<compile_context>
chip_gen: v7x
topology: tpu7x:2x2x1
jax: 0.10.0
libtpu: 0.0.40
codegen_flags: <defaults>
</compile_context>

<pallas_src>
import numpy as np
import jax
import jax.numpy as jnp
from jax.experimental import pallas as pl
from jax.experimental.pallas import tpu as pltpu

POOL_K = 5
POOL_S = 3
OUT_HW = 4                        # (14 - 5) // 3 + 1  -> 4x4 pooled map
CONV_OUT = 128
FC1_IN = CONV_OUT * OUT_HW * OUT_HW   # 2048
FC1_OUT = 1024
BN_EPS = 1e-5
LANE = 128


def fused_aux_kernel(x_ref, wc_ref, bc_ref, w1_hbm, b1_ref, w2_ref, b2_ref,
                     o_ref, hb_ref, pooled_ref, y_ref, feat_ref, w1_vmem, w1_sem):
    """Fused InceptionAux forward.

    x_ref:   (N, 14, 14, C_in)  NHWC, f32, VMEM
    wc_ref:  (C_in, 128)  bf16   BN-folded 1x1 conv weight
    bc_ref:  (1, 128)     f32    BN-folded conv bias
    w1_hbm:  (2048, 1024) bf16   fc1 weight, left in HBM (manual DMA)
    b1_ref:  (1, 1024)    f32
    w2_ref:  (1024, P)    bf16   fc2 weight padded to P = 128 lanes
    b2_ref:  (1, P)       f32
    o_ref:   (N, P)       f32    single lane-dense output store
    """
    n = x_ref.shape[0]
    inv_area = 1.0 / float(POOL_K * POOL_K)

    # Kick off the dominant fc1-weight DMA immediately; it overlaps the whole
    # pool/conv stage and we only wait right before the fc1 matmul.
    w1_copy = pltpu.make_async_copy(w1_hbm, w1_vmem, w1_sem)
    w1_copy.start()

    # ---- Separable AvgPool2d(5, 3): 14x14 -> 4x4 ---------------------------
    # Horizontal pass: for each output column, sum its 5 input columns.
    for ow in range(OUT_HW):
        base = ow * POOL_S
        band = x_ref[:, :, base, :]
        for j in range(1, POOL_K):
            band = band + x_ref[:, :, base + j, :]
        hb_ref[pl.ds(ow * n, n), :, :] = band                  # rows: ow*n + b

    # Vertical pass on the stacked bands: sum 5 rows per output row.
    for oh in range(OUT_HW):
        base = oh * POOL_S
        acc = hb_ref[:, base, :]
        for i in range(1, POOL_K):
            acc = acc + hb_ref[:, base + i, :]
        # acc rows are (ow, b); pooled rows are s*n + b with s = oh*4 + ow.
        pooled_ref[pl.ds(oh * OUT_HW * n, OUT_HW * n), :] = acc * inv_area

    # ---- 1x1 conv (+folded BN) + ReLU: ONE (16n, C_in)x(C_in, 128) matmul --
    y = jnp.dot(pooled_ref[...].astype(jnp.bfloat16), wc_ref[...],
                preferred_element_type=jnp.float32)
    y_ref[...] = jnp.maximum(y + bc_ref[...], 0.0)             # (16n, 128)

    # ---- Assemble the lane-dense (n, 2048) fc1 LHS (spatial-major order). --
    # fc1_w rows were permuted at param-prep to match feat[b, s*128 + k].
    for s in range(OUT_HW * OUT_HW):
        feat_ref[:, pl.ds(s * CONV_OUT, CONV_OUT)] = y_ref[pl.ds(s * n, n), :]

    # ---- fc1 + ReLU + (dropout: eval identity) + fc2 -----------------------
    w1_copy.wait()
    h = jnp.dot(feat_ref[...].astype(jnp.bfloat16), w1_vmem[...],
                preferred_element_type=jnp.float32) + b1_ref[...]
    h = jnp.maximum(h, 0.0)
    # TODO(synk): training-mode Dropout(p=0.4) would mask with pltpu.prng_seed /
    # pltpu.prng_random_bits; eval mode is the identity.
    o_ref[...] = jnp.dot(h.astype(jnp.bfloat16), w2_ref[...],
                         preferred_element_type=jnp.float32) + b2_ref[...]


def prepare_params(p):
    """One-time transform of torch-layout params into kernel-ready params.

    Folds conv bias + eval BatchNorm into (conv_w', conv_b'), permutes fc1
    rows from torch's (c, oh, ow) flatten order to the kernel's spatial-major
    (s, c) order, pads fc2 out to a full 128-lane tile, and casts matmul
    weights to bfloat16 (f32 accumulation in-kernel).
    """
    scale = p["bn_gamma"] * jax.lax.rsqrt(p["bn_var"] + BN_EPS)          # (1, 128)
    conv_w = (p["conv_w"] * scale).astype(jnp.bfloat16)                  # (C_in, 128)
    conv_b = (p["conv_b"] - p["bn_mean"]) * scale + p["bn_beta"]         # (1, 128) f32

    # torch feat index = k*16 + s; kernel feat index = s*128 + k.
    fc1_w = (p["fc1_w"].reshape(CONV_OUT, OUT_HW * OUT_HW, FC1_OUT)
             .transpose(1, 0, 2).reshape(FC1_IN, FC1_OUT).astype(jnp.bfloat16))

    num_classes = p["fc2_w"].shape[1]
    padded = ((num_classes + LANE - 1) // LANE) * LANE
    fc2_w = jnp.zeros((FC1_OUT, padded), jnp.bfloat16).at[:, :num_classes].set(
        p["fc2_w"].astype(jnp.bfloat16))
    fc2_b = jnp.zeros((1, padded), jnp.float32).at[:, :num_classes].set(p["fc2_b"])

    kp = dict(conv_w=conv_w, conv_b=conv_b, fc1_w=fc1_w, fc1_b=p["fc1_b"],
              fc2_w=fc2_w, fc2_b=fc2_b)
    return kp, num_classes


def inception_aux_forward(x, kp, num_classes):
    n, c_in, h_in, _ = x.shape
    padded = kp["fc2_w"].shape[1]

    # TODO(synk): for real GoogLeNet channel counts (C_in=512/528) fold this
    # NCHW->NHWC transpose into the kernel's read pattern instead of an extra
    # XLA pass over x; at C_in=4 it is negligible.
    x_nhwc = jnp.transpose(x, (0, 2, 3, 1))

    vmem = pl.BlockSpec(memory_space=pltpu.MemorySpace.VMEM)
    out = pl.pallas_call(
        fused_aux_kernel,
        out_shape=jax.ShapeDtypeStruct((n, padded), jnp.float32),
        in_specs=[vmem, vmem, vmem,
                  pl.BlockSpec(memory_space=pl.ANY),   # fc1_w stays in HBM; manual DMA
                  vmem, vmem, vmem],
        out_specs=vmem,
        scratch_shapes=[
            pltpu.VMEM((OUT_HW * n, h_in, c_in), jnp.float32),          # hb_ref
            pltpu.VMEM((OUT_HW * OUT_HW * n, c_in), jnp.float32),       # pooled_ref
            pltpu.VMEM((OUT_HW * OUT_HW * n, CONV_OUT), jnp.float32),   # y_ref
            pltpu.VMEM((n, FC1_IN), jnp.float32),                       # feat_ref
            pltpu.VMEM((FC1_IN, FC1_OUT), jnp.bfloat16),                # fc1_w staging
            pltpu.SemaphoreType.DMA,                                    # fc1_w DMA sem
        ],
    )(x_nhwc, kp["conv_w"], kp["conv_b"], kp["fc1_w"], kp["fc1_b"],
      kp["fc2_w"], kp["fc2_b"])
    return out[:, :num_classes]


def init_params(key, in_channels, num_classes):
    """Torch-layout parameters (what a PyTorch checkpoint would provide)."""
    ks = jax.random.split(key, 10)
    p = {}
    # 1x1 conv: torch weight is (128, C_in, 1, 1); stored here as (C_in, 128).
    p["conv_w"] = jax.random.normal(ks[0], (in_channels, CONV_OUT), jnp.float32) * 0.2
    p["conv_b"] = jax.random.normal(ks[1], (1, CONV_OUT), jnp.float32) * 0.1
    p["bn_gamma"] = 1.0 + 0.1 * jax.random.normal(ks[2], (1, CONV_OUT), jnp.float32)
    p["bn_beta"] = 0.1 * jax.random.normal(ks[3], (1, CONV_OUT), jnp.float32)
    p["bn_mean"] = 0.05 * jax.random.normal(ks[4], (1, CONV_OUT), jnp.float32)
    p["bn_var"] = 0.9 + 0.1 * jnp.abs(jax.random.normal(ks[5], (1, CONV_OUT), jnp.float32))
    # fc1: torch (1024, 2048) -> stored transposed (2048, 1024)
    p["fc1_w"] = jax.random.normal(ks[6], (FC1_IN, FC1_OUT), jnp.float32) / np.sqrt(FC1_IN)
    p["fc1_b"] = 0.1 * jax.random.normal(ks[7], (1, FC1_OUT), jnp.float32)
    # fc2: torch (num_classes, 1024) -> stored transposed (1024, num_classes)
    p["fc2_w"] = jax.random.normal(ks[8], (FC1_OUT, num_classes), jnp.float32) / np.sqrt(FC1_OUT)
    p["fc2_b"] = 0.1 * jax.random.normal(ks[9], (1, num_classes), jnp.float32)
    return p


def reference_forward(x, p):
    """Pure-JAX f32 reference matching PyTorch eval-mode semantics."""
    pooled = jax.lax.reduce_window(x, 0.0, jax.lax.add,
                                   (1, 1, POOL_K, POOL_K),
                                   (1, 1, POOL_S, POOL_S), "VALID") / float(POOL_K * POOL_K)
    y = jnp.einsum("nchw,co->nohw", pooled, p["conv_w"]) + p["conv_b"][0][None, :, None, None]
    scale = p["bn_gamma"][0] * jax.lax.rsqrt(p["bn_var"][0] + BN_EPS)
    shift = p["bn_beta"][0] - p["bn_mean"][0] * scale
    y = y * scale[None, :, None, None] + shift[None, :, None, None]
    y = jnp.maximum(y, 0.0)
    f = y.reshape(y.shape[0], -1)                 # torch flatten order (c, oh, ow)
    h = jnp.maximum(f @ p["fc1_w"] + p["fc1_b"], 0.0)
    return h @ p["fc2_w"] + p["fc2_b"]


if __name__ == "__main__":
    key = jax.random.PRNGKey(0)
    kx, kparam = jax.random.split(key)
    # H = W = 14 is implied by the module: AvgPool(5,3) -> 4x4, 128*4*4 = 2048 = fc1.in_features.
    N, C_in, H, W = 2, 4, 14, 14
    num_classes = 10

    x = jax.random.normal(kx, (N, C_in, H, W), jnp.float32)
    params = init_params(kparam, C_in, num_classes)
    kparams, nc = prepare_params(params)

    out = inception_aux_forward(x, kparams, nc)
    out = jax.block_until_ready(out)
    assert out.shape == (N, num_classes)

    ref = reference_forward(x, params)
    np.testing.assert_allclose(np.asarray(out), np.asarray(ref), rtol=5e-2, atol=5e-2)

    print("KERNEL_OK")
</pallas_src>

<mosaic_0001>
module attributes {stable_mosaic.version = 11 : i64} {
  func.func @fused_aux_kernel(%arg0: memref<2x14x14x4xf32, #tpu.memory_space<vmem>>, %arg1: memref<4x128xbf16, #tpu.memory_space<vmem>>, %arg2: memref<1x128xf32, #tpu.memory_space<vmem>>, %arg3: memref<2048x1024xbf16, #tpu.memory_space<any>>, %arg4: memref<1x1024xf32, #tpu.memory_space<vmem>>, %arg5: memref<1024x128xbf16, #tpu.memory_space<vmem>>, %arg6: memref<1x128xf32, #tpu.memory_space<vmem>>, %arg7: memref<2x128xf32, #tpu.memory_space<vmem>>, %arg8: memref<8x14x4xf32, #tpu.memory_space<vmem>>, %arg9: memref<32x4xf32, #tpu.memory_space<vmem>>, %arg10: memref<32x128xf32, #tpu.memory_space<vmem>>, %arg11: memref<2x2048xf32, #tpu.memory_space<vmem>>, %arg12: memref<2048x1024xbf16, #tpu.memory_space<vmem>>, %arg13: memref<!tpu.dma_semaphore, #tpu.memory_space<semaphore_mem>>) attributes {dimension_semantics = [], scalar_prefetch = 0 : i64, scratch_operands = 6 : i64, tpu.core_type = #tpu.core_type<tc>} {
    tpu.enqueue_dma source(%arg3 : memref<2048x1024xbf16, #tpu.memory_space<any>>) target(%arg12 : memref<2048x1024xbf16, #tpu.memory_space<vmem>>) target_semaphore(%arg13 : memref<!tpu.dma_semaphore, #tpu.memory_space<semaphore_mem>>)
    %c0 = arith.constant 0 : index
    %c0_0 = arith.constant 0 : index
    %c0_1 = arith.constant 0 : index
    %c0_2 = arith.constant 0 : index
    %0 = vector.load %arg0[%c0, %c0_0, %c0_1, %c0_2] : memref<2x14x14x4xf32, #tpu.memory_space<vmem>>, vector<2x14x1x4xf32>
    %1 = vector.shape_cast %0 : vector<2x14x1x4xf32> to vector<2x14x4xf32>
    %c0_3 = arith.constant 0 : index
    %c0_4 = arith.constant 0 : index
    %c1 = arith.constant 1 : index
    %c0_5 = arith.constant 0 : index
    %2 = vector.load %arg0[%c0_3, %c0_4, %c1, %c0_5] : memref<2x14x14x4xf32, #tpu.memory_space<vmem>>, vector<2x14x1x4xf32>
    %3 = vector.shape_cast %2 : vector<2x14x1x4xf32> to vector<2x14x4xf32>
    %4 = arith.addf %1, %3 : vector<2x14x4xf32>
    %c0_6 = arith.constant 0 : index
    %c0_7 = arith.constant 0 : index
    %c2 = arith.constant 2 : index
    %c0_8 = arith.constant 0 : index
    %5 = vector.load %arg0[%c0_6, %c0_7, %c2, %c0_8] : memref<2x14x14x4xf32, #tpu.memory_space<vmem>>, vector<2x14x1x4xf32>
    %6 = vector.shape_cast %5 : vector<2x14x1x4xf32> to vector<2x14x4xf32>
    %7 = arith.addf %4, %6 : vector<2x14x4xf32>
    %c0_9 = arith.constant 0 : index
    %c0_10 = arith.constant 0 : index
    %c3 = arith.constant 3 : index
    %c0_11 = arith.constant 0 : index
    %8 = vector.load %arg0[%c0_9, %c0_10, %c3, %c0_11] : memref<2x14x14x4xf32, #tpu.memory_space<vmem>>, vector<2x14x1x4xf32>
    %9 = vector.shape_cast %8 : vector<2x14x1x4xf32> to vector<2x14x4xf32>
    %10 = arith.addf %7, %9 : vector<2x14x4xf32>
    %c0_12 = arith.constant 0 : index
    %c0_13 = arith.constant 0 : index
    %c4 = arith.constant 4 : index
    %c0_14 = arith.constant 0 : index
    %11 = vector.load %arg0[%c0_12, %c0_13, %c4, %c0_14] : memref<2x14x14x4xf32, #tpu.memory_space<vmem>>, vector<2x14x1x4xf32>
    %12 = vector.shape_cast %11 : vector<2x14x1x4xf32> to vector<2x14x4xf32>
    %13 = arith.addf %10, %12 : vector<2x14x4xf32>
    %c0_15 = arith.constant 0 : index
    %c0_16 = arith.constant 0 : index
    %c0_17 = arith.constant 0 : index
    %14 = vector.load %arg8[%c0_15, %c0_16, %c0_17] : memref<8x14x4xf32, #tpu.memory_space<vmem>>, vector<2x14x4xf32>
    tpu.vector_store %arg8[%c0_15, %c0_16, %c0_17], %13 {strides = array<i32>} : memref<8x14x4xf32, #tpu.memory_space<vmem>>, vector<2x14x4xf32>,
    %c0_18 = arith.constant 0 : index
    %c0_19 = arith.constant 0 : index
    %c3_20 = arith.constant 3 : index
    %c0_21 = arith.constant 0 : index
    %15 = vector.load %arg0[%c0_18, %c0_19, %c3_20, %c0_21] : memref<2x14x14x4xf32, #tpu.memory_space<vmem>>, vector<2x14x1x4xf32>
    %16 = vector.shape_cast %15 : vector<2x14x1x4xf32> to vector<2x14x4xf32>
    %c0_22 = arith.constant 0 : index
    %c0_23 = arith.constant 0 : index
    %c4_24 = arith.constant 4 : index
    %c0_25 = arith.constant 0 : index
    %17 = vector.load %arg0[%c0_22, %c0_23, %c4_24, %c0_25] : memref<2x14x14x4xf32, #tpu.memory_space<vmem>>, vector<2x14x1x4xf32>
    %18 = vector.shape_cast %17 : vector<2x14x1x4xf32> to vector<2x14x4xf32>
    %19 = arith.addf %16, %18 : vector<2x14x4xf32>
    %c0_26 = arith.constant 0 : index
    %c0_27 = arith.constant 0 : index
    %c5 = arith.constant 5 : index
    %c0_28 = arith.constant 0 : index
    %20 = vector.load %arg0[%c0_26, %c0_27, %c5, %c0_28] : memref<2x14x14x4xf32, #tpu.memory_space<vmem>>, vector<2x14x1x4xf32>
    %21 = vector.shape_cast %20 : vector<2x14x1x4xf32> to vector<2x14x4xf32>
    %22 = arith.addf %19, %21 : vector<2x14x4xf32>
    %c0_29 = arith.constant 0 : index
    %c0_30 = arith.constant 0 : index
    %c6 = arith.constant 6 : index
    %c0_31 = arith.constant 0 : index
    %23 = vector.load %arg0[%c0_29, %c0_30, %c6, %c0_31] : memref<2x14x14x4xf32, #tpu.memory_space<vmem>>, vector<2x14x1x4xf32>
    %24 = vector.shape_cast %23 : vector<2x14x1x4xf32> to vector<2x14x4xf32>
    %25 = arith.addf %22, %24 : vector<2x14x4xf32>
    %c0_32 = arith.constant 0 : index
    %c0_33 = arith.constant 0 : index
    %c7 = arith.constant 7 : index
    %c0_34 = arith.constant 0 : index
    %26 = vector.load %arg0[%c0_32, %c0_33, %c7, %c0_34] : memref<2x14x14x4xf32, #tpu.memory_space<vmem>>, vector<2x14x1x4xf32>
    %27 = vector.shape_cast %26 : vector<2x14x1x4xf32> to vector<2x14x4xf32>
    %28 = arith.addf %25, %27 : vector<2x14x4xf32>
    %c2_35 = arith.constant 2 : index
    %c0_36 = arith.constant 0 : index
    %c0_37 = arith.constant 0 : index
    %29 = vector.load %arg8[%c2_35, %c0_36, %c0_37] : memref<8x14x4xf32, #tpu.memory_space<vmem>>, vector<2x14x4xf32>
    tpu.vector_store %arg8[%c2_35, %c0_36, %c0_37], %28 {strides = array<i32>} : memref<8x14x4xf32, #tpu.memory_space<vmem>>, vector<2x14x4xf32>,
    %c0_38 = arith.constant 0 : index
    %c0_39 = arith.constant 0 : index
    %c6_40 = arith.constant 6 : index
    %c0_41 = arith.constant 0 : index
    %30 = vector.load %arg0[%c0_38, %c0_39, %c6_40, %c0_41] : memref<2x14x14x4xf32, #tpu.memory_space<vmem>>, vector<2x14x1x4xf32>
    %31 = vector.shape_cast %30 : vector<2x14x1x4xf32> to vector<2x14x4xf32>
    %c0_42 = arith.constant 0 : index
    %c0_43 = arith.constant 0 : index
    %c7_44 = arith.constant 7 : index
    %c0_45 = arith.constant 0 : index
    %32 = vector.load %arg0[%c0_42, %c0_43, %c7_44, %c0_45] : memref<2x14x14x4xf32, #tpu.memory_space<vmem>>, vector<2x14x1x4xf32>
    %33 = vector.shape_cast %32 : vector<2x14x1x4xf32> to vector<2x14x4xf32>
    %34 = arith.addf %31, %33 : vector<2x14x4xf32>
    %c0_46 = arith.constant 0 : index
    %c0_47 = arith.constant 0 : index
    %c8 = arith.constant 8 : index
    %c0_48 = arith.constant 0 : index
    %35 = vector.load %arg0[%c0_46, %c0_47, %c8, %c0_48] : memref<2x14x14x4xf32, #tpu.memory_space<vmem>>, vector<2x14x1x4xf32>
    %36 = vector.shape_cast %35 : vector<2x14x1x4xf32> to vector<2x14x4xf32>
    %37 = arith.addf %34, %36 : vector<2x14x4xf32>
    %c0_49 = arith.constant 0 : index
    %c0_50 = arith.constant 0 : index
    %c9 = arith.constant 9 : index
    %c0_51 = arith.constant 0 : index
    %38 = vector.load %arg0[%c0_49, %c0_50, %c9, %c0_51] : memref<2x14x14x4xf32, #tpu.memory_space<vmem>>, vector<2x14x1x4xf32>
    %39 = vector.shape_cast %38 : vector<2x14x1x4xf32> to vector<2x14x4xf32>
    %40 = arith.addf %37, %39 : vector<2x14x4xf32>
    %c0_52 = arith.constant 0 : index
    %c0_53 = arith.constant 0 : index
    %c10 = arith.constant 10 : index
    %c0_54 = arith.constant 0 : index
    %41 = vector.load %arg0[%c0_52, %c0_53, %c10, %c0_54] : memref<2x14x14x4xf32, #tpu.memory_space<vmem>>, vector<2x14x1x4xf32>
    %42 = vector.shape_cast %41 : vector<2x14x1x4xf32> to vector<2x14x4xf32>
    %43 = arith.addf %40, %42 : vector<2x14x4xf32>
    %c4_55 = arith.constant 4 : index
    %c0_56 = arith.constant 0 : index
    %c0_57 = arith.constant 0 : index
    %44 = vector.load %arg8[%c4_55, %c0_56, %c0_57] : memref<8x14x4xf32, #tpu.memory_space<vmem>>, vector<2x14x4xf32>
    tpu.vector_store %arg8[%c4_55, %c0_56, %c0_57], %43 {strides = array<i32>} : memref<8x14x4xf32, #tpu.memory_space<vmem>>, vector<2x14x4xf32>,
    %c0_58 = arith.constant 0 : index
    %c0_59 = arith.constant 0 : index
    %c9_60 = arith.constant 9 : index
    %c0_61 = arith.constant 0 : index
    %45 = vector.load %arg0[%c0_58, %c0_59, %c9_60, %c0_61] : memref<2x14x14x4xf32, #tpu.memory_space<vmem>>, vector<2x14x1x4xf32>
    %46 = vector.shape_cast %45 : vector<2x14x1x4xf32> to vector<2x14x4xf32>
    %c0_62 = arith.constant 0 : index
    %c0_63 = arith.constant 0 : index
    %c10_64 = arith.constant 10 : index
    %c0_65 = arith.constant 0 : index
    %47 = vector.load %arg0[%c0_62, %c0_63, %c10_64, %c0_65] : memref<2x14x14x4xf32, #tpu.memory_space<vmem>>, vector<2x14x1x4xf32>
    %48 = vector.shape_cast %47 : vector<2x14x1x4xf32> to vector<2x14x4xf32>
    %49 = arith.addf %46, %48 : vector<2x14x4xf32>
    %c0_66 = arith.constant 0 : index
    %c0_67 = arith.constant 0 : index
    %c11 = arith.constant 11 : index
    %c0_68 = arith.constant 0 : index
    %50 = vector.load %arg0[%c0_66, %c0_67, %c11, %c0_68] : memref<2x14x14x4xf32, #tpu.memory_space<vmem>>, vector<2x14x1x4xf32>
    %51 = vector.shape_cast %50 : vector<2x14x1x4xf32> to vector<2x14x4xf32>
    %52 = arith.addf %49, %51 : vector<2x14x4xf32>
    %c0_69 = arith.constant 0 : index
    %c0_70 = arith.constant 0 : index
    %c12 = arith.constant 12 : index
    %c0_71 = arith.constant 0 : index
    %53 = vector.load %arg0[%c0_69, %c0_70, %c12, %c0_71] : memref<2x14x14x4xf32, #tpu.memory_space<vmem>>, vector<2x14x1x4xf32>
    %54 = vector.shape_cast %53 : vector<2x14x1x4xf32> to vector<2x14x4xf32>
    %55 = arith.addf %52, %54 : vector<2x14x4xf32>
    %c0_72 = arith.constant 0 : index
    %c0_73 = arith.constant 0 : index
    %c13 = arith.constant 13 : index
    %c0_74 = arith.constant 0 : index
    %56 = vector.load %arg0[%c0_72, %c0_73, %c13, %c0_74] : memref<2x14x14x4xf32, #tpu.memory_space<vmem>>, vector<2x14x1x4xf32>
    %57 = vector.shape_cast %56 : vector<2x14x1x4xf32> to vector<2x14x4xf32>
    %58 = arith.addf %55, %57 : vector<2x14x4xf32>
    %c6_75 = arith.constant 6 : index
    %c0_76 = arith.constant 0 : index
    %c0_77 = arith.constant 0 : index
    %59 = vector.load %arg8[%c6_75, %c0_76, %c0_77] : memref<8x14x4xf32, #tpu.memory_space<vmem>>, vector<2x14x4xf32>
    tpu.vector_store %arg8[%c6_75, %c0_76, %c0_77], %58 {strides = array<i32>} : memref<8x14x4xf32, #tpu.memory_space<vmem>>, vector<2x14x4xf32>,
    %c0_78 = arith.constant 0 : index
    %c0_79 = arith.constant 0 : index
    %c0_80 = arith.constant 0 : index
    %60 = vector.load %arg8[%c0_78, %c0_79, %c0_80] : memref<8x14x4xf32, #tpu.memory_space<vmem>>, vector<8x1x4xf32>
    %61 = vector.shape_cast %60 : vector<8x1x4xf32> to vector<8x4xf32>
    %c0_81 = arith.constant 0 : index
    %c1_82 = arith.constant 1 : index
    %c0_83 = arith.constant 0 : index
    %62 = vector.load %arg8[%c0_81, %c1_82, %c0_83] : memref<8x14x4xf32, #tpu.memory_space<vmem>>, vector<8x1x4xf32>
    %63 = vector.shape_cast %62 : vector<8x1x4xf32> to vector<8x4xf32>
    %64 = arith.addf %61, %63 : vector<8x4xf32>
    %c0_84 = arith.constant 0 : index
    %c2_85 = arith.constant 2 : index
    %c0_86 = arith.constant 0 : index
    %65 = vector.load %arg8[%c0_84, %c2_85, %c0_86] : memref<8x14x4xf32, #tpu.memory_space<vmem>>, vector<8x1x4xf32>
    %66 = vector.shape_cast %65 : vector<8x1x4xf32> to vector<8x4xf32>
    %67 = arith.addf %64, %66 : vector<8x4xf32>
    %c0_87 = arith.constant 0 : index
    %c3_88 = arith.constant 3 : index
    %c0_89 = arith.constant 0 : index
    %68 = vector.load %arg8[%c0_87, %c3_88, %c0_89] : memref<8x14x4xf32, #tpu.memory_space<vmem>>, vector<8x1x4xf32>
    %69 = vector.shape_cast %68 : vector<8x1x4xf32> to vector<8x4xf32>
    %70 = arith.addf %67, %69 : vector<8x4xf32>
    %c0_90 = arith.constant 0 : index
    %c4_91 = arith.constant 4 : index
    %c0_92 = arith.constant 0 : index
    %71 = vector.load %arg8[%c0_90, %c4_91, %c0_92] : memref<8x14x4xf32, #tpu.memory_space<vmem>>, vector<8x1x4xf32>
    %72 = vector.shape_cast %71 : vector<8x1x4xf32> to vector<8x4xf32>
    %73 = arith.addf %70, %72 : vector<8x4xf32>
    %cst = arith.constant 4.000000e-02 : f32
    %74 = vector.broadcast %cst : f32 to vector<8x4xf32>
    %75 = arith.mulf %73, %74 : vector<8x4xf32>
    %c0_93 = arith.constant 0 : index
    %c0_94 = arith.constant 0 : index
    %76 = vector.load %arg9[%c0_93, %c0_94] : memref<32x4xf32, #tpu.memory_space<vmem>>, vector<8x4xf32>
    tpu.vector_store %arg9[%c0_93, %c0_94], %75 {strides = array<i32>} : memref<32x4xf32, #tpu.memory_space<vmem>>, vector<8x4xf32>,
    %c0_95 = arith.constant 0 : index
    %c3_96 = arith.constant 3 : index
    %c0_97 = arith.constant 0 : index
    %77 = vector.load %arg8[%c0_95, %c3_96, %c0_97] : memref<8x14x4xf32, #tpu.memory_space<vmem>>, vector<8x1x4xf32>
    %78 = vector.shape_cast %77 : vector<8x1x4xf32> to vector<8x4xf32>
    %c0_98 = arith.constant 0 : index
    %c4_99 = arith.constant 4 : index
    %c0_100 = arith.constant 0 : index
    %79 = vector.load %arg8[%c0_98, %c4_99, %c0_100] : memref<8x14x4xf32, #tpu.memory_space<vmem>>, vector<8x1x4xf32>
    %80 = vector.shape_cast %79 : vector<8x1x4xf32> to vector<8x4xf32>
    %81 = arith.addf %78, %80 : vector<8x4xf32>
    %c0_101 = arith.constant 0 : index
    %c5_102 = arith.constant 5 : index
    %c0_103 = arith.constant 0 : index
    %82 = vector.load %arg8[%c0_101, %c5_102, %c0_103] : memref<8x14x4xf32, #tpu.memory_space<vmem>>, vector<8x1x4xf32>
    %83 = vector.shape_cast %82 : vector<8x1x4xf32> to vector<8x4xf32>
    %84 = arith.addf %81, %83 : vector<8x4xf32>
    %c0_104 = arith.constant 0 : index
    %c6_105 = arith.constant 6 : index
    %c0_106 = arith.constant 0 : index
    %85 = vector.load %arg8[%c0_104, %c6_105, %c0_106] : memref<8x14x4xf32, #tpu.memory_space<vmem>>, vector<8x1x4xf32>
    %86 = vector.shape_cast %85 : vector<8x1x4xf32> to vector<8x4xf32>
    %87 = arith.addf %84, %86 : vector<8x4xf32>
    %c0_107 = arith.constant 0 : index
    %c7_108 = arith.constant 7 : index
    %c0_109 = arith.constant 0 : index
    %88 = vector.load %arg8[%c0_107, %c7_108, %c0_109] : memref<8x14x4xf32, #tpu.memory_space<vmem>>, vector<8x1x4xf32>
    %89 = vector.shape_cast %88 : vector<8x1x4xf32> to vector<8x4xf32>
    %90 = arith.addf %87, %89 : vector<8x4xf32>
    %cst_110 = arith.constant 4.000000e-02 : f32
    %91 = vector.broadcast %cst_110 : f32 to vector<8x4xf32>
    %92 = arith.mulf %90, %91 : vector<8x4xf32>
    %c8_111 = arith.constant 8 : index
    %c0_112 = arith.constant 0 : index
    %93 = vector.load %arg9[%c8_111, %c0_112] : memref<32x4xf32, #tpu.memory_space<vmem>>, vector<8x4xf32>
    tpu.vector_store %arg9[%c8_111, %c0_112], %92 {strides = array<i32>} : memref<32x4xf32, #tpu.memory_space<vmem>>, vector<8x4xf32>,
    %c0_113 = arith.constant 0 : index
    %c6_114 = arith.constant 6 : index
    %c0_115 = arith.constant 0 : index
    %94 = vector.load %arg8[%c0_113, %c6_114, %c0_115] : memref<8x14x4xf32, #tpu.memory_space<vmem>>, vector<8x1x4xf32>
    %95 = vector.shape_cast %94 : vector<8x1x4xf32> to vector<8x4xf32>
    %c0_116 = arith.constant 0 : index
    %c7_117 = arith.constant 7 : index
    %c0_118 = arith.constant 0 : index
    %96 = vector.load %arg8[%c0_116, %c7_117, %c0_118] : memref<8x14x4xf32, #tpu.memory_space<vmem>>, vector<8x1x4xf32>
    %97 = vector.shape_cast %96 : vector<8x1x4xf32> to vector<8x4xf32>
    %98 = arith.addf %95, %97 : vector<8x4xf32>
    %c0_119 = arith.constant 0 : index
    %c8_120 = arith.constant 8 : index
    %c0_121 = arith.constant 0 : index
    %99 = vector.load %arg8[%c0_119, %c8_120, %c0_121] : memref<8x14x4xf32, #tpu.memory_space<vmem>>, vector<8x1x4xf32>
    %100 = vector.shape_cast %99 : vector<8x1x4xf32> to vector<8x4xf32>
    %101 = arith.addf %98, %100 : vector<8x4xf32>
    %c0_122 = arith.constant 0 : index
    %c9_123 = arith.constant 9 : index
    %c0_124 = arith.constant 0 : index
    %102 = vector.load %arg8[%c0_122, %c9_123, %c0_124] : memref<8x14x4xf32, #tpu.memory_space<vmem>>, vector<8x1x4xf32>
    %103 = vector.shape_cast %102 : vector<8x1x4xf32> to vector<8x4xf32>
    %104 = arith.addf %101, %103 : vector<8x4xf32>
    %c0_125 = arith.constant 0 : index
    %c10_126 = arith.constant 10 : index
    %c0_127 = arith.constant 0 : index
    %105 = vector.load %arg8[%c0_125, %c10_126, %c0_127] : memref<8x14x4xf32, #tpu.memory_space<vmem>>, vector<8x1x4xf32>
    %106 = vector.shape_cast %105 : vector<8x1x4xf32> to vector<8x4xf32>
    %107 = arith.addf %104, %106 : vector<8x4xf32>
    %cst_128 = arith.constant 4.000000e-02 : f32
    %108 = vector.broadcast %cst_128 : f32 to vector<8x4xf32>
    %109 = arith.mulf %107, %108 : vector<8x4xf32>
    %c16 = arith.constant 16 : index
    %c0_129 = arith.constant 0 : index
    %110 = vector.load %arg9[%c16, %c0_129] : memref<32x4xf32, #tpu.memory_space<vmem>>, vector<8x4xf32>
    tpu.vector_store %arg9[%c16, %c0_129], %109 {strides = array<i32>} : memref<32x4xf32, #tpu.memory_space<vmem>>, vector<8x4xf32>,
    %c0_130 = arith.constant 0 : index
    %c9_131 = arith.constant 9 : index
    %c0_132 = arith.constant 0 : index
    %111 = vector.load %arg8[%c0_130, %c9_131, %c0_132] : memref<8x14x4xf32, #tpu.memory_space<vmem>>, vector<8x1x4xf32>
    %112 = vector.shape_cast %111 : vector<8x1x4xf32> to vector<8x4xf32>
    %c0_133 = arith.constant 0 : index
    %c10_134 = arith.constant 10 : index
    %c0_135 = arith.constant 0 : index
    %113 = vector.load %arg8[%c0_133, %c10_134, %c0_135] : memref<8x14x4xf32, #tpu.memory_space<vmem>>, vector<8x1x4xf32>
    %114 = vector.shape_cast %113 : vector<8x1x4xf32> to vector<8x4xf32>
    %115 = arith.addf %112, %114 : vector<8x4xf32>
    %c0_136 = arith.constant 0 : index
    %c11_137 = arith.constant 11 : index
    %c0_138 = arith.constant 0 : index
    %116 = vector.load %arg8[%c0_136, %c11_137, %c0_138] : memref<8x14x4xf32, #tpu.memory_space<vmem>>, vector<8x1x4xf32>
    %117 = vector.shape_cast %116 : vector<8x1x4xf32> to vector<8x4xf32>
    %118 = arith.addf %115, %117 : vector<8x4xf32>
    %c0_139 = arith.constant 0 : index
    %c12_140 = arith.constant 12 : index
    %c0_141 = arith.constant 0 : index
    %119 = vector.load %arg8[%c0_139, %c12_140, %c0_141] : memref<8x14x4xf32, #tpu.memory_space<vmem>>, vector<8x1x4xf32>
    %120 = vector.shape_cast %119 : vector<8x1x4xf32> to vector<8x4xf32>
    %121 = arith.addf %118, %120 : vector<8x4xf32>
    %c0_142 = arith.constant 0 : index
    %c13_143 = arith.constant 13 : index
    %c0_144 = arith.constant 0 : index
    %122 = vector.load %arg8[%c0_142, %c13_143, %c0_144] : memref<8x14x4xf32, #tpu.memory_space<vmem>>, vector<8x1x4xf32>
    %123 = vector.shape_cast %122 : vector<8x1x4xf32> to vector<8x4xf32>
    %124 = arith.addf %121, %123 : vector<8x4xf32>
    %cst_145 = arith.constant 4.000000e-02 : f32
    %125 = vector.broadcast %cst_145 : f32 to vector<8x4xf32>
    %126 = arith.mulf %124, %125 : vector<8x4xf32>
    %c24 = arith.constant 24 : index
    %c0_146 = arith.constant 0 : index
    %127 = vector.load %arg9[%c24, %c0_146] : memref<32x4xf32, #tpu.memory_space<vmem>>, vector<8x4xf32>
    tpu.vector_store %arg9[%c24, %c0_146], %126 {strides = array<i32>} : memref<32x4xf32, #tpu.memory_space<vmem>>, vector<8x4xf32>,
    %c0_147 = arith.constant 0 : index
    %c0_148 = arith.constant 0 : index
    %128 = vector.load %arg9[%c0_147, %c0_148] : memref<32x4xf32, #tpu.memory_space<vmem>>, vector<32x4xf32>
    %129 = arith.truncf %128 : vector<32x4xf32> to vector<32x4xbf16>
    %c0_149 = arith.constant 0 : index
    %c0_150 = arith.constant 0 : index
    %130 = vector.load %arg1[%c0_149, %c0_150] : memref<4x128xbf16, #tpu.memory_space<vmem>>, vector<4x128xbf16>
    %cst_151 = arith.constant dense<0.000000e+00> : vector<32x128xf32>
    %131 = tpu.matmul %129, %130, %cst_151 {dimension_numbers = #tpu.dot_dimension_numbers<[1], [0], [0], [1], [0, 0, 1, 1], [], []>} : vector<32x4xbf16>, vector<4x128xbf16>, vector<32x128xf32> -> vector<32x128xf32>
    %c0_152 = arith.constant 0 : index
    %c0_153 = arith.constant 0 : index
    %132 = vector.load %arg2[%c0_152, %c0_153] : memref<1x128xf32, #tpu.memory_space<vmem>>, vector<1x128xf32>
    %133 = vector.broadcast %132 : vector<1x128xf32> to vector<32x128xf32>
    %134 = arith.addf %131, %133 : vector<32x128xf32>
    %cst_154 = arith.constant 0.000000e+00 : f32
    %135 = vector.broadcast %cst_154 : f32 to vector<32x128xf32>
    %136 = arith.maximumf %134, %135 : vector<32x128xf32>
    %c0_155 = arith.constant 0 : index
    %c0_156 = arith.constant 0 : index
    %137 = vector.load %arg10[%c0_155, %c0_156] : memref<32x128xf32, #tpu.memory_space<vmem>>, vector<32x128xf32>
    tpu.vector_store %arg10[%c0_155, %c0_156], %136 {strides = array<i32>} : memref<32x128xf32, #tpu.memory_space<vmem>>, vector<32x128xf32>,
    %c0_157 = arith.constant 0 : index
    %c0_158 = arith.constant 0 : index
    %138 = vector.load %arg10[%c0_157, %c0_158] : memref<32x128xf32, #tpu.memory_space<vmem>>, vector<2x128xf32>
    %c0_159 = arith.constant 0 : index
    %c0_160 = arith.constant 0 : index
    %139 = vector.load %arg11[%c0_159, %c0_160] : memref<2x2048xf32, #tpu.memory_space<vmem>>, vector<2x128xf32>
    tpu.vector_store %arg11[%c0_159, %c0_160], %138 {strides = array<i32>} : memref<2x2048xf32, #tpu.memory_space<vmem>>, vector<2x128xf32>,
    %c2_161 = arith.constant 2 : index
    %c0_162 = arith.constant 0 : index
    %140 = vector.load %arg10[%c2_161, %c0_162] : memref<32x128xf32, #tpu.memory_space<vmem>>, vector<2x128xf32>
    %c0_163 = arith.constant 0 : index
    %c128 = arith.constant 128 : index
    %141 = vector.load %arg11[%c0_163, %c128] : memref<2x2048xf32, #tpu.memory_space<vmem>>, vector<2x128xf32>
    tpu.vector_store %arg11[%c0_163, %c128], %140 {strides = array<i32>} : memref<2x2048xf32, #tpu.memory_space<vmem>>, vector<2x128xf32>,
    %c4_164 = arith.constant 4 : index
    %c0_165 = arith.constant 0 : index
    %142 = vector.load %arg10[%c4_164, %c0_165] : memref<32x128xf32, #tpu.memory_space<vmem>>, vector<2x128xf32>
    %c0_166 = arith.constant 0 : index
    %c256 = arith.constant 256 : index
    %143 = vector.load %arg11[%c0_166, %c256] : memref<2x2048xf32, #tpu.memory_space<vmem>>, vector<2x128xf32>
    tpu.vector_store %arg11[%c0_166, %c256], %142 {strides = array<i32>} : memref<2x2048xf32, #tpu.memory_space<vmem>>, vector<2x128xf32>,
    %c6_167 = arith.constant 6 : index
    %c0_168 = arith.constant 0 : index
    %144 = vector.load %arg10[%c6_167, %c0_168] : memref<32x128xf32, #tpu.memory_space<vmem>>, vector<2x128xf32>
    %c0_169 = arith.constant 0 : index
    %c384 = arith.constant 384 : index
    %145 = vector.load %arg11[%c0_169, %c384] : memref<2x2048xf32, #tpu.memory_space<vmem>>, vector<2x128xf32>
    tpu.vector_store %arg11[%c0_169, %c384], %144 {strides = array<i32>} : memref<2x2048xf32, #tpu.memory_space<vmem>>, vector<2x128xf32>,
    %c8_170 = arith.constant 8 : index
    %c0_171 = arith.constant 0 : index
    %146 = vector.load %arg10[%c8_170, %c0_171] : memref<32x128xf32, #tpu.memory_space<vmem>>, vector<2x128xf32>
    %c0_172 = arith.constant 0 : index
    %c512 = arith.constant 512 : index
    %147 = vector.load %arg11[%c0_172, %c512] : memref<2x2048xf32, #tpu.memory_space<vmem>>, vector<2x128xf32>
    tpu.vector_store %arg11[%c0_172, %c512], %146 {strides = array<i32>} : memref<2x2048xf32, #tpu.memory_space<vmem>>, vector<2x128xf32>,
    %c10_173 = arith.constant 10 : index
    %c0_174 = arith.constant 0 : index
    %148 = vector.load %arg10[%c10_173, %c0_174] : memref<32x128xf32, #tpu.memory_space<vmem>>, vector<2x128xf32>
    %c0_175 = arith.constant 0 : index
    %c640 = arith.constant 640 : index
    %149 = vector.load %arg11[%c0_175, %c640] : memref<2x2048xf32, #tpu.memory_space<vmem>>, vector<2x128xf32>
    tpu.vector_store %arg11[%c0_175, %c640], %148 {strides = array<i32>} : memref<2x2048xf32, #tpu.memory_space<vmem>>, vector<2x128xf32>,
    %c12_176 = arith.constant 12 : index
    %c0_177 = arith.constant 0 : index
    %150 = vector.load %arg10[%c12_176, %c0_177] : memref<32x128xf32, #tpu.memory_space<vmem>>, vector<2x128xf32>
    %c0_178 = arith.constant 0 : index
    %c768 = arith.constant 768 : index
    %151 = vector.load %arg11[%c0_178, %c768] : memref<2x2048xf32, #tpu.memory_space<vmem>>, vector<2x128xf32>
    tpu.vector_store %arg11[%c0_178, %c768], %150 {strides = array<i32>} : memref<2x2048xf32, #tpu.memory_space<vmem>>, vector<2x128xf32>,
    %c14 = arith.constant 14 : index
    %c0_179 = arith.constant 0 : index
    %152 = vector.load %arg10[%c14, %c0_179] : memref<32x128xf32, #tpu.memory_space<vmem>>, vector<2x128xf32>
    %c0_180 = arith.constant 0 : index
    %c896 = arith.constant 896 : index
    %153 = vector.load %arg11[%c0_180, %c896] : memref<2x2048xf32, #tpu.memory_space<vmem>>, vector<2x128xf32>
    tpu.vector_store %arg11[%c0_180, %c896], %152 {strides = array<i32>} : memref<2x2048xf32, #tpu.memory_space<vmem>>, vector<2x128xf32>,
    %c16_181 = arith.constant 16 : index
    %c0_182 = arith.constant 0 : index
    %154 = vector.load %arg10[%c16_181, %c0_182] : memref<32x128xf32, #tpu.memory_space<vmem>>, vector<2x128xf32>
    %c0_183 = arith.constant 0 : index
    %c1024 = arith.constant 1024 : index
    %155 = vector.load %arg11[%c0_183, %c1024] : memref<2x2048xf32, #tpu.memory_space<vmem>>, vector<2x128xf32>
    tpu.vector_store %arg11[%c0_183, %c1024], %154 {strides = array<i32>} : memref<2x2048xf32, #tpu.memory_space<vmem>>, vector<2x128xf32>,
    %c18 = arith.constant 18 : index
    %c0_184 = arith.constant 0 : index
    %156 = vector.load %arg10[%c18, %c0_184] : memref<32x128xf32, #tpu.memory_space<vmem>>, vector<2x128xf32>
    %c0_185 = arith.constant 0 : index
    %c1152 = arith.constant 1152 : index
    %157 = vector.load %arg11[%c0_185, %c1152] : memref<2x2048xf32, #tpu.memory_space<vmem>>, vector<2x128xf32>
    tpu.vector_store %arg11[%c0_185, %c1152], %156 {strides = array<i32>} : memref<2x2048xf32, #tpu.memory_space<vmem>>, vector<2x128xf32>,
    %c20 = arith.constant 20 : index
    %c0_186 = arith.constant 0 : index
    %158 = vector.load %arg10[%c20, %c0_186] : memref<32x128xf32, #tpu.memory_space<vmem>>, vector<2x128xf32>
    %c0_187 = arith.constant 0 : index
    %c1280 = arith.constant 1280 : index
    %159 = vector.load %arg11[%c0_187, %c1280] : memref<2x2048xf32, #tpu.memory_space<vmem>>, vector<2x128xf32>
    tpu.vector_store %arg11[%c0_187, %c1280], %158 {strides = array<i32>} : memref<2x2048xf32, #tpu.memory_space<vmem>>, vector<2x128xf32>,
    %c22 = arith.constant 22 : index
    %c0_188 = arith.constant 0 : index
    %160 = vector.load %arg10[%c22, %c0_188] : memref<32x128xf32, #tpu.memory_space<vmem>>, vector<2x128xf32>
    %c0_189 = arith.constant 0 : index
    %c1408 = arith.constant 1408 : index
    %161 = vector.load %arg11[%c0_189, %c1408] : memref<2x2048xf32, #tpu.memory_space<vmem>>, vector<2x128xf32>
    tpu.vector_store %arg11[%c0_189, %c1408], %160 {strides = array<i32>} : memref<2x2048xf32, #tpu.memory_space<vmem>>, vector<2x128xf32>,
    %c24_190 = arith.constant 24 : index
    %c0_191 = arith.constant 0 : index
    %162 = vector.load %arg10[%c24_190, %c0_191] : memref<32x128xf32, #tpu.memory_space<vmem>>, vector<2x128xf32>
    %c0_192 = arith.constant 0 : index
    %c1536 = arith.constant 1536 : index
    %163 = vector.load %arg11[%c0_192, %c1536] : memref<2x2048xf32, #tpu.memory_space<vmem>>, vector<2x128xf32>
    tpu.vector_store %arg11[%c0_192, %c1536], %162 {strides = array<i32>} : memref<2x2048xf32, #tpu.memory_space<vmem>>, vector<2x128xf32>,
    %c26 = arith.constant 26 : index
    %c0_193 = arith.constant 0 : index
    %164 = vector.load %arg10[%c26, %c0_193] : memref<32x128xf32, #tpu.memory_space<vmem>>, vector<2x128xf32>
    %c0_194 = arith.constant 0 : index
    %c1664 = arith.constant 1664 : index
    %165 = vector.load %arg11[%c0_194, %c1664] : memref<2x2048xf32, #tpu.memory_space<vmem>>, vector<2x128xf32>
    tpu.vector_store %arg11[%c0_194, %c1664], %164 {strides = array<i32>} : memref<2x2048xf32, #tpu.memory_space<vmem>>, vector<2x128xf32>,
    %c28 = arith.constant 28 : index
    %c0_195 = arith.constant 0 : index
    %166 = vector.load %arg10[%c28, %c0_195] : memref<32x128xf32, #tpu.memory_space<vmem>>, vector<2x128xf32>
    %c0_196 = arith.constant 0 : index
    %c1792 = arith.constant 1792 : index
    %167 = vector.load %arg11[%c0_196, %c1792] : memref<2x2048xf32, #tpu.memory_space<vmem>>, vector<2x128xf32>
    tpu.vector_store %arg11[%c0_196, %c1792], %166 {strides = array<i32>} : memref<2x2048xf32, #tpu.memory_space<vmem>>, vector<2x128xf32>,
    %c30 = arith.constant 30 : index
    %c0_197 = arith.constant 0 : index
    %168 = vector.load %arg10[%c30, %c0_197] : memref<32x128xf32, #tpu.memory_space<vmem>>, vector<2x128xf32>
    %c0_198 = arith.constant 0 : index
    %c1920 = arith.constant 1920 : index
    %169 = vector.load %arg11[%c0_198, %c1920] : memref<2x2048xf32, #tpu.memory_space<vmem>>, vector<2x128xf32>
    tpu.vector_store %arg11[%c0_198, %c1920], %168 {strides = array<i32>} : memref<2x2048xf32, #tpu.memory_space<vmem>>, vector<2x128xf32>,
    tpu.wait_dma2 semaphore(%arg13 : memref<!tpu.dma_semaphore, #tpu.memory_space<semaphore_mem>>) src(%arg3 : memref<2048x1024xbf16, #tpu.memory_space<any>>) dst(%arg12 : memref<2048x1024xbf16, #tpu.memory_space<vmem>>)
    %c0_199 = arith.constant 0 : index
    %c0_200 = arith.constant 0 : index
    %170 = vector.load %arg11[%c0_199, %c0_200] : memref<2x2048xf32, #tpu.memory_space<vmem>>, vector<2x2048xf32>
    %171 = arith.truncf %170 : vector<2x2048xf32> to vector<2x2048xbf16>
    %c0_201 = arith.constant 0 : index
    %c0_202 = arith.constant 0 : index
    %172 = vector.load %arg12[%c0_201, %c0_202] : memref<2048x1024xbf16, #tpu.memory_space<vmem>>, vector<2048x1024xbf16>
    %cst_203 = arith.constant dense<0.000000e+00> : vector<2x1024xf32>
    %173 = tpu.matmul %171, %172, %cst_203 {dimension_numbers = #tpu.dot_dimension_numbers<[1], [0], [0], [1], [0, 0, 1, 1], [], []>} : vector<2x2048xbf16>, vector<2048x1024xbf16>, vector<2x1024xf32> -> vector<2x1024xf32>
    %c0_204 = arith.constant 0 : index
    %c0_205 = arith.constant 0 : index
    %174 = vector.load %arg4[%c0_204, %c0_205] : memref<1x1024xf32, #tpu.memory_space<vmem>>, vector<1x1024xf32>
    %175 = vector.broadcast %174 : vector<1x1024xf32> to vector<2x1024xf32>
    %176 = arith.addf %173, %175 : vector<2x1024xf32>
    %cst_206 = arith.constant 0.000000e+00 : f32
    %177 = vector.broadcast %cst_206 : f32 to vector<2x1024xf32>
    %178 = arith.maximumf %176, %177 : vector<2x1024xf32>
    %179 = arith.truncf %178 : vector<2x1024xf32> to vector<2x1024xbf16>
    %c0_207 = arith.constant 0 : index
    %c0_208 = arith.constant 0 : index
    %180 = vector.load %arg5[%c0_207, %c0_208] : memref<1024x128xbf16, #tpu.memory_space<vmem>>, vector<1024x128xbf16>
    %cst_209 = arith.constant dense<0.000000e+00> : vector<2x128xf32>
    %181 = tpu.matmul %179, %180, %cst_209 {dimension_numbers = #tpu.dot_dimension_numbers<[1], [0], [0], [1], [0, 0, 1, 1], [], []>} : vector<2x1024xbf16>, vector<1024x128xbf16>, vector<2x128xf32> -> vector<2x128xf32>
    %c0_210 = arith.constant 0 : index
    %c0_211 = arith.constant 0 : index
    %182 = vector.load %arg6[%c0_210, %c0_211] : memref<1x128xf32, #tpu.memory_space<vmem>>, vector<1x128xf32>
    %183 = vector.broadcast %182 : vector<1x128xf32> to vector<2x128xf32>
    %184 = arith.addf %181, %183 : vector<2x128xf32>
    %c0_212 = arith.constant 0 : index
    %c0_213 = arith.constant 0 : index
    %185 = vector.load %arg7[%c0_212, %c0_213] : memref<2x128xf32, #tpu.memory_space<vmem>>, vector<2x128xf32>
    tpu.vector_store %arg7[%c0_212, %c0_213], %184 {strides = array<i32>} : memref<2x128xf32, #tpu.memory_space<vmem>>, vector<2x128xf32>,
    return
  }
}

</mosaic_0001>

<bundles_post_ra>
// kernel: tpu_custom_call.1
= control target key start
LH: loop header
LB: loop body
LE: loop exit
PB: predicated region body
PF: predicated region fallthrough
CT: control target
= control target key end

     0   :  { %12 = vsyncpa [#allocation9], 0  ;;  %s7959_s0 = inlined_call_operand.vmem [shape: f32[2,14,14,4], index: 0, kind: input, shape index: {}]   ;;  %s7960_s1 = inlined_call_operand.hbm [shape: bf16[4,128], index: 1, kind: input, shape index: {}]   ;;  %s7961_s2 = inlined_call_operand.hbm [shape: f32[1,128], index: 2, kind: input, shape index: {}]   ;;  %s7962_s3 = inlined_call_operand.hbm [shape: bf16[2048,1024], index: 3, kind: input, shape index: {}]   ;;  %s7963_s4 = inlined_call_operand.hbm [shape: f32[1,1024], index: 4, kind: input, shape index: {}]   ;;  %s7964_s5 = inlined_call_operand.hbm [shape: bf16[1024,128], index: 5, kind: input, shape index: {}]   ;;  %s7965_s6 = inlined_call_operand.hbm [shape: f32[1,128], index: 6, kind: input, shape index: {}]   ;;  %s7966_s7 = inlined_call_operand.hbm [shape: f32[2,128], index: 7, kind: output, shape index: {}]  }
   0x1   :  { %13 = vsyncpa [#allocation12], 0 }
   0x2   :  { %14 = vsyncpa [#allocation15], 0 }
   0x3   :  { %15 = vsyncpa [#allocation10], 0  ;;  %s5731_s24 = smov [#allocation11]   ;;  %s5732_s26 = smov [#allocation14]  }
   0x4   :  { %s34_s25 = sshll.u32 %s5731_s24, 4  ;;  %s53_s27 = sshll.u32 %s5732_s26, 4  ;;  %s35_s25 = int_to_ptr.vmem [resolvable:$true] %s34_s25  ;;  %s5788_s27 = int_to_ptr.vmem [resolvable:$true] %s53_s27 }
   0x5   :  { %s5589_s30 = scalar_lea.hbm %s7961_s2, 16 }
   0x6   :  { %p5590_p0 = scmp.ne.s32.totalorder %s7961_s2, %s5589_s30  ;;  %p5593_p1 = scmp.lt.u32.totalorder %s5589_s30, %s7961_s2 }
   0x8   :  { %p5595_p2 = pnand %p5593_p1, %p5590_p0 }
   0xa   :  { %5598 = shalt.err (!%p5595_p2)
}
   0xb   :  { %s5599_s12 = scalar_lea.vmem %s35_s25, 16  ;;  %s5603_s13 = scalar_lea.vmem %s35_s25, 32 }
   0xc   :  { %p5600_p3 = scmp.ne.s32.totalorder %s35_s25, %s5599_s12  ;;  %p5604_p4 = scmp.lt.s32.totalorder %s35_s25, %s35_s25 }
   0xd   :  { %p5605_p5 = scmp.lt.s32.totalorder %s5603_s13, %s5599_s12 }
   0xf   :  { %p5606_p6 = por %p5605_p5, %p5604_p4 }
  0x11   :  { %p5607_p7 = pnand %p5606_p6, %p5600_p3 }
  0x13   :  { %5610 = shalt.err (!%p5607_p7)
}
  0x14   :  { %37 = dma.hbm_to_vmem [thread:$0]  %s7961_s2, 16, %s35_s25, [#allocation12]  }
  0x15   :  { %s5611_s18 = scalar_lea.hbm %s7964_s5, 8192 }
  0x16   :  { %p5612_p8 = scmp.ne.s32.totalorder %s7964_s5, %s5611_s18  ;;  %p5615_p9 = scmp.lt.u32.totalorder %s5611_s18, %s7964_s5 }
  0x18   :  { %p5617_p10 = pnand %p5615_p9, %p5612_p8 }
  0x1a   :  { %5620 = shalt.err (!%p5617_p10)
}
  0x1b   :  { %s5621_s23 = scalar_lea.vmem %s5788_s27, 8192  ;;  %p5626_p12 = scmp.lt.s32.totalorder %s5788_s27, %s5788_s27 }
  0x1c   :  { %p5622_p11 = scmp.ne.s32.totalorder %s5788_s27, %s5621_s23  ;;  %p5627_p13 = scmp.lt.s32.totalorder %s5621_s23, %s5621_s23 }
  0x1e   :  { %p5628_p0 = por %p5627_p13, %p5626_p12 }
  0x20   :  { %p5629_p1 = pnand %p5628_p0, %p5622_p11 }
  0x22   :  { %5632 = shalt.err (!%p5629_p1)
}
  0x23   :  { %s5733_s2 = smov 64   ;;  %s5734_s24 = smov 4  }
  0x24   :  { %59 = dma.hbm_to_vmem [thread:$0]  %s7964_s5, 8192, %s5788_s27, [#allocation15], %s5733_s2, %s5733_s2, %s5734_s24  }
  0x25   :  { %s5735_s28 = smov [#allocation8]   ;;  %s5736_s30 = smov [#allocation13]  }
  0x26   :  { %s24_s29 = sshll.u32 %s5735_s28, 4  ;;  %s44_s8 = sshll.u32 %s5736_s30, 4  ;;  %s25_s29 = int_to_ptr.vmem [resolvable:$true] %s24_s29  ;;  %s45_s8 = int_to_ptr.vmem [resolvable:$true] %s44_s8 }
  0x27   :  { %s5633_s11 = scalar_lea.hbm %s7960_s1, 32 }
  0x28   :  { %p5634_p2 = scmp.ne.s32.totalorder %s7960_s1, %s5633_s11  ;;  %p5637_p3 = scmp.lt.u32.totalorder %s5633_s11, %s7960_s1 }
  0x2a   :  { %p5639_p4 = pnand %p5637_p3, %p5634_p2 }
  0x2c   :  { %5642 = shalt.err (!%p5639_p4)
}
  0x2d   :  { %s5643_s5 = scalar_lea.vmem %s25_s29, 32  ;;  %p5648_p6 = scmp.lt.s32.totalorder %s25_s29, %s25_s29 }
  0x2e   :  { %p5644_p5 = scmp.ne.s32.totalorder %s25_s29, %s5643_s5  ;;  %p5649_p7 = scmp.lt.s32.totalorder %s5643_s5, %s5643_s5 }
  0x30   :  { %p5650_p8 = por %p5649_p7, %p5648_p6 }
  0x32   :  { %p5651_p9 = pnand %p5650_p8, %p5644_p5 }
  0x34   :  { %5654 = shalt.err (!%p5651_p9)
}
  0x35   :  { %27 = dma.hbm_to_vmem [thread:$0]  %s7960_s1, 32, %s25_s29, [#allocation9]  }
  0x36   :  { %s5655_s19 = scalar_lea.hbm %s7963_s4, 128 }
  0x37   :  { %p5656_p10 = scmp.ne.s32.totalorder %s7963_s4, %s5655_s19  ;;  %p5659_p11 = scmp.lt.u32.totalorder %s5655_s19, %s7963_s4 }
  0x39   :  { %p5661_p12 = pnand %p5659_p11, %p5656_p10 }
  0x3b   :  { %5664 = shalt.err (!%p5661_p12)
}
  0x3c   :  { %s5665_s25 = scalar_lea.vmem %s45_s8, 128  ;;  %p5670_p0 = scmp.lt.s32.totalorder %s45_s8, %s45_s8 }
  0x3d   :  { %p5666_p13 = scmp.ne.s32.totalorder %s45_s8, %s5665_s25  ;;  %p5671_p1 = scmp.lt.s32.totalorder %s5665_s25, %s5665_s25 }
  0x3f   :  { %p5672_p2 = por %p5671_p1, %p5670_p0 }
  0x41   :  { %p5673_p3 = pnand %p5672_p2, %p5666_p13 }
  0x43   :  { %5676 = shalt.err (!%p5673_p3)
}
  0x44   :  { %47 = dma.hbm_to_vmem [thread:$0]  %s7963_s4, 128, %s45_s8, [#allocation12]  }
  0x45   :  { %s5737_s28 = smov [#allocation16]   ;;  %s5677_s10 = scalar_lea.hbm %s7965_s6, 16 }
  0x46   :  { %s66_s29 = sshll.u32 %s5737_s28, 4  ;;  %p5678_p4 = scmp.ne.s32.totalorder %s7965_s6, %s5677_s10  ;;  %s67_s29 = int_to_ptr.vmem [resolvable:$true] %s66_s29 }
  0x47   :  { %p5681_p5 = scmp.lt.u32.totalorder %s5677_s10, %s7965_s6 }
  0x49   :  { %p5683_p6 = pnand %p5681_p5, %p5678_p4 }
  0x4b   :  { %5686 = shalt.err (!%p5683_p6)
}
  0x4c   :  { %s5687_s15 = scalar_lea.vmem %s67_s29, 16  ;;  %s5691_s4 = scalar_lea.vmem %s67_s29, 32 }
  0x4d   :  { %p5688_p7 = scmp.ne.s32.totalorder %s67_s29, %s5687_s15  ;;  %p5692_p8 = scmp.lt.s32.totalorder %s67_s29, %s67_s29 }
  0x4e   :  { %p5693_p9 = scmp.lt.s32.totalorder %s5691_s4, %s5687_s15 }
  0x50   :  { %p5694_p10 = por %p5693_p9, %p5692_p8 }
  0x52   :  { %p5695_p11 = pnand %p5694_p10, %p5688_p7 }
  0x54   :  { %5698 = shalt.err (!%p5695_p11)
}
  0x55   :  { %69 = dma.hbm_to_vmem [thread:$0]  %s7965_s6, 16, %s67_s29, [#allocation15]  }
  0x56   :  { %5721 = dma.done.wait [#allocation9], 32  }
  0x57   :  { %5722 = vsyncadd [#allocation9], 4294967264 }
  0x58   :  { %5723 = dma.done.wait [#allocation12], 144  }
  0x59   :  { %5724 = vsyncadd [#allocation12], 4294967152 }
  0x5a   :  { %5725 = dma.done.wait [#allocation15], 8208  }
  0x5b   :  { %5726 = vsyncadd [#allocation15], 4294959088  ;;  %s90_s27 = sld [smem:[#allocation0]]   ;;  %s5738_s16 = smov [#allocation6]   ;;  %vm402_vm0 = vcmask 1041409   ;;  %vm405_vm1 = vcmask 1042434  }
  0x5c   :  { %s98_s17 = sshll.u32 %s5738_s16, 4  ;;  %s5739_s18 = smov 1024   ;;  %vm408_vm2 = vcmask 1043459   ;;  %vm411_vm3 = vcmask 1044484   ;;  %vm414_vm4 = vcmask 1045509   ;;  %vm417_vm5 = vcmask 1046534   ;;  %s99_s17 = int_to_ptr.vmem [resolvable:$true] %s98_s17 }
  0x5d   :  { %102 = sst [smem:[#allocation19]] %s5739_s18  ;;  %s5740_s19 = smov 8   ;;  %vm420_vm6 = vcmask 1047559   ;;  %vm460_vm7 = vcmask 31744   ;;  %vm462_vm8 = vcmask 29696   ;;  %vm1913_vm9 = vcmask 1041408  }
  0x5e   :  { %104 = sst [smem:[#allocation19 + $0x1]] %s5739_s18  ;;  %s5741_s20 = smov 128  }
  0x5f   :  { %106 = sst [smem:[#allocation19 + $0x2]] %s5740_s19  ;;  %s5742_s21 = smov 2  }
  0x60   :  { %108 = sst [smem:[#allocation19 + $0x3]] %s5733_s2  ;;  %s5743_s23 = smov 512  }
  0x61   :  { %110 = sst [smem:[#allocation19 + $0x4]] %s5741_s20  ;;  %s5215_s6 = sshll.u32 %s90_s27, 26 }
  0x62   :  { %112 = sst [smem:[#allocation19 + $0x5]] %s5742_s21  ;;  %s5216_s22 = sadd.s32 134217728, %s5215_s6 }
  0x63   :  { %114 = sst [smem:[#allocation19 + $0x6]] %s5743_s23  ;;  %s5744_s25 = smov [#allocation7]  }
  0x64   :  { %116 = sst [smem:[#allocation19 + $0x7]] %s5733_s2  ;;  %s5745_s1 = smov [#allocation18]  }
  0x65   :  { %118 = sst [smem:[#allocation19 + $0x8]] %s5734_s24 }
  0x66   :  { %120 = dma.general %s7962_s3, 131072, %s99_s17, %s5744_s25, %s5745_s1, [#allocation19], %s5216_s22, 0  }
  0x67   :  { %v121_v0 = vld [vmem:[%s7959_s0] sm:$0x1]  ;;  %v122_v1 = vld [vmem:[%s7959_s0 + $0x10] sm:$0x1]  ;;  %v149_v3 = vld [vmem:[%s7959_s0 + $0x1] sm:$0x1] }
  0x68   :  { %v123_v2 = vld [vmem:[%s7959_s0 + $0x20] sm:$0x1]  ;;  %v150_v4 = vld [vmem:[%s7959_s0 + $0x11] sm:$0x1]  ;;  %v151_v5 = vld [vmem:[%s7959_s0 + $0x21] sm:$0x1]  ;;  %v177_v46 = vadd.f32 %v149_v3, %v121_v0 }
  0x69   :  { %v124_v6 = vld [vmem:[%s7959_s0 + $0x30] sm:$0x1]  ;;  %v125_v7 = vld [vmem:[%s7959_s0 + $0x40] sm:$0x1]  ;;  %v152_v10 = vld [vmem:[%s7959_s0 + $0x31] sm:$0x1]  ;;  %v178_v47 = vadd.f32 %v150_v4, %v122_v1  ;;  %v179_v48 = vadd.f32 %v151_v5, %v123_v2 }
  0x6a   :  { %v126_v8 = vld [vmem:[%s7959_s0 + $0x50] sm:$0x1]  ;;  %v127_v9 = vld [vmem:[%s7959_s0 + $0x60] sm:$0x1]  ;;  %v153_v11 = vld [vmem:[%s7959_s0 + $0x41] sm:$0x1]  ;;  %v180_v57 = vadd.f32 %v152_v10, %v124_v6 }
  0x6b   :  { %v154_v12 = vld [vmem:[%s7959_s0 + $0x51] sm:$0x1]  ;;  %v155_v13 = vld [vmem:[%s7959_s0 + $0x61] sm:$0x1]  ;;  %v128_v14 = vld [vmem:[%s7959_s0 + $0x70] sm:$0x1]  ;;  %v181_v58 = vadd.f32 %v153_v11, %v125_v7 }
  0x6c   :  { %v129_v15 = vld [vmem:[%s7959_s0 + $0x80] sm:$0x1]  ;;  %v130_v16 = vld [vmem:[%s7959_s0 + $0x90] sm:$0x1]  ;;  %v156_v18 = vld [vmem:[%s7959_s0 + $0x71] sm:$0x1]  ;;  %v182_v59 = vadd.f32 %v154_v12, %v126_v8  ;;  %v183_v60 = vadd.f32 %v155_v13, %v127_v9 }
  0x6d   :  { %v131_v17 = vld [vmem:[%s7959_s0 + $0xa0] sm:$0x1]  ;;  %v157_v19 = vld [vmem:[%s7959_s0 + $0x81] sm:$0x1]  ;;  %v158_v20 = vld [vmem:[%s7959_s0 + $0x91] sm:$0x1]  ;;  %v184_v63 = vadd.f32 %v156_v18, %v128_v14 }
  0x6e   :  { %v159_v21 = vld [vmem:[%s7959_s0 + $0xa1] sm:$0x1]  ;;  %v132_v22 = vld [vmem:[%s7959_s0 + $0xb0] sm:$0x1]  ;;  %v133_v23 = vld [vmem:[%s7959_s0 + $0xc0] sm:$0x1]  ;;  %v185_v0 = vadd.f32 %v157_v19, %v129_v15  ;;  %v186_v1 = vadd.f32 %v158_v20, %v130_v16 }
  0x6f   :  { %v134_v24 = vld [vmem:[%s7959_s0 + $0xd0] sm:$0x1]  ;;  %v135_v25 = vld [vmem:[%s7959_s0 + $0xe0] sm:$0x1]  ;;  %v160_v26 = vld [vmem:[%s7959_s0 + $0xb1] sm:$0x1]  ;;  %v187_v2 = vadd.f32 %v159_v21, %v131_v17 }
  0x70   :  { %v161_v27 = vld [vmem:[%s7959_s0 + $0xc1] sm:$0x1]  ;;  %v162_v28 = vld [vmem:[%s7959_s0 + $0xd1] sm:$0x1]  ;;  %v136_v30 = vld [vmem:[%s7959_s0 + $0xf0] sm:$0x1]  ;;  %v188_v6 = vadd.f32 %v160_v26, %v132_v22 }
  0x71   :  { %v163_v29 = vld [vmem:[%s7959_s0 + $0xe1] sm:$0x1]  ;;  %v137_v31 = vld [vmem:[%s7959_s0 + $0x100] sm:$0x1]  ;;  %v138_v32 = vld [vmem:[%s7959_s0 + $0x110] sm:$0x1]  ;;  %v189_v7 = vadd.f32 %v161_v27, %v133_v23  ;;  %v190_v8 = vadd.f32 %v162_v28, %v134_v24 }
  0x72   :  { %v139_v33 = vld [vmem:[%s7959_s0 + $0x120] sm:$0x1]  ;;  %v164_v34 = vld [vmem:[%s7959_s0 + $0xf1] sm:$0x1]  ;;  %v165_v35 = vld [vmem:[%s7959_s0 + $0x101] sm:$0x1]  ;;  %v191_v9 = vadd.f32 %v163_v29, %v135_v25 }
  0x73   :  { %v166_v36 = vld [vmem:[%s7959_s0 + $0x111] sm:$0x1]  ;;  %v167_v37 = vld [vmem:[%s7959_s0 + $0x121] sm:$0x1]  ;;  %v140_v38 = vld [vmem:[%s7959_s0 + $0x130] sm:$0x1]  ;;  %v192_v14 = vadd.f32 %v164_v34, %v136_v30  ;;  %v193_v15 = vadd.f32 %v165_v35, %v137_v31 }
  0x74   :  { %v141_v39 = vld [vmem:[%s7959_s0 + $0x140] sm:$0x1]  ;;  %v142_v40 = vld [vmem:[%s7959_s0 + $0x150] sm:$0x1]  ;;  %v168_v42 = vld [vmem:[%s7959_s0 + $0x131] sm:$0x1]  ;;  %v194_v16 = vadd.f32 %v166_v36, %v138_v32  ;;  %v195_v17 = vadd.f32 %v167_v37, %v139_v33 }
  0x75   :  { %v143_v41 = vld [vmem:[%s7959_s0 + $0x160] sm:$0x1]  ;;  %v169_v43 = vld [vmem:[%s7959_s0 + $0x141] sm:$0x1]  ;;  %v170_v44 = vld [vmem:[%s7959_s0 + $0x151] sm:$0x1]  ;;  %v196_v22 = vadd.f32 %v168_v42, %v140_v38 }
  0x76   :  { %v171_v45 = vld [vmem:[%s7959_s0 + $0x161] sm:$0x1]  ;;  %v144_v49 = vld [vmem:[%s7959_s0 + $0x170] sm:$0x1]  ;;  %v145_v50 = vld [vmem:[%s7959_s0 + $0x180] sm:$0x1]  ;;  %v197_v23 = vadd.f32 %v169_v43, %v141_v39  ;;  %v198_v24 = vadd.f32 %v170_v44, %v142_v40 }
  0x77   :  { %v146_v51 = vld [vmem:[%s7959_s0 + $0x190] sm:$0x1]  ;;  %v147_v52 = vld [vmem:[%s7959_s0 + $0x1a0] sm:$0x1]  ;;  %v172_v53 = vld [vmem:[%s7959_s0 + $0x171] sm:$0x1]  ;;  %v199_v25 = vadd.f32 %v171_v45, %v143_v41 }
  0x78   :  { %v173_v54 = vld [vmem:[%s7959_s0 + $0x181] sm:$0x1]  ;;  %v174_v55 = vld [vmem:[%s7959_s0 + $0x191] sm:$0x1]  ;;  %v148_v61 = vld [vmem:[%s7959_s0 + $0x1b0] sm:$0x1]  ;;  %v200_v30 = vadd.f32 %v172_v53, %v144_v49 }
  0x79   :  { %v175_v56 = vld [vmem:[%s7959_s0 + $0x1a1] sm:$0x1]  ;;  %v176_v62 = vld [vmem:[%s7959_s0 + $0x1b1] sm:$0x1]  ;;  %v205_v3 = vld [vmem:[%s7959_s0 + $0x2] sm:$0x1]  ;;  %v201_v31 = vadd.f32 %v173_v54, %v145_v50  ;;  %v202_v32 = vadd.f32 %v174_v55, %v146_v51 }
  0x7a   :  { %v206_v4 = vld [vmem:[%s7959_s0 + $0x12] sm:$0x1]  ;;  %v207_v5 = vld [vmem:[%s7959_s0 + $0x22] sm:$0x1]  ;;  %v203_v33 = vadd.f32 %v175_v56, %v147_v52  ;;  %v204_v38 = vadd.f32 %v176_v62, %v148_v61  ;;  %v233_v43 = vadd.f32 %v205_v3, %v177_v46  ;;  %v261_v3 = vld [vmem:[%s7959_s0 + $0x3] sm:$0x1] }
  0x7b   :  { %v208_v10 = vld [vmem:[%s7959_s0 + $0x32] sm:$0x1]  ;;  %v209_v11 = vld [vmem:[%s7959_s0 + $0x42] sm:$0x1]  ;;  %v234_v44 = vadd.f32 %v206_v4, %v178_v47  ;;  %v235_v45 = vadd.f32 %v207_v5, %v179_v48  ;;  %v262_v4 = vld [vmem:[%s7959_s0 + $0x13] sm:$0x1] }
  0x7c   :  { %v210_v12 = vld [vmem:[%s7959_s0 + $0x52] sm:$0x1]  ;;  %v211_v13 = vld [vmem:[%s7959_s0 + $0x62] sm:$0x1]  ;;  %v236_v53 = vadd.f32 %v208_v10, %v180_v57  ;;  %v237_v46 = vadd.f32 %v209_v11, %v181_v58  ;;  %v263_v57 = vld [vmem:[%s7959_s0 + $0x23] sm:$0x1] }
  0x7d   :  { %v212_v18 = vld [vmem:[%s7959_s0 + $0x72] sm:$0x1]  ;;  %v213_v19 = vld [vmem:[%s7959_s0 + $0x82] sm:$0x1]  ;;  %v238_v47 = vadd.f32 %v210_v12, %v182_v59  ;;  %v239_v48 = vadd.f32 %v211_v13, %v183_v60 }
  0x7e   :  { %v214_v20 = vld [vmem:[%s7959_s0 + $0x92] sm:$0x1]  ;;  %v215_v21 = vld [vmem:[%s7959_s0 + $0xa2] sm:$0x1]  ;;  %v240_v55 = vadd.f32 %v212_v18, %v184_v63  ;;  %v241_v56 = vadd.f32 %v213_v19, %v185_v0  ;;  %v264_v63 = vld [vmem:[%s7959_s0 + $0x33] sm:$0x1] }
  0x7f   :  { %v216_v26 = vld [vmem:[%s7959_s0 + $0xb2] sm:$0x1]  ;;  %v217_v27 = vld [vmem:[%s7959_s0 + $0xc2] sm:$0x1]  ;;  %v242_v61 = vadd.f32 %v214_v20, %v186_v1  ;;  %v243_v62 = vadd.f32 %v215_v21, %v187_v2  ;;  %v265_v0 = vld [vmem:[%s7959_s0 + $0x43] sm:$0x1] }
  0x80   :  { %v218_v28 = vld [vmem:[%s7959_s0 + $0xd2] sm:$0x1]  ;;  %v219_v29 = vld [vmem:[%s7959_s0 + $0xe2] sm:$0x1]  ;;  %v244_v58 = vadd.f32 %v216_v26, %v188_v6  ;;  %v245_v59 = vadd.f32 %v217_v27, %v189_v7  ;;  %v266_v1 = vld [vmem:[%s7959_s0 + $0x53] sm:$0x1] }
  0x81   :  { %v220_v34 = vld [vmem:[%s7959_s0 + $0xf2] sm:$0x1]  ;;  %v221_v35 = vld [vmem:[%s7959_s0 + $0x102] sm:$0x1]  ;;  %v246_v60 = vadd.f32 %v218_v28, %v190_v8  ;;  %v247_v5 = vadd.f32 %v219_v29, %v191_v9  ;;  %v267_v6 = vld [vmem:[%s7959_s0 + $0x63] sm:$0x1] }
  0x82   :  { %v222_v36 = vld [vmem:[%s7959_s0 + $0x112] sm:$0x1]  ;;  %v223_v37 = vld [vmem:[%s7959_s0 + $0x122] sm:$0x1]  ;;  %v248_v2 = vadd.f32 %v220_v34, %v192_v14  ;;  %v249_v10 = vadd.f32 %v221_v35, %v193_v15  ;;  %v268_v7 = vld [vmem:[%s7959_s0 + $0x73] sm:$0x1] }
  0x83   :  { %v224_v39 = vld [vmem:[%s7959_s0 + $0x132] sm:$0x1]  ;;  %v225_v40 = vld [vmem:[%s7959_s0 + $0x142] sm:$0x1]  ;;  %v250_v11 = vadd.f32 %v222_v36, %v194_v16  ;;  %v251_v12 = vadd.f32 %v223_v37, %v195_v17  ;;  %v269_v8 = vld [vmem:[%s7959_s0 + $0x83] sm:$0x1]  ;;  %v292_v36 = vadd.f32 %v264_v63, %v236_v53  ;;  %v293_v37 = vadd.f32 %v265_v0, %v237_v46 }
  0x84   :  { %v226_v41 = vld [vmem:[%s7959_s0 + $0x152] sm:$0x1]  ;;  %v227_v42 = vld [vmem:[%s7959_s0 + $0x162] sm:$0x1]  ;;  %v252_v9 = vadd.f32 %v224_v39, %v196_v22  ;;  %v253_v13 = vadd.f32 %v225_v40, %v197_v23  ;;  %v270_v14 = vld [vmem:[%s7959_s0 + $0x93] sm:$0x1]  ;;  %v295_v39 = vadd.f32 %v267_v6, %v239_v48 }
  0x85   :  { %v228_v49 = vld [vmem:[%s7959_s0 + $0x172] sm:$0x1]  ;;  %v229_v50 = vld [vmem:[%s7959_s0 + $0x182] sm:$0x1]  ;;  %v254_v18 = vadd.f32 %v226_v41, %v198_v24  ;;  %v255_v19 = vadd.f32 %v227_v42, %v199_v25  ;;  %v271_v15 = vld [vmem:[%s7959_s0 + $0xa3] sm:$0x1] }
  0x86   :  { %v230_v51 = vld [vmem:[%s7959_s0 + $0x192] sm:$0x1]  ;;  %v231_v52 = vld [vmem:[%s7959_s0 + $0x1a2] sm:$0x1]  ;;  %v272_v16 = vld [vmem:[%s7959_s0 + $0xb3] sm:$0x1]  ;;  %v256_v17 = vadd.f32 %v228_v49, %v200_v30  ;;  %v257_v20 = vadd.f32 %v229_v50, %v201_v31  ;;  %v289_v30 = vadd.f32 %v261_v3, %v233_v43  ;;  %v290_v31 = vadd.f32 %v262_v4, %v234_v44 }
  0x87   :  { %v232_v54 = vld [vmem:[%s7959_s0 + $0x1b2] sm:$0x1]  ;;  %v258_v21 = vadd.f32 %v230_v51, %v202_v32  ;;  %v259_v26 = vadd.f32 %v231_v52, %v203_v33  ;;  %v273_v22 = vld [vmem:[%s7959_s0 + $0xc3] sm:$0x1]  ;;  %v274_v23 = vld [vmem:[%s7959_s0 + $0xd3] sm:$0x1]  ;;  %v291_v32 = vadd.f32 %v263_v57, %v235_v45  ;;  %v296_v43 = vadd.f32 %v268_v7, %v240_v55 }
  0x88   :  { %v275_v24 = vld [vmem:[%s7959_s0 + $0xe3] sm:$0x1]  ;;  %v260_v25 = vadd.f32 %v232_v54, %v204_v38  ;;  %v276_v27 = vld [vmem:[%s7959_s0 + $0xf3] sm:$0x1]  ;;  %v294_v38 = vadd.f32 %v266_v1, %v238_v47  ;;  %v297_v44 = vadd.f32 %v269_v8, %v241_v56  ;;  %v298_v45 = vadd.f32 %v270_v14, %v242_v61  ;;  %v317_v3 = vld [vmem:[%s7959_s0 + $0x4] sm:$0x1] }
  0x89   :  { %v277_v28 = vld [vmem:[%s7959_s0 + $0x103] sm:$0x1]  ;;  %v278_v29 = vld [vmem:[%s7959_s0 + $0x113] sm:$0x1]  ;;  %v299_v49 = vadd.f32 %v271_v15, %v243_v62  ;;  %v300_v53 = vadd.f32 %v272_v16, %v244_v58  ;;  %v301_v46 = vadd.f32 %v273_v22, %v245_v59  ;;  %v302_v47 = vadd.f32 %v274_v23, %v246_v60  ;;  %v318_v4 = vld [vmem:[%s7959_s0 + $0x14] sm:$0x1] }
  0x8a   :  { %v279_v33 = vld [vmem:[%s7959_s0 + $0x123] sm:$0x1]  ;;  %v280_v34 = vld [vmem:[%s7959_s0 + $0x133] sm:$0x1]  ;;  %v303_v48 = vadd.f32 %v275_v24, %v247_v5  ;;  %v304_v55 = vadd.f32 %v276_v27, %v248_v2  ;;  %v305_v56 = vadd.f32 %v277_v28, %v249_v10  ;;  %v306_v61 = vadd.f32 %v278_v29, %v250_v11  ;;  %v319_v5 = vld [vmem:[%s7959_s0 + $0x24] sm:$0x1] }
  0x8b   :  { %v281_v35 = vld [vmem:[%s7959_s0 + $0x143] sm:$0x1]  ;;  %v282_v40 = vld [vmem:[%s7959_s0 + $0x153] sm:$0x1]  ;;  %v307_v62 = vadd.f32 %v279_v33, %v251_v12  ;;  %v308_v57 = vadd.f32 %v280_v34, %v252_v9  ;;  %v320_v63 = vld [vmem:[%s7959_s0 + $0x34] sm:$0x1]  ;;  %v346_v14 = vadd.f32 %v318_v4, %v290_v31  ;;  %v347_v15 = vadd.f32 %v319_v5, %v291_v32 }
  0x8c   :  { %v283_v41 = vld [vmem:[%s7959_s0 + $0x163] sm:$0x1]  ;;  %v284_v42 = vld [vmem:[%s7959_s0 + $0x173] sm:$0x1]  ;;  %v309_v58 = vadd.f32 %v281_v35, %v253_v13  ;;  %v310_v59 = vadd.f32 %v282_v40, %v254_v18  ;;  %v321_v0 = vld [vmem:[%s7959_s0 + $0x44] sm:$0x1] }
  0x8d   :  { %v285_v50 = vld [vmem:[%s7959_s0 + $0x183] sm:$0x1]  ;;  %v286_v51 = vld [vmem:[%s7959_s0 + $0x193] sm:$0x1]  ;;  %v311_v60 = vadd.f32 %v283_v41, %v255_v19  ;;  %v312_v1 = vadd.f32 %v284_v42, %v256_v17  ;;  %v322_v12 = vld [vmem:[%s7959_s0 + $0x54] sm:$0x1]  ;;  %v345_v19 = vadd.f32 %v317_v3, %v289_v30 }
  0x8e   :  { %v287_v52 = vld [vmem:[%s7959_s0 + $0x1a3] sm:$0x1]  ;;  %v288_v54 = vld [vmem:[%s7959_s0 + $0x1b3] sm:$0x1]  ;;  %v313_v2 = vadd.f32 %v285_v50, %v257_v20  ;;  %v314_v10 = vadd.f32 %v286_v51, %v258_v21  ;;  %v323_v6 = vld [vmem:[%s7959_s0 + $0x64] sm:$0x1]  ;;  %v348_v21 = vadd.f32 %v320_v63, %v292_v36  ;;  %v6242_v22 = vadd.f32 %v322_v12, %v294_v38 }
  0x8f   :  { %v315_v11 = vadd.f32 %v287_v52, %v259_v26  ;;  %v324_v7 = vld [vmem:[%s7959_s0 + $0x74] sm:$0x1]  ;;  %v316_v8 = vadd.f32 %v288_v54, %v260_v25  ;;  %v325_v9 = vld [vmem:[%s7959_s0 + $0x84] sm:$0x1]  ;;  %v349_v26 = vadd.f32 %v321_v0, %v293_v37  ;;  %v6244_v23 = vadd.f32 %v323_v6, %v295_v39 }
  0x90   :  { %v326_v13 = vld [vmem:[%s7959_s0 + $0x94] sm:$0x1]  ;;  %v327_v18 = vld [vmem:[%s7959_s0 + $0xa4] sm:$0x1]  ;;  %v6255_v28 = vadd.f32 %v324_v7, %v296_v43  ;;  %v353_v29 = vadd.f32 %v325_v9, %v297_v44  ;;  %v413_v5 = vrot.slane %v6242_v22, 3 }
  0x91   :  { %v328_v16 = vld [vmem:[%s7959_s0 + $0xb4] sm:$0x1]  ;;  %v329_v17 = vld [vmem:[%s7959_s0 + $0xc4] sm:$0x1]  ;;  %v354_v30 = vadd.f32 %v326_v13, %v298_v45  ;;  %v355_v31 = vadd.f32 %v327_v18, %v299_v49  ;;  %v416_v63 = vrot.slane %v6244_v23, 2 }
  0x92   :  { %v330_v20 = vld [vmem:[%s7959_s0 + $0xd4] sm:$0x1]  ;;  %v331_v24 = vld [vmem:[%s7959_s0 + $0xe4] sm:$0x1]  ;;  %v356_v35 = vadd.f32 %v328_v16, %v300_v53  ;;  %v357_v36 = vadd.f32 %v329_v17, %v301_v46 }
  0x93   :  { %v332_v25 = vld [vmem:[%s7959_s0 + $0xf4] sm:$0x1]  ;;  %v333_v27 = vld [vmem:[%s7959_s0 + $0x104] sm:$0x1]  ;;  %v358_v37 = vadd.f32 %v330_v20, %v302_v47  ;;  %v359_v38 = vadd.f32 %v331_v24, %v303_v48 }
  0x94   :  { %v334_v32 = vld [vmem:[%s7959_s0 + $0x114] sm:$0x1]  ;;  %v335_v33 = vld [vmem:[%s7959_s0 + $0x124] sm:$0x1]  ;;  %v360_v42 = vadd.f32 %v332_v25, %v304_v55  ;;  %v361_v43 = vadd.f32 %v333_v27, %v305_v56  ;;  %v428_v6 = vrot.slane %v357_v36, 4 }
  0x95   :  { %v336_v34 = vld [vmem:[%s7959_s0 + $0x134] sm:$0x1]  ;;  %v337_v39 = vld [vmem:[%s7959_s0 + $0x144] sm:$0x1]  ;;  %v362_v44 = vadd.f32 %v334_v32, %v306_v61  ;;  %v363_v45 = vadd.f32 %v335_v33, %v307_v62  ;;  %v401_v62 = vrot.slane %v346_v14, 7  ;;  %v430_v7 = vrot.slane %v358_v37, 3 }
  0x96   :  { %v338_v40 = vld [vmem:[%s7959_s0 + $0x154] sm:$0x1]  ;;  %v339_v41 = vld [vmem:[%s7959_s0 + $0x164] sm:$0x1]  ;;  %v364_v52 = vadd.f32 %v336_v34, %v308_v57  ;;  %v365_v53 = vadd.f32 %v337_v39, %v309_v58  ;;  %v404_v57 = vrot.slane %v347_v15, 6  ;;  %v407_v58 = vrot.slane %v348_v21, 5 }
  0x97   :  { %v340_v49 = vld [vmem:[%s7959_s0 + $0x174] sm:$0x1]  ;;  %v341_v50 = vld [vmem:[%s7959_s0 + $0x184] sm:$0x1]  ;;  %v366_v46 = vadd.f32 %v338_v40, %v310_v59  ;;  %v367_v47 = vadd.f32 %v339_v41, %v311_v60  ;;  %v403_v59 = vsel %vm402_vm0, %v401_v62, %v345_v19  ;;  %v410_v60 = vrot.slane %v349_v26, 4 }
  0x98   :  { %v342_v51 = vld [vmem:[%s7959_s0 + $0x194] sm:$0x1]  ;;  %v343_v48 = vld [vmem:[%s7959_s0 + $0x1a4] sm:$0x1]  ;;  %v368_v55 = vadd.f32 %v340_v49, %v312_v1  ;;  %v369_v56 = vadd.f32 %v341_v50, %v313_v2  ;;  %v406_v0 = vsel %vm405_vm1, %v404_v57, %v403_v59  ;;  %v419_v1 = vrot.slane %v6255_v28, 1 }
  0x99   :  { %v344_v54 = vld [vmem:[%s7959_s0 + $0x1b4] sm:$0x1]  ;;  %v370_v61 = vadd.f32 %v342_v51, %v314_v10  ;;  %v371_v3 = vadd.f32 %v343_v48, %v315_v11  ;;  %v422_v2 = vrot.slane %v354_v30, 7  ;;  %v424_v10 = vrot.slane %v355_v31, 6  ;;  %v468_v49 = vld [vmem:[%s7959_s0 + $0x23] sm:$0x1] }
  0x9a   :  { %v372_v4 = vadd.f32 %v344_v54, %v316_v8  ;;  %v409_v12 = vsel %vm408_vm2, %v407_v58, %v406_v0  ;;  %v426_v11 = vrot.slane %v356_v35, 5  ;;  %v432_v13 = vrot.slane %v360_v42, 7  ;;  %v494_v50 = vld [vmem:[%s7959_s0 + $0x4] sm:$0x1]  ;;  %v495_v51 = vld [vmem:[%s7959_s0 + $0x14] sm:$0x1] }
  0x9b   :  { %v412_v8 = vsel %vm411_vm3, %v410_v60, %v409_v12  ;;  %v423_v9 = vsel %vm402_vm0, %v422_v2, %v353_v29  ;;  %v434_v18 = vrot.slane %v361_v43, 6  ;;  %v436_v15 = vrot.slane %v362_v44, 5  ;;  %v466_v44 = vld [vmem:[%s7959_s0 + $0x3] sm:$0x1]  ;;  %v497_v54 = vld [vmem:[%s7959_s0 + $0x34] sm:$0x1] }
  0x9c   :  { %v415_v19 = vsel %vm414_vm4, %v413_v5, %v412_v8  ;;  %v425_v14 = vsel %vm405_vm1, %v424_v10, %v423_v9  ;;  %v438_v16 = vrot.slane %v363_v45, 4  ;;  %v433_v21 = vsel %vm402_vm0, %v432_v13, %v359_v38  ;;  %v467_v45 = vld [vmem:[%s7959_s0 + $0x13] sm:$0x1]  ;;  %v472_v48 = vld [vmem:[%s7959_s0 + $0x63] sm:$0x1] }
  0x9d   :  { %v418_v17 = vsel %vm417_vm5, %v416_v63, %v415_v19  ;;  %v427_v20 = vsel %vm408_vm2, %v426_v11, %v425_v14  ;;  %v440_v26 = vrot.slane %v364_v52, 3  ;;  %v435_v24 = vsel %vm405_vm1, %v434_v18, %v433_v21  ;;  %v496_v52 = vld [vmem:[%s7959_s0 + $0x24] sm:$0x1]  ;;  %v473_v62 = vld [vmem:[%s7959_s0 + $0x73] sm:$0x1] }
  0x9e   :  { %v421_v22 = vsel %vm420_vm6, %v419_v1, %v418_v17  ;;  %v429_v23 = vsel %vm411_vm3, %v428_v6, %v427_v20  ;;  %v442_v25 = vrot.slane %v365_v53, 2  ;;  %v437_v28 = vsel %vm408_vm2, %v436_v15, %v435_v24  ;;  %v469_v53 = vld [vmem:[%s7959_s0 + $0x33] sm:$0x1]  ;;  %v476_v57 = vld [vmem:[%s7959_s0 + $0xa3] sm:$0x1] }
  0x9f   :  { %v431_v27 = vsel %vm414_vm4, %v430_v7, %v429_v23  ;;  %v444_v29 = vrot.slane %v366_v46, 1  ;;  %v446_v30 = vrot.slane %v368_v55, 7  ;;  %461 = vst.msk [vmem:[#allocation2] sm:$0xff] %vm460_vm7, %v421_v22  ;;  %v439_v31 = vsel %vm411_vm3, %v438_v16, %v437_v28  ;;  %v470_v46 = vld [vmem:[%s7959_s0 + $0x43] sm:$0x1] }
  0xa0   :  { %v448_v32 = vrot.slane %v369_v56, 6  ;;  %v450_v33 = vrot.slane %v370_v61, 5  ;;  %v452_v34 = vrot.slane %v371_v3, 4  ;;  %463 = vst.msk [vmem:[#allocation2 + $0x8] sm:$0x3f] %vm462_vm8, %v431_v27  ;;  %v441_v35 = vsel %vm414_vm4, %v440_v26, %v439_v31 }
  0xa1   :  { %v447_v36 = vsel %vm402_vm0, %v446_v30, %v367_v47  ;;  %v454_v37 = vrot.slane %v372_v4, 3  ;;  %v443_v38 = vsel %vm417_vm5, %v442_v25, %v441_v35  ;;  %v471_v47 = vld [vmem:[%s7959_s0 + $0x53] sm:$0x1]  ;;  %v498_v55 = vld [vmem:[%s7959_s0 + $0x44] sm:$0x1]  ;;  %v522_v25 = vadd.f32 %v494_v50, %v466_v44 }
  0xa2   :  { %v449_v39 = vsel %vm405_vm1, %v448_v32, %v447_v36  ;;  %v445_v40 = vsel %vm420_vm6, %v444_v29, %v443_v38  ;;  %v499_v56 = vld [vmem:[%s7959_s0 + $0x54] sm:$0x1]  ;;  %v500_v61 = vld [vmem:[%s7959_s0 + $0x64] sm:$0x1]  ;;  %v474_v3 = vld [vmem:[%s7959_s0 + $0x83] sm:$0x1]  ;;  %v523_v27 = vadd.f32 %v495_v51, %v467_v45  ;;  %v524_v28 = vadd.f32 %v496_v52, %v468_v49 }
  0xa3   :  { %v451_v41 = vsel %vm408_vm2, %v450_v33, %v449_v39  ;;  %464 = vst.msk [vmem:[#allocation2 + $0x10] sm:$0xff] %vm460_vm7, %v445_v40  ;;  %v475_v4 = vld [vmem:[%s7959_s0 + $0x93] sm:$0x1]  ;;  %v501_v58 = vld [vmem:[%s7959_s0 + $0x74] sm:$0x1]  ;;  %v526_v38 = vadd.f32 %v498_v55, %v470_v46  ;;  %v527_v39 = vadd.f32 %v499_v56, %v471_v47  ;;  %v528_v40 = vadd.f32 %v500_v61, %v472_v48 }
  0xa4   :  { %v453_v42 = vsel %vm411_vm3, %v452_v34, %v451_v41  ;;  %v502_v59 = vld [vmem:[%s7959_s0 + $0x84] sm:$0x1]  ;;  %v503_v60 = vld [vmem:[%s7959_s0 + $0x94] sm:$0x1]  ;;  %v477_v63 = vld [vmem:[%s7959_s0 + $0xb3] sm:$0x1] }
  0xa5   :  { %v455_v43 = vsel %vm414_vm4, %v454_v37, %v453_v42  ;;  %v504_v5 = vld [vmem:[%s7959_s0 + $0xa4] sm:$0x1]  ;;  %v478_v0 = vld [vmem:[%s7959_s0 + $0xc3] sm:$0x1]  ;;  %v479_v1 = vld [vmem:[%s7959_s0 + $0xd3] sm:$0x1]  ;;  %v525_v37 = vadd.f32 %v497_v54, %v469_v53  ;;  %v530_v44 = vadd.f32 %v502_v59, %v474_v3  ;;  %v531_v45 = vadd.f32 %v503_v60, %v475_v4 }
  0xa6   :  { %465 = vst.msk [vmem:[#allocation2 + $0x18] sm:$0x3f] %vm462_vm8, %v455_v43  ;;  %v480_v2 = vld [vmem:[%s7959_s0 + $0xe3] sm:$0x1]  ;;  %v505_v10 = vld [vmem:[%s7959_s0 + $0xb4] sm:$0x1]  ;;  %v529_v43 = vadd.f32 %v501_v58, %v473_v62  ;;  %v532_v49 = vadd.f32 %v504_v5, %v476_v57 }
  0xa7   :  { %v506_v12 = vld [vmem:[%s7959_s0 + $0xc4] sm:$0x1]  ;;  %v507_v11 = vld [vmem:[%s7959_s0 + $0xd4] sm:$0x1]  ;;  %v481_v7 = vld [vmem:[%s7959_s0 + $0xf3] sm:$0x1]  ;;  %v533_v53 = vadd.f32 %v505_v10, %v477_v63 }
  0xa8   :  { %v508_v6 = vld [vmem:[%s7959_s0 + $0xe4] sm:$0x1]  ;;  %v482_v8 = vld [vmem:[%s7959_s0 + $0x103] sm:$0x1]  ;;  %v483_v9 = vld [vmem:[%s7959_s0 + $0x113] sm:$0x1]  ;;  %v534_v46 = vadd.f32 %v506_v12, %v478_v0  ;;  %v535_v47 = vadd.f32 %v507_v11, %v479_v1 }
  0xa9   :  { %v484_v13 = vld [vmem:[%s7959_s0 + $0x123] sm:$0x1]  ;;  %v509_v18 = vld [vmem:[%s7959_s0 + $0xf4] sm:$0x1]  ;;  %v510_v19 = vld [vmem:[%s7959_s0 + $0x104] sm:$0x1]  ;;  %v536_v48 = vadd.f32 %v508_v6, %v480_v2 }
  0xaa   :  { %v511_v14 = vld [vmem:[%s7959_s0 + $0x114] sm:$0x1]  ;;  %v512_v15 = vld [vmem:[%s7959_s0 + $0x124] sm:$0x1]  ;;  %v485_v16 = vld [vmem:[%s7959_s0 + $0x133] sm:$0x1]  ;;  %v537_v62 = vadd.f32 %v509_v18, %v481_v7  ;;  %v538_v3 = vadd.f32 %v510_v19, %v482_v8 }
  0xab   :  { %v486_v17 = vld [vmem:[%s7959_s0 + $0x143] sm:$0x1]  ;;  %v487_v20 = vld [vmem:[%s7959_s0 + $0x153] sm:$0x1]  ;;  %v513_v26 = vld [vmem:[%s7959_s0 + $0x134] sm:$0x1]  ;;  %v539_v4 = vadd.f32 %v511_v14, %v483_v9  ;;  %v540_v57 = vadd.f32 %v512_v15, %v484_v13 }
  0xac   :  { %v488_v21 = vld [vmem:[%s7959_s0 + $0x163] sm:$0x1]  ;;  %v514_v22 = vld [vmem:[%s7959_s0 + $0x144] sm:$0x1]  ;;  %v515_v23 = vld [vmem:[%s7959_s0 + $0x154] sm:$0x1]  ;;  %v541_v63 = vadd.f32 %v513_v26, %v485_v16 }
  0xad   :  { %v516_v24 = vld [vmem:[%s7959_s0 + $0x164] sm:$0x1]  ;;  %v489_v29 = vld [vmem:[%s7959_s0 + $0x173] sm:$0x1]  ;;  %v490_v30 = vld [vmem:[%s7959_s0 + $0x183] sm:$0x1]  ;;  %v542_v0 = vadd.f32 %v514_v22, %v486_v17  ;;  %v543_v1 = vadd.f32 %v515_v23, %v487_v20 }
  0xae   :  { %v491_v31 = vld [vmem:[%s7959_s0 + $0x193] sm:$0x1]  ;;  %v492_v32 = vld [vmem:[%s7959_s0 + $0x1a3] sm:$0x1]  ;;  %v517_v33 = vld [vmem:[%s7959_s0 + $0x174] sm:$0x1]  ;;  %v544_v2 = vadd.f32 %v516_v24, %v488_v21 }
  0xaf   :  { %v518_v34 = vld [vmem:[%s7959_s0 + $0x184] sm:$0x1]  ;;  %v519_v35 = vld [vmem:[%s7959_s0 + $0x194] sm:$0x1]  ;;  %v493_v41 = vld [vmem:[%s7959_s0 + $0x1b3] sm:$0x1]  ;;  %v545_v7 = vadd.f32 %v517_v33, %v489_v29 }
  0xb0   :  { %v520_v36 = vld [vmem:[%s7959_s0 + $0x1a4] sm:$0x1]  ;;  %v521_v42 = vld [vmem:[%s7959_s0 + $0x1b4] sm:$0x1]  ;;  %v550_v50 = vld [vmem:[%s7959_s0 + $0x5] sm:$0x1]  ;;  %v546_v8 = vadd.f32 %v518_v34, %v490_v30  ;;  %v547_v9 = vadd.f32 %v519_v35, %v491_v31 }
  0xb1   :  { %v551_v51 = vld [vmem:[%s7959_s0 + $0x15] sm:$0x1]  ;;  %v552_v52 = vld [vmem:[%s7959_s0 + $0x25] sm:$0x1]  ;;  %v548_v13 = vadd.f32 %v520_v36, %v492_v32  ;;  %v549_v16 = vadd.f32 %v521_v42, %v493_v41  ;;  %v578_v22 = vadd.f32 %v550_v50, %v522_v25  ;;  %v606_v50 = vld [vmem:[%s7959_s0 + $0x6] sm:$0x1] }
  0xb2   :  { %v553_v54 = vld [vmem:[%s7959_s0 + $0x35] sm:$0x1]  ;;  %v554_v55 = vld [vmem:[%s7959_s0 + $0x45] sm:$0x1]  ;;  %v579_v23 = vadd.f32 %v551_v51, %v523_v27  ;;  %v580_v24 = vadd.f32 %v552_v52, %v524_v28  ;;  %v607_v51 = vld [vmem:[%s7959_s0 + $0x16] sm:$0x1] }
  0xb3   :  { %v555_v56 = vld [vmem:[%s7959_s0 + $0x55] sm:$0x1]  ;;  %v556_v61 = vld [vmem:[%s7959_s0 + $0x65] sm:$0x1]  ;;  %v581_v33 = vadd.f32 %v553_v54, %v525_v37  ;;  %v582_v25 = vadd.f32 %v554_v55, %v526_v38  ;;  %v608_v37 = vld [vmem:[%s7959_s0 + $0x26] sm:$0x1] }
  0xb4   :  { %v557_v58 = vld [vmem:[%s7959_s0 + $0x75] sm:$0x1]  ;;  %v558_v59 = vld [vmem:[%s7959_s0 + $0x85] sm:$0x1]  ;;  %v583_v27 = vadd.f32 %v555_v56, %v527_v39  ;;  %v584_v28 = vadd.f32 %v556_v61, %v528_v40 }
  0xb5   :  { %v559_v60 = vld [vmem:[%s7959_s0 + $0x95] sm:$0x1]  ;;  %v560_v5 = vld [vmem:[%s7959_s0 + $0xa5] sm:$0x1]  ;;  %v585_v35 = vadd.f32 %v557_v58, %v529_v43  ;;  %v586_v36 = vadd.f32 %v558_v59, %v530_v44  ;;  %v609_v43 = vld [vmem:[%s7959_s0 + $0x36] sm:$0x1] }
  0xb6   :  { %v561_v10 = vld [vmem:[%s7959_s0 + $0xb5] sm:$0x1]  ;;  %v562_v12 = vld [vmem:[%s7959_s0 + $0xc5] sm:$0x1]  ;;  %v587_v41 = vadd.f32 %v559_v60, %v531_v45  ;;  %v588_v42 = vadd.f32 %v560_v5, %v532_v49  ;;  %v610_v44 = vld [vmem:[%s7959_s0 + $0x46] sm:$0x1] }
  0xb7   :  { %v563_v11 = vld [vmem:[%s7959_s0 + $0xd5] sm:$0x1]  ;;  %v564_v6 = vld [vmem:[%s7959_s0 + $0xe5] sm:$0x1]  ;;  %v589_v38 = vadd.f32 %v561_v10, %v533_v53  ;;  %v590_v39 = vadd.f32 %v562_v12, %v534_v46  ;;  %v611_v45 = vld [vmem:[%s7959_s0 + $0x56] sm:$0x1] }
  0xb8   :  { %v565_v18 = vld [vmem:[%s7959_s0 + $0xf5] sm:$0x1]  ;;  %v566_v19 = vld [vmem:[%s7959_s0 + $0x105] sm:$0x1]  ;;  %v591_v40 = vadd.f32 %v563_v11, %v535_v47  ;;  %v592_v52 = vadd.f32 %v564_v6, %v536_v48  ;;  %v612_v53 = vld [vmem:[%s7959_s0 + $0x66] sm:$0x1] }
  0xb9   :  { %v567_v14 = vld [vmem:[%s7959_s0 + $0x115] sm:$0x1]  ;;  %v568_v15 = vld [vmem:[%s7959_s0 + $0x125] sm:$0x1]  ;;  %v593_v49 = vadd.f32 %v565_v18, %v537_v62  ;;  %v594_v54 = vadd.f32 %v566_v19, %v538_v3  ;;  %v613_v46 = vld [vmem:[%s7959_s0 + $0x76] sm:$0x1] }
  0xba   :  { %v569_v17 = vld [vmem:[%s7959_s0 + $0x135] sm:$0x1]  ;;  %v570_v20 = vld [vmem:[%s7959_s0 + $0x145] sm:$0x1]  ;;  %v595_v55 = vadd.f32 %v567_v14, %v539_v4  ;;  %v596_v56 = vadd.f32 %v568_v15, %v540_v57  ;;  %v614_v47 = vld [vmem:[%s7959_s0 + $0x86] sm:$0x1]  ;;  %v637_v14 = vadd.f32 %v609_v43, %v581_v33  ;;  %v638_v15 = vadd.f32 %v610_v44, %v582_v25 }
  0xbb   :  { %v571_v21 = vld [vmem:[%s7959_s0 + $0x155] sm:$0x1]  ;;  %v572_v26 = vld [vmem:[%s7959_s0 + $0x165] sm:$0x1]  ;;  %v597_v48 = vadd.f32 %v569_v17, %v541_v63  ;;  %v598_v61 = vadd.f32 %v570_v20, %v542_v0  ;;  %v615_v62 = vld [vmem:[%s7959_s0 + $0x96] sm:$0x1]  ;;  %v640_v17 = vadd.f32 %v612_v53, %v584_v28 }
  0xbc   :  { %v573_v29 = vld [vmem:[%s7959_s0 + $0x175] sm:$0x1]  ;;  %v574_v30 = vld [vmem:[%s7959_s0 + $0x185] sm:$0x1]  ;;  %v599_v58 = vadd.f32 %v571_v21, %v543_v1  ;;  %v600_v59 = vadd.f32 %v572_v26, %v544_v2  ;;  %v616_v3 = vld [vmem:[%s7959_s0 + $0xa6] sm:$0x1] }
  0xbd   :  { %v575_v31 = vld [vmem:[%s7959_s0 + $0x195] sm:$0x1]  ;;  %v576_v32 = vld [vmem:[%s7959_s0 + $0x1a5] sm:$0x1]  ;;  %v617_v4 = vld [vmem:[%s7959_s0 + $0xb6] sm:$0x1]  ;;  %v601_v57 = vadd.f32 %v573_v29, %v545_v7  ;;  %v602_v60 = vadd.f32 %v574_v30, %v546_v8  ;;  %v634_v7 = vadd.f32 %v606_v50, %v578_v22  ;;  %v635_v8 = vadd.f32 %v607_v51, %v579_v23 }
  0xbe   :  { %v577_v34 = vld [vmem:[%s7959_s0 + $0x1b5] sm:$0x1]  ;;  %v603_v5 = vadd.f32 %v575_v31, %v547_v9  ;;  %v604_v10 = vadd.f32 %v576_v32, %v548_v13  ;;  %v618_v63 = vld [vmem:[%s7959_s0 + $0xc6] sm:$0x1]  ;;  %v619_v0 = vld [vmem:[%s7959_s0 + $0xd6] sm:$0x1]  ;;  %v636_v9 = vadd.f32 %v608_v37, %v580_v24  ;;  %v641_v22 = vadd.f32 %v613_v46, %v585_v35 }
  0xbf   :  { %v620_v1 = vld [vmem:[%s7959_s0 + $0xe6] sm:$0x1]  ;;  %v605_v2 = vadd.f32 %v577_v34, %v549_v16  ;;  %v621_v12 = vld [vmem:[%s7959_s0 + $0xf6] sm:$0x1]  ;;  %v639_v16 = vadd.f32 %v611_v45, %v583_v27  ;;  %v642_v23 = vadd.f32 %v614_v47, %v586_v36  ;;  %v643_v24 = vadd.f32 %v615_v62, %v587_v41  ;;  %v662_v50 = vld [vmem:[%s7959_s0 + $0x7] sm:$0x1] }
  0xc0   :  { %v622_v11 = vld [vmem:[%s7959_s0 + $0x106] sm:$0x1]  ;;  %v623_v6 = vld [vmem:[%s7959_s0 + $0x116] sm:$0x1]  ;;  %v644_v29 = vadd.f32 %v616_v3, %v588_v42  ;;  %v645_v33 = vadd.f32 %v617_v4, %v589_v38  ;;  %v646_v25 = vadd.f32 %v618_v63, %v590_v39  ;;  %v647_v27 = vadd.f32 %v619_v0, %v591_v40  ;;  %v663_v51 = vld [vmem:[%s7959_s0 + $0x17] sm:$0x1] }
  0xc1   :  { %v624_v13 = vld [vmem:[%s7959_s0 + $0x126] sm:$0x1]  ;;  %v625_v18 = vld [vmem:[%s7959_s0 + $0x136] sm:$0x1]  ;;  %v648_v28 = vadd.f32 %v620_v1, %v592_v52  ;;  %v649_v35 = vadd.f32 %v621_v12, %v593_v49  ;;  %v650_v36 = vadd.f32 %v622_v11, %v594_v54  ;;  %v651_v41 = vadd.f32 %v623_v6, %v595_v55  ;;  %v664_v52 = vld [vmem:[%s7959_s0 + $0x27] sm:$0x1] }
  0xc2   :  { %v626_v19 = vld [vmem:[%s7959_s0 + $0x146] sm:$0x1]  ;;  %v627_v20 = vld [vmem:[%s7959_s0 + $0x156] sm:$0x1]  ;;  %v652_v42 = vadd.f32 %v624_v13, %v596_v56  ;;  %v653_v37 = vadd.f32 %v625_v18, %v597_v48  ;;  %v665_v43 = vld [vmem:[%s7959_s0 + $0x37] sm:$0x1]  ;;  %v691_v62 = vadd.f32 %v663_v51, %v635_v8  ;;  %v692_v3 = vadd.f32 %v664_v52, %v636_v9 }
  0xc3   :  { %v628_v21 = vld [vmem:[%s7959_s0 + $0x166] sm:$0x1]  ;;  %v629_v26 = vld [vmem:[%s7959_s0 + $0x176] sm:$0x1]  ;;  %v654_v38 = vadd.f32 %v626_v19, %v598_v61  ;;  %v655_v39 = vadd.f32 %v627_v20, %v599_v58  ;;  %v666_v44 = vld [vmem:[%s7959_s0 + $0x47] sm:$0x1] }
  0xc4   :  { %v630_v30 = vld [vmem:[%s7959_s0 + $0x186] sm:$0x1]  ;;  %v631_v31 = vld [vmem:[%s7959_s0 + $0x196] sm:$0x1]  ;;  %v656_v40 = vadd.f32 %v628_v21, %v600_v59  ;;  %v657_v45 = vadd.f32 %v629_v26, %v601_v57  ;;  %v667_v56 = vld [vmem:[%s7959_s0 + $0x57] sm:$0x1]  ;;  %v690_v59 = vadd.f32 %v662_v50, %v634_v7 }
  0xc5   :  { %v632_v32 = vld [vmem:[%s7959_s0 + $0x1a6] sm:$0x1]  ;;  %v633_v34 = vld [vmem:[%s7959_s0 + $0x1b6] sm:$0x1]  ;;  %v658_v49 = vadd.f32 %v630_v30, %v602_v60  ;;  %v659_v54 = vadd.f32 %v631_v31, %v603_v5  ;;  %v668_v53 = vld [vmem:[%s7959_s0 + $0x67] sm:$0x1]  ;;  %v693_v5 = vadd.f32 %v665_v43, %v637_v14  ;;  %v695_v63 = vadd.f32 %v667_v56, %v639_v16 }
  0xc6   :  { %v660_v55 = vadd.f32 %v632_v32, %v604_v10  ;;  %v669_v46 = vld [vmem:[%s7959_s0 + $0x77] sm:$0x1]  ;;  %v661_v47 = vadd.f32 %v633_v34, %v605_v2  ;;  %v670_v48 = vld [vmem:[%s7959_s0 + $0x87] sm:$0x1]  ;;  %v694_v10 = vadd.f32 %v666_v44, %v638_v15  ;;  %v696_v0 = vadd.f32 %v668_v53, %v640_v17 }
  0xc7   :  { %v671_v61 = vld [vmem:[%s7959_s0 + $0x97] sm:$0x1]  ;;  %v672_v58 = vld [vmem:[%s7959_s0 + $0xa7] sm:$0x1]  ;;  %v697_v11 = vadd.f32 %v669_v46, %v641_v22  ;;  %v698_v6 = vadd.f32 %v670_v48, %v642_v23  ;;  %v748_v52 = vrot.slane %v692_v3, 6  ;;  %v750_v43 = vrot.slane %v693_v5, 5 }
  0xc8   :  { %v673_v4 = vld [vmem:[%s7959_s0 + $0xb7] sm:$0x1]  ;;  %v674_v57 = vld [vmem:[%s7959_s0 + $0xc7] sm:$0x1]  ;;  %v699_v7 = vadd.f32 %v671_v61, %v643_v24  ;;  %v700_v8 = vadd.f32 %v672_v58, %v644_v29 }
  0xc9   :  { %v675_v60 = vld [vmem:[%s7959_s0 + $0xd7] sm:$0x1]  ;;  %v676_v1 = vld [vmem:[%s7959_s0 + $0xe7] sm:$0x1]  ;;  %v701_v19 = vadd.f32 %v673_v4, %v645_v33  ;;  %v702_v14 = vadd.f32 %v674_v57, %v646_v25  ;;  %v758_v56 = vrot.slane %v697_v11, 1 }
  0xca   :  { %v677_v2 = vld [vmem:[%s7959_s0 + $0xf7] sm:$0x1]  ;;  %v678_v12 = vld [vmem:[%s7959_s0 + $0x107] sm:$0x1]  ;;  %v703_v15 = vadd.f32 %v675_v60, %v647_v27  ;;  %v704_v16 = vadd.f32 %v676_v1, %v648_v28  ;;  %v760_v53 = vrot.slane %v699_v7, 7  ;;  %v762_v46 = vrot.slane %v700_v8, 6 }
  0xcb   :  { %v679_v9 = vld [vmem:[%s7959_s0 + $0x117] sm:$0x1]  ;;  %v680_v13 = vld [vmem:[%s7959_s0 + $0x127] sm:$0x1]  ;;  %v705_v26 = vadd.f32 %v677_v2, %v649_v35  ;;  %v706_v22 = vadd.f32 %v678_v12, %v650_v36 }
  0xcc   :  { %v681_v18 = vld [vmem:[%s7959_s0 + $0x137] sm:$0x1]  ;;  %v682_v17 = vld [vmem:[%s7959_s0 + $0x147] sm:$0x1]  ;;  %v707_v23 = vadd.f32 %v679_v9, %v651_v41  ;;  %v708_v24 = vadd.f32 %v680_v13, %v652_v42  ;;  %v746_v42 = vrot.slane %v691_v62, 7 }
  0xcd   :  { %v683_v20 = vld [vmem:[%s7959_s0 + $0x157] sm:$0x1]  ;;  %v684_v21 = vld [vmem:[%s7959_s0 + $0x167] sm:$0x1]  ;;  %v709_v32 = vadd.f32 %v681_v18, %v653_v37  ;;  %v710_v33 = vadd.f32 %v682_v17, %v654_v38  ;;  %v752_v38 = vrot.slane %v694_v10, 4  ;;  %v770_v61 = vrot.slane %v705_v26, 7 }
  0xce   :  { %v685_v29 = vld [vmem:[%s7959_s0 + $0x177] sm:$0x1]  ;;  %v686_v30 = vld [vmem:[%s7959_s0 + $0x187] sm:$0x1]  ;;  %v711_v25 = vadd.f32 %v683_v20, %v655_v39  ;;  %v712_v27 = vadd.f32 %v684_v21, %v656_v40  ;;  %v747_v37 = vsel %vm402_vm0, %v746_v42, %v690_v59  ;;  %v754_v39 = vrot.slane %v695_v63, 3 }
  0xcf   :  { %v687_v31 = vld [vmem:[%s7959_s0 + $0x197] sm:$0x1]  ;;  %v688_v28 = vld [vmem:[%s7959_s0 + $0x1a7] sm:$0x1]  ;;  %v713_v35 = vadd.f32 %v685_v29, %v657_v45  ;;  %v714_v36 = vadd.f32 %v686_v30, %v658_v49  ;;  %v756_v40 = vrot.slane %v696_v0, 2  ;;  %v749_v44 = vsel %vm405_vm1, %v748_v52, %v747_v37 }
  0xd0   :  { %v689_v34 = vld [vmem:[%s7959_s0 + $0x1b7] sm:$0x1]  ;;  %v715_v41 = vadd.f32 %v687_v31, %v659_v54  ;;  %v716_v50 = vadd.f32 %v688_v28, %v660_v55  ;;  %v751_v48 = vsel %vm408_vm2, %v750_v43, %v749_v44  ;;  %v764_v45 = vrot.slane %v701_v19, 5  ;;  %v805_v29 = vld [vmem:[%s7959_s0 + $0x26] sm:$0x1] }
  0xd1   :  { %v717_v51 = vadd.f32 %v689_v34, %v661_v47  ;;  %v766_v49 = vrot.slane %v702_v14, 4  ;;  %v768_v54 = vrot.slane %v703_v15, 3  ;;  %v753_v55 = vsel %vm411_vm3, %v752_v38, %v751_v48  ;;  %v831_v30 = vld [vmem:[%s7959_s0 + $0x7] sm:$0x1]  ;;  %v832_v31 = vld [vmem:[%s7959_s0 + $0x17] sm:$0x1] }
  0xd2   :  { %v761_v47 = vsel %vm402_vm0, %v760_v53, %v698_v6  ;;  %v772_v58 = vrot.slane %v706_v22, 6  ;;  %v755_v59 = vsel %vm414_vm4, %v754_v39, %v753_v55  ;;  %v774_v3 = vrot.slane %v707_v23, 5  ;;  %v803_v23 = vld [vmem:[%s7959_s0 + $0x6] sm:$0x1]  ;;  %v834_v34 = vld [vmem:[%s7959_s0 + $0x37] sm:$0x1] }
  0xd3   :  { %v763_v62 = vsel %vm405_vm1, %v762_v46, %v761_v47  ;;  %v776_v4 = vrot.slane %v708_v24, 4  ;;  %v757_v57 = vsel %vm417_vm5, %v756_v40, %v755_v59  ;;  %v771_v5 = vsel %vm402_vm0, %v770_v61, %v704_v16  ;;  %v804_v24 = vld [vmem:[%s7959_s0 + $0x16] sm:$0x1]  ;;  %v809_v28 = vld [vmem:[%s7959_s0 + $0x66] sm:$0x1] }
  0xd4   :  { %v765_v60 = vsel %vm408_vm2, %v764_v45, %v763_v62  ;;  %v778_v10 = vrot.slane %v709_v32, 3  ;;  %v759_v63 = vsel %vm420_vm6, %v758_v56, %v757_v57  ;;  %v773_v1 = vsel %vm405_vm1, %v772_v58, %v771_v5  ;;  %v833_v32 = vld [vmem:[%s7959_s0 + $0x27] sm:$0x1]  ;;  %v810_v42 = vld [vmem:[%s7959_s0 + $0x76] sm:$0x1] }
  0xd5   :  { %v767_v0 = vsel %vm411_vm3, %v766_v49, %v765_v60  ;;  %v780_v2 = vrot.slane %v710_v33, 2  ;;  %v775_v11 = vsel %vm408_vm2, %v774_v3, %v773_v1  ;;  %v782_v6 = vrot.slane %v711_v25, 1  ;;  %799 = vst.msk [vmem:[#allocation2 + $0x20] sm:$0xff] %vm460_vm7, %v759_v63  ;;  %v806_v33 = vld [vmem:[%s7959_s0 + $0x36] sm:$0x1] }
  0xd6   :  { %v769_v12 = vsel %vm414_vm4, %v768_v54, %v767_v0  ;;  %v784_v7 = vrot.slane %v713_v35, 7  ;;  %v777_v8 = vsel %vm411_vm3, %v776_v4, %v775_v11  ;;  %v786_v9 = vrot.slane %v714_v36, 6  ;;  %v807_v25 = vld [vmem:[%s7959_s0 + $0x46] sm:$0x1]  ;;  %v835_v35 = vld [vmem:[%s7959_s0 + $0x47] sm:$0x1] }
  0xd7   :  { %v788_v13 = vrot.slane %v715_v41, 5  ;;  %v790_v18 = vrot.slane %v716_v50, 4  ;;  %800 = vst.msk [vmem:[#allocation2 + $0x28] sm:$0x3f] %vm462_vm8, %v769_v12  ;;  %v779_v19 = vsel %vm414_vm4, %v778_v10, %v777_v8  ;;  %v792_v15 = vrot.slane %v717_v51, 3 }
  0xd8   :  { %v785_v14 = vsel %vm402_vm0, %v784_v7, %v712_v27  ;;  %v781_v16 = vsel %vm417_vm5, %v780_v2, %v779_v19  ;;  %v808_v27 = vld [vmem:[%s7959_s0 + $0x56] sm:$0x1]  ;;  %v836_v36 = vld [vmem:[%s7959_s0 + $0x57] sm:$0x1]  ;;  %v837_v41 = vld [vmem:[%s7959_s0 + $0x67] sm:$0x1]  ;;  %v859_v2 = vadd.f32 %v831_v30, %v803_v23  ;;  %v860_v12 = vadd.f32 %v832_v31, %v804_v24 }
  0xd9   :  { %v787_v17 = vsel %vm405_vm1, %v786_v9, %v785_v14  ;;  %v783_v20 = vsel %vm420_vm6, %v782_v6, %v781_v16  ;;  %v811_v50 = vld [vmem:[%s7959_s0 + $0x86] sm:$0x1]  ;;  %v812_v51 = vld [vmem:[%s7959_s0 + $0x96] sm:$0x1]  ;;  %v838_v43 = vld [vmem:[%s7959_s0 + $0x77] sm:$0x1]  ;;  %v861_v11 = vadd.f32 %v833_v32, %v805_v29  ;;  %v863_v16 = vadd.f32 %v835_v35, %v807_v25 }
  0xda   :  { %v789_v21 = vsel %vm408_vm2, %v788_v13, %v787_v17  ;;  %801 = vst.msk [vmem:[#allocation2 + $0x30] sm:$0xff] %vm460_vm7, %v783_v20  ;;  %v813_v52 = vld [vmem:[%s7959_s0 + $0xa6] sm:$0x1]  ;;  %v839_v37 = vld [vmem:[%s7959_s0 + $0x87] sm:$0x1]  ;;  %v864_v17 = vadd.f32 %v836_v36, %v808_v27  ;;  %v865_v20 = vadd.f32 %v837_v41, %v809_v28 }
  0xdb   :  { %v791_v26 = vsel %vm411_vm3, %v790_v18, %v789_v21  ;;  %v840_v38 = vld [vmem:[%s7959_s0 + $0x97] sm:$0x1]  ;;  %v841_v39 = vld [vmem:[%s7959_s0 + $0xa7] sm:$0x1]  ;;  %v814_v40 = vld [vmem:[%s7959_s0 + $0xb6] sm:$0x1]  ;;  %v867_v23 = vadd.f32 %v839_v37, %v811_v50 }
  0xdc   :  { %v793_v22 = vsel %vm414_vm4, %v792_v15, %v791_v26  ;;  %v815_v44 = vld [vmem:[%s7959_s0 + $0xc6] sm:$0x1]  ;;  %v816_v56 = vld [vmem:[%s7959_s0 + $0xd6] sm:$0x1]  ;;  %v842_v46 = vld [vmem:[%s7959_s0 + $0xb7] sm:$0x1]  ;;  %v862_v15 = vadd.f32 %v834_v34, %v806_v33  ;;  %v868_v24 = vadd.f32 %v840_v38, %v812_v51  ;;  %v869_v29 = vadd.f32 %v841_v39, %v813_v52 }
  0xdd   :  { %802 = vst.msk [vmem:[#allocation2 + $0x38] sm:$0x3f] %vm462_vm8, %v793_v22  ;;  %v817_v53 = vld [vmem:[%s7959_s0 + $0xe6] sm:$0x1]  ;;  %v843_v48 = vld [vmem:[%s7959_s0 + $0xc7] sm:$0x1]  ;;  %v866_v22 = vadd.f32 %v838_v43, %v810_v42  ;;  %v870_v33 = vadd.f32 %v842_v46, %v814_v40 }
  0xde   :  { %v844_v45 = vld [vmem:[%s7959_s0 + $0xd7] sm:$0x1]  ;;  %v845_v49 = vld [vmem:[%s7959_s0 + $0xe7] sm:$0x1]  ;;  %v818_v54 = vld [vmem:[%s7959_s0 + $0xf6] sm:$0x1]  ;;  %v871_v25 = vadd.f32 %v843_v48, %v815_v44 }
  0xdf   :  { %v819_v55 = vld [vmem:[%s7959_s0 + $0x106] sm:$0x1]  ;;  %v820_v47 = vld [vmem:[%s7959_s0 + $0x116] sm:$0x1]  ;;  %v846_v58 = vld [vmem:[%s7959_s0 + $0xf7] sm:$0x1]  ;;  %v872_v27 = vadd.f32 %v844_v45, %v816_v56  ;;  %v873_v28 = vadd.f32 %v845_v49, %v817_v53 }
  0xe0   :  { %v821_v61 = vld [vmem:[%s7959_s0 + $0x126] sm:$0x1]  ;;  %v847_v59 = vld [vmem:[%s7959_s0 + $0x107] sm:$0x1]  ;;  %v848_v62 = vld [vmem:[%s7959_s0 + $0x117] sm:$0x1]  ;;  %v874_v42 = vadd.f32 %v846_v58, %v818_v54 }
  0xe1   :  { %v849_v3 = vld [vmem:[%s7959_s0 + $0x127] sm:$0x1]  ;;  %v822_v4 = vld [vmem:[%s7959_s0 + $0x136] sm:$0x1]  ;;  %v823_v57 = vld [vmem:[%s7959_s0 + $0x146] sm:$0x1]  ;;  %v875_v50 = vadd.f32 %v847_v59, %v819_v55  ;;  %v876_v51 = vadd.f32 %v848_v62, %v820_v47 }
  0xe2   :  { %v824_v60 = vld [vmem:[%s7959_s0 + $0x156] sm:$0x1]  ;;  %v825_v5 = vld [vmem:[%s7959_s0 + $0x166] sm:$0x1]  ;;  %v850_v10 = vld [vmem:[%s7959_s0 + $0x137] sm:$0x1]  ;;  %v877_v52 = vadd.f32 %v849_v3, %v821_v61 }
  0xe3   :  { %v851_v63 = vld [vmem:[%s7959_s0 + $0x147] sm:$0x1]  ;;  %v852_v0 = vld [vmem:[%s7959_s0 + $0x157] sm:$0x1]  ;;  %v826_v6 = vld [vmem:[%s7959_s0 + $0x176] sm:$0x1]  ;;  %v878_v40 = vadd.f32 %v850_v10, %v822_v4 }
  0xe4   :  { %v853_v1 = vld [vmem:[%s7959_s0 + $0x167] sm:$0x1]  ;;  %v827_v7 = vld [vmem:[%s7959_s0 + $0x186] sm:$0x1]  ;;  %v828_v8 = vld [vmem:[%s7959_s0 + $0x196] sm:$0x1]  ;;  %v879_v44 = vadd.f32 %v851_v63, %v823_v57  ;;  %v880_v56 = vadd.f32 %v852_v0, %v824_v60 }
  0xe5   :  { %v829_v9 = vld [vmem:[%s7959_s0 + $0x1a6] sm:$0x1]  ;;  %v854_v13 = vld [vmem:[%s7959_s0 + $0x177] sm:$0x1]  ;;  %v855_v18 = vld [vmem:[%s7959_s0 + $0x187] sm:$0x1]  ;;  %v881_v53 = vadd.f32 %v853_v1, %v825_v5 }
  0xe6   :  { %v856_v19 = vld [vmem:[%s7959_s0 + $0x197] sm:$0x1]  ;;  %v857_v14 = vld [vmem:[%s7959_s0 + $0x1a7] sm:$0x1]  ;;  %v830_v21 = vld [vmem:[%s7959_s0 + $0x1b6] sm:$0x1]  ;;  %v882_v54 = vadd.f32 %v854_v13, %v826_v6  ;;  %v883_v55 = vadd.f32 %v855_v18, %v827_v7 }
  0xe7   :  { %v858_v26 = vld [vmem:[%s7959_s0 + $0x1b7] sm:$0x1]  ;;  %v887_v30 = vld [vmem:[%s7959_s0 + $0x8] sm:$0x1]  ;;  %v888_v31 = vld [vmem:[%s7959_s0 + $0x18] sm:$0x1]  ;;  %v884_v47 = vadd.f32 %v856_v19, %v828_v8  ;;  %v885_v61 = vadd.f32 %v857_v14, %v829_v9 }
  0xe8   :  { %v889_v32 = vld [vmem:[%s7959_s0 + $0x28] sm:$0x1]  ;;  %v890_v34 = vld [vmem:[%s7959_s0 + $0x38] sm:$0x1]  ;;  %v886_v4 = vadd.f32 %v858_v26, %v830_v21  ;;  %v915_v63 = vadd.f32 %v887_v30, %v859_v2  ;;  %v916_v0 = vadd.f32 %v888_v31, %v860_v12  ;;  %v943_v30 = vld [vmem:[%s7959_s0 + $0x9] sm:$0x1] }
  0xe9   :  { %v891_v35 = vld [vmem:[%s7959_s0 + $0x48] sm:$0x1]  ;;  %v892_v36 = vld [vmem:[%s7959_s0 + $0x58] sm:$0x1]  ;;  %v917_v1 = vadd.f32 %v889_v32, %v861_v11  ;;  %v918_v13 = vadd.f32 %v890_v34, %v862_v15  ;;  %v944_v31 = vld [vmem:[%s7959_s0 + $0x19] sm:$0x1] }
  0xea   :  { %v893_v41 = vld [vmem:[%s7959_s0 + $0x68] sm:$0x1]  ;;  %v894_v43 = vld [vmem:[%s7959_s0 + $0x78] sm:$0x1]  ;;  %v919_v2 = vadd.f32 %v891_v35, %v863_v16  ;;  %v920_v12 = vadd.f32 %v892_v36, %v864_v17  ;;  %v945_v15 = vld [vmem:[%s7959_s0 + $0x29] sm:$0x1] }
  0xeb   :  { %v895_v37 = vld [vmem:[%s7959_s0 + $0x88] sm:$0x1]  ;;  %v896_v38 = vld [vmem:[%s7959_s0 + $0x98] sm:$0x1]  ;;  %v921_v11 = vadd.f32 %v893_v41, %v865_v20  ;;  %v922_v19 = vadd.f32 %v894_v43, %v866_v22  ;;  %v946_v22 = vld [vmem:[%s7959_s0 + $0x39] sm:$0x1] }
  0xec   :  { %v897_v39 = vld [vmem:[%s7959_s0 + $0xa8] sm:$0x1]  ;;  %v898_v46 = vld [vmem:[%s7959_s0 + $0xb8] sm:$0x1]  ;;  %v923_v14 = vadd.f32 %v895_v37, %v867_v23  ;;  %v924_v21 = vadd.f32 %v896_v38, %v868_v24  ;;  %v947_v23 = vld [vmem:[%s7959_s0 + $0x49] sm:$0x1] }
  0xed   :  { %v899_v48 = vld [vmem:[%s7959_s0 + $0xc8] sm:$0x1]  ;;  %v900_v45 = vld [vmem:[%s7959_s0 + $0xd8] sm:$0x1]  ;;  %v925_v26 = vadd.f32 %v897_v39, %v869_v29  ;;  %v926_v16 = vadd.f32 %v898_v46, %v870_v33  ;;  %v948_v24 = vld [vmem:[%s7959_s0 + $0x59] sm:$0x1] }
  0xee   :  { %v901_v49 = vld [vmem:[%s7959_s0 + $0xe8] sm:$0x1]  ;;  %v902_v58 = vld [vmem:[%s7959_s0 + $0xf8] sm:$0x1]  ;;  %v927_v17 = vadd.f32 %v899_v48, %v871_v25  ;;  %v928_v20 = vadd.f32 %v900_v45, %v872_v27  ;;  %v949_v33 = vld [vmem:[%s7959_s0 + $0x69] sm:$0x1] }
  0xef   :  { %v903_v59 = vld [vmem:[%s7959_s0 + $0x108] sm:$0x1]  ;;  %v904_v62 = vld [vmem:[%s7959_s0 + $0x118] sm:$0x1]  ;;  %v929_v32 = vadd.f32 %v901_v49, %v873_v28  ;;  %v930_v29 = vadd.f32 %v902_v58, %v874_v42  ;;  %v950_v25 = vld [vmem:[%s7959_s0 + $0x79] sm:$0x1] }
  0xf0   :  { %v905_v3 = vld [vmem:[%s7959_s0 + $0x128] sm:$0x1]  ;;  %v906_v57 = vld [vmem:[%s7959_s0 + $0x138] sm:$0x1]  ;;  %v931_v34 = vadd.f32 %v903_v59, %v875_v50  ;;  %v932_v35 = vadd.f32 %v904_v62, %v876_v51  ;;  %v951_v27 = vld [vmem:[%s7959_s0 + $0x89] sm:$0x1]  ;;  %v974_v62 = vadd.f32 %v946_v22, %v918_v13 }
  0xf1   :  { %v907_v60 = vld [vmem:[%s7959_s0 + $0x148] sm:$0x1]  ;;  %v908_v5 = vld [vmem:[%s7959_s0 + $0x158] sm:$0x1]  ;;  %v933_v36 = vadd.f32 %v905_v3, %v877_v52  ;;  %v934_v28 = vadd.f32 %v906_v57, %v878_v40  ;;  %v952_v42 = vld [vmem:[%s7959_s0 + $0x99] sm:$0x1]  ;;  %v975_v3 = vadd.f32 %v947_v23, %v919_v2  ;;  %v977_v57 = vadd.f32 %v949_v33, %v921_v11 }
  0xf2   :  { %v909_v10 = vld [vmem:[%s7959_s0 + $0x168] sm:$0x1]  ;;  %v910_v6 = vld [vmem:[%s7959_s0 + $0x178] sm:$0x1]  ;;  %v935_v41 = vadd.f32 %v907_v60, %v879_v44  ;;  %v936_v43 = vadd.f32 %v908_v5, %v880_v56  ;;  %v953_v50 = vld [vmem:[%s7959_s0 + $0xa9] sm:$0x1] }
  0xf3   :  { %v911_v7 = vld [vmem:[%s7959_s0 + $0x188] sm:$0x1]  ;;  %v912_v8 = vld [vmem:[%s7959_s0 + $0x198] sm:$0x1]  ;;  %v937_v37 = vadd.f32 %v909_v10, %v881_v53  ;;  %v954_v51 = vld [vmem:[%s7959_s0 + $0xb9] sm:$0x1]  ;;  %v938_v52 = vadd.f32 %v910_v6, %v882_v54  ;;  %v971_v54 = vadd.f32 %v943_v30, %v915_v63  ;;  %v978_v63 = vadd.f32 %v950_v25, %v922_v19 }
  0xf4   :  { %v913_v9 = vld [vmem:[%s7959_s0 + $0x1a8] sm:$0x1]  ;;  %v914_v18 = vld [vmem:[%s7959_s0 + $0x1b8] sm:$0x1]  ;;  %v939_v38 = vadd.f32 %v911_v7, %v883_v55  ;;  %v940_v39 = vadd.f32 %v912_v8, %v884_v47  ;;  %v955_v40 = vld [vmem:[%s7959_s0 + $0xc9] sm:$0x1]  ;;  %v972_v55 = vadd.f32 %v944_v31, %v916_v0  ;;  %v973_v47 = vadd.f32 %v945_v15, %v917_v1 }
  0xf5   :  { %v941_v46 = vadd.f32 %v913_v9, %v885_v61  ;;  %v956_v44 = vld [vmem:[%s7959_s0 + $0xd9] sm:$0x1]  ;;  %v957_v56 = vld [vmem:[%s7959_s0 + $0xe9] sm:$0x1]  ;;  %v942_v53 = vadd.f32 %v914_v18, %v886_v4  ;;  %v976_v4 = vadd.f32 %v948_v24, %v920_v12  ;;  %v979_v0 = vadd.f32 %v951_v27, %v923_v14  ;;  %v999_v30 = vld [vmem:[%s7959_s0 + $0xa] sm:$0x1] }
  0xf6   :  { %v958_v48 = vld [vmem:[%s7959_s0 + $0xf9] sm:$0x1]  ;;  %v959_v45 = vld [vmem:[%s7959_s0 + $0x109] sm:$0x1]  ;;  %v980_v1 = vadd.f32 %v952_v42, %v924_v21  ;;  %v981_v6 = vadd.f32 %v953_v50, %v925_v26  ;;  %v982_v13 = vadd.f32 %v954_v51, %v926_v16  ;;  %v983_v2 = vadd.f32 %v955_v40, %v927_v17  ;;  %v1000_v31 = vld [vmem:[%s7959_s0 + $0x1a] sm:$0x1] }
  0xf7   :  { %v960_v49 = vld [vmem:[%s7959_s0 + $0x119] sm:$0x1]  ;;  %v961_v61 = vld [vmem:[%s7959_s0 + $0x129] sm:$0x1]  ;;  %v984_v12 = vadd.f32 %v956_v44, %v928_v20  ;;  %v985_v11 = vadd.f32 %v957_v56, %v929_v32  ;;  %v986_v19 = vadd.f32 %v958_v48, %v930_v29  ;;  %v987_v14 = vadd.f32 %v959_v45, %v931_v34  ;;  %v1001_v32 = vld [vmem:[%s7959_s0 + $0x2a] sm:$0x1] }
  0xf8   :  { %v962_v58 = vld [vmem:[%s7959_s0 + $0x139] sm:$0x1]  ;;  %v963_v59 = vld [vmem:[%s7959_s0 + $0x149] sm:$0x1]  ;;  %v988_v21 = vadd.f32 %v960_v49, %v932_v35  ;;  %v989_v26 = vadd.f32 %v961_v61, %v933_v36  ;;  %v1002_v22 = vld [vmem:[%s7959_s0 + $0x3a] sm:$0x1]  ;;  %v1028_v42 = vadd.f32 %v1000_v31, %v972_v55  ;;  %v1029_v50 = vadd.f32 %v1001_v32, %v973_v47 }
  0xf9   :  { %v964_v60 = vld [vmem:[%s7959_s0 + $0x159] sm:$0x1]  ;;  %v965_v5 = vld [vmem:[%s7959_s0 + $0x169] sm:$0x1]  ;;  %v990_v15 = vadd.f32 %v962_v58, %v934_v28  ;;  %v991_v16 = vadd.f32 %v963_v59, %v935_v41  ;;  %v1003_v23 = vld [vmem:[%s7959_s0 + $0x4a] sm:$0x1] }
  0xfa   :  { %v966_v10 = vld [vmem:[%s7959_s0 + $0x179] sm:$0x1]  ;;  %v967_v7 = vld [vmem:[%s7959_s0 + $0x189] sm:$0x1]  ;;  %v992_v17 = vadd.f32 %v964_v60, %v936_v43  ;;  %v993_v20 = vadd.f32 %v965_v5, %v937_v37  ;;  %v1004_v36 = vld [vmem:[%s7959_s0 + $0x5a] sm:$0x1]  ;;  %v1027_v37 = vadd.f32 %v999_v30, %v971_v54 }
  0xfb   :  { %v968_v8 = vld [vmem:[%s7959_s0 + $0x199] sm:$0x1]  ;;  %v969_v9 = vld [vmem:[%s7959_s0 + $0x1a9] sm:$0x1]  ;;  %v994_v24 = vadd.f32 %v966_v10, %v938_v52  ;;  %v995_v29 = vadd.f32 %v967_v7, %v939_v38  ;;  %v1005_v33 = vld [vmem:[%s7959_s0 + $0x6a] sm:$0x1]  ;;  %v1032_v40 = vadd.f32 %v1004_v36, %v976_v4 }
  0xfc   :  { %v970_v18 = vld [vmem:[%s7959_s0 + $0x1b9] sm:$0x1]  ;;  %v996_v34 = vadd.f32 %v968_v8, %v940_v39  ;;  %v997_v35 = vadd.f32 %v969_v9, %v941_v46  ;;  %v1006_v25 = vld [vmem:[%s7959_s0 + $0x7a] sm:$0x1]  ;;  %v1007_v28 = vld [vmem:[%s7959_s0 + $0x8a] sm:$0x1]  ;;  %v1030_v39 = vadd.f32 %v1002_v22, %v974_v62  ;;  %v1031_v46 = vadd.f32 %v1003_v23, %v975_v3 }
  0xfd   :  { %v998_v27 = vadd.f32 %v970_v18, %v942_v53  ;;  %v1008_v41 = vld [vmem:[%s7959_s0 + $0x9a] sm:$0x1]  ;;  %v1009_v43 = vld [vmem:[%s7959_s0 + $0xaa] sm:$0x1]  ;;  %v1033_v44 = vadd.f32 %v1005_v33, %v977_v57  ;;  %v1034_v45 = vadd.f32 %v1006_v25, %v978_v63  ;;  %v1035_v49 = vadd.f32 %v1007_v28, %v979_v0 }
  0xfe   :  { %v1010_v51 = vld [vmem:[%s7959_s0 + $0xba] sm:$0x1]  ;;  %v1011_v52 = vld [vmem:[%s7959_s0 + $0xca] sm:$0x1]  ;;  %v1036_v54 = vadd.f32 %v1008_v41, %v980_v1  ;;  %v1037_v55 = vadd.f32 %v1009_v43, %v981_v6  ;;  %v1085_v32 = vrot.slane %v1029_v50, 6  ;;  %v1087_v22 = vrot.slane %v1030_v39, 5 }
  0xff   :  { %v1012_v38 = vld [vmem:[%s7959_s0 + $0xda] sm:$0x1]  ;;  %v1013_v56 = vld [vmem:[%s7959_s0 + $0xea] sm:$0x1]  ;;  %v1038_v59 = vadd.f32 %v1010_v51, %v982_v13  ;;  %v1039_v62 = vadd.f32 %v1011_v52, %v983_v2  ;;  %v1095_v36 = vrot.slane %v1034_v45, 1 }
 0x100   :  { %v1014_v53 = vld [vmem:[%s7959_s0 + $0xfa] sm:$0x1]  ;;  %v1015_v48 = vld [vmem:[%s7959_s0 + $0x10a] sm:$0x1]  ;;  %v1040_v3 = vadd.f32 %v1012_v38, %v984_v12  ;;  %v1041_v4 = vadd.f32 %v1013_v56, %v985_v11  ;;  %v1097_v33 = vrot.slane %v1036_v54, 7  ;;  %v1099_v25 = vrot.slane %v1037_v55, 6 }
 0x101   :  { %v1016_v47 = vld [vmem:[%s7959_s0 + $0x11a] sm:$0x1]  ;;  %v1017_v61 = vld [vmem:[%s7959_s0 + $0x12a] sm:$0x1]  ;;  %v1042_v10 = vadd.f32 %v1014_v53, %v986_v19  ;;  %v1043_v63 = vadd.f32 %v1015_v48, %v987_v14 }
 0x102   :  { %v1018_v58 = vld [vmem:[%s7959_s0 + $0x13a] sm:$0x1]  ;;  %v1019_v57 = vld [vmem:[%s7959_s0 + $0x14a] sm:$0x1]  ;;  %v1044_v0 = vadd.f32 %v1016_v47, %v988_v21  ;;  %v1045_v1 = vadd.f32 %v1017_v61, %v989_v26  ;;  %v1083_v26 = vrot.slane %v1028_v42, 7 }
 0x103   :  { %v1020_v60 = vld [vmem:[%s7959_s0 + $0x15a] sm:$0x1]  ;;  %v1021_v5 = vld [vmem:[%s7959_s0 + $0x16a] sm:$0x1]  ;;  %v1046_v9 = vadd.f32 %v1018_v58, %v990_v15  ;;  %v1047_v13 = vadd.f32 %v1019_v57, %v991_v16  ;;  %v1089_v16 = vrot.slane %v1031_v46, 4  ;;  %v1107_v41 = vrot.slane %v1042_v10, 7 }
 0x104   :  { %v1022_v6 = vld [vmem:[%s7959_s0 + $0x17a] sm:$0x1]  ;;  %v1023_v7 = vld [vmem:[%s7959_s0 + $0x18a] sm:$0x1]  ;;  %v1048_v2 = vadd.f32 %v1020_v60, %v992_v17  ;;  %v1049_v12 = vadd.f32 %v1021_v5, %v993_v20  ;;  %v1084_v15 = vsel %vm402_vm0, %v1083_v26, %v1027_v37  ;;  %v1091_v17 = vrot.slane %v1032_v40, 3 }
 0x105   :  { %v1024_v8 = vld [vmem:[%s7959_s0 + $0x19a] sm:$0x1]  ;;  %v1025_v11 = vld [vmem:[%s7959_s0 + $0x1aa] sm:$0x1]  ;;  %v1050_v19 = vadd.f32 %v1022_v6, %v994_v24  ;;  %v1051_v14 = vadd.f32 %v1023_v7, %v995_v29  ;;  %v1093_v20 = vrot.slane %v1033_v44, 2  ;;  %v1086_v23 = vsel %vm405_vm1, %v1085_v32, %v1084_v15 }
 0x106   :  { %v1026_v18 = vld [vmem:[%s7959_s0 + $0x1ba] sm:$0x1]  ;;  %v1052_v21 = vadd.f32 %v1024_v8, %v996_v34  ;;  %v1053_v30 = vadd.f32 %v1025_v11, %v997_v35  ;;  %v1088_v28 = vsel %vm408_vm2, %v1087_v22, %v1086_v23  ;;  %v1101_v24 = vrot.slane %v1038_v59, 5  ;;  %v1142_v6 = vld [vmem:[%s7959_s0 + $0x29] sm:$0x1] }
 0x107   :  { %v1054_v31 = vadd.f32 %v1026_v18, %v998_v27  ;;  %v1103_v29 = vrot.slane %v1039_v62, 4  ;;  %v1105_v34 = vrot.slane %v1040_v3, 3  ;;  %v1090_v35 = vsel %vm411_vm3, %v1089_v16, %v1088_v28  ;;  %v1168_v7 = vld [vmem:[%s7959_s0 + $0xa] sm:$0x1]  ;;  %v1169_v8 = vld [vmem:[%s7959_s0 + $0x1a] sm:$0x1] }
 0x108   :  { %v1098_v27 = vsel %vm402_vm0, %v1097_v33, %v1035_v49  ;;  %v1109_v43 = vrot.slane %v1043_v63, 6  ;;  %v1092_v37 = vsel %vm414_vm4, %v1091_v17, %v1090_v35  ;;  %v1111_v50 = vrot.slane %v1044_v0, 5  ;;  %v1140_v0 = vld [vmem:[%s7959_s0 + $0x9] sm:$0x1]  ;;  %v1171_v18 = vld [vmem:[%s7959_s0 + $0x3a] sm:$0x1] }
 0x109   :  { %v1100_v42 = vsel %vm405_vm1, %v1099_v25, %v1098_v27  ;;  %v1113_v51 = vrot.slane %v1045_v1, 4  ;;  %v1094_v52 = vsel %vm417_vm5, %v1093_v20, %v1092_v37  ;;  %v1108_v39 = vsel %vm402_vm0, %v1107_v41, %v1041_v4  ;;  %v1141_v1 = vld [vmem:[%s7959_s0 + $0x19] sm:$0x1]  ;;  %v1146_v11 = vld [vmem:[%s7959_s0 + $0x69] sm:$0x1] }
 0x10a   :  { %v1102_v38 = vsel %vm408_vm2, %v1101_v24, %v1100_v42  ;;  %v1115_v46 = vrot.slane %v1046_v9, 3  ;;  %v1096_v40 = vsel %vm420_vm6, %v1095_v36, %v1094_v52  ;;  %v1110_v56 = vsel %vm405_vm1, %v1109_v43, %v1108_v39  ;;  %v1170_v9 = vld [vmem:[%s7959_s0 + $0x2a] sm:$0x1]  ;;  %v1147_v26 = vld [vmem:[%s7959_s0 + $0x79] sm:$0x1] }
 0x10b   :  { %v1104_v44 = vsel %vm411_vm3, %v1103_v29, %v1102_v38  ;;  %v1117_v53 = vrot.slane %v1047_v13, 2  ;;  %v1112_v45 = vsel %vm408_vm2, %v1111_v50, %v1110_v56  ;;  %v1119_v49 = vrot.slane %v1048_v2, 1  ;;  %1136 = vst.msk [vmem:[#allocation2 + $0x40] sm:$0xff] %vm460_vm7, %v1096_v40  ;;  %v1143_v13 = vld [vmem:[%s7959_s0 + $0x39] sm:$0x1] }
 0x10c   :  { %v1106_v48 = vsel %vm414_vm4, %v1105_v34, %v1104_v44  ;;  %v1121_v54 = vrot.slane %v1050_v19, 7  ;;  %v1114_v55 = vsel %vm411_vm3, %v1113_v51, %v1112_v45  ;;  %v1123_v47 = vrot.slane %v1051_v14, 6  ;;  %v1144_v2 = vld [vmem:[%s7959_s0 + $0x49] sm:$0x1]  ;;  %v1172_v19 = vld [vmem:[%s7959_s0 + $0x4a] sm:$0x1] }
 0x10d   :  { %v1125_v61 = vrot.slane %v1052_v21, 5  ;;  %v1127_v58 = vrot.slane %v1053_v30, 4  ;;  %1137 = vst.msk [vmem:[#allocation2 + $0x48] sm:$0x3f] %vm462_vm8, %v1106_v48  ;;  %v1116_v59 = vsel %vm414_vm4, %v1115_v46, %v1114_v55  ;;  %v1129_v3 = vrot.slane %v1054_v31, 3 }
 0x10e   :  { %v1122_v62 = vsel %vm402_vm0, %v1121_v54, %v1049_v12  ;;  %v1118_v4 = vsel %vm417_vm5, %v1117_v53, %v1116_v59  ;;  %v1145_v12 = vld [vmem:[%s7959_s0 + $0x59] sm:$0x1]  ;;  %v1173_v14 = vld [vmem:[%s7959_s0 + $0x5a] sm:$0x1]  ;;  %v1174_v21 = vld [vmem:[%s7959_s0 + $0x6a] sm:$0x1]  ;;  %v1196_v53 = vadd.f32 %v1168_v7, %v1140_v0  ;;  %v1197_v48 = vadd.f32 %v1169_v8, %v1141_v1 }
 0x10f   :  { %v1124_v57 = vsel %vm405_vm1, %v1123_v47, %v1122_v62  ;;  %v1120_v60 = vsel %vm420_vm6, %v1119_v49, %v1118_v4  ;;  %v1148_v30 = vld [vmem:[%s7959_s0 + $0x89] sm:$0x1]  ;;  %v1149_v31 = vld [vmem:[%s7959_s0 + $0x99] sm:$0x1]  ;;  %v1175_v22 = vld [vmem:[%s7959_s0 + $0x7a] sm:$0x1]  ;;  %v1198_v45 = vadd.f32 %v1170_v9, %v1142_v6  ;;  %v1200_v4 = vadd.f32 %v1172_v19, %v1144_v2 }
 0x110   :  { %v1126_v5 = vsel %vm408_vm2, %v1125_v61, %v1124_v57  ;;  %1138 = vst.msk [vmem:[#allocation2 + $0x50] sm:$0xff] %vm460_vm7, %v1120_v60  ;;  %v1150_v32 = vld [vmem:[%s7959_s0 + $0xa9] sm:$0x1]  ;;  %v1176_v15 = vld [vmem:[%s7959_s0 + $0x8a] sm:$0x1]  ;;  %v1201_v57 = vadd.f32 %v1173_v14, %v1145_v12  ;;  %v1202_v60 = vadd.f32 %v1174_v21, %v1146_v11 }
 0x111   :  { %v1128_v10 = vsel %vm411_vm3, %v1127_v58, %v1126_v5  ;;  %v1177_v16 = vld [vmem:[%s7959_s0 + $0x9a] sm:$0x1]  ;;  %v1178_v17 = vld [vmem:[%s7959_s0 + $0xaa] sm:$0x1]  ;;  %v1151_v20 = vld [vmem:[%s7959_s0 + $0xb9] sm:$0x1]  ;;  %v1204_v0 = vadd.f32 %v1176_v15, %v1148_v30 }
 0x112   :  { %v1130_v63 = vsel %vm414_vm4, %v1129_v3, %v1128_v10  ;;  %v1152_v23 = vld [vmem:[%s7959_s0 + $0xc9] sm:$0x1]  ;;  %v1153_v36 = vld [vmem:[%s7959_s0 + $0xd9] sm:$0x1]  ;;  %v1179_v25 = vld [vmem:[%s7959_s0 + $0xba] sm:$0x1]  ;;  %v1199_v3 = vadd.f32 %v1171_v18, %v1143_v13  ;;  %v1205_v1 = vadd.f32 %v1177_v16, %v1149_v31  ;;  %v1206_v6 = vadd.f32 %v1178_v17, %v1150_v32 }
 0x113   :  { %1139 = vst.msk [vmem:[#allocation2 + $0x58] sm:$0x3f] %vm462_vm8, %v1130_v63  ;;  %v1154_v33 = vld [vmem:[%s7959_s0 + $0xe9] sm:$0x1]  ;;  %v1180_v28 = vld [vmem:[%s7959_s0 + $0xca] sm:$0x1]  ;;  %v1203_v63 = vadd.f32 %v1175_v22, %v1147_v26  ;;  %v1207_v13 = vadd.f32 %v1179_v25, %v1151_v20 }
 0x114   :  { %v1181_v24 = vld [vmem:[%s7959_s0 + $0xda] sm:$0x1]  ;;  %v1182_v29 = vld [vmem:[%s7959_s0 + $0xea] sm:$0x1]  ;;  %v1155_v34 = vld [vmem:[%s7959_s0 + $0xf9] sm:$0x1]  ;;  %v1208_v2 = vadd.f32 %v1180_v28, %v1152_v23 }
 0x115   :  { %v1156_v35 = vld [vmem:[%s7959_s0 + $0x109] sm:$0x1]  ;;  %v1157_v27 = vld [vmem:[%s7959_s0 + $0x119] sm:$0x1]  ;;  %v1183_v43 = vld [vmem:[%s7959_s0 + $0xfa] sm:$0x1]  ;;  %v1209_v12 = vadd.f32 %v1181_v24, %v1153_v36  ;;  %v1210_v11 = vadd.f32 %v1182_v29, %v1154_v33 }
 0x116   :  { %v1158_v41 = vld [vmem:[%s7959_s0 + $0x129] sm:$0x1]  ;;  %v1184_v37 = vld [vmem:[%s7959_s0 + $0x10a] sm:$0x1]  ;;  %v1185_v42 = vld [vmem:[%s7959_s0 + $0x11a] sm:$0x1]  ;;  %v1211_v26 = vadd.f32 %v1183_v43, %v1155_v34 }
 0x117   :  { %v1186_v50 = vld [vmem:[%s7959_s0 + $0x12a] sm:$0x1]  ;;  %v1159_v51 = vld [vmem:[%s7959_s0 + $0x139] sm:$0x1]  ;;  %v1160_v52 = vld [vmem:[%s7959_s0 + $0x149] sm:$0x1]  ;;  %v1212_v30 = vadd.f32 %v1184_v37, %v1156_v35  ;;  %v1213_v31 = vadd.f32 %v1185_v42, %v1157_v27 }
 0x118   :  { %v1161_v38 = vld [vmem:[%s7959_s0 + $0x159] sm:$0x1]  ;;  %v1162_v39 = vld [vmem:[%s7959_s0 + $0x169] sm:$0x1]  ;;  %v1187_v46 = vld [vmem:[%s7959_s0 + $0x13a] sm:$0x1]  ;;  %v1214_v32 = vadd.f32 %v1186_v50, %v1158_v41 }
 0x119   :  { %v1188_v40 = vld [vmem:[%s7959_s0 + $0x14a] sm:$0x1]  ;;  %v1189_v44 = vld [vmem:[%s7959_s0 + $0x15a] sm:$0x1]  ;;  %v1163_v49 = vld [vmem:[%s7959_s0 + $0x179] sm:$0x1]  ;;  %v1215_v20 = vadd.f32 %v1187_v46, %v1159_v51 }
 0x11a   :  { %v1190_v56 = vld [vmem:[%s7959_s0 + $0x16a] sm:$0x1]  ;;  %v1164_v54 = vld [vmem:[%s7959_s0 + $0x189] sm:$0x1]  ;;  %v1165_v55 = vld [vmem:[%s7959_s0 + $0x199] sm:$0x1]  ;;  %v1216_v23 = vadd.f32 %v1188_v40, %v1160_v52  ;;  %v1217_v36 = vadd.f32 %v1189_v44, %v1161_v38 }
 0x11b   :  { %v1166_v47 = vld [vmem:[%s7959_s0 + $0x1a9] sm:$0x1]  ;;  %v1191_v61 = vld [vmem:[%s7959_s0 + $0x17a] sm:$0x1]  ;;  %v1192_v58 = vld [vmem:[%s7959_s0 + $0x18a] sm:$0x1]  ;;  %v1218_v33 = vadd.f32 %v1190_v56, %v1162_v39 }
 0x11c   :  { %v1193_v59 = vld [vmem:[%s7959_s0 + $0x19a] sm:$0x1]  ;;  %v1194_v62 = vld [vmem:[%s7959_s0 + $0x1aa] sm:$0x1]  ;;  %v1167_v5 = vld [vmem:[%s7959_s0 + $0x1b9] sm:$0x1]  ;;  %v1219_v34 = vadd.f32 %v1191_v61, %v1163_v49  ;;  %v1220_v35 = vadd.f32 %v1192_v58, %v1164_v54 }
 0x11d   :  { %v1195_v10 = vld [vmem:[%s7959_s0 + $0x1ba] sm:$0x1]  ;;  %v1224_v7 = vld [vmem:[%s7959_s0 + $0xb] sm:$0x1]  ;;  %v1225_v8 = vld [vmem:[%s7959_s0 + $0x1b] sm:$0x1]  ;;  %v1221_v27 = vadd.f32 %v1193_v59, %v1165_v55  ;;  %v1222_v41 = vadd.f32 %v1194_v62, %v1166_v47 }
 0x11e   :  { %v1226_v9 = vld [vmem:[%s7959_s0 + $0x2b] sm:$0x1]  ;;  %v1227_v18 = vld [vmem:[%s7959_s0 + $0x3b] sm:$0x1]  ;;  %v1223_v51 = vadd.f32 %v1195_v10, %v1167_v5  ;;  %v1252_v40 = vadd.f32 %v1224_v7, %v1196_v53  ;;  %v1253_v44 = vadd.f32 %v1225_v8, %v1197_v48  ;;  %v1280_v7 = vld [vmem:[%s7959_s0 + $0xc] sm:$0x1] }
 0x11f   :  { %v1228_v19 = vld [vmem:[%s7959_s0 + $0x4b] sm:$0x1]  ;;  %v1229_v14 = vld [vmem:[%s7959_s0 + $0x5b] sm:$0x1]  ;;  %v1254_v56 = vadd.f32 %v1226_v9, %v1198_v45  ;;  %v1255_v61 = vadd.f32 %v1227_v18, %v1199_v3  ;;  %v1281_v8 = vld [vmem:[%s7959_s0 + $0x1c] sm:$0x1] }
 0x120   :  { %v1230_v21 = vld [vmem:[%s7959_s0 + $0x6b] sm:$0x1]  ;;  %v1231_v22 = vld [vmem:[%s7959_s0 + $0x7b] sm:$0x1]  ;;  %v1256_v53 = vadd.f32 %v1228_v19, %v1200_v4  ;;  %v1257_v48 = vadd.f32 %v1229_v14, %v1201_v57  ;;  %v1282_v3 = vld [vmem:[%s7959_s0 + $0x2c] sm:$0x1] }
 0x121   :  { %v1232_v15 = vld [vmem:[%s7959_s0 + $0x8b] sm:$0x1]  ;;  %v1233_v16 = vld [vmem:[%s7959_s0 + $0x9b] sm:$0x1]  ;;  %v1258_v45 = vadd.f32 %v1230_v21, %v1202_v60  ;;  %v1259_v59 = vadd.f32 %v1231_v22, %v1203_v63  ;;  %v1283_v63 = vld [vmem:[%s7959_s0 + $0x3c] sm:$0x1] }
 0x122   :  { %v1234_v17 = vld [vmem:[%s7959_s0 + $0xab] sm:$0x1]  ;;  %v1235_v25 = vld [vmem:[%s7959_s0 + $0xbb] sm:$0x1]  ;;  %v1260_v62 = vadd.f32 %v1232_v15, %v1204_v0  ;;  %v1261_v5 = vadd.f32 %v1233_v16, %v1205_v1  ;;  %v1284_v0 = vld [vmem:[%s7959_s0 + $0x4c] sm:$0x1] }
 0x123   :  { %v1236_v28 = vld [vmem:[%s7959_s0 + $0xcb] sm:$0x1]  ;;  %v1237_v24 = vld [vmem:[%s7959_s0 + $0xdb] sm:$0x1]  ;;  %v1262_v10 = vadd.f32 %v1234_v17, %v1206_v6  ;;  %v1263_v4 = vadd.f32 %v1235_v25, %v1207_v13  ;;  %v1285_v1 = vld [vmem:[%s7959_s0 + $0x5c] sm:$0x1] }
 0x124   :  { %v1238_v29 = vld [vmem:[%s7959_s0 + $0xeb] sm:$0x1]  ;;  %v1239_v43 = vld [vmem:[%s7959_s0 + $0xfb] sm:$0x1]  ;;  %v1264_v57 = vadd.f32 %v1236_v28, %v1208_v2  ;;  %v1265_v60 = vadd.f32 %v1237_v24, %v1209_v12  ;;  %v1286_v13 = vld [vmem:[%s7959_s0 + $0x6c] sm:$0x1] }
 0x125   :  { %v1240_v37 = vld [vmem:[%s7959_s0 + $0x10b] sm:$0x1]  ;;  %v1241_v42 = vld [vmem:[%s7959_s0 + $0x11b] sm:$0x1]  ;;  %v1266_v9 = vadd.f32 %v1238_v29, %v1210_v11  ;;  %v1267_v6 = vadd.f32 %v1239_v43, %v1211_v26  ;;  %v1287_v2 = vld [vmem:[%s7959_s0 + $0x7c] sm:$0x1] }
 0x126   :  { %v1242_v50 = vld [vmem:[%s7959_s0 + $0x12b] sm:$0x1]  ;;  %v1243_v52 = vld [vmem:[%s7959_s0 + $0x13b] sm:$0x1]  ;;  %v1268_v18 = vadd.f32 %v1240_v37, %v1212_v30  ;;  %v1269_v19 = vadd.f32 %v1241_v42, %v1213_v31  ;;  %v1288_v12 = vld [vmem:[%s7959_s0 + $0x8c] sm:$0x1]  ;;  %v1311_v42 = vadd.f32 %v1283_v63, %v1255_v61 }
 0x127   :  { %v1244_v38 = vld [vmem:[%s7959_s0 + $0x14b] sm:$0x1]  ;;  %v1245_v39 = vld [vmem:[%s7959_s0 + $0x15b] sm:$0x1]  ;;  %v1270_v14 = vadd.f32 %v1242_v50, %v1214_v32  ;;  %v1271_v11 = vadd.f32 %v1243_v52, %v1215_v20  ;;  %v1289_v26 = vld [vmem:[%s7959_s0 + $0x9c] sm:$0x1]  ;;  %v1312_v50 = vadd.f32 %v1284_v0, %v1256_v53  ;;  %v1314_v52 = vadd.f32 %v1286_v13, %v1258_v45 }
 0x128   :  { %v1246_v46 = vld [vmem:[%s7959_s0 + $0x16b] sm:$0x1]  ;;  %v1247_v49 = vld [vmem:[%s7959_s0 + $0x17b] sm:$0x1]  ;;  %v1272_v21 = vadd.f32 %v1244_v38, %v1216_v23  ;;  %v1273_v22 = vadd.f32 %v1245_v39, %v1217_v36  ;;  %v1290_v30 = vld [vmem:[%s7959_s0 + $0xac] sm:$0x1] }
 0x129   :  { %v1248_v54 = vld [vmem:[%s7959_s0 + $0x18b] sm:$0x1]  ;;  %v1249_v55 = vld [vmem:[%s7959_s0 + $0x19b] sm:$0x1]  ;;  %v1274_v15 = vadd.f32 %v1246_v46, %v1218_v33  ;;  %v1291_v31 = vld [vmem:[%s7959_s0 + $0xbc] sm:$0x1]  ;;  %v1275_v32 = vadd.f32 %v1247_v49, %v1219_v34  ;;  %v1308_v34 = vadd.f32 %v1280_v7, %v1252_v40  ;;  %v1315_v40 = vadd.f32 %v1287_v2, %v1259_v59 }
 0x12a   :  { %v1250_v47 = vld [vmem:[%s7959_s0 + $0x1ab] sm:$0x1]  ;;  %v1251_v58 = vld [vmem:[%s7959_s0 + $0x1bb] sm:$0x1]  ;;  %v1276_v16 = vadd.f32 %v1248_v54, %v1220_v35  ;;  %v1277_v17 = vadd.f32 %v1249_v55, %v1221_v27  ;;  %v1292_v20 = vld [vmem:[%s7959_s0 + $0xcc] sm:$0x1]  ;;  %v1309_v35 = vadd.f32 %v1281_v8, %v1253_v44  ;;  %v1310_v27 = vadd.f32 %v1282_v3, %v1254_v56 }
 0x12b   :  { %v1278_v25 = vadd.f32 %v1250_v47, %v1222_v41  ;;  %v1293_v23 = vld [vmem:[%s7959_s0 + $0xdc] sm:$0x1]  ;;  %v1294_v36 = vld [vmem:[%s7959_s0 + $0xec] sm:$0x1]  ;;  %v1279_v33 = vadd.f32 %v1251_v58, %v1223_v51  ;;  %v1313_v51 = vadd.f32 %v1285_v1, %v1257_v48  ;;  %v1316_v44 = vadd.f32 %v1288_v12, %v1260_v62  ;;  %v1336_v7 = vld [vmem:[%s7959_s0 + $0xd] sm:$0x1] }
 0x12c   :  { %v1295_v28 = vld [vmem:[%s7959_s0 + $0xfc] sm:$0x1]  ;;  %v1296_v24 = vld [vmem:[%s7959_s0 + $0x10c] sm:$0x1]  ;;  %v1317_v56 = vadd.f32 %v1289_v26, %v1261_v5  ;;  %v1318_v49 = vadd.f32 %v1290_v30, %v1262_v10  ;;  %v1319_v61 = vadd.f32 %v1291_v31, %v1263_v4  ;;  %v1320_v53 = vadd.f32 %v1292_v20, %v1264_v57  ;;  %v1337_v8 = vld [vmem:[%s7959_s0 + $0x1d] sm:$0x1] }
 0x12d   :  { %v1297_v29 = vld [vmem:[%s7959_s0 + $0x11c] sm:$0x1]  ;;  %v1298_v41 = vld [vmem:[%s7959_s0 + $0x12c] sm:$0x1]  ;;  %v1321_v48 = vadd.f32 %v1293_v23, %v1265_v60  ;;  %v1322_v45 = vadd.f32 %v1294_v36, %v1266_v9  ;;  %v1323_v59 = vadd.f32 %v1295_v28, %v1267_v6  ;;  %v1324_v62 = vadd.f32 %v1296_v24, %v1268_v18  ;;  %v1338_v9 = vld [vmem:[%s7959_s0 + $0x2d] sm:$0x1] }
 0x12e   :  { %v1299_v43 = vld [vmem:[%s7959_s0 + $0x13c] sm:$0x1]  ;;  %v1300_v37 = vld [vmem:[%s7959_s0 + $0x14c] sm:$0x1]  ;;  %v1325_v5 = vadd.f32 %v1297_v29, %v1269_v19  ;;  %v1326_v10 = vadd.f32 %v1298_v41, %v1270_v14  ;;  %v1339_v63 = vld [vmem:[%s7959_s0 + $0x3d] sm:$0x1]  ;;  %v1365_v26 = vadd.f32 %v1337_v8, %v1309_v35  ;;  %v1366_v30 = vadd.f32 %v1338_v9, %v1310_v27 }
 0x12f   :  { %v1301_v38 = vld [vmem:[%s7959_s0 + $0x15c] sm:$0x1]  ;;  %v1302_v39 = vld [vmem:[%s7959_s0 + $0x16c] sm:$0x1]  ;;  %v1327_v3 = vadd.f32 %v1299_v43, %v1271_v11  ;;  %v1328_v4 = vadd.f32 %v1300_v37, %v1272_v21  ;;  %v1340_v0 = vld [vmem:[%s7959_s0 + $0x4d] sm:$0x1] }
 0x130   :  { %v1303_v46 = vld [vmem:[%s7959_s0 + $0x17c] sm:$0x1]  ;;  %v1304_v54 = vld [vmem:[%s7959_s0 + $0x18c] sm:$0x1]  ;;  %v1329_v57 = vadd.f32 %v1301_v38, %v1273_v22  ;;  %v1330_v60 = vadd.f32 %v1302_v39, %v1274_v15  ;;  %v1341_v14 = vld [vmem:[%s7959_s0 + $0x5d] sm:$0x1]  ;;  %v1364_v15 = vadd.f32 %v1336_v7, %v1308_v34 }
 0x131   :  { %v1305_v55 = vld [vmem:[%s7959_s0 + $0x19c] sm:$0x1]  ;;  %v1306_v47 = vld [vmem:[%s7959_s0 + $0x1ac] sm:$0x1]  ;;  %v1331_v1 = vadd.f32 %v1303_v46, %v1275_v32  ;;  %v1332_v6 = vadd.f32 %v1304_v54, %v1276_v16  ;;  %v1342_v13 = vld [vmem:[%s7959_s0 + $0x6d] sm:$0x1]  ;;  %v1369_v20 = vadd.f32 %v1341_v14, %v1313_v51 }
 0x132   :  { %v1307_v58 = vld [vmem:[%s7959_s0 + $0x1bc] sm:$0x1]  ;;  %v1333_v18 = vadd.f32 %v1305_v55, %v1277_v17  ;;  %v1334_v19 = vadd.f32 %v1306_v47, %v1278_v25  ;;  %v1343_v2 = vld [vmem:[%s7959_s0 + $0x7d] sm:$0x1]  ;;  %v1344_v11 = vld [vmem:[%s7959_s0 + $0x8d] sm:$0x1]  ;;  %v1367_v17 = vadd.f32 %v1339_v63, %v1311_v42  ;;  %v1368_v25 = vadd.f32 %v1340_v0, %v1312_v50 }
 0x133   :  { %v1335_v12 = vadd.f32 %v1307_v58, %v1279_v33  ;;  %v1345_v21 = vld [vmem:[%s7959_s0 + $0x9d] sm:$0x1]  ;;  %v1346_v22 = vld [vmem:[%s7959_s0 + $0xad] sm:$0x1]  ;;  %v7595_v23 = vadd.f32 %v1342_v13, %v1314_v52  ;;  %v7606_v24 = vadd.f32 %v1343_v2, %v1315_v40  ;;  %v1372_v29 = vadd.f32 %v1344_v11, %v1316_v44 }
 0x134   :  { %v1347_v31 = vld [vmem:[%s7959_s0 + $0xbd] sm:$0x1]  ;;  %v1348_v32 = vld [vmem:[%s7959_s0 + $0xcd] sm:$0x1]  ;;  %v1373_v34 = vadd.f32 %v1345_v21, %v1317_v56  ;;  %v1374_v35 = vadd.f32 %v1346_v22, %v1318_v49  ;;  %v1428_v9 = vrot.slane %v1369_v20, 3 }
 0x135   :  { %v1349_v16 = vld [vmem:[%s7959_s0 + $0xdd] sm:$0x1]  ;;  %v1350_v36 = vld [vmem:[%s7959_s0 + $0xed] sm:$0x1]  ;;  %v1375_v37 = vadd.f32 %v1347_v31, %v1319_v61  ;;  %v1376_v42 = vadd.f32 %v1348_v32, %v1320_v53  ;;  %v1430_v63 = vrot.slane %v7595_v23, 2 }
 0x136   :  { %v1351_v33 = vld [vmem:[%s7959_s0 + $0xfd] sm:$0x1]  ;;  %v1352_v28 = vld [vmem:[%s7959_s0 + $0x10d] sm:$0x1]  ;;  %v7617_v50 = vadd.f32 %v1349_v16, %v1321_v48  ;;  %v1378_v51 = vadd.f32 %v1350_v36, %v1322_v45  ;;  %v1477_v32 = vld [vmem:[#allocation2] sm:$0x1] }
 0x137   :  { %v1353_v27 = vld [vmem:[%s7959_s0 + $0x11d] sm:$0x1]  ;;  %v1354_v41 = vld [vmem:[%s7959_s0 + $0x12d] sm:$0x1]  ;;  %v1379_v46 = vadd.f32 %v1351_v33, %v1323_v59  ;;  %v1380_v40 = vadd.f32 %v1352_v28, %v1324_v62  ;;  %v1440_v13 = vrot.slane %v1376_v42, 4 }
 0x138   :  { %v1355_v43 = vld [vmem:[%s7959_s0 + $0x13d] sm:$0x1]  ;;  %v1356_v52 = vld [vmem:[%s7959_s0 + $0x14d] sm:$0x1]  ;;  %v1381_v44 = vadd.f32 %v1353_v27, %v1325_v5  ;;  %v7628_v56 = vadd.f32 %v1354_v41, %v1326_v10  ;;  %v1420_v10 = vrot.slane %v1365_v26, 7  ;;  %v1442_v2 = vrot.slane %v7617_v50, 3 }
 0x139   :  { %v1357_v38 = vld [vmem:[%s7959_s0 + $0x15d] sm:$0x1]  ;;  %v1358_v39 = vld [vmem:[%s7959_s0 + $0x16d] sm:$0x1]  ;;  %v7639_v47 = vadd.f32 %v1355_v43, %v1327_v3  ;;  %v7641_v61 = vadd.f32 %v1356_v52, %v1328_v4  ;;  %v1422_v3 = vrot.slane %v1366_v30, 6  ;;  %v1424_v4 = vrot.slane %v1367_v17, 5 }
 0x13a   :  { %v1359_v49 = vld [vmem:[%s7959_s0 + $0x17d] sm:$0x1]  ;;  %v1360_v54 = vld [vmem:[%s7959_s0 + $0x18d] sm:$0x1]  ;;  %v7643_v53 = vadd.f32 %v1357_v38, %v1329_v57  ;;  %v7645_v48 = vadd.f32 %v1358_v39, %v1330_v60  ;;  %v1421_v57 = vsel %vm402_vm0, %v1420_v10, %v1364_v15  ;;  %v1426_v60 = vrot.slane %v1368_v25, 4 }
 0x13b   :  { %v1361_v55 = vld [vmem:[%s7959_s0 + $0x19d] sm:$0x1]  ;;  %v1362_v45 = vld [vmem:[%s7959_s0 + $0x1ad] sm:$0x1]  ;;  %v7653_v59 = vadd.f32 %v1359_v49, %v1331_v1  ;;  %v7655_v62 = vadd.f32 %v1360_v54, %v1332_v6  ;;  %v1423_v0 = vsel %vm405_vm1, %v1422_v3, %v1421_v57  ;;  %v1432_v1 = vrot.slane %v7606_v24, 1 }
 0x13c   :  { %v1363_v58 = vld [vmem:[%s7959_s0 + $0x1bd] sm:$0x1]  ;;  %v7657_v5 = vadd.f32 %v1361_v55, %v1333_v18  ;;  %v7659_v7 = vadd.f32 %v1362_v45, %v1334_v19  ;;  %v1434_v6 = vrot.slane %v1373_v34, 7  ;;  %v1436_v18 = vrot.slane %v1374_v35, 6  ;;  %v1485_v16 = vld [vmem:[#allocation2 + $0x1] sm:$0x1] }
 0x13d   :  { %v7661_v8 = vadd.f32 %v1363_v58, %v1335_v12  ;;  %v1425_v14 = vsel %vm408_vm2, %v1424_v4, %v1423_v0  ;;  %v1438_v19 = vrot.slane %v1375_v37, 5  ;;  %v1444_v21 = vrot.slane %v1379_v46, 7  ;;  %v1478_v36 = vld [vmem:[#allocation2 + $0x10] sm:$0x1]  ;;  %v1479_v33 = vld [vmem:[#allocation2 + $0x20] sm:$0x1] }
 0x13e   :  { %v1427_v12 = vsel %vm411_vm3, %v1426_v60, %v1425_v14  ;;  %v1435_v11 = vsel %vm402_vm0, %v1434_v6, %v1372_v29  ;;  %v1446_v22 = vrot.slane %v1380_v40, 6  ;;  %v1448_v30 = vrot.slane %v1381_v44, 5  ;;  %v1486_v28 = vld [vmem:[#allocation2 + $0x11] sm:$0x1]  ;;  %v1487_v24 = vld [vmem:[#allocation2 + $0x21] sm:$0x1] }
 0x13f   :  { %v1429_v15 = vsel %vm414_vm4, %v1428_v9, %v1427_v12  ;;  %v1437_v26 = vsel %vm405_vm1, %v1436_v18, %v1435_v11  ;;  %v1450_v31 = vrot.slane %v7628_v56, 4  ;;  %v1445_v20 = vsel %vm402_vm0, %v1444_v21, %v1378_v51  ;;  %v1480_v41 = vld [vmem:[#allocation2 + $0x30] sm:$0x1]  ;;  %v1481_v43 = vld [vmem:[#allocation2 + $0x40] sm:$0x1] }
 0x140   :  { %v1431_v17 = vsel %vm417_vm5, %v1430_v63, %v1429_v15  ;;  %v1439_v25 = vsel %vm408_vm2, %v1438_v19, %v1437_v26  ;;  %v1452_v23 = vrot.slane %v7639_v47, 3  ;;  %v1447_v35 = vsel %vm405_vm1, %v1446_v22, %v1445_v20  ;;  %v1488_v37 = vld [vmem:[#allocation2 + $0x31] sm:$0x1]  ;;  %v1489_v42 = vld [vmem:[#allocation2 + $0x41] sm:$0x1] }
 0x141   :  { %v1433_v29 = vsel %vm420_vm6, %v1432_v1, %v1431_v17  ;;  %v1441_v34 = vsel %vm411_vm3, %v1440_v13, %v1439_v25  ;;  %v1454_v27 = vrot.slane %v7641_v61, 2  ;;  %v1449_v51 = vsel %vm408_vm2, %v1448_v30, %v1447_v35  ;;  %v1482_v39 = vld [vmem:[#allocation2 + $0x50] sm:$0x1]  ;;  %v1490_v46 = vld [vmem:[#allocation2 + $0x51] sm:$0x1] }
 0x142   :  { %v1443_v50 = vsel %vm414_vm4, %v1442_v2, %v1441_v34  ;;  %v1456_v52 = vrot.slane %v7643_v53, 1  ;;  %v1458_v38 = vrot.slane %v7653_v59, 7  ;;  %1473 = vst.msk [vmem:[#allocation2 + $0x60] sm:$0xff] %vm460_vm7, %v1433_v29  ;;  %v1501_v40 = vld [vmem:[#allocation2 + $0x2] sm:$0x1]  ;;  %v1451_v56 = vsel %vm411_vm3, %v1450_v31, %v1449_v51 }
 0x143   :  { %v1502_v44 = vld [vmem:[#allocation2 + $0x12] sm:$0x1]  ;;  %v1460_v49 = vrot.slane %v7655_v62, 6  ;;  %v1462_v54 = vrot.slane %v7657_v5, 5  ;;  %v1464_v55 = vrot.slane %v7659_v7, 4  ;;  %v1453_v61 = vsel %vm414_vm4, %v1452_v23, %v1451_v56 }
 0x144   :  { %1474 = vst.msk [vmem:[#allocation2 + $0x68] sm:$0x3f] %vm462_vm8, %v1443_v50  ;;  %v1503_v47 = vld [vmem:[#allocation2 + $0x22] sm:$0x1]  ;;  %v1459_v53 = vsel %vm402_vm0, %v1458_v38, %v7645_v48  ;;  %v1466_v45 = vrot.slane %v7661_v8, 3  ;;  %v1493_v58 = vadd.f32 %v1485_v16, %v1477_v32  ;;  %v1455_v3 = vsel %vm417_vm5, %v1454_v27, %v1453_v61 }
 0x145   :  { %v1504_v59 = vld [vmem:[#allocation2 + $0x32] sm:$0x1]  ;;  %v1505_v10 = vld [vmem:[#allocation2 + $0x42] sm:$0x1]  ;;  %v1461_v62 = vsel %vm405_vm1, %v1460_v49, %v1459_v53  ;;  %v1494_v5 = vadd.f32 %v1486_v28, %v1478_v36  ;;  %v1495_v4 = vadd.f32 %v1487_v24, %v1479_v33  ;;  %v1517_v57 = vld [vmem:[#allocation2 + $0x3] sm:$0x1]  ;;  %v1457_v9 = vsel %vm420_vm6, %v1456_v52, %v1455_v3 }
 0x146   :  { %v1506_v7 = vld [vmem:[#allocation2 + $0x52] sm:$0x1]  ;;  %v1518_v60 = vld [vmem:[#allocation2 + $0x13] sm:$0x1]  ;;  %v1463_v63 = vsel %vm408_vm2, %v1462_v54, %v1461_v62  ;;  %v1496_v0 = vadd.f32 %v1488_v37, %v1480_v41  ;;  %v1497_v48 = vadd.f32 %v1489_v42, %v1481_v43  ;;  %v1519_v1 = vld [vmem:[#allocation2 + $0x23] sm:$0x1]  ;;  %v1498_v14 = vadd.f32 %v1490_v46, %v1482_v39 }
 0x147   :  { %v1520_v8 = vld [vmem:[#allocation2 + $0x33] sm:$0x1]  ;;  %v1521_v6 = vld [vmem:[#allocation2 + $0x43] sm:$0x1]  ;;  %v1465_v18 = vsel %vm411_vm3, %v1464_v55, %v1463_v63  ;;  %1475 = vst.msk [vmem:[#allocation2 + $0x70] sm:$0xff] %vm460_vm7, %v1457_v9  ;;  %v1509_v19 = vadd.f32 %v1501_v40, %v1493_v58  ;;  %v1510_v13 = vadd.f32 %v1502_v44, %v1494_v5  ;;  %v1511_v22 = vadd.f32 %v1503_v47, %v1495_v4 }
 0x148   :  { %v1522_v2 = vld [vmem:[#allocation2 + $0x53] sm:$0x1]  ;;  %v1533_v12 = vld [vmem:[#allocation2 + $0x4] sm:$0x1]  ;;  %v1534_v11 = vld [vmem:[#allocation2 + $0x14] sm:$0x1]  ;;  %v1467_v21 = vsel %vm414_vm4, %v1466_v45, %v1465_v18  ;;  %v1512_v15 = vadd.f32 %v1504_v59, %v1496_v0  ;;  %v1513_v26 = vadd.f32 %v1505_v10, %v1497_v48  ;;  %v1514_v20 = vadd.f32 %v1506_v7, %v1498_v14 }
 0x149   :  { %v1535_v30 = vld [vmem:[#allocation2 + $0x24] sm:$0x1]  ;;  %v1536_v31 = vld [vmem:[#allocation2 + $0x34] sm:$0x1]  ;;  %1476 = vst.msk [vmem:[#allocation2 + $0x78] sm:$0x3f] %vm462_vm8, %v1467_v21  ;;  %v1525_v23 = vadd.f32 %v1517_v57, %v1509_v19  ;;  %v1526_v36 = vadd.f32 %v1518_v60, %v1510_v13  ;;  %v1527_v28 = vadd.f32 %v1519_v1, %v1511_v22 }
 0x14a   :  { %v1537_v32 = vld [vmem:[#allocation2 + $0x44] sm:$0x1]  ;;  %v1483_v16 = vld [vmem:[#allocation2 + $0x60] sm:$0x1]  ;;  %v1491_v17 = vld [vmem:[#allocation2 + $0x61] sm:$0x1]  ;;  %v1528_v24 = vadd.f32 %v1520_v8, %v1512_v15  ;;  %v1529_v29 = vadd.f32 %v1521_v6, %v1513_v26  ;;  %v1530_v27 = vadd.f32 %v1522_v2, %v1514_v20 }
 0x14b   :  { %v1507_v25 = vld [vmem:[#allocation2 + $0x62] sm:$0x1]  ;;  %v1499_v33 = vadd.f32 %v1491_v17, %v1483_v16  ;;  %v1538_v34 = vld [vmem:[#allocation2 + $0x54] sm:$0x1]  ;;  %v1523_v35 = vld [vmem:[#allocation2 + $0x63] sm:$0x1]  ;;  %v1541_v41 = vadd.f32 %v1533_v12, %v1525_v23  ;;  %v1542_v43 = vadd.f32 %v1534_v11, %v1526_v36  ;;  %v1543_v50 = vadd.f32 %v1535_v30, %v1527_v28 }
 0x14c   :  { %v1539_v42 = vld [vmem:[#allocation2 + $0x64] sm:$0x1]  ;;  %v1544_v51 = vadd.f32 %v1536_v31, %v1528_v24  ;;  %v1545_v52 = vadd.f32 %v1537_v32, %v1529_v29  ;;  %v1546_v38 = vadd.f32 %v1538_v34, %v1530_v27  ;;  %v1581_v46 = vld [vmem:[#allocation2 + $0x3] sm:$0x1]  ;;  %v1582_v55 = vld [vmem:[#allocation2 + $0x13] sm:$0x1] }
 0x14d   :  { %v1515_v37 = vadd.f32 %v1507_v25, %v1499_v33  ;;  %v1550_v39 = vmul.f32 0.04, %v1542_v43  ;;  %v1589_v40 = vld [vmem:[#allocation2 + $0x4] sm:$0x1]  ;;  %v1549_v53 = vmul.f32 0.04, %v1541_v41 }
 0x14e   :  { %v1484_v44 = vld [vmem:[#allocation2 + $0x70] sm:$0x1]  ;;  %v1492_v56 = vld [vmem:[#allocation2 + $0x71] sm:$0x1]  ;;  %v1508_v49 = vld [vmem:[#allocation2 + $0x72] sm:$0x1]  ;;  %v1597_v8 = vadd.f32 %v1589_v40, %v1581_v46 }
 0x14f   :  { %v1531_v54 = vadd.f32 %v1523_v35, %v1515_v37  ;;  %v1500_v47 = vadd.f32 %v1492_v56, %v1484_v44  ;;  %v1524_v61 = vld [vmem:[#allocation2 + $0x73] sm:$0x1]  ;;  %v1551_v45 = vmul.f32 0.04, %v1543_v50  ;;  %v1583_v58 = vld [vmem:[#allocation2 + $0x23] sm:$0x1] }
 0x150   :  { %v1584_v59 = vld [vmem:[#allocation2 + $0x33] sm:$0x1]  ;;  %v1540_v10 = vld [vmem:[#allocation2 + $0x74] sm:$0x1]  ;;  %v1552_v62 = vmul.f32 0.04, %v1544_v51 }
 0x151   :  { %v1547_v3 = vadd.f32 %v1539_v42, %v1531_v54  ;;  %v1553_v5 = vmul.f32 0.04, %v1545_v52  ;;  %v1554_v4 = vmul.f32 0.04, %v1546_v38  ;;  %v1585_v7 = vld [vmem:[#allocation2 + $0x43] sm:$0x1]  ;;  %v1516_v60 = vadd.f32 %v1508_v49, %v1500_v47 }
 0x152   :  { %v1586_v57 = vld [vmem:[#allocation2 + $0x53] sm:$0x1]  ;;  %v1565_v9 = vrot.slane %v1550_v39, 7  ;;  %v1567_v63 = vrot.slane %v1551_v45, 6  ;;  %v1587_v0 = vld [vmem:[#allocation2 + $0x63] sm:$0x1] }
 0x153   :  { %v1588_v48 = vld [vmem:[#allocation2 + $0x73] sm:$0x1]  ;;  %v1590_v1 = vld [vmem:[#allocation2 + $0x14] sm:$0x1]  ;;  %v1555_v6 = vmul.f32 0.04, %v1547_v3  ;;  %v1532_v13 = vadd.f32 %v1524_v61, %v1516_v60 }
 0x154   :  { %v1569_v18 = vrot.slane %v1552_v62, 5  ;;  %v1571_v14 = vrot.slane %v1553_v5, 4  ;;  %v1573_v19 = vrot.slane %v1554_v4, 3  ;;  %v1566_v2 = vsel %vm402_vm0, %v1565_v9, %v1549_v53  ;;  %v1591_v12 = vld [vmem:[#allocation2 + $0x24] sm:$0x1] }
 0x155   :  { %v1592_v11 = vld [vmem:[#allocation2 + $0x34] sm:$0x1]  ;;  %v1593_v21 = vld [vmem:[#allocation2 + $0x44] sm:$0x1]  ;;  %v1598_v22 = vadd.f32 %v1590_v1, %v1582_v55  ;;  %v1568_v15 = vsel %vm405_vm1, %v1567_v63, %v1566_v2  ;;  %v1575_v26 = vrot.slane %v1555_v6, 2  ;;  %v1599_v32 = vadd.f32 %v1591_v12, %v1583_v58 }
 0x156   :  { %v1594_v30 = vld [vmem:[#allocation2 + $0x54] sm:$0x1]  ;;  %v1595_v31 = vld [vmem:[#allocation2 + $0x64] sm:$0x1]  ;;  %v1600_v16 = vadd.f32 %v1592_v11, %v1584_v59  ;;  %v1548_v17 = vadd.f32 %v1540_v10, %v1532_v13  ;;  %v1570_v25 = vsel %vm408_vm2, %v1569_v18, %v1568_v15  ;;  %v1601_v23 = vadd.f32 %v1593_v21, %v1585_v7  ;;  %v1605_v33 = vld [vmem:[#allocation2 + $0x5] sm:$0x1] }
 0x157   :  { %v1596_v20 = vld [vmem:[#allocation2 + $0x74] sm:$0x1]  ;;  %v1602_v36 = vadd.f32 %v1594_v30, %v1586_v57  ;;  %v1606_v28 = vld [vmem:[#allocation2 + $0x15] sm:$0x1]  ;;  %v1572_v24 = vsel %vm411_vm3, %v1571_v14, %v1570_v25  ;;  %v1603_v29 = vadd.f32 %v1595_v31, %v1587_v0  ;;  %v1607_v35 = vld [vmem:[#allocation2 + $0x25] sm:$0x1]  ;;  %v1613_v43 = vadd.f32 %v1605_v33, %v1597_v8 }
 0x158   :  { %v1604_v34 = vadd.f32 %v1596_v20, %v1588_v48  ;;  %v1608_v27 = vld [vmem:[#allocation2 + $0x35] sm:$0x1]  ;;  %v1609_v41 = vld [vmem:[#allocation2 + $0x45] sm:$0x1]  ;;  %v1556_v37 = vmul.f32 0.04, %v1548_v17  ;;  %v1574_v42 = vsel %vm414_vm4, %v1573_v19, %v1572_v24  ;;  %v1614_v52 = vadd.f32 %v1606_v28, %v1598_v22 }
 0x159   :  { %v1610_v50 = vld [vmem:[#allocation2 + $0x55] sm:$0x1]  ;;  %v1611_v51 = vld [vmem:[#allocation2 + $0x65] sm:$0x1]  ;;  %v1615_v38 = vadd.f32 %v1607_v35, %v1599_v32  ;;  %v1576_v39 = vsel %vm417_vm5, %v1575_v26, %v1574_v42  ;;  %v1616_v40 = vadd.f32 %v1608_v27, %v1600_v16  ;;  %v1617_v44 = vadd.f32 %v1609_v41, %v1601_v23  ;;  %v1621_v49 = vld [vmem:[#allocation2 + $0x6] sm:$0x1] }
 0x15a   :  { %v1612_v46 = vld [vmem:[#allocation2 + $0x75] sm:$0x1]  ;;  %v1618_v56 = vadd.f32 %v1610_v50, %v1602_v36  ;;  %v1622_v54 = vld [vmem:[#allocation2 + $0x16] sm:$0x1]  ;;  %v1577_v55 = vrot.slane %v1556_v37, 1  ;;  %v1619_v47 = vadd.f32 %v1611_v51, %v1603_v29  ;;  %v1629_v58 = vadd.f32 %v1621_v49, %v1613_v43 }
 0x15b   :  { %v1620_v61 = vadd.f32 %v1612_v46, %v1604_v34  ;;  %v1623_v53 = vld [vmem:[#allocation2 + $0x26] sm:$0x1]  ;;  %v1624_v45 = vld [vmem:[#allocation2 + $0x36] sm:$0x1]  ;;  %v1630_v62 = vadd.f32 %v1622_v54, %v1614_v52  ;;  %v1637_v0 = vld [vmem:[#allocation2 + $0x7] sm:$0x1] }
 0x15c   :  { %v1625_v59 = vld [vmem:[#allocation2 + $0x46] sm:$0x1]  ;;  %v1626_v10 = vld [vmem:[#allocation2 + $0x56] sm:$0x1]  ;;  %v1631_v5 = vadd.f32 %v1623_v53, %v1615_v38  ;;  %v1632_v4 = vadd.f32 %v1624_v45, %v1616_v40  ;;  %v1578_v7 = vsel %vm420_vm6, %v1577_v55, %v1576_v39  ;;  %v1638_v48 = vld [vmem:[#allocation2 + $0x17] sm:$0x1]  ;;  %v1645_v14 = vadd.f32 %v1637_v0, %v1629_v58 }
 0x15d   :  { %v1627_v3 = vld [vmem:[#allocation2 + $0x66] sm:$0x1]  ;;  %v1628_v57 = vld [vmem:[#allocation2 + $0x76] sm:$0x1]  ;;  %v1633_v60 = vadd.f32 %v1625_v59, %v1617_v44  ;;  %v1634_v9 = vadd.f32 %v1626_v10, %v1618_v56  ;;  %1580 = vst.msk [vmem:[#allocation3] sm:$0xff] %vm460_vm7, %v1578_v7  ;;  %v1646_v19 = vadd.f32 %v1638_v48, %v1630_v62 }
 0x15e   :  { %v1635_v63 = vadd.f32 %v1627_v3, %v1619_v47  ;;  %v1636_v1 = vadd.f32 %v1628_v57, %v1620_v61  ;;  %v1639_v8 = vld [vmem:[#allocation2 + $0x27] sm:$0x1]  ;;  %v1640_v6 = vld [vmem:[#allocation2 + $0x37] sm:$0x1]  ;;  %v1653_v31 = vmul.f32 0.04, %v1645_v14 }
 0x15f   :  { %v1641_v18 = vld [vmem:[#allocation2 + $0x47] sm:$0x1]  ;;  %v1642_v13 = vld [vmem:[#allocation2 + $0x57] sm:$0x1]  ;;  %v1647_v11 = vadd.f32 %v1639_v8, %v1631_v5  ;;  %v1648_v21 = vadd.f32 %v1640_v6, %v1632_v4  ;;  %v1654_v32 = vmul.f32 0.04, %v1646_v19 }
 0x160   :  { %v1643_v2 = vld [vmem:[#allocation2 + $0x67] sm:$0x1]  ;;  %v1644_v12 = vld [vmem:[#allocation2 + $0x77] sm:$0x1]  ;;  %v1649_v22 = vadd.f32 %v1641_v18, %v1633_v60  ;;  %v1650_v15 = vadd.f32 %v1642_v13, %v1634_v9  ;;  %v1685_v29 = vld [vmem:[#allocation2 + $0x6] sm:$0x1] }
 0x161   :  { %v1651_v26 = vadd.f32 %v1643_v2, %v1635_v63  ;;  %v1652_v30 = vadd.f32 %v1644_v12, %v1636_v1  ;;  %v1655_v16 = vmul.f32 0.04, %v1647_v11  ;;  %v1656_v17 = vmul.f32 0.04, %v1648_v21  ;;  %v1686_v27 = vld [vmem:[#allocation2 + $0x16] sm:$0x1] }
 0x162   :  { %v1657_v25 = vmul.f32 0.04, %v1649_v22  ;;  %v1658_v20 = vmul.f32 0.04, %v1650_v15  ;;  %v1669_v33 = vrot.slane %v1654_v32, 7 }
 0x163   :  { %v1659_v23 = vmul.f32 0.04, %v1651_v26  ;;  %v1660_v36 = vmul.f32 0.04, %v1652_v30  ;;  %v1671_v28 = vrot.slane %v1655_v16, 6  ;;  %v1673_v24 = vrot.slane %v1656_v17, 5 }
 0x164   :  { %v1675_v34 = vrot.slane %v1657_v25, 4  ;;  %v1677_v35 = vrot.slane %v1658_v20, 3  ;;  %v1687_v41 = vld [vmem:[#allocation2 + $0x26] sm:$0x1]  ;;  %v1670_v43 = vsel %vm402_vm0, %v1669_v33, %v1653_v31  ;;  %v1688_v50 = vld [vmem:[#allocation2 + $0x36] sm:$0x1] }
 0x165   :  { %v1679_v37 = vrot.slane %v1659_v23, 2  ;;  %v1681_v42 = vrot.slane %v1660_v36, 1  ;;  %v1689_v51 = vld [vmem:[#allocation2 + $0x46] sm:$0x1]  ;;  %v1672_v52 = vsel %vm405_vm1, %v1671_v28, %v1670_v43  ;;  %v1690_v38 = vld [vmem:[#allocation2 + $0x56] sm:$0x1] }
 0x166   :  { %v1691_v39 = vld [vmem:[#allocation2 + $0x66] sm:$0x1]  ;;  %v1692_v46 = vld [vmem:[#allocation2 + $0x76] sm:$0x1]  ;;  %v1674_v40 = vsel %vm408_vm2, %v1673_v24, %v1672_v52  ;;  %v1693_v44 = vld [vmem:[#allocation2 + $0x7] sm:$0x1] }
 0x167   :  { %v1694_v56 = vld [vmem:[#allocation2 + $0x17] sm:$0x1]  ;;  %v1695_v49 = vld [vmem:[#allocation2 + $0x27] sm:$0x1]  ;;  %v1676_v54 = vsel %vm411_vm3, %v1675_v34, %v1674_v40  ;;  %v1701_v53 = vadd.f32 %v1693_v44, %v1685_v29  ;;  %v1709_v7 = vld [vmem:[#allocation2 + $0x8] sm:$0x1] }
 0x168   :  { %v1696_v55 = vld [vmem:[#allocation2 + $0x37] sm:$0x1]  ;;  %v1697_v47 = vld [vmem:[#allocation2 + $0x47] sm:$0x1]  ;;  %v1702_v45 = vadd.f32 %v1694_v56, %v1686_v27  ;;  %v1703_v58 = vadd.f32 %v1695_v49, %v1687_v41  ;;  %v1678_v59 = vsel %vm414_vm4, %v1677_v35, %v1676_v54  ;;  %v1710_v63 = vld [vmem:[#allocation2 + $0x18] sm:$0x1] }
 0x169   :  { %v1698_v61 = vld [vmem:[#allocation2 + $0x57] sm:$0x1]  ;;  %v1699_v10 = vld [vmem:[#allocation2 + $0x67] sm:$0x1]  ;;  %v1704_v62 = vadd.f32 %v1696_v55, %v1688_v50  ;;  %v1705_v5 = vadd.f32 %v1697_v47, %v1689_v51  ;;  %v1680_v57 = vsel %vm417_vm5, %v1679_v37, %v1678_v59  ;;  %v1711_v0 = vld [vmem:[#allocation2 + $0x28] sm:$0x1]  ;;  %v1717_v1 = vadd.f32 %v1709_v7, %v1701_v53 }
 0x16a   :  { %v1700_v3 = vld [vmem:[#allocation2 + $0x77] sm:$0x1]  ;;  %v1706_v4 = vadd.f32 %v1698_v61, %v1690_v38  ;;  %v1707_v60 = vadd.f32 %v1699_v10, %v1691_v39  ;;  %v1712_v48 = vld [vmem:[#allocation2 + $0x38] sm:$0x1]  ;;  %v1682_v8 = vsel %vm420_vm6, %v1681_v42, %v1680_v57  ;;  %v1713_v6 = vld [vmem:[#allocation2 + $0x48] sm:$0x1]  ;;  %v1718_v19 = vadd.f32 %v1710_v63, %v1702_v45 }
 0x16b   :  { %v1708_v9 = vadd.f32 %v1700_v3, %v1692_v46  ;;  %v1714_v18 = vld [vmem:[#allocation2 + $0x58] sm:$0x1]  ;;  %v1715_v14 = vld [vmem:[#allocation2 + $0x68] sm:$0x1]  ;;  %v1719_v13 = vadd.f32 %v1711_v0, %v1703_v58  ;;  %v1720_v2 = vadd.f32 %v1712_v48, %v1704_v62  ;;  %1684 = vst.msk [vmem:[#allocation3 + $0x8] sm:$0xff] %vm460_vm7, %v1682_v8  ;;  %v1721_v11 = vadd.f32 %v1713_v6, %v1705_v5  ;;  %v1893_v61 = vld [vmem:[#allocation3] sm:$0xff] }
 0x16c   :  { %v1716_v12 = vld [vmem:[#allocation2 + $0x78] sm:$0x1]  ;;  %v1722_v21 = vadd.f32 %v1714_v18, %v1706_v4  ;;  %v1723_v22 = vadd.f32 %v1715_v14, %v1707_v60  ;;  %v1725_v15 = vld [vmem:[#allocation2 + $0x9] sm:$0x1]  ;;  %v1726_v26 = vld [vmem:[#allocation2 + $0x19] sm:$0x1] }
 0x16d   :  { %v1724_v30 = vadd.f32 %v1716_v12, %v1708_v9  ;;  %v1727_v31 = vld [vmem:[#allocation2 + $0x29] sm:$0x1]  ;;  %v1728_v32 = vld [vmem:[#allocation2 + $0x39] sm:$0x1]  ;;  %v1733_v17 = vadd.f32 %v1725_v15, %v1717_v1  ;;  %v1734_v25 = vadd.f32 %v1726_v26, %v1718_v19  ;;  %v1741_v27 = vld [vmem:[#allocation2 + $0xa] sm:$0x1] }
 0x16e   :  { %v1729_v16 = vld [vmem:[#allocation2 + $0x49] sm:$0x1]  ;;  %v1730_v20 = vld [vmem:[#allocation2 + $0x59] sm:$0x1]  ;;  %v1735_v33 = vadd.f32 %v1727_v31, %v1719_v13  ;;  %v1736_v28 = vadd.f32 %v1728_v32, %v1720_v2  ;;  %v1742_v41 = vld [vmem:[#allocation2 + $0x1a] sm:$0x1] }
 0x16f   :  { %v1731_v23 = vld [vmem:[#allocation2 + $0x69] sm:$0x1]  ;;  %v1732_v36 = vld [vmem:[#allocation2 + $0x79] sm:$0x1]  ;;  %v1737_v24 = vadd.f32 %v1729_v16, %v1721_v11  ;;  %v1738_v29 = vadd.f32 %v1730_v20, %v1722_v21  ;;  %v1743_v43 = vld [vmem:[#allocation2 + $0x2a] sm:$0x1]  ;;  %v1749_v51 = vadd.f32 %v1741_v27, %v1733_v17  ;;  %v1750_v52 = vadd.f32 %v1742_v41, %v1734_v25 }
 0x170   :  { %v1739_v34 = vadd.f32 %v1731_v23, %v1723_v22  ;;  %v1740_v35 = vadd.f32 %v1732_v36, %v1724_v30  ;;  %v1744_v37 = vld [vmem:[#allocation2 + $0x3a] sm:$0x1]  ;;  %v1745_v42 = vld [vmem:[#allocation2 + $0x4a] sm:$0x1]  ;;  %v1751_v38 = vadd.f32 %v1743_v43, %v1735_v33  ;;  %v1789_v62 = vld [vmem:[#allocation2 + $0x9] sm:$0x1] }
 0x171   :  { %v1746_v50 = vld [vmem:[#allocation2 + $0x5a] sm:$0x1]  ;;  %v1747_v39 = vld [vmem:[#allocation2 + $0x6a] sm:$0x1]  ;;  %v1752_v40 = vadd.f32 %v1744_v37, %v1736_v28  ;;  %v1753_v44 = vadd.f32 %v1745_v42, %v1737_v24  ;;  %v1757_v55 = vmul.f32 0.04, %v1749_v51 }
 0x172   :  { %v1748_v46 = vld [vmem:[#allocation2 + $0x7a] sm:$0x1]  ;;  %v1754_v56 = vadd.f32 %v1746_v50, %v1738_v29  ;;  %v1755_v49 = vadd.f32 %v1747_v39, %v1739_v34  ;;  %v1758_v47 = vmul.f32 0.04, %v1750_v52  ;;  %v1759_v53 = vmul.f32 0.04, %v1751_v38 }
 0x173   :  { %v1756_v54 = vadd.f32 %v1748_v46, %v1740_v35  ;;  %v1760_v45 = vmul.f32 0.04, %v1752_v40  ;;  %v1761_v58 = vmul.f32 0.04, %v1753_v44  ;;  %v1790_v5 = vld [vmem:[#allocation2 + $0x19] sm:$0x1] }
 0x174   :  { %v1762_v59 = vmul.f32 0.04, %v1754_v56  ;;  %v1763_v10 = vmul.f32 0.04, %v1755_v49  ;;  %v1773_v4 = vrot.slane %v1758_v47, 7  ;;  %v1775_v7 = vrot.slane %v1759_v53, 6 }
 0x175   :  { %v1764_v3 = vmul.f32 0.04, %v1756_v54  ;;  %v1777_v57 = vrot.slane %v1760_v45, 5  ;;  %v1779_v60 = vrot.slane %v1761_v58, 4  ;;  %v1791_v9 = vld [vmem:[#allocation2 + $0x29] sm:$0x1] }
 0x176   :  { %v1781_v63 = vrot.slane %v1762_v59, 3  ;;  %v1783_v0 = vrot.slane %v1763_v10, 2  ;;  %v1792_v1 = vld [vmem:[#allocation2 + $0x39] sm:$0x1]  ;;  %v1894_v8 = vld [vmem:[#allocation3 + $0x8] sm:$0xff]  ;;  %v1774_v6 = vsel %vm402_vm0, %v1773_v4, %v1757_v55 }
 0x177   :  { %v1785_v48 = vrot.slane %v1764_v3, 1  ;;  %v1793_v18 = vld [vmem:[#allocation2 + $0x49] sm:$0x1]  ;;  %v1794_v14 = vld [vmem:[#allocation2 + $0x59] sm:$0x1]  ;;  %v1897_v13 = vpack.c.bf16 %v1894_v8, %v1893_v61  ;;  %v1776_v2 = vsel %vm405_vm1, %v1775_v7, %v1774_v6 }
 0x178   :  { %v1795_v19 = vld [vmem:[#allocation2 + $0x69] sm:$0x1]  ;;  %v1796_v12 = vld [vmem:[#allocation2 + $0x79] sm:$0x1]  ;;  %v1797_v11 = vld [vmem:[#allocation2 + $0xa] sm:$0x1]  ;;  %v1778_v22 = vsel %vm408_vm2, %v1777_v57, %v1776_v2 }
 0x179   :  { %v1798_v21 = vld [vmem:[#allocation2 + $0x1a] sm:$0x1]  ;;  %v1799_v15 = vld [vmem:[#allocation2 + $0x2a] sm:$0x1]  ;;  %v1805_v31 = vadd.f32 %v1797_v11, %v1789_v62  ;;  %5379 = vmatprep.mubr.msk.bf16.mxu0 %vm460_vm7, %v1897_v13  ;;  %v1780_v16 = vsel %vm411_vm3, %v1779_v60, %v1778_v22  ;;  %v1813_v35 = vld [vmem:[#allocation2 + $0xb] sm:$0x1] }
 0x17a   :  { %v1800_v26 = vld [vmem:[#allocation2 + $0x3a] sm:$0x1]  ;;  %v1801_v30 = vld [vmem:[#allocation2 + $0x4a] sm:$0x1]  ;;  %v1806_v32 = vadd.f32 %v1798_v21, %v1790_v5  ;;  %v1807_v23 = vadd.f32 %v1799_v15, %v1791_v9  ;;  %v1782_v28 = vsel %vm414_vm4, %v1781_v63, %v1780_v16  ;;  %v1814_v27 = vld [vmem:[#allocation2 + $0x1b] sm:$0x1] }
 0x17b   :  { %v1802_v17 = vld [vmem:[#allocation2 + $0x5a] sm:$0x1]  ;;  %v1803_v25 = vld [vmem:[#allocation2 + $0x6a] sm:$0x1]  ;;  %v1808_v36 = vadd.f32 %v1800_v26, %v1792_v1  ;;  %v1809_v33 = vadd.f32 %v1801_v30, %v1793_v18  ;;  %v1815_v41 = vld [vmem:[#allocation2 + $0x2b] sm:$0x1]  ;;  %v1784_v43 = vsel %vm417_vm5, %v1783_v0, %v1782_v28  ;;  %v1821_v51 = vadd.f32 %v1813_v35, %v1805_v31 }
 0x17c   :  { %v1804_v20 = vld [vmem:[#allocation2 + $0x7a] sm:$0x1]  ;;  %v1810_v24 = vadd.f32 %v1802_v17, %v1794_v14  ;;  %v1811_v29 = vadd.f32 %v1803_v25, %v1795_v19  ;;  %v1816_v37 = vld [vmem:[#allocation2 + $0x3b] sm:$0x1]  ;;  %v1817_v42 = vld [vmem:[#allocation2 + $0x4b] sm:$0x1]  ;;  %v1822_v52 = vadd.f32 %v1814_v27, %v1806_v32  ;;  %v1823_v38 = vadd.f32 %v1815_v41, %v1807_v23 }
 0x17d   :  { %v1812_v34 = vadd.f32 %v1804_v20, %v1796_v12  ;;  %v1818_v50 = vld [vmem:[#allocation2 + $0x5b] sm:$0x1]  ;;  %v1786_v39 = vsel %vm420_vm6, %v1785_v48, %v1784_v43  ;;  %v1819_v46 = vld [vmem:[#allocation2 + $0x6b] sm:$0x1]  ;;  %v1824_v44 = vadd.f32 %v1816_v37, %v1808_v36  ;;  %v1825_v56 = vadd.f32 %v1817_v42, %v1809_v33  ;;  %v1829_v54 = vld [vmem:[#allocation2 + $0xc] sm:$0x1] }
 0x17e   :  { %v1820_v40 = vld [vmem:[#allocation2 + $0x7b] sm:$0x1]  ;;  %v1826_v49 = vadd.f32 %v1818_v50, %v1810_v24  ;;  %1788 = vst.msk [vmem:[#allocation3 + $0x10] sm:$0xff] %vm460_vm7, %v1786_v39  ;;  %v1827_v55 = vadd.f32 %v1819_v46, %v1811_v29  ;;  %v1830_v61 = vld [vmem:[#allocation2 + $0x1c] sm:$0x1]  ;;  %v1837_v58 = vadd.f32 %v1829_v54, %v1821_v51 }
 0x17f   :  { %v1828_v47 = vadd.f32 %v1820_v40, %v1812_v34  ;;  %v1831_v53 = vld [vmem:[#allocation2 + $0x2c] sm:$0x1]  ;;  %v1832_v45 = vld [vmem:[#allocation2 + $0x3c] sm:$0x1]  ;;  %v1838_v62 = vadd.f32 %v1830_v61, %v1822_v52  ;;  %v1845_v63 = vld [vmem:[#allocation2 + $0xd] sm:$0x1] }
 0x180   :  { %v1833_v59 = vld [vmem:[#allocation2 + $0x4c] sm:$0x1]  ;;  %v1834_v10 = vld [vmem:[#allocation2 + $0x5c] sm:$0x1]  ;;  %v1839_v5 = vadd.f32 %v1831_v53, %v1823_v38  ;;  %v1840_v4 = vadd.f32 %v1832_v45, %v1824_v44  ;;  %v1846_v0 = vld [vmem:[#allocation2 + $0x1d] sm:$0x1]  ;;  %v1853_v18 = vadd.f32 %v1845_v63, %v1837_v58 }
 0x181   :  { %v1835_v3 = vld [vmem:[#allocation2 + $0x6c] sm:$0x1]  ;;  %v1836_v7 = vld [vmem:[#allocation2 + $0x7c] sm:$0x1]  ;;  %v1841_v57 = vadd.f32 %v1833_v59, %v1825_v56  ;;  %v1842_v60 = vadd.f32 %v1834_v10, %v1826_v49  ;;  %v1847_v1 = vld [vmem:[#allocation2 + $0x2d] sm:$0x1]  ;;  %v1854_v14 = vadd.f32 %v1846_v0, %v1838_v62 }
 0x182   :  { %v1843_v9 = vadd.f32 %v1835_v3, %v1827_v55  ;;  %v1844_v48 = vadd.f32 %v1836_v7, %v1828_v47  ;;  %v1848_v8 = vld [vmem:[#allocation2 + $0x3d] sm:$0x1]  ;;  %v1849_v6 = vld [vmem:[#allocation2 + $0x4d] sm:$0x1]  ;;  %v1855_v12 = vadd.f32 %v1847_v1, %v1839_v5  ;;  %v1861_v30 = vmul.f32 0.04, %v1853_v18 }
 0x183   :  { %v1850_v19 = vld [vmem:[#allocation2 + $0x5d] sm:$0x1]  ;;  %v1851_v13 = vld [vmem:[#allocation2 + $0x6d] sm:$0x1]  ;;  %v1856_v11 = vadd.f32 %v1848_v8, %v1840_v4  ;;  %v1857_v21 = vadd.f32 %v1849_v6, %v1841_v57  ;;  %v1899_v31 = vld [vmem:[#allocation8] sm:$0x3] }
 0x184   :  { %v1852_v2 = vld [vmem:[#allocation2 + $0x7d] sm:$0x1]  ;;  %v1858_v22 = vadd.f32 %v1850_v19, %v1842_v60  ;;  %v1859_v15 = vadd.f32 %v1851_v13, %v1843_v9  ;;  %v1862_v32 = vmul.f32 0.04, %v1854_v14  ;;  %v1863_v16 = vmul.f32 0.04, %v1855_v12  ;;  %5503 = vmatprep.subr.msk.bf16.mxu0 %vm1913_vm9, %v1899_v31 }
 0x185   :  { %v1860_v26 = vadd.f32 %v1852_v2, %v1844_v48  ;;  %v1864_v17 = vmul.f32 0.04, %v1856_v11  ;;  %v1865_v25 = vmul.f32 0.04, %v1857_v21  ;;  %v1915_v34 = vsel %vm1913_vm9, %v1899_v31, 0  ;;  %v1895_v39 = vld [vmem:[#allocation3 + $0x10] sm:$0xff] }
 0x186   :  { %v1866_v20 = vmul.f32 0.04, %v1858_v22  ;;  %v1867_v23 = vmul.f32 0.04, %v1859_v15  ;;  %v1877_v33 = vrot.slane %v1862_v32, 7  ;;  %v1879_v28 = vrot.slane %v1863_v16, 6  ;;  %5378 = vmatpush3.bf16.msra.mxu0 %v1915_v34 }
 0x187   :  { %v1868_v36 = vmul.f32 0.04, %v1860_v26  ;;  %v1881_v24 = vrot.slane %v1864_v17, 5  ;;  %v1883_v29 = vrot.slane %v1865_v25, 4  ;;  %v5217_v44 = vld [vmem:[#allocation11] ss:$0 sm:$0xff] }
 0x188   :  { %v1878_v35 = vsel %vm402_vm0, %v1877_v33, %v1861_v30  ;;  %v1885_v27 = vrot.slane %v1866_v20, 3  ;;  %v1887_v43 = vrot.slane %v1867_v23, 2 }
 0x189   :  { %v1880_v41 = vsel %vm405_vm1, %v1879_v28, %v1878_v35  ;;  %v1889_v42 = vrot.slane %v1868_v36, 1 }
 0x18a   :  { %v1882_v37 = vsel %vm408_vm2, %v1881_v24, %v1880_v41 }
 0x18b   :  { %v1884_v50 = vsel %vm411_vm3, %v1883_v29, %v1882_v37 }
 0x18c   :  { %v1886_v51 = vsel %vm414_vm4, %v1885_v27, %v1884_v50 }
 0x18d   :  { %v1888_v52 = vsel %vm417_vm5, %v1887_v43, %v1886_v51 }
 0x18e   :  { %v1890_v38 = vsel %vm420_vm6, %v1889_v42, %v1888_v52 }
 0x18f   :  { %1892 = vst.msk [vmem:[#allocation3 + $0x18] sm:$0xff] %vm460_vm7, %v1890_v38 }
 0x196   :  { %v1896_v46 = vld [vmem:[#allocation3 + $0x18] sm:$0xff] }
 0x197   :  { %v1898_v40 = vpack.c.bf16 %v1896_v46, %v1895_v39 }
 0x199   :  { %5380 = vmatmul.mubr.msk.bf16.vlgmr.msra.gmra.mrb[0].mxu0 %vm460_vm7, %v1898_v40 }
 0x26c   :  { %v5381_v56 = vpop.f32.mrb[0].mxu0 }
 0x26d   :  { %v1951_v49 = vpop.f32.mrb[1].mxu0  ;;  %v1960_v54 = vadd.f32 %v5381_v56, %v5217_v44 }
 0x26e   :  { %v1952_v55 = vadd.f32 %v5217_v44, %v1951_v49  ;;  %v5382_v47 = vpop.f32.mrb[2].mxu0 }
 0x26f   :  { %v1954_v61 = vpop.f32.mrb[3].mxu0  ;;  %v1963_v53 = vadd.f32 %v5382_v47, %v5217_v44  ;;  %v1968_v45 = vmax.f32 %v1960_v54, 0.0 }
 0x270   :  { %v1955_v58 = vadd.f32 %v5217_v44, %v1954_v61  ;;  %v1966_v59 = vmax.f32 %v1952_v55, 0.0 }
 0x271   :  { %v1969_v10 = vmax.f32 %v1963_v53, 0.0  ;;  %1972 = vst [vmem:[#allocation4 + $0x10] sm:$0xff] %v1968_v45 }
 0x272   :  { %v1967_v3 = vmax.f32 %v1955_v58, 0.0  ;;  %1970 = vst [vmem:[#allocation4] sm:$0xff] %v1966_v59 }
 0x273   :  { %1973 = vst [vmem:[#allocation4 + $0x18] sm:$0xff] %v1969_v10 }
 0x274   :  { %1971 = vst [vmem:[#allocation4 + $0x8] sm:$0xff] %v1967_v3 }
 0x278   :  { %v1990_v62 = vld [vmem:[#allocation4 + $0x10] sm:$0xff]  }
 0x279   :  { %v1974_v5 = vld [vmem:[#allocation4] sm:$0xff]   ;;  %1991 = vst [vmem:[#allocation5 + $0x10] sm:$0xff] %v1990_v62  }
 0x27a   :  { %1975 = vst [vmem:[#allocation5] sm:$0xff] %v1974_v5   ;;  %v1998_v4 = vld [vmem:[#allocation4 + $0x18] sm:$0xff]  }
 0x27b   :  { %v1982_v7 = vld [vmem:[#allocation4 + $0x8] sm:$0xff]   ;;  %1999 = vst [vmem:[#allocation5 + $0x18] sm:$0xff] %v1998_v4  }
 0x27c   :  { %1983 = vst [vmem:[#allocation5 + $0x8] sm:$0xff] %v1982_v7  }
 0x27d   :  { %5727 = dma.done.wait [#allocation7], 131072 }
 0x27e   :  { %5728 = vsyncadd [#allocation7], 4294836224  ;;  %v2119_v57 = vld [vmem:[#allocation6 + $0x8] sm:$0xff]  ;;  %v2121_v60 = vld [vmem:[#allocation6 + $0x18] sm:$0xff]  ;;  %v5746_v12 = vmov 1983009808   ;;  %v2022_v21 = vlaneseq }
 0x27f   :  { %v2118_v9 = vld [vmem:[#allocation6] sm:$0xff]  ;;  %3184 = vmatprep.subr.bf16.mxu1 %v2119_v57  ;;  %3512 = vmatprep.subr.bf16.mxu0 %v2121_v60  ;;  %v2120_v63 = vld [vmem:[#allocation6 + $0x10] sm:$0xff]  ;;  %v2127_v0 = vld [vmem:[#allocation6 + $0x48] sm:$0xff]  ;;  %v2020_v11 = vunpack.c.l.s4 %v5746_v12  ;;  %s5747_s0 = smov [#allocation17]  }
 0x280   :  { %v2129_v48 = vld [vmem:[#allocation6 + $0x58] sm:$0xff]  ;;  %3185 = vmatpush1.bf16.msra.mxu1 %v2118_v9  ;;  %3513 = vmatpush1.bf16.msra.mxu0 %v2120_v63  ;;  %v2126_v1 = vld [vmem:[#allocation6 + $0x40] sm:$0xff]  ;;  %v2128_v8 = vld [vmem:[#allocation6 + $0x50] sm:$0xff]  ;;  %v7740_v32 = vshrl.u32 %v2022_v21, 7  ;;  %s5198_s18 = sshll.u32 %s5747_s0, 4  ;;  %s5199_s18 = int_to_ptr.vmem [resolvable:$true] %s5198_s18 }
 0x281   :  { %3186 = vmatprep.subr.bf16.mxu1 %v2127_v0  ;;  %3514 = vmatprep.subr.bf16.mxu0 %v2129_v48  ;;  %v2135_v6 = vld [vmem:[#allocation6 + $0x88] sm:$0xff]  ;;  %v2137_v18 = vld [vmem:[#allocation6 + $0x98] sm:$0xff]  ;;  %v2134_v14 = vld [vmem:[#allocation6 + $0x80] sm:$0xff]  ;;  %v2021_v31 = vunpack.c.0.s8 %v2020_v11  ;;  %s5699_s19 = scalar_lea.vmem %s5199_s18, 32  ;;  %p5704_p13 = scmp.lt.s32.totalorder %s5199_s18, %s5199_s18 }
 0x282   :  { %v2136_v19 = vld [vmem:[#allocation6 + $0x90] sm:$0xff]  ;;  %v2143_v13 = vld [vmem:[#allocation6 + $0xc8] sm:$0xff]  ;;  %v2145_v2 = vld [vmem:[#allocation6 + $0xd8] sm:$0xff]  ;;  %p5700_p12 = scmp.ne.s32.totalorder %s5199_s18, %s5699_s19  ;;  %p5705_p0 = scmp.lt.s32.totalorder %s5699_s19, %s5699_s19 }
 0x283   :  { %v2142_v22 = vld [vmem:[#allocation6 + $0xc0] sm:$0xff]  ;;  %v2144_v15 = vld [vmem:[#allocation6 + $0xd0] sm:$0xff]  ;;  %v2151_v26 = vld [vmem:[#allocation6 + $0x108] sm:$0xff]  ;;  %v7743_v23 = vsub.s32 %v2021_v31, %v7740_v32 }
 0x284   :  { %3187 = vmatpush1.bf16.msra.mxu1 %v2126_v1  ;;  %3515 = vmatpush1.bf16.msra.mxu0 %v2128_v8  ;;  %v2153_v30 = vld [vmem:[#allocation6 + $0x118] sm:$0xff]  ;;  %v2150_v16 = vld [vmem:[#allocation6 + $0x100] sm:$0xff]  ;;  %v2152_v17 = vld [vmem:[#allocation6 + $0x110] sm:$0xff]  ;;  %p5706_p1 = por %p5705_p0, %p5704_p13 }
 0x285   :  { %3188 = vmatprep.subr.bf16.mxu1 %v2135_v6  ;;  %3516 = vmatprep.subr.bf16.mxu0 %v2137_v18  ;;  %v2159_v25 = vld [vmem:[#allocation6 + $0x148] sm:$0xff]  ;;  %v2161_v20 = vld [vmem:[#allocation6 + $0x158] sm:$0xff]  ;;  %v2158_v36 = vld [vmem:[#allocation6 + $0x140] sm:$0xff] }
 0x286   :  { %v2160_v33 = vld [vmem:[#allocation6 + $0x150] sm:$0xff]  ;;  %v2167_v28 = vld [vmem:[#allocation6 + $0x188] sm:$0xff]  ;;  %v2169_v24 = vld [vmem:[#allocation6 + $0x198] sm:$0xff]  ;;  %p5707_p2 = pnand %p5706_p1, %p5700_p12 }
 0x287   :  { %v7745_v29 = vld [vmem:[#allocation5] sm:$0xff]  ;;  %v2168_v27 = vld [vmem:[#allocation6 + $0x190] sm:$0xff]  ;;  %v2175_v41 = vld [vmem:[#allocation6 + $0x1c8] sm:$0xff] }
 0x288   :  { %3189 = vmatpush1.bf16.msra.mxu1 %v2134_v14  ;;  %3517 = vmatpush1.bf16.msra.mxu0 %v2136_v19  ;;  %v7749_v34 = vrot.slane %v7745_v29, %v7743_v23  ;;  %v2166_v35 = vld [vmem:[#allocation6 + $0x180] sm:$0xff]  ;;  %v2177_v43 = vld [vmem:[#allocation6 + $0x1d8] sm:$0xff]  ;;  %v2176_v51 = vld [vmem:[#allocation6 + $0x1d0] sm:$0xff]  ;;  %v2018_v0 = vcombine.high %v7745_v29, %v7745_v29 }
 0x289   :  { %3190 = vmatprep.subr.bf16.mxu1 %v2143_v13  ;;  %3518 = vmatprep.subr.bf16.mxu0 %v2145_v2  ;;  %v2174_v50 = vld [vmem:[#allocation6 + $0x1c0] sm:$0xff]  ;;  %v2183_v52 = vld [vmem:[#allocation6 + $0x208] sm:$0xff]  ;;  %v2185_v38 = vld [vmem:[#allocation6 + $0x218] sm:$0xff] }
 0x28a   :  { %v2033_v37 = vcombine.high %v7749_v34, %v7749_v34  ;;  %v2182_v39 = vld [vmem:[#allocation6 + $0x200] sm:$0xff]  ;;  %v2184_v46 = vld [vmem:[#allocation6 + $0x210] sm:$0xff]  ;;  %v2191_v40 = vld [vmem:[#allocation6 + $0x248] sm:$0xff]  ;;  %v7760_v18 = vrot.slane %v2018_v0, %v7743_v23  ;;  %v7766_v11 = vpack.c.bf16 %v7749_v34, %v7749_v34 }
 0x28b   :  { %v2193_v44 = vld [vmem:[#allocation6 + $0x258] sm:$0xff]  ;;  %v2190_v56 = vld [vmem:[#allocation6 + $0x240] sm:$0xff]  ;;  %v2192_v49 = vld [vmem:[#allocation6 + $0x250] sm:$0xff] }
 0x28c   :  { %3191 = vmatpush1.bf16.msra.mxu1 %v2142_v22  ;;  %3519 = vmatpush1.bf16.msra.mxu0 %v2144_v15  ;;  %v7753_v42 = vpack.c.bf16 %v2033_v37, %v2033_v37  ;;  %v2199_v54 = vld [vmem:[#allocation6 + $0x288] sm:$0xff]  ;;  %v2201_v55 = vld [vmem:[#allocation6 + $0x298] sm:$0xff]  ;;  %v2198_v47 = vld [vmem:[#allocation6 + $0x280] sm:$0xff]  ;;  %v2034_v12 = vcombine.high %v7760_v18, %v7760_v18 }
 0x28d   :  { %3192 = vmatprep.subr.bf16.mxu1 %v2151_v26  ;;  %3520 = vmatprep.subr.bf16.mxu0 %v2153_v30  ;;  %v2200_v61 = vld [vmem:[#allocation6 + $0x290] sm:$0xff]  ;;  %v2207_v53 = vld [vmem:[#allocation6 + $0x2c8] sm:$0xff]  ;;  %v2209_v45 = vld [vmem:[#allocation6 + $0x2d8] sm:$0xff] }
 0x28e   :  { %3216 = vmatprep.mubr.bf16.mxu1 %v7753_v42  ;;  %3544 = vmatprep.mubr.bf16.mxu0 %v7753_v42  ;;  %v2206_v58 = vld [vmem:[#allocation6 + $0x2c0] sm:$0xff]  ;;  %v2208_v59 = vld [vmem:[#allocation6 + $0x2d0] sm:$0xff]  ;;  %v2215_v10 = vld [vmem:[#allocation6 + $0x308] sm:$0xff]  ;;  %v7768_v30 = vpack.c.bf16 %v2034_v12, %v2034_v12 }
 0x28f   :  { %v2217_v3 = vld [vmem:[#allocation6 + $0x318] sm:$0xff]  ;;  %v2214_v62 = vld [vmem:[#allocation6 + $0x300] sm:$0xff]  ;;  %v2216_v5 = vld [vmem:[#allocation6 + $0x310] sm:$0xff] }
 0x290   :  { %3193 = vmatpush1.bf16.msra.mxu1 %v2150_v16  ;;  %3521 = vmatpush1.bf16.msra.mxu0 %v2152_v17  ;;  %v2223_v4 = vld [vmem:[#allocation6 + $0x348] sm:$0xff]  ;;  %v2225_v7 = vld [vmem:[#allocation6 + $0x358] sm:$0xff]  ;;  %v2222_v57 = vld [vmem:[#allocation6 + $0x340] sm:$0xff] }
 0x291   :  { %3194 = vmatprep.subr.bf16.mxu1 %v2159_v25  ;;  %3522 = vmatprep.subr.bf16.mxu0 %v2161_v20  ;;  %v2224_v60 = vld [vmem:[#allocation6 + $0x350] sm:$0xff]  ;;  %v2231_v9 = vld [vmem:[#allocation6 + $0x388] sm:$0xff]  ;;  %v2233_v63 = vld [vmem:[#allocation6 + $0x398] sm:$0xff] }
 0x292   :  { %v2230_v48 = vld [vmem:[#allocation6 + $0x380] sm:$0xff]  ;;  %v2232_v1 = vld [vmem:[#allocation6 + $0x390] sm:$0xff]  ;;  %v2239_v8 = vld [vmem:[#allocation6 + $0x3c8] sm:$0xff] }
 0x293   :  { %v2241_v6 = vld [vmem:[#allocation6 + $0x3d8] sm:$0xff]  ;;  %v2238_v14 = vld [vmem:[#allocation6 + $0x3c0] sm:$0xff]  ;;  %v2240_v19 = vld [vmem:[#allocation6 + $0x3d0] sm:$0xff] }
 0x294   :  { %3195 = vmatpush1.bf16.msra.mxu1 %v2158_v36  ;;  %3523 = vmatpush1.bf16.msra.mxu0 %v2160_v33  ;;  %v2247_v13 = vld [vmem:[#allocation6 + $0x408] sm:$0xff]  ;;  %v2249_v2 = vld [vmem:[#allocation6 + $0x418] sm:$0xff]  ;;  %v2246_v21 = vld [vmem:[#allocation6 + $0x400] sm:$0xff] }
 0x295   :  { %3196 = vmatprep.subr.bf16.mxu1 %v2167_v28  ;;  %3524 = vmatprep.subr.bf16.mxu0 %v2169_v24  ;;  %v2248_v22 = vld [vmem:[#allocation6 + $0x410] sm:$0xff]  ;;  %v2255_v15 = vld [vmem:[#allocation6 + $0x448] sm:$0xff]  ;;  %v2257_v26 = vld [vmem:[#allocation6 + $0x458] sm:$0xff] }
 0x296   :  { %v2254_v31 = vld [vmem:[#allocation6 + $0x440] sm:$0xff]  ;;  %v2256_v16 = vld [vmem:[#allocation6 + $0x450] sm:$0xff]  ;;  %v2263_v17 = vld [vmem:[#allocation6 + $0x488] sm:$0xff] }
 0x297   :  { %v2265_v25 = vld [vmem:[#allocation6 + $0x498] sm:$0xff]  ;;  %v2262_v20 = vld [vmem:[#allocation6 + $0x480] sm:$0xff]  ;;  %v2264_v36 = vld [vmem:[#allocation6 + $0x490] sm:$0xff] }
 0x298   :  { %3197 = vmatpush1.bf16.msra.mxu1 %v2166_v35  ;;  %3525 = vmatpush1.bf16.msra.mxu0 %v2168_v27  ;;  %v2271_v33 = vld [vmem:[#allocation6 + $0x4c8] sm:$0xff]  ;;  %v2273_v28 = vld [vmem:[#allocation6 + $0x4d8] sm:$0xff]  ;;  %v2270_v24 = vld [vmem:[#allocation6 + $0x4c0] sm:$0xff] }
 0x299   :  { %3198 = vmatprep.subr.bf16.mxu1 %v2175_v41  ;;  %3526 = vmatprep.subr.bf16.mxu0 %v2177_v43  ;;  %v2272_v29 = vld [vmem:[#allocation6 + $0x4d0] sm:$0xff]  ;;  %v2279_v34 = vld [vmem:[#allocation6 + $0x508] sm:$0xff]  ;;  %v2281_v35 = vld [vmem:[#allocation6 + $0x518] sm:$0xff] }
 0x29a   :  { %v2278_v27 = vld [vmem:[#allocation6 + $0x500] sm:$0xff]  ;;  %v2280_v41 = vld [vmem:[#allocation6 + $0x510] sm:$0xff]  ;;  %v2287_v43 = vld [vmem:[#allocation6 + $0x548] sm:$0xff] }
 0x29b   :  { %v2289_v37 = vld [vmem:[#allocation6 + $0x558] sm:$0xff]  ;;  %v2342_v0 = vld [vmem:[#allocation6 + $0x700] sm:$0xff]  ;;  %v7774_v12 = vld [vmem:[#allocation5 + $0x8] sm:$0xff] }
 0x29c   :  { %3199 = vmatpush1.bf16.msra.mxu1 %v2174_v50  ;;  %3527 = vmatpush1.bf16.msra.mxu0 %v2176_v51  ;;  %v2286_v50 = vld [vmem:[#allocation6 + $0x540] sm:$0xff]  ;;  %v2288_v51 = vld [vmem:[#allocation6 + $0x550] sm:$0xff] }
 0x29d   :  { %3200 = vmatprep.subr.bf16.mxu1 %v2183_v52  ;;  %3528 = vmatprep.subr.bf16.mxu0 %v2185_v38  ;;  %v2295_v52 = vld [vmem:[#allocation6 + $0x588] sm:$0xff]  ;;  %v2297_v38 = vld [vmem:[#allocation6 + $0x598] sm:$0xff] }
 0x2a0   :  { %3201 = vmatpush1.bf16.msra.mxu1 %v2182_v39  ;;  %3529 = vmatpush1.bf16.msra.mxu0 %v2184_v46  ;;  %v2294_v39 = vld [vmem:[#allocation6 + $0x580] sm:$0xff]  ;;  %v2296_v46 = vld [vmem:[#allocation6 + $0x590] sm:$0xff] }
 0x2a1   :  { %3202 = vmatprep.subr.bf16.mxu1 %v2191_v40  ;;  %3530 = vmatprep.subr.bf16.mxu0 %v2193_v44  ;;  %v2303_v40 = vld [vmem:[#allocation6 + $0x5c8] sm:$0xff]  ;;  %v2305_v44 = vld [vmem:[#allocation6 + $0x5d8] sm:$0xff] }
 0x2a4   :  { %3203 = vmatpush1.bf16.msra.mxu1 %v2190_v56  ;;  %3531 = vmatpush1.bf16.msra.mxu0 %v2192_v49  ;;  %v2302_v56 = vld [vmem:[#allocation6 + $0x5c0] sm:$0xff]  ;;  %v2304_v49 = vld [vmem:[#allocation6 + $0x5d0] sm:$0xff] }
 0x2a5   :  { %3204 = vmatprep.subr.bf16.mxu1 %v2199_v54  ;;  %3532 = vmatprep.subr.bf16.mxu0 %v2201_v55  ;;  %v2311_v54 = vld [vmem:[#allocation6 + $0x608] sm:$0xff]  ;;  %v2313_v55 = vld [vmem:[#allocation6 + $0x618] sm:$0xff] }
 0x2a8   :  { %3205 = vmatpush1.bf16.msra.mxu1 %v2198_v47  ;;  %3533 = vmatpush1.bf16.msra.mxu0 %v2200_v61  ;;  %v2310_v47 = vld [vmem:[#allocation6 + $0x600] sm:$0xff]  ;;  %v2312_v61 = vld [vmem:[#allocation6 + $0x610] sm:$0xff] }
 0x2a9   :  { %3206 = vmatprep.subr.bf16.mxu1 %v2207_v53  ;;  %3534 = vmatprep.subr.bf16.mxu0 %v2209_v45  ;;  %v2319_v53 = vld [vmem:[#allocation6 + $0x648] sm:$0xff]  ;;  %v2321_v45 = vld [vmem:[#allocation6 + $0x658] sm:$0xff] }
 0x2ac   :  { %3207 = vmatpush1.bf16.msra.mxu1 %v2206_v58  ;;  %3535 = vmatpush1.bf16.msra.mxu0 %v2208_v59  ;;  %v2318_v58 = vld [vmem:[#allocation6 + $0x640] sm:$0xff]  ;;  %v2320_v59 = vld [vmem:[#allocation6 + $0x650] sm:$0xff] }
 0x2ad   :  { %3208 = vmatprep.subr.bf16.mxu1 %v2215_v10  ;;  %3536 = vmatprep.subr.bf16.mxu0 %v2217_v3  ;;  %v2327_v10 = vld [vmem:[#allocation6 + $0x688] sm:$0xff]  ;;  %v2329_v3 = vld [vmem:[#allocation6 + $0x698] sm:$0xff] }
 0x2b0   :  { %3209 = vmatpush1.bf16.msra.mxu1 %v2214_v62  ;;  %3537 = vmatpush1.bf16.msra.mxu0 %v2216_v5  ;;  %v2326_v62 = vld [vmem:[#allocation6 + $0x680] sm:$0xff]  ;;  %v2328_v5 = vld [vmem:[#allocation6 + $0x690] sm:$0xff] }
 0x2b1   :  { %3210 = vmatprep.subr.bf16.mxu1 %v2223_v4  ;;  %3538 = vmatprep.subr.bf16.mxu0 %v2225_v7  ;;  %v2335_v4 = vld [vmem:[#allocation6 + $0x6c8] sm:$0xff]  ;;  %v2337_v7 = vld [vmem:[#allocation6 + $0x6d8] sm:$0xff] }
 0x2b4   :  { %3211 = vmatpush1.bf16.msra.mxu1 %v2222_v57  ;;  %3539 = vmatpush1.bf16.msra.mxu0 %v2224_v60  ;;  %v2334_v57 = vld [vmem:[#allocation6 + $0x6c0] sm:$0xff]  ;;  %v2336_v60 = vld [vmem:[#allocation6 + $0x6d0] sm:$0xff] }
 0x2b5   :  { %3212 = vmatprep.subr.bf16.mxu1 %v2231_v9  ;;  %3540 = vmatprep.subr.bf16.mxu0 %v2233_v63  ;;  %v2343_v9 = vld [vmem:[#allocation6 + $0x708] sm:$0xff]  ;;  %v2345_v63 = vld [vmem:[#allocation6 + $0x718] sm:$0xff] }
 0x2b8   :  { %3213 = vmatpush1.bf16.msra.mxu1 %v2230_v48  ;;  %3541 = vmatpush1.bf16.msra.mxu0 %v2232_v1  ;;  %v2344_v48 = vld [vmem:[#allocation6 + $0x710] sm:$0xff]  ;;  %v2351_v1 = vld [vmem:[#allocation6 + $0x748] sm:$0xff] }
 0x2b9   :  { %3214 = vmatprep.subr.bf16.mxu1 %v2239_v8  ;;  %3542 = vmatprep.subr.bf16.mxu0 %v2241_v6  ;;  %v2353_v8 = vld [vmem:[#allocation6 + $0x758] sm:$0xff]  ;;  %v2350_v6 = vld [vmem:[#allocation6 + $0x740] sm:$0xff] }
 0x2bc   :  { %3215 = vmatpush1.bf16.msra.mxu1 %v2238_v14  ;;  %3543 = vmatpush1.bf16.msra.mxu0 %v2240_v19  ;;  %v2352_v14 = vld [vmem:[#allocation6 + $0x750] sm:$0xff]  ;;  %v2359_v19 = vld [vmem:[#allocation6 + $0x788] sm:$0xff] }
 0x2bd   :  { %3225 = vmatprep.subr.bf16.mxu1 %v2247_v13  ;;  %3553 = vmatprep.subr.bf16.mxu0 %v2249_v2  ;;  %v2361_v13 = vld [vmem:[#allocation6 + $0x798] sm:$0xff]  ;;  %v2358_v2 = vld [vmem:[#allocation6 + $0x780] sm:$0xff] }
 0x2bf   :  { %3217 = vmatmul.mubr.bf16.vlgmr.msra.gmra.mrb[0].mxu1 %v7766_v11  ;;  %3545 = vmatmul.mubr.bf16.vlgmr.msra.gmra.mrb[4].mxu0 %v7766_v11 }
 0x2c0   :  { %3226 = vmatpush1.bf16.msra.mxu1 %v2246_v21  ;;  %3554 = vmatpush1.bf16.msra.mxu0 %v2248_v22  ;;  %v2360_v21 = vld [vmem:[#allocation6 + $0x790] sm:$0xff]  ;;  %v2367_v22 = vld [vmem:[#allocation6 + $0x7c8] sm:$0xff] }
 0x2c1   :  { %3227 = vmatprep.subr.bf16.mxu1 %v2255_v15  ;;  %3555 = vmatprep.subr.bf16.mxu0 %v2257_v26  ;;  %v2369_v15 = vld [vmem:[#allocation6 + $0x7d8] sm:$0xff]  ;;  %v7778_v26 = vrot.slane %v7774_v12, %v7743_v23 }
 0x2c2   :  { %3257 = vmatprep.mubr.bf16.mxu1 %v7768_v30  ;;  %3585 = vmatprep.mubr.bf16.mxu0 %v7768_v30 }
 0x2c4   :  { %3228 = vmatpush1.bf16.msra.mxu1 %v2254_v31  ;;  %3556 = vmatpush1.bf16.msra.mxu0 %v2256_v16  ;;  %v2366_v31 = vld [vmem:[#allocation6 + $0x7c0] sm:$0xff]  ;;  %v2368_v16 = vld [vmem:[#allocation6 + $0x7d0] sm:$0xff] }
 0x2c5   :  { %3229 = vmatprep.subr.bf16.mxu1 %v2263_v17  ;;  %3557 = vmatprep.subr.bf16.mxu0 %v2265_v25  ;;  %v2375_v17 = vld [vmem:[#allocation6 + $0x808] sm:$0xff]  ;;  %v2377_v25 = vld [vmem:[#allocation6 + $0x818] sm:$0xff] }
 0x2c8   :  { %3230 = vmatpush1.bf16.msra.mxu1 %v2262_v20  ;;  %3558 = vmatpush1.bf16.msra.mxu0 %v2264_v36  ;;  %v2050_v20 = vcombine.high %v7778_v26, %v7778_v26  ;;  %v7784_v36 = vpack.c.bf16 %v7760_v18, %v7760_v18  ;;  %v2382_v18 = vld [vmem:[#allocation6 + $0x840] sm:$0xff] }
 0x2c9   :  { %3231 = vmatprep.subr.bf16.mxu1 %v2271_v33  ;;  %3559 = vmatprep.subr.bf16.mxu0 %v2273_v28  ;;  %v2374_v33 = vld [vmem:[#allocation6 + $0x800] sm:$0xff]  ;;  %v2376_v28 = vld [vmem:[#allocation6 + $0x810] sm:$0xff] }
 0x2cc   :  { %3232 = vmatpush1.bf16.msra.mxu1 %v2270_v24  ;;  %3560 = vmatpush1.bf16.msra.mxu0 %v2272_v29  ;;  %v2383_v24 = vld [vmem:[#allocation6 + $0x848] sm:$0xff]  ;;  %v2385_v29 = vld [vmem:[#allocation6 + $0x858] sm:$0xff] }
 0x2cd   :  { %3233 = vmatprep.subr.bf16.mxu1 %v2279_v34  ;;  %3561 = vmatprep.subr.bf16.mxu0 %v2281_v35  ;;  %v7786_v34 = vpack.c.bf16 %v2050_v20, %v2050_v20  ;;  %v2384_v35 = vld [vmem:[#allocation6 + $0x850] sm:$0xff]  ;;  %v2487_v20 = vld [vmem:[#allocation6 + $0xb88] sm:$0xff] }
 0x2d0   :  { %3234 = vmatpush1.bf16.msra.mxu1 %v2278_v27  ;;  %3562 = vmatpush1.bf16.msra.mxu0 %v2280_v41  ;;  %v2391_v27 = vld [vmem:[#allocation6 + $0x888] sm:$0xff]  ;;  %v2393_v41 = vld [vmem:[#allocation6 + $0x898] sm:$0xff] }
 0x2d1   :  { %3235 = vmatprep.subr.bf16.mxu1 %v2287_v43  ;;  %3563 = vmatprep.subr.bf16.mxu0 %v2289_v37  ;;  %v2390_v43 = vld [vmem:[#allocation6 + $0x880] sm:$0xff]  ;;  %v2392_v37 = vld [vmem:[#allocation6 + $0x890] sm:$0xff] }
 0x2d4   :  { %3236 = vmatpush1.bf16.msra.mxu1 %v2286_v50  ;;  %3564 = vmatpush1.bf16.msra.mxu0 %v2288_v51  ;;  %v2399_v50 = vld [vmem:[#allocation6 + $0x8c8] sm:$0xff]  ;;  %v2401_v51 = vld [vmem:[#allocation6 + $0x8d8] sm:$0xff] }
 0x2d5   :  { %3237 = vmatprep.subr.bf16.mxu1 %v2295_v52  ;;  %3565 = vmatprep.subr.bf16.mxu0 %v2297_v38  ;;  %v2398_v52 = vld [vmem:[#allocation6 + $0x8c0] sm:$0xff]  ;;  %v2400_v38 = vld [vmem:[#allocation6 + $0x8d0] sm:$0xff] }
 0x2d8   :  { %3238 = vmatpush1.bf16.msra.mxu1 %v2294_v39  ;;  %3566 = vmatpush1.bf16.msra.mxu0 %v2296_v46  ;;  %v2407_v39 = vld [vmem:[#allocation6 + $0x908] sm:$0xff]  ;;  %v2409_v46 = vld [vmem:[#allocation6 + $0x918] sm:$0xff] }
 0x2d9   :  { %3239 = vmatprep.subr.bf16.mxu1 %v2303_v40  ;;  %3567 = vmatprep.subr.bf16.mxu0 %v2305_v44  ;;  %v2406_v40 = vld [vmem:[#allocation6 + $0x900] sm:$0xff]  ;;  %v2408_v44 = vld [vmem:[#allocation6 + $0x910] sm:$0xff] }
 0x2dc   :  { %3240 = vmatpush1.bf16.msra.mxu1 %v2302_v56  ;;  %3568 = vmatpush1.bf16.msra.mxu0 %v2304_v49  ;;  %v2415_v56 = vld [vmem:[#allocation6 + $0x948] sm:$0xff]  ;;  %v2417_v49 = vld [vmem:[#allocation6 + $0x958] sm:$0xff] }
 0x2dd   :  { %3241 = vmatprep.subr.bf16.mxu1 %v2311_v54  ;;  %3569 = vmatprep.subr.bf16.mxu0 %v2313_v55  ;;  %v2414_v54 = vld [vmem:[#allocation6 + $0x940] sm:$0xff]  ;;  %v2416_v55 = vld [vmem:[#allocation6 + $0x950] sm:$0xff] }
 0x2e0   :  { %3242 = vmatpush1.bf16.msra.mxu1 %v2310_v47  ;;  %3570 = vmatpush1.bf16.msra.mxu0 %v2312_v61  ;;  %v2423_v47 = vld [vmem:[#allocation6 + $0x988] sm:$0xff]  ;;  %v2425_v61 = vld [vmem:[#allocation6 + $0x998] sm:$0xff] }
 0x2e1   :  { %3243 = vmatprep.subr.bf16.mxu1 %v2319_v53  ;;  %3571 = vmatprep.subr.bf16.mxu0 %v2321_v45  ;;  %v2422_v53 = vld [vmem:[#allocation6 + $0x980] sm:$0xff]  ;;  %v2424_v45 = vld [vmem:[#allocation6 + $0x990] sm:$0xff] }
 0x2e4   :  { %3244 = vmatpush1.bf16.msra.mxu1 %v2318_v58  ;;  %3572 = vmatpush1.bf16.msra.mxu0 %v2320_v59  ;;  %v2431_v58 = vld [vmem:[#allocation6 + $0x9c8] sm:$0xff]  ;;  %v2433_v59 = vld [vmem:[#allocation6 + $0x9d8] sm:$0xff] }
 0x2e5   :  { %3245 = vmatprep.subr.bf16.mxu1 %v2327_v10  ;;  %3573 = vmatprep.subr.bf16.mxu0 %v2329_v3  ;;  %v2430_v10 = vld [vmem:[#allocation6 + $0x9c0] sm:$0xff]  ;;  %v2432_v3 = vld [vmem:[#allocation6 + $0x9d0] sm:$0xff] }
 0x2e8   :  { %3246 = vmatpush1.bf16.msra.mxu1 %v2326_v62  ;;  %3574 = vmatpush1.bf16.msra.mxu0 %v2328_v5  ;;  %v2439_v62 = vld [vmem:[#allocation6 + $0xa08] sm:$0xff]  ;;  %v2441_v5 = vld [vmem:[#allocation6 + $0xa18] sm:$0xff] }
 0x2e9   :  { %3247 = vmatprep.subr.bf16.mxu1 %v2335_v4  ;;  %3575 = vmatprep.subr.bf16.mxu0 %v2337_v7  ;;  %v2438_v4 = vld [vmem:[#allocation6 + $0xa00] sm:$0xff]  ;;  %v2440_v7 = vld [vmem:[#allocation6 + $0xa10] sm:$0xff] }
 0x2ec   :  { %3248 = vmatpush1.bf16.msra.mxu1 %v2334_v57  ;;  %3576 = vmatpush1.bf16.msra.mxu0 %v2336_v60  ;;  %v2447_v57 = vld [vmem:[#allocation6 + $0xa48] sm:$0xff]  ;;  %v2449_v60 = vld [vmem:[#allocation6 + $0xa58] sm:$0xff] }
 0x2ed   :  { %3249 = vmatprep.subr.bf16.mxu1 %v2343_v9  ;;  %3577 = vmatprep.subr.bf16.mxu0 %v2345_v63  ;;  %v2446_v9 = vld [vmem:[#allocation6 + $0xa40] sm:$0xff]  ;;  %v2448_v63 = vld [vmem:[#allocation6 + $0xa50] sm:$0xff] }
 0x2f0   :  { %3250 = vmatpush1.bf16.msra.mxu1 %v2342_v0  ;;  %3578 = vmatpush1.bf16.msra.mxu0 %v2344_v48  ;;  %v2455_v0 = vld [vmem:[#allocation6 + $0xa88] sm:$0xff]  ;;  %v2457_v48 = vld [vmem:[#allocation6 + $0xa98] sm:$0xff] }
 0x2f1   :  { %3251 = vmatprep.subr.bf16.mxu1 %v2351_v1  ;;  %3579 = vmatprep.subr.bf16.mxu0 %v2353_v8  ;;  %v2454_v1 = vld [vmem:[#allocation6 + $0xa80] sm:$0xff]  ;;  %v2456_v8 = vld [vmem:[#allocation6 + $0xa90] sm:$0xff] }
 0x2f4   :  { %3252 = vmatpush1.bf16.msra.mxu1 %v2350_v6  ;;  %3580 = vmatpush1.bf16.msra.mxu0 %v2352_v14  ;;  %v2463_v6 = vld [vmem:[#allocation6 + $0xac8] sm:$0xff]  ;;  %v2465_v14 = vld [vmem:[#allocation6 + $0xad8] sm:$0xff] }
 0x2f5   :  { %3253 = vmatprep.subr.bf16.mxu1 %v2359_v19  ;;  %3581 = vmatprep.subr.bf16.mxu0 %v2361_v13  ;;  %v2462_v19 = vld [vmem:[#allocation6 + $0xac0] sm:$0xff]  ;;  %v2464_v13 = vld [vmem:[#allocation6 + $0xad0] sm:$0xff] }
 0x2f8   :  { %3254 = vmatpush1.bf16.msra.mxu1 %v2358_v2  ;;  %3582 = vmatpush1.bf16.msra.mxu0 %v2360_v21  ;;  %v2471_v2 = vld [vmem:[#allocation6 + $0xb08] sm:$0xff]  ;;  %v2473_v21 = vld [vmem:[#allocation6 + $0xb18] sm:$0xff] }
 0x2f9   :  { %3255 = vmatprep.subr.bf16.mxu1 %v2367_v22  ;;  %3583 = vmatprep.subr.bf16.mxu0 %v2369_v15  ;;  %v2470_v22 = vld [vmem:[#allocation6 + $0xb00] sm:$0xff]  ;;  %v2472_v15 = vld [vmem:[#allocation6 + $0xb10] sm:$0xff] }
 0x2fc   :  { %3256 = vmatpush1.bf16.msra.mxu1 %v2366_v31  ;;  %3584 = vmatpush1.bf16.msra.mxu0 %v2368_v16  ;;  %v2479_v31 = vld [vmem:[#allocation6 + $0xb48] sm:$0xff]  ;;  %v2481_v16 = vld [vmem:[#allocation6 + $0xb58] sm:$0xff] }
 0x2fd   :  { %3266 = vmatprep.subr.bf16.mxu1 %v2375_v17  ;;  %3594 = vmatprep.subr.bf16.mxu0 %v2377_v25  ;;  %v2478_v17 = vld [vmem:[#allocation6 + $0xb40] sm:$0xff]  ;;  %v2480_v25 = vld [vmem:[#allocation6 + $0xb50] sm:$0xff] }
 0x2ff   :  { %3258 = vmatmul.mubr.bf16.vlgmr.msra.gmra.mrb[0].mxu1 %v7784_v36  ;;  %3586 = vmatmul.mubr.bf16.vlgmr.msra.gmra.mrb[4].mxu0 %v7784_v36 }
 0x300   :  { %3267 = vmatpush1.bf16.msra.mxu1 %v2374_v33  ;;  %3595 = vmatpush1.bf16.msra.mxu0 %v2376_v28  ;;  %v2489_v33 = vld [vmem:[#allocation6 + $0xb98] sm:$0xff]  ;;  %v2035_v28 = vcombine.high %v7774_v12, %v7774_v12 }
 0x301   :  { %3268 = vmatprep.subr.bf16.mxu1 %v2383_v24  ;;  %3596 = vmatprep.subr.bf16.mxu0 %v2385_v29  ;;  %v2486_v24 = vld [vmem:[#allocation6 + $0xb80] sm:$0xff]  ;;  %v2488_v29 = vld [vmem:[#allocation6 + $0xb90] sm:$0xff] }
 0x302   :  { %3298 = vmatprep.mubr.bf16.mxu1 %v7786_v34  ;;  %3626 = vmatprep.mubr.bf16.mxu0 %v7786_v34 }
 0x304   :  { %3269 = vmatpush1.bf16.msra.mxu1 %v2382_v18  ;;  %3597 = vmatpush1.bf16.msra.mxu0 %v2384_v35  ;;  %v2495_v18 = vld [vmem:[#allocation6 + $0xbc8] sm:$0xff]  ;;  %v2497_v35 = vld [vmem:[#allocation6 + $0xbd8] sm:$0xff] }
 0x305   :  { %3270 = vmatprep.subr.bf16.mxu1 %v2391_v27  ;;  %3598 = vmatprep.subr.bf16.mxu0 %v2393_v41  ;;  %v7795_v27 = vrot.slane %v2035_v28, %v7743_v23  ;;  %v2494_v41 = vld [vmem:[#allocation6 + $0xbc0] sm:$0xff] }
 0x306   :  { %v2590_v28 = vld [vmem:[#allocation6 + $0xec0] sm:$0xff] }
 0x307   :  { %v2051_v12 = vcombine.high %v7795_v27, %v7795_v27 }
 0x308   :  { %3271 = vmatpush1.bf16.msra.mxu1 %v2390_v43  ;;  %3599 = vmatpush1.bf16.msra.mxu0 %v2392_v37  ;;  %v2496_v43 = vld [vmem:[#allocation6 + $0xbd0] sm:$0xff]  ;;  %v2503_v37 = vld [vmem:[#allocation6 + $0xc08] sm:$0xff] }
 0x309   :  { %3272 = vmatprep.subr.bf16.mxu1 %v2399_v50  ;;  %3600 = vmatprep.subr.bf16.mxu0 %v2401_v51  ;;  %v2505_v50 = vld [vmem:[#allocation6 + $0xc18] sm:$0xff]  ;;  %v7801_v51 = vpack.c.bf16 %v7778_v26, %v7778_v26  ;;  %v2510_v26 = vld [vmem:[#allocation6 + $0xc40] sm:$0xff] }
 0x30c   :  { %3273 = vmatpush1.bf16.msra.mxu1 %v2398_v52  ;;  %3601 = vmatpush1.bf16.msra.mxu0 %v2400_v38  ;;  %v2502_v52 = vld [vmem:[#allocation6 + $0xc00] sm:$0xff]  ;;  %v2504_v38 = vld [vmem:[#allocation6 + $0xc10] sm:$0xff] }
 0x30d   :  { %3274 = vmatprep.subr.bf16.mxu1 %v2407_v39  ;;  %3602 = vmatprep.subr.bf16.mxu0 %v2409_v46  ;;  %v2511_v39 = vld [vmem:[#allocation6 + $0xc48] sm:$0xff]  ;;  %v2513_v46 = vld [vmem:[#allocation6 + $0xc58] sm:$0xff] }
 0x310   :  { %3275 = vmatpush1.bf16.msra.mxu1 %v2406_v40  ;;  %3603 = vmatpush1.bf16.msra.mxu0 %v2408_v44  ;;  %v7803_v40 = vpack.c.bf16 %v2051_v12, %v2051_v12  ;;  %v2512_v44 = vld [vmem:[#allocation6 + $0xc50] sm:$0xff] }
 0x311   :  { %3276 = vmatprep.subr.bf16.mxu1 %v2415_v56  ;;  %3604 = vmatprep.subr.bf16.mxu0 %v2417_v49  ;;  %v2519_v56 = vld [vmem:[#allocation6 + $0xc88] sm:$0xff]  ;;  %v2521_v49 = vld [vmem:[#allocation6 + $0xc98] sm:$0xff]  ;;  %v2608_v12 = vld [vmem:[#allocation6 + $0xf50] sm:$0xff] }
 0x314   :  { %3277 = vmatpush1.bf16.msra.mxu1 %v2414_v54  ;;  %3605 = vmatpush1.bf16.msra.mxu0 %v2416_v55  ;;  %v2518_v54 = vld [vmem:[#allocation6 + $0xc80] sm:$0xff]  ;;  %v2520_v55 = vld [vmem:[#allocation6 + $0xc90] sm:$0xff] }
 0x315   :  { %3278 = vmatprep.subr.bf16.mxu1 %v2423_v47  ;;  %3606 = vmatprep.subr.bf16.mxu0 %v2425_v61  ;;  %v2527_v47 = vld [vmem:[#allocation6 + $0xcc8] sm:$0xff]  ;;  %v2529_v61 = vld [vmem:[#allocation6 + $0xcd8] sm:$0xff] }
 0x318   :  { %3279 = vmatpush1.bf16.msra.mxu1 %v2422_v53  ;;  %3607 = vmatpush1.bf16.msra.mxu0 %v2424_v45  ;;  %v2526_v53 = vld [vmem:[#allocation6 + $0xcc0] sm:$0xff]  ;;  %v2528_v45 = vld [vmem:[#allocation6 + $0xcd0] sm:$0xff] }
 0x319   :  { %3280 = vmatprep.subr.bf16.mxu1 %v2431_v58  ;;  %3608 = vmatprep.subr.bf16.mxu0 %v2433_v59  ;;  %v2535_v58 = vld [vmem:[#allocation6 + $0xd08] sm:$0xff]  ;;  %v2537_v59 = vld [vmem:[#allocation6 + $0xd18] sm:$0xff] }
 0x31c   :  { %3281 = vmatpush1.bf16.msra.mxu1 %v2430_v10  ;;  %3609 = vmatpush1.bf16.msra.mxu0 %v2432_v3  ;;  %v2534_v10 = vld [vmem:[#allocation6 + $0xd00] sm:$0xff]  ;;  %v2536_v3 = vld [vmem:[#allocation6 + $0xd10] sm:$0xff] }
 0x31d   :  { %3282 = vmatprep.subr.bf16.mxu1 %v2439_v62  ;;  %3610 = vmatprep.subr.bf16.mxu0 %v2441_v5  ;;  %v2543_v62 = vld [vmem:[#allocation6 + $0xd48] sm:$0xff]  ;;  %v2545_v5 = vld [vmem:[#allocation6 + $0xd58] sm:$0xff] }
 0x320   :  { %3283 = vmatpush1.bf16.msra.mxu1 %v2438_v4  ;;  %3611 = vmatpush1.bf16.msra.mxu0 %v2440_v7  ;;  %v2542_v4 = vld [vmem:[#allocation6 + $0xd40] sm:$0xff]  ;;  %v2544_v7 = vld [vmem:[#allocation6 + $0xd50] sm:$0xff] }
 0x321   :  { %3284 = vmatprep.subr.bf16.mxu1 %v2447_v57  ;;  %3612 = vmatprep.subr.bf16.mxu0 %v2449_v60  ;;  %v2551_v57 = vld [vmem:[#allocation6 + $0xd88] sm:$0xff]  ;;  %v2553_v60 = vld [vmem:[#allocation6 + $0xd98] sm:$0xff] }
 0x324   :  { %3285 = vmatpush1.bf16.msra.mxu1 %v2446_v9  ;;  %3613 = vmatpush1.bf16.msra.mxu0 %v2448_v63  ;;  %v2550_v9 = vld [vmem:[#allocation6 + $0xd80] sm:$0xff]  ;;  %v2552_v63 = vld [vmem:[#allocation6 + $0xd90] sm:$0xff] }
 0x325   :  { %3286 = vmatprep.subr.bf16.mxu1 %v2455_v0  ;;  %3614 = vmatprep.subr.bf16.mxu0 %v2457_v48  ;;  %v2559_v0 = vld [vmem:[#allocation6 + $0xdc8] sm:$0xff]  ;;  %v2561_v48 = vld [vmem:[#allocation6 + $0xdd8] sm:$0xff] }
 0x328   :  { %3287 = vmatpush1.bf16.msra.mxu1 %v2454_v1  ;;  %3615 = vmatpush1.bf16.msra.mxu0 %v2456_v8  ;;  %v2558_v1 = vld [vmem:[#allocation6 + $0xdc0] sm:$0xff]  ;;  %v2560_v8 = vld [vmem:[#allocation6 + $0xdd0] sm:$0xff] }
 0x329   :  { %3288 = vmatprep.subr.bf16.mxu1 %v2463_v6  ;;  %3616 = vmatprep.subr.bf16.mxu0 %v2465_v14  ;;  %v2567_v6 = vld [vmem:[#allocation6 + $0xe08] sm:$0xff]  ;;  %v2569_v14 = vld [vmem:[#allocation6 + $0xe18] sm:$0xff] }
 0x32c   :  { %3289 = vmatpush1.bf16.msra.mxu1 %v2462_v19  ;;  %3617 = vmatpush1.bf16.msra.mxu0 %v2464_v13  ;;  %v2566_v19 = vld [vmem:[#allocation6 + $0xe00] sm:$0xff]  ;;  %v2568_v13 = vld [vmem:[#allocation6 + $0xe10] sm:$0xff] }
 0x32d   :  { %3290 = vmatprep.subr.bf16.mxu1 %v2471_v2  ;;  %3618 = vmatprep.subr.bf16.mxu0 %v2473_v21  ;;  %v2575_v2 = vld [vmem:[#allocation6 + $0xe48] sm:$0xff]  ;;  %v2577_v21 = vld [vmem:[#allocation6 + $0xe58] sm:$0xff] }
 0x330   :  { %3291 = vmatpush1.bf16.msra.mxu1 %v2470_v22  ;;  %3619 = vmatpush1.bf16.msra.mxu0 %v2472_v15  ;;  %v2574_v22 = vld [vmem:[#allocation6 + $0xe40] sm:$0xff]  ;;  %v2576_v15 = vld [vmem:[#allocation6 + $0xe50] sm:$0xff] }
 0x331   :  { %3292 = vmatprep.subr.bf16.mxu1 %v2479_v31  ;;  %3620 = vmatprep.subr.bf16.mxu0 %v2481_v16  ;;  %v2583_v31 = vld [vmem:[#allocation6 + $0xe88] sm:$0xff]  ;;  %v2585_v16 = vld [vmem:[#allocation6 + $0xe98] sm:$0xff] }
 0x334   :  { %3293 = vmatpush1.bf16.msra.mxu1 %v2478_v17  ;;  %3621 = vmatpush1.bf16.msra.mxu0 %v2480_v25  ;;  %v2582_v17 = vld [vmem:[#allocation6 + $0xe80] sm:$0xff]  ;;  %v2584_v25 = vld [vmem:[#allocation6 + $0xe90] sm:$0xff] }
 0x335   :  { %3294 = vmatprep.subr.bf16.mxu1 %v2487_v20  ;;  %3622 = vmatprep.subr.bf16.mxu0 %v2489_v33  ;;  %v2591_v20 = vld [vmem:[#allocation6 + $0xec8] sm:$0xff]  ;;  %v2593_v33 = vld [vmem:[#allocation6 + $0xed8] sm:$0xff] }
 0x338   :  { %3295 = vmatpush1.bf16.msra.mxu1 %v2486_v24  ;;  %3623 = vmatpush1.bf16.msra.mxu0 %v2488_v29  ;;  %v2592_v24 = vld [vmem:[#allocation6 + $0xed0] sm:$0xff]  ;;  %v2599_v29 = vld [vmem:[#allocation6 + $0xf08] sm:$0xff] }
 0x339   :  { %3296 = vmatprep.subr.bf16.mxu1 %v2495_v18  ;;  %3624 = vmatprep.subr.bf16.mxu0 %v2497_v35  ;;  %v2601_v18 = vld [vmem:[#allocation6 + $0xf18] sm:$0xff]  ;;  %v2598_v35 = vld [vmem:[#allocation6 + $0xf00] sm:$0xff] }
 0x33c   :  { %3297 = vmatpush1.bf16.msra.mxu1 %v2494_v41  ;;  %3625 = vmatpush1.bf16.msra.mxu0 %v2496_v43  ;;  %v2600_v41 = vld [vmem:[#allocation6 + $0xf10] sm:$0xff]  ;;  %v2607_v43 = vld [vmem:[#allocation6 + $0xf48] sm:$0xff] }
 0x33d   :  { %3307 = vmatprep.subr.bf16.mxu1 %v2503_v37  ;;  %3635 = vmatprep.subr.bf16.mxu0 %v2505_v50  ;;  %v2609_v37 = vld [vmem:[#allocation6 + $0xf58] sm:$0xff]  ;;  %v2606_v50 = vld [vmem:[#allocation6 + $0xf40] sm:$0xff] }
 0x33f   :  { %3299 = vmatmul.mubr.bf16.vlgmr.msra.gmra.mrb[0].mxu1 %v7801_v51  ;;  %3627 = vmatmul.mubr.bf16.vlgmr.msra.gmra.mrb[4].mxu0 %v7801_v51 }
 0x340   :  { %3308 = vmatpush1.bf16.msra.mxu1 %v2502_v52  ;;  %3636 = vmatpush1.bf16.msra.mxu0 %v2504_v38  ;;  %v2615_v52 = vld [vmem:[#allocation6 + $0xf88] sm:$0xff]  ;;  %v2617_v38 = vld [vmem:[#allocation6 + $0xf98] sm:$0xff] }
 0x341   :  { %3309 = vmatprep.subr.bf16.mxu1 %v2511_v39  ;;  %3637 = vmatprep.subr.bf16.mxu0 %v2513_v46  ;;  %v7809_v39 = vld [vmem:[#allocation5 + $0x10] sm:$0xff]  ;;  %v2614_v46 = vld [vmem:[#allocation6 + $0xf80] sm:$0xff] }
 0x342   :  { %3339 = vmatprep.mubr.bf16.mxu1 %v7803_v40  ;;  %3667 = vmatprep.mubr.bf16.mxu0 %v7803_v40 }
 0x344   :  { %3310 = vmatpush1.bf16.msra.mxu1 %v2510_v26  ;;  %3638 = vmatpush1.bf16.msra.mxu0 %v2512_v44  ;;  %v2616_v26 = vld [vmem:[#allocation6 + $0xf90] sm:$0xff]  ;;  %v2623_v44 = vld [vmem:[#allocation6 + $0xfc8] sm:$0xff] }
 0x345   :  { %3311 = vmatprep.subr.bf16.mxu1 %v2519_v56  ;;  %3639 = vmatprep.subr.bf16.mxu0 %v2521_v49  ;;  %v2625_v56 = vld [vmem:[#allocation6 + $0xfd8] sm:$0xff]  ;;  %v7813_v49 = vrot.slane %v7809_v39, %v7743_v23 }
 0x348   :  { %3312 = vmatpush1.bf16.msra.mxu1 %v2518_v54  ;;  %3640 = vmatpush1.bf16.msra.mxu0 %v2520_v55  ;;  %v2622_v54 = vld [vmem:[#allocation6 + $0xfc0] sm:$0xff]  ;;  %v2624_v55 = vld [vmem:[#allocation6 + $0xfd0] sm:$0xff] }
 0x349   :  { %3313 = vmatprep.subr.bf16.mxu1 %v2527_v47  ;;  %3641 = vmatprep.subr.bf16.mxu0 %v2529_v61  ;;  %v2631_v47 = vld [vmem:[#allocation6 + $0x1008] sm:$0xff]  ;;  %v2633_v61 = vld [vmem:[#allocation6 + $0x1018] sm:$0xff] }
 0x34c   :  { %3314 = vmatpush1.bf16.msra.mxu1 %v2526_v53  ;;  %3642 = vmatpush1.bf16.msra.mxu0 %v2528_v45  ;;  %v2067_v53 = vcombine.high %v7813_v49, %v7813_v49  ;;  %v7819_v45 = vpack.c.bf16 %v7795_v27, %v7795_v27  ;;  %v2638_v27 = vld [vmem:[#allocation6 + $0x1040] sm:$0xff] }
 0x34d   :  { %3315 = vmatprep.subr.bf16.mxu1 %v2535_v58  ;;  %3643 = vmatprep.subr.bf16.mxu0 %v2537_v59  ;;  %v2630_v58 = vld [vmem:[#allocation6 + $0x1000] sm:$0xff]  ;;  %v2632_v59 = vld [vmem:[#allocation6 + $0x1010] sm:$0xff] }
 0x350   :  { %3316 = vmatpush1.bf16.msra.mxu1 %v2534_v10  ;;  %3644 = vmatpush1.bf16.msra.mxu0 %v2536_v3  ;;  %v2639_v10 = vld [vmem:[#allocation6 + $0x1048] sm:$0xff]  ;;  %v2641_v3 = vld [vmem:[#allocation6 + $0x1058] sm:$0xff] }
 0x351   :  { %3317 = vmatprep.subr.bf16.mxu1 %v2543_v62  ;;  %3645 = vmatprep.subr.bf16.mxu0 %v2545_v5  ;;  %v7821_v62 = vpack.c.bf16 %v2067_v53, %v2067_v53  ;;  %v2640_v5 = vld [vmem:[#allocation6 + $0x1050] sm:$0xff]  ;;  %v2735_v53 = vld [vmem:[#allocation6 + $0x1348] sm:$0xff] }
 0x354   :  { %3318 = vmatpush1.bf16.msra.mxu1 %v2542_v4  ;;  %3646 = vmatpush1.bf16.msra.mxu0 %v2544_v7  ;;  %v2647_v4 = vld [vmem:[#allocation6 + $0x1088] sm:$0xff]  ;;  %v2649_v7 = vld [vmem:[#allocation6 + $0x1098] sm:$0xff] }
 0x355   :  { %3319 = vmatprep.subr.bf16.mxu1 %v2551_v57  ;;  %3647 = vmatprep.subr.bf16.mxu0 %v2553_v60  ;;  %v2646_v57 = vld [vmem:[#allocation6 + $0x1080] sm:$0xff]  ;;  %v2648_v60 = vld [vmem:[#allocation6 + $0x1090] sm:$0xff] }
 0x358   :  { %3320 = vmatpush1.bf16.msra.mxu1 %v2550_v9  ;;  %3648 = vmatpush1.bf16.msra.mxu0 %v2552_v63  ;;  %v2655_v9 = vld [vmem:[#allocation6 + $0x10c8] sm:$0xff]  ;;  %v2657_v63 = vld [vmem:[#allocation6 + $0x10d8] sm:$0xff] }
 0x359   :  { %3321 = vmatprep.subr.bf16.mxu1 %v2559_v0  ;;  %3649 = vmatprep.subr.bf16.mxu0 %v2561_v48  ;;  %v2654_v0 = vld [vmem:[#allocation6 + $0x10c0] sm:$0xff]  ;;  %v2656_v48 = vld [vmem:[#allocation6 + $0x10d0] sm:$0xff] }
 0x35c   :  { %3322 = vmatpush1.bf16.msra.mxu1 %v2558_v1  ;;  %3650 = vmatpush1.bf16.msra.mxu0 %v2560_v8  ;;  %v2663_v1 = vld [vmem:[#allocation6 + $0x1108] sm:$0xff]  ;;  %v2665_v8 = vld [vmem:[#allocation6 + $0x1118] sm:$0xff] }
 0x35d   :  { %3323 = vmatprep.subr.bf16.mxu1 %v2567_v6  ;;  %3651 = vmatprep.subr.bf16.mxu0 %v2569_v14  ;;  %v2662_v6 = vld [vmem:[#allocation6 + $0x1100] sm:$0xff]  ;;  %v2664_v14 = vld [vmem:[#allocation6 + $0x1110] sm:$0xff] }
 0x360   :  { %3324 = vmatpush1.bf16.msra.mxu1 %v2566_v19  ;;  %3652 = vmatpush1.bf16.msra.mxu0 %v2568_v13  ;;  %v2671_v19 = vld [vmem:[#allocation6 + $0x1148] sm:$0xff]  ;;  %v2673_v13 = vld [vmem:[#allocation6 + $0x1158] sm:$0xff] }
 0x361   :  { %3325 = vmatprep.subr.bf16.mxu1 %v2575_v2  ;;  %3653 = vmatprep.subr.bf16.mxu0 %v2577_v21  ;;  %v2670_v2 = vld [vmem:[#allocation6 + $0x1140] sm:$0xff]  ;;  %v2672_v21 = vld [vmem:[#allocation6 + $0x1150] sm:$0xff] }
 0x364   :  { %3326 = vmatpush1.bf16.msra.mxu1 %v2574_v22  ;;  %3654 = vmatpush1.bf16.msra.mxu0 %v2576_v15  ;;  %v2679_v22 = vld [vmem:[#allocation6 + $0x1188] sm:$0xff]  ;;  %v2681_v15 = vld [vmem:[#allocation6 + $0x1198] sm:$0xff] }
 0x365   :  { %3327 = vmatprep.subr.bf16.mxu1 %v2583_v31  ;;  %3655 = vmatprep.subr.bf16.mxu0 %v2585_v16  ;;  %v2678_v31 = vld [vmem:[#allocation6 + $0x1180] sm:$0xff]  ;;  %v2680_v16 = vld [vmem:[#allocation6 + $0x1190] sm:$0xff] }
 0x368   :  { %3328 = vmatpush1.bf16.msra.mxu1 %v2582_v17  ;;  %3656 = vmatpush1.bf16.msra.mxu0 %v2584_v25  ;;  %v2687_v17 = vld [vmem:[#allocation6 + $0x11c8] sm:$0xff]  ;;  %v2689_v25 = vld [vmem:[#allocation6 + $0x11d8] sm:$0xff] }
 0x369   :  { %3329 = vmatprep.subr.bf16.mxu1 %v2591_v20  ;;  %3657 = vmatprep.subr.bf16.mxu0 %v2593_v33  ;;  %v2686_v20 = vld [vmem:[#allocation6 + $0x11c0] sm:$0xff]  ;;  %v2688_v33 = vld [vmem:[#allocation6 + $0x11d0] sm:$0xff] }
 0x36c   :  { %3330 = vmatpush1.bf16.msra.mxu1 %v2590_v28  ;;  %3658 = vmatpush1.bf16.msra.mxu0 %v2592_v24  ;;  %v2695_v28 = vld [vmem:[#allocation6 + $0x1208] sm:$0xff]  ;;  %v2697_v24 = vld [vmem:[#allocation6 + $0x1218] sm:$0xff] }
 0x36d   :  { %3331 = vmatprep.subr.bf16.mxu1 %v2599_v29  ;;  %3659 = vmatprep.subr.bf16.mxu0 %v2601_v18  ;;  %v2694_v29 = vld [vmem:[#allocation6 + $0x1200] sm:$0xff]  ;;  %v2696_v18 = vld [vmem:[#allocation6 + $0x1210] sm:$0xff] }
 0x370   :  { %3332 = vmatpush1.bf16.msra.mxu1 %v2598_v35  ;;  %3660 = vmatpush1.bf16.msra.mxu0 %v2600_v41  ;;  %v2703_v35 = vld [vmem:[#allocation6 + $0x1248] sm:$0xff]  ;;  %v2705_v41 = vld [vmem:[#allocation6 + $0x1258] sm:$0xff] }
 0x371   :  { %3333 = vmatprep.subr.bf16.mxu1 %v2607_v43  ;;  %3661 = vmatprep.subr.bf16.mxu0 %v2609_v37  ;;  %v2702_v43 = vld [vmem:[#allocation6 + $0x1240] sm:$0xff]  ;;  %v2704_v37 = vld [vmem:[#allocation6 + $0x1250] sm:$0xff] }
 0x374   :  { %3334 = vmatpush1.bf16.msra.mxu1 %v2606_v50  ;;  %3662 = vmatpush1.bf16.msra.mxu0 %v2608_v12  ;;  %v2711_v50 = vld [vmem:[#allocation6 + $0x1288] sm:$0xff]  ;;  %v2713_v12 = vld [vmem:[#allocation6 + $0x1298] sm:$0xff] }
 0x375   :  { %3335 = vmatprep.subr.bf16.mxu1 %v2615_v52  ;;  %3663 = vmatprep.subr.bf16.mxu0 %v2617_v38  ;;  %v2710_v52 = vld [vmem:[#allocation6 + $0x1280] sm:$0xff]  ;;  %v2712_v38 = vld [vmem:[#allocation6 + $0x1290] sm:$0xff] }
 0x378   :  { %3336 = vmatpush1.bf16.msra.mxu1 %v2614_v46  ;;  %3664 = vmatpush1.bf16.msra.mxu0 %v2616_v26  ;;  %v2719_v46 = vld [vmem:[#allocation6 + $0x12c8] sm:$0xff]  ;;  %v2721_v26 = vld [vmem:[#allocation6 + $0x12d8] sm:$0xff] }
 0x379   :  { %3337 = vmatprep.subr.bf16.mxu1 %v2623_v44  ;;  %3665 = vmatprep.subr.bf16.mxu0 %v2625_v56  ;;  %v2718_v44 = vld [vmem:[#allocation6 + $0x12c0] sm:$0xff]  ;;  %v2720_v56 = vld [vmem:[#allocation6 + $0x12d0] sm:$0xff] }
 0x37c   :  { %3338 = vmatpush1.bf16.msra.mxu1 %v2622_v54  ;;  %3666 = vmatpush1.bf16.msra.mxu0 %v2624_v55  ;;  %v2727_v54 = vld [vmem:[#allocation6 + $0x1308] sm:$0xff]  ;;  %v2729_v55 = vld [vmem:[#allocation6 + $0x1318] sm:$0xff] }
 0x37d   :  { %3348 = vmatprep.subr.bf16.mxu1 %v2631_v47  ;;  %3676 = vmatprep.subr.bf16.mxu0 %v2633_v61  ;;  %v2726_v47 = vld [vmem:[#allocation6 + $0x1300] sm:$0xff]  ;;  %v2728_v61 = vld [vmem:[#allocation6 + $0x1310] sm:$0xff] }
 0x37f   :  { %3340 = vmatmul.mubr.bf16.vlgmr.msra.gmra.mrb[0].mxu1 %v7819_v45  ;;  %3668 = vmatmul.mubr.bf16.vlgmr.msra.gmra.mrb[4].mxu0 %v7819_v45 }
 0x380   :  { %3349 = vmatpush1.bf16.msra.mxu1 %v2630_v58  ;;  %3677 = vmatpush1.bf16.msra.mxu0 %v2632_v59  ;;  %v2737_v58 = vld [vmem:[#allocation6 + $0x1358] sm:$0xff]  ;;  %v2734_v59 = vld [vmem:[#allocation6 + $0x1340] sm:$0xff] }
 0x381   :  { %3350 = vmatprep.subr.bf16.mxu1 %v2639_v10  ;;  %3678 = vmatprep.subr.bf16.mxu0 %v2641_v3  ;;  %v2736_v10 = vld [vmem:[#allocation6 + $0x1350] sm:$0xff]  ;;  %v2743_v3 = vld [vmem:[#allocation6 + $0x1388] sm:$0xff] }
 0x382   :  { %3380 = vmatprep.mubr.bf16.mxu1 %v7821_v62  ;;  %3708 = vmatprep.mubr.bf16.mxu0 %v7821_v62 }
 0x384   :  { %3351 = vmatpush1.bf16.msra.mxu1 %v2638_v27  ;;  %3679 = vmatpush1.bf16.msra.mxu0 %v2640_v5  ;;  %v2745_v27 = vld [vmem:[#allocation6 + $0x1398] sm:$0xff]  ;;  %v2052_v5 = vcombine.high %v7809_v39, %v7809_v39 }
 0x385   :  { %3352 = vmatprep.subr.bf16.mxu1 %v2647_v4  ;;  %3680 = vmatprep.subr.bf16.mxu0 %v2649_v7  ;;  %v2742_v4 = vld [vmem:[#allocation6 + $0x1380] sm:$0xff]  ;;  %v2744_v7 = vld [vmem:[#allocation6 + $0x1390] sm:$0xff] }
 0x388   :  { %3353 = vmatpush1.bf16.msra.mxu1 %v2646_v57  ;;  %3681 = vmatpush1.bf16.msra.mxu0 %v2648_v60  ;;  %v2751_v57 = vld [vmem:[#allocation6 + $0x13c8] sm:$0xff]  ;;  %v2753_v60 = vld [vmem:[#allocation6 + $0x13d8] sm:$0xff] }
 0x389   :  { %3354 = vmatprep.subr.bf16.mxu1 %v2655_v9  ;;  %3682 = vmatprep.subr.bf16.mxu0 %v2657_v63  ;;  %v7830_v9 = vrot.slane %v2052_v5, %v7743_v23  ;;  %v2750_v63 = vld [vmem:[#allocation6 + $0x13c0] sm:$0xff] }
 0x38a   :  { %v2838_v5 = vld [vmem:[#allocation6 + $0x1680] sm:$0xff] }
 0x38b   :  { %v2068_v39 = vcombine.high %v7830_v9, %v7830_v9 }
 0x38c   :  { %3355 = vmatpush1.bf16.msra.mxu1 %v2654_v0  ;;  %3683 = vmatpush1.bf16.msra.mxu0 %v2656_v48  ;;  %v2752_v0 = vld [vmem:[#allocation6 + $0x13d0] sm:$0xff]  ;;  %v2759_v48 = vld [vmem:[#allocation6 + $0x1408] sm:$0xff] }
 0x38d   :  { %3356 = vmatprep.subr.bf16.mxu1 %v2663_v1  ;;  %3684 = vmatprep.subr.bf16.mxu0 %v2665_v8  ;;  %v2761_v1 = vld [vmem:[#allocation6 + $0x1418] sm:$0xff]  ;;  %v7836_v8 = vpack.c.bf16 %v7813_v49, %v7813_v49  ;;  %v2766_v49 = vld [vmem:[#allocation6 + $0x1440] sm:$0xff] }
 0x390   :  { %3357 = vmatpush1.bf16.msra.mxu1 %v2662_v6  ;;  %3685 = vmatpush1.bf16.msra.mxu0 %v2664_v14  ;;  %v2758_v6 = vld [vmem:[#allocation6 + $0x1400] sm:$0xff]  ;;  %v2760_v14 = vld [vmem:[#allocation6 + $0x1410] sm:$0xff] }
 0x391   :  { %3358 = vmatprep.subr.bf16.mxu1 %v2671_v19  ;;  %3686 = vmatprep.subr.bf16.mxu0 %v2673_v13  ;;  %v2767_v19 = vld [vmem:[#allocation6 + $0x1448] sm:$0xff]  ;;  %v2769_v13 = vld [vmem:[#allocation6 + $0x1458] sm:$0xff] }
 0x394   :  { %3359 = vmatpush1.bf16.msra.mxu1 %v2670_v2  ;;  %3687 = vmatpush1.bf16.msra.mxu0 %v2672_v21  ;;  %v7838_v2 = vpack.c.bf16 %v2068_v39, %v2068_v39  ;;  %v2768_v21 = vld [vmem:[#allocation6 + $0x1450] sm:$0xff] }
 0x395   :  { %3360 = vmatprep.subr.bf16.mxu1 %v2679_v22  ;;  %3688 = vmatprep.subr.bf16.mxu0 %v2681_v15  ;;  %v2775_v22 = vld [vmem:[#allocation6 + $0x1488] sm:$0xff]  ;;  %v2777_v15 = vld [vmem:[#allocation6 + $0x1498] sm:$0xff]  ;;  %v2856_v39 = vld [vmem:[#allocation6 + $0x1710] sm:$0xff] }
 0x398   :  { %3361 = vmatpush1.bf16.msra.mxu1 %v2678_v31  ;;  %3689 = vmatpush1.bf16.msra.mxu0 %v2680_v16  ;;  %v2774_v31 = vld [vmem:[#allocation6 + $0x1480] sm:$0xff]  ;;  %v2776_v16 = vld [vmem:[#allocation6 + $0x1490] sm:$0xff] }
 0x399   :  { %3362 = vmatprep.subr.bf16.mxu1 %v2687_v17  ;;  %3690 = vmatprep.subr.bf16.mxu0 %v2689_v25  ;;  %v2783_v17 = vld [vmem:[#allocation6 + $0x14c8] sm:$0xff]  ;;  %v2785_v25 = vld [vmem:[#allocation6 + $0x14d8] sm:$0xff] }
 0x39c   :  { %3363 = vmatpush1.bf16.msra.mxu1 %v2686_v20  ;;  %3691 = vmatpush1.bf16.msra.mxu0 %v2688_v33  ;;  %v2782_v20 = vld [vmem:[#allocation6 + $0x14c0] sm:$0xff]  ;;  %v2784_v33 = vld [vmem:[#allocation6 + $0x14d0] sm:$0xff] }
 0x39d   :  { %3364 = vmatprep.subr.bf16.mxu1 %v2695_v28  ;;  %3692 = vmatprep.subr.bf16.mxu0 %v2697_v24  ;;  %v2791_v28 = vld [vmem:[#allocation6 + $0x1508] sm:$0xff]  ;;  %v2793_v24 = vld [vmem:[#allocation6 + $0x1518] sm:$0xff] }
 0x3a0   :  { %3365 = vmatpush1.bf16.msra.mxu1 %v2694_v29  ;;  %3693 = vmatpush1.bf16.msra.mxu0 %v2696_v18  ;;  %v2790_v29 = vld [vmem:[#allocation6 + $0x1500] sm:$0xff]  ;;  %v2792_v18 = vld [vmem:[#allocation6 + $0x1510] sm:$0xff] }
 0x3a1   :  { %3366 = vmatprep.subr.bf16.mxu1 %v2703_v35  ;;  %3694 = vmatprep.subr.bf16.mxu0 %v2705_v41  ;;  %v2799_v35 = vld [vmem:[#allocation6 + $0x1548] sm:$0xff]  ;;  %v2801_v41 = vld [vmem:[#allocation6 + $0x1558] sm:$0xff] }
 0x3a4   :  { %3367 = vmatpush1.bf16.msra.mxu1 %v2702_v43  ;;  %3695 = vmatpush1.bf16.msra.mxu0 %v2704_v37  ;;  %v2798_v43 = vld [vmem:[#allocation6 + $0x1540] sm:$0xff]  ;;  %v2800_v37 = vld [vmem:[#allocation6 + $0x1550] sm:$0xff] }
 0x3a5   :  { %3368 = vmatprep.subr.bf16.mxu1 %v2711_v50  ;;  %3696 = vmatprep.subr.bf16.mxu0 %v2713_v12  ;;  %v2807_v50 = vld [vmem:[#allocation6 + $0x1588] sm:$0xff]  ;;  %v2809_v12 = vld [vmem:[#allocation6 + $0x1598] sm:$0xff] }
 0x3a8   :  { %3369 = vmatpush1.bf16.msra.mxu1 %v2710_v52  ;;  %3697 = vmatpush1.bf16.msra.mxu0 %v2712_v38  ;;  %v2806_v52 = vld [vmem:[#allocation6 + $0x1580] sm:$0xff]  ;;  %v2808_v38 = vld [vmem:[#allocation6 + $0x1590] sm:$0xff] }
 0x3a9   :  { %3370 = vmatprep.subr.bf16.mxu1 %v2719_v46  ;;  %3698 = vmatprep.subr.bf16.mxu0 %v2721_v26  ;;  %v2815_v46 = vld [vmem:[#allocation6 + $0x15c8] sm:$0xff]  ;;  %v2817_v26 = vld [vmem:[#allocation6 + $0x15d8] sm:$0xff] }
 0x3ac   :  { %3371 = vmatpush1.bf16.msra.mxu1 %v2718_v44  ;;  %3699 = vmatpush1.bf16.msra.mxu0 %v2720_v56  ;;  %v2814_v44 = vld [vmem:[#allocation6 + $0x15c0] sm:$0xff]  ;;  %v2816_v56 = vld [vmem:[#allocation6 + $0x15d0] sm:$0xff] }
 0x3ad   :  { %3372 = vmatprep.subr.bf16.mxu1 %v2727_v54  ;;  %3700 = vmatprep.subr.bf16.mxu0 %v2729_v55  ;;  %v2823_v54 = vld [vmem:[#allocation6 + $0x1608] sm:$0xff]  ;;  %v2825_v55 = vld [vmem:[#allocation6 + $0x1618] sm:$0xff] }
 0x3b0   :  { %3373 = vmatpush1.bf16.msra.mxu1 %v2726_v47  ;;  %3701 = vmatpush1.bf16.msra.mxu0 %v2728_v61  ;;  %v2822_v47 = vld [vmem:[#allocation6 + $0x1600] sm:$0xff]  ;;  %v2824_v61 = vld [vmem:[#allocation6 + $0x1610] sm:$0xff] }
 0x3b1   :  { %3374 = vmatprep.subr.bf16.mxu1 %v2735_v53  ;;  %3702 = vmatprep.subr.bf16.mxu0 %v2737_v58  ;;  %v2831_v53 = vld [vmem:[#allocation6 + $0x1648] sm:$0xff]  ;;  %v2833_v58 = vld [vmem:[#allocation6 + $0x1658] sm:$0xff] }
 0x3b4   :  { %3375 = vmatpush1.bf16.msra.mxu1 %v2734_v59  ;;  %3703 = vmatpush1.bf16.msra.mxu0 %v2736_v10  ;;  %v2830_v59 = vld [vmem:[#allocation6 + $0x1640] sm:$0xff]  ;;  %v2832_v10 = vld [vmem:[#allocation6 + $0x1650] sm:$0xff] }
 0x3b5   :  { %3376 = vmatprep.subr.bf16.mxu1 %v2743_v3  ;;  %3704 = vmatprep.subr.bf16.mxu0 %v2745_v27  ;;  %v2839_v3 = vld [vmem:[#allocation6 + $0x1688] sm:$0xff]  ;;  %v2841_v27 = vld [vmem:[#allocation6 + $0x1698] sm:$0xff] }
 0x3b8   :  { %3377 = vmatpush1.bf16.msra.mxu1 %v2742_v4  ;;  %3705 = vmatpush1.bf16.msra.mxu0 %v2744_v7  ;;  %v2840_v4 = vld [vmem:[#allocation6 + $0x1690] sm:$0xff]  ;;  %v2847_v7 = vld [vmem:[#allocation6 + $0x16c8] sm:$0xff] }
 0x3b9   :  { %3378 = vmatprep.subr.bf16.mxu1 %v2751_v57  ;;  %3706 = vmatprep.subr.bf16.mxu0 %v2753_v60  ;;  %v2849_v57 = vld [vmem:[#allocation6 + $0x16d8] sm:$0xff]  ;;  %v2846_v60 = vld [vmem:[#allocation6 + $0x16c0] sm:$0xff] }
 0x3bc   :  { %3379 = vmatpush1.bf16.msra.mxu1 %v2750_v63  ;;  %3707 = vmatpush1.bf16.msra.mxu0 %v2752_v0  ;;  %v2848_v63 = vld [vmem:[#allocation6 + $0x16d0] sm:$0xff]  ;;  %v2855_v0 = vld [vmem:[#allocation6 + $0x1708] sm:$0xff] }
 0x3bd   :  { %3389 = vmatprep.subr.bf16.mxu1 %v2759_v48  ;;  %3717 = vmatprep.subr.bf16.mxu0 %v2761_v1  ;;  %v2857_v48 = vld [vmem:[#allocation6 + $0x1718] sm:$0xff]  ;;  %v2854_v1 = vld [vmem:[#allocation6 + $0x1700] sm:$0xff] }
 0x3bf   :  { %3381 = vmatmul.mubr.bf16.vlgmr.msra.gmra.mrb[0].mxu1 %v7836_v8  ;;  %3709 = vmatmul.mubr.bf16.vlgmr.msra.gmra.mrb[4].mxu0 %v7836_v8 }
 0x3c0   :  { %3390 = vmatpush1.bf16.msra.mxu1 %v2758_v6  ;;  %3718 = vmatpush1.bf16.msra.mxu0 %v2760_v14  ;;  %v2863_v6 = vld [vmem:[#allocation6 + $0x1748] sm:$0xff]  ;;  %v2865_v14 = vld [vmem:[#allocation6 + $0x1758] sm:$0xff] }
 0x3c1   :  { %3391 = vmatprep.subr.bf16.mxu1 %v2767_v19  ;;  %3719 = vmatprep.subr.bf16.mxu0 %v2769_v13  ;;  %v2862_v19 = vld [vmem:[#allocation6 + $0x1740] sm:$0xff]  ;;  %v2864_v13 = vld [vmem:[#allocation6 + $0x1750] sm:$0xff] }
 0x3c2   :  { %3421 = vmatprep.mubr.bf16.mxu1 %v7838_v2  ;;  %3749 = vmatprep.mubr.bf16.mxu0 %v7838_v2 }
 0x3c4   :  { %3392 = vmatpush1.bf16.msra.mxu1 %v2766_v49  ;;  %3720 = vmatpush1.bf16.msra.mxu0 %v2768_v21  ;;  %v2871_v49 = vld [vmem:[#allocation6 + $0x1788] sm:$0xff]  ;;  %v2873_v21 = vld [vmem:[#allocation6 + $0x1798] sm:$0xff] }
 0x3c5   :  { %3393 = vmatprep.subr.bf16.mxu1 %v2775_v22  ;;  %3721 = vmatprep.subr.bf16.mxu0 %v2777_v15  ;;  %v7844_v22 = vld [vmem:[#allocation5 + $0x18] sm:$0xff]  ;;  %v2870_v15 = vld [vmem:[#allocation6 + $0x1780] sm:$0xff] }
 0x3c8   :  { %3394 = vmatpush1.bf16.msra.mxu1 %v2774_v31  ;;  %3722 = vmatpush1.bf16.msra.mxu0 %v2776_v16  ;;  %v2872_v31 = vld [vmem:[#allocation6 + $0x1790] sm:$0xff]  ;;  %v2879_v16 = vld [vmem:[#allocation6 + $0x17c8] sm:$0xff] }
 0x3c9   :  { %3395 = vmatprep.subr.bf16.mxu1 %v2783_v17  ;;  %3723 = vmatprep.subr.bf16.mxu0 %v2785_v25  ;;  %v2881_v17 = vld [vmem:[#allocation6 + $0x17d8] sm:$0xff]  ;;  %v7848_v25 = vrot.slane %v7844_v22, %v7743_v23 }
 0x3cc   :  { %3396 = vmatpush1.bf16.msra.mxu1 %v2782_v20  ;;  %3724 = vmatpush1.bf16.msra.mxu0 %v2784_v33  ;;  %v2878_v20 = vld [vmem:[#allocation6 + $0x17c0] sm:$0xff]  ;;  %v2880_v33 = vld [vmem:[#allocation6 + $0x17d0] sm:$0xff] }
 0x3cd   :  { %3397 = vmatprep.subr.bf16.mxu1 %v2791_v28  ;;  %3725 = vmatprep.subr.bf16.mxu0 %v2793_v24  ;;  %v2887_v28 = vld [vmem:[#allocation6 + $0x1808] sm:$0xff]  ;;  %v2889_v24 = vld [vmem:[#allocation6 + $0x1818] sm:$0xff] }
 0x3d0   :  { %3398 = vmatpush1.bf16.msra.mxu1 %v2790_v29  ;;  %3726 = vmatpush1.bf16.msra.mxu0 %v2792_v18  ;;  %v2084_v29 = vcombine.high %v7848_v25, %v7848_v25  ;;  %v7854_v18 = vpack.c.bf16 %v7830_v9, %v7830_v9  ;;  %v2894_v9 = vld [vmem:[#allocation6 + $0x1840] sm:$0xff] }
 0x3d1   :  { %3399 = vmatprep.subr.bf16.mxu1 %v2799_v35  ;;  %3727 = vmatprep.subr.bf16.mxu0 %v2801_v41  ;;  %v2886_v35 = vld [vmem:[#allocation6 + $0x1800] sm:$0xff]  ;;  %v2888_v41 = vld [vmem:[#allocation6 + $0x1810] sm:$0xff] }
 0x3d4   :  { %3400 = vmatpush1.bf16.msra.mxu1 %v2798_v43  ;;  %3728 = vmatpush1.bf16.msra.mxu0 %v2800_v37  ;;  %v2895_v43 = vld [vmem:[#allocation6 + $0x1848] sm:$0xff]  ;;  %v2897_v37 = vld [vmem:[#allocation6 + $0x1858] sm:$0xff] }
 0x3d5   :  { %3401 = vmatprep.subr.bf16.mxu1 %v2807_v50  ;;  %3729 = vmatprep.subr.bf16.mxu0 %v2809_v12  ;;  %v7856_v50 = vpack.c.bf16 %v2084_v29, %v2084_v29  ;;  %v2896_v12 = vld [vmem:[#allocation6 + $0x1850] sm:$0xff]  ;;  %v2983_v29 = vld [vmem:[#allocation6 + $0x1b08] sm:$0xff] }
 0x3d8   :  { %3402 = vmatpush1.bf16.msra.mxu1 %v2806_v52  ;;  %3730 = vmatpush1.bf16.msra.mxu0 %v2808_v38  ;;  %v2903_v52 = vld [vmem:[#allocation6 + $0x1888] sm:$0xff]  ;;  %v2905_v38 = vld [vmem:[#allocation6 + $0x1898] sm:$0xff] }
 0x3d9   :  { %3403 = vmatprep.subr.bf16.mxu1 %v2815_v46  ;;  %3731 = vmatprep.subr.bf16.mxu0 %v2817_v26  ;;  %v2902_v46 = vld [vmem:[#allocation6 + $0x1880] sm:$0xff]  ;;  %v2904_v26 = vld [vmem:[#allocation6 + $0x1890] sm:$0xff] }
 0x3dc   :  { %3404 = vmatpush1.bf16.msra.mxu1 %v2814_v44  ;;  %3732 = vmatpush1.bf16.msra.mxu0 %v2816_v56  ;;  %v2911_v44 = vld [vmem:[#allocation6 + $0x18c8] sm:$0xff]  ;;  %v2913_v56 = vld [vmem:[#allocation6 + $0x18d8] sm:$0xff] }
 0x3dd   :  { %3405 = vmatprep.subr.bf16.mxu1 %v2823_v54  ;;  %3733 = vmatprep.subr.bf16.mxu0 %v2825_v55  ;;  %v2910_v54 = vld [vmem:[#allocation6 + $0x18c0] sm:$0xff]  ;;  %v2912_v55 = vld [vmem:[#allocation6 + $0x18d0] sm:$0xff] }
 0x3e0   :  { %3406 = vmatpush1.bf16.msra.mxu1 %v2822_v47  ;;  %3734 = vmatpush1.bf16.msra.mxu0 %v2824_v61  ;;  %v2919_v47 = vld [vmem:[#allocation6 + $0x1908] sm:$0xff]  ;;  %v2921_v61 = vld [vmem:[#allocation6 + $0x1918] sm:$0xff] }
 0x3e1   :  { %3407 = vmatprep.subr.bf16.mxu1 %v2831_v53  ;;  %3735 = vmatprep.subr.bf16.mxu0 %v2833_v58  ;;  %v2918_v53 = vld [vmem:[#allocation6 + $0x1900] sm:$0xff]  ;;  %v2920_v58 = vld [vmem:[#allocation6 + $0x1910] sm:$0xff] }
 0x3e4   :  { %3408 = vmatpush1.bf16.msra.mxu1 %v2830_v59  ;;  %3736 = vmatpush1.bf16.msra.mxu0 %v2832_v10  ;;  %v2927_v59 = vld [vmem:[#allocation6 + $0x1948] sm:$0xff]  ;;  %v2929_v10 = vld [vmem:[#allocation6 + $0x1958] sm:$0xff] }
 0x3e5   :  { %3409 = vmatprep.subr.bf16.mxu1 %v2839_v3  ;;  %3737 = vmatprep.subr.bf16.mxu0 %v2841_v27  ;;  %v2926_v3 = vld [vmem:[#allocation6 + $0x1940] sm:$0xff]  ;;  %v2928_v27 = vld [vmem:[#allocation6 + $0x1950] sm:$0xff] }
 0x3e8   :  { %3410 = vmatpush1.bf16.msra.mxu1 %v2838_v5  ;;  %3738 = vmatpush1.bf16.msra.mxu0 %v2840_v4  ;;  %v2935_v5 = vld [vmem:[#allocation6 + $0x1988] sm:$0xff]  ;;  %v2937_v4 = vld [vmem:[#allocation6 + $0x1998] sm:$0xff] }
 0x3e9   :  { %3411 = vmatprep.subr.bf16.mxu1 %v2847_v7  ;;  %3739 = vmatprep.subr.bf16.mxu0 %v2849_v57  ;;  %v2934_v7 = vld [vmem:[#allocation6 + $0x1980] sm:$0xff]  ;;  %v2936_v57 = vld [vmem:[#allocation6 + $0x1990] sm:$0xff] }
 0x3ec   :  { %3412 = vmatpush1.bf16.msra.mxu1 %v2846_v60  ;;  %3740 = vmatpush1.bf16.msra.mxu0 %v2848_v63  ;;  %v2943_v60 = vld [vmem:[#allocation6 + $0x19c8] sm:$0xff]  ;;  %v2945_v63 = vld [vmem:[#allocation6 + $0x19d8] sm:$0xff] }
 0x3ed   :  { %3413 = vmatprep.subr.bf16.mxu1 %v2855_v0  ;;  %3741 = vmatprep.subr.bf16.mxu0 %v2857_v48  ;;  %v2942_v0 = vld [vmem:[#allocation6 + $0x19c0] sm:$0xff]  ;;  %v2944_v48 = vld [vmem:[#allocation6 + $0x19d0] sm:$0xff] }
 0x3f0   :  { %3414 = vmatpush1.bf16.msra.mxu1 %v2854_v1  ;;  %3742 = vmatpush1.bf16.msra.mxu0 %v2856_v39  ;;  %v2951_v1 = vld [vmem:[#allocation6 + $0x1a08] sm:$0xff]  ;;  %v2953_v39 = vld [vmem:[#allocation6 + $0x1a18] sm:$0xff] }
 0x3f1   :  { %3415 = vmatprep.subr.bf16.mxu1 %v2863_v6  ;;  %3743 = vmatprep.subr.bf16.mxu0 %v2865_v14  ;;  %v2950_v6 = vld [vmem:[#allocation6 + $0x1a00] sm:$0xff]  ;;  %v2952_v14 = vld [vmem:[#allocation6 + $0x1a10] sm:$0xff] }
 0x3f4   :  { %3416 = vmatpush1.bf16.msra.mxu1 %v2862_v19  ;;  %3744 = vmatpush1.bf16.msra.mxu0 %v2864_v13  ;;  %v2959_v19 = vld [vmem:[#allocation6 + $0x1a48] sm:$0xff]  ;;  %v2961_v13 = vld [vmem:[#allocation6 + $0x1a58] sm:$0xff] }
 0x3f5   :  { %3417 = vmatprep.subr.bf16.mxu1 %v2871_v49  ;;  %3745 = vmatprep.subr.bf16.mxu0 %v2873_v21  ;;  %v2958_v49 = vld [vmem:[#allocation6 + $0x1a40] sm:$0xff]  ;;  %v2960_v21 = vld [vmem:[#allocation6 + $0x1a50] sm:$0xff] }
 0x3f8   :  { %3418 = vmatpush1.bf16.msra.mxu1 %v2870_v15  ;;  %3746 = vmatpush1.bf16.msra.mxu0 %v2872_v31  ;;  %v2967_v15 = vld [vmem:[#allocation6 + $0x1a88] sm:$0xff]  ;;  %v2969_v31 = vld [vmem:[#allocation6 + $0x1a98] sm:$0xff] }
 0x3f9   :  { %3419 = vmatprep.subr.bf16.mxu1 %v2879_v16  ;;  %3747 = vmatprep.subr.bf16.mxu0 %v2881_v17  ;;  %v2966_v16 = vld [vmem:[#allocation6 + $0x1a80] sm:$0xff]  ;;  %v2968_v17 = vld [vmem:[#allocation6 + $0x1a90] sm:$0xff] }
 0x3fc   :  { %3420 = vmatpush1.bf16.msra.mxu1 %v2878_v20  ;;  %3748 = vmatpush1.bf16.msra.mxu0 %v2880_v33  ;;  %v2975_v20 = vld [vmem:[#allocation6 + $0x1ac8] sm:$0xff]  ;;  %v2977_v33 = vld [vmem:[#allocation6 + $0x1ad8] sm:$0xff] }
 0x3fd   :  { %3430 = vmatprep.subr.bf16.mxu1 %v2887_v28  ;;  %3758 = vmatprep.subr.bf16.mxu0 %v2889_v24  ;;  %v2974_v28 = vld [vmem:[#allocation6 + $0x1ac0] sm:$0xff]  ;;  %v2976_v24 = vld [vmem:[#allocation6 + $0x1ad0] sm:$0xff] }
 0x3ff   :  { %3422 = vmatmul.mubr.bf16.vlgmr.msra.gmra.mrb[0].mxu1 %v7854_v18  ;;  %3750 = vmatmul.mubr.bf16.vlgmr.msra.gmra.mrb[4].mxu0 %v7854_v18 }
 0x400   :  { %3431 = vmatpush1.bf16.msra.mxu1 %v2886_v35  ;;  %3759 = vmatpush1.bf16.msra.mxu0 %v2888_v41  ;;  %v2985_v35 = vld [vmem:[#allocation6 + $0x1b18] sm:$0xff]  ;;  %v2982_v41 = vld [vmem:[#allocation6 + $0x1b00] sm:$0xff] }
 0x401   :  { %3432 = vmatprep.subr.bf16.mxu1 %v2895_v43  ;;  %3760 = vmatprep.subr.bf16.mxu0 %v2897_v37  ;;  %v2984_v43 = vld [vmem:[#allocation6 + $0x1b10] sm:$0xff]  ;;  %v2991_v37 = vld [vmem:[#allocation6 + $0x1b48] sm:$0xff] }
 0x402   :  { %3462 = vmatprep.mubr.bf16.mxu1 %v7856_v50  ;;  %3790 = vmatprep.mubr.bf16.mxu0 %v7856_v50 }
 0x404   :  { %3433 = vmatpush1.bf16.msra.mxu1 %v2894_v9  ;;  %3761 = vmatpush1.bf16.msra.mxu0 %v2896_v12  ;;  %v2993_v9 = vld [vmem:[#allocation6 + $0x1b58] sm:$0xff]  ;;  %v2990_v12 = vld [vmem:[#allocation6 + $0x1b40] sm:$0xff] }
 0x405   :  { %3434 = vmatprep.subr.bf16.mxu1 %v2903_v52  ;;  %3762 = vmatprep.subr.bf16.mxu0 %v2905_v38  ;;  %v2992_v52 = vld [vmem:[#allocation6 + $0x1b50] sm:$0xff]  ;;  %v2999_v38 = vld [vmem:[#allocation6 + $0x1b88] sm:$0xff] }
 0x408   :  { %3435 = vmatpush1.bf16.msra.mxu1 %v2902_v46  ;;  %3763 = vmatpush1.bf16.msra.mxu0 %v2904_v26  ;;  %v3001_v46 = vld [vmem:[#allocation6 + $0x1b98] sm:$0xff]  ;;  %v2069_v26 = vcombine.high %v7844_v22, %v7844_v22 }
 0x409   :  { %3436 = vmatprep.subr.bf16.mxu1 %v2911_v44  ;;  %3764 = vmatprep.subr.bf16.mxu0 %v2913_v56  ;;  %v2998_v44 = vld [vmem:[#allocation6 + $0x1b80] sm:$0xff]  ;;  %v3000_v56 = vld [vmem:[#allocation6 + $0x1b90] sm:$0xff] }
 0x40c   :  { %3437 = vmatpush1.bf16.msra.mxu1 %v2910_v54  ;;  %3765 = vmatpush1.bf16.msra.mxu0 %v2912_v55  ;;  %v3007_v54 = vld [vmem:[#allocation6 + $0x1bc8] sm:$0xff]  ;;  %v3009_v55 = vld [vmem:[#allocation6 + $0x1bd8] sm:$0xff] }
 0x40d   :  { %3438 = vmatprep.subr.bf16.mxu1 %v2919_v47  ;;  %3766 = vmatprep.subr.bf16.mxu0 %v2921_v61  ;;  %v7865_v47 = vrot.slane %v2069_v26, %v7743_v23  ;;  %v3006_v61 = vld [vmem:[#allocation6 + $0x1bc0] sm:$0xff]  ;;  %v3088_v26 = vld [vmem:[#allocation6 + $0x1e50] sm:$0xff] }
 0x40e   :  { %v3014_v23 = vld [vmem:[#allocation6 + $0x1c00] sm:$0xff] }
 0x40f   :  { %v2085_v22 = vcombine.high %v7865_v47, %v7865_v47 }
 0x410   :  { %3439 = vmatpush1.bf16.msra.mxu1 %v2918_v53  ;;  %3767 = vmatpush1.bf16.msra.mxu0 %v2920_v58  ;;  %v3008_v53 = vld [vmem:[#allocation6 + $0x1bd0] sm:$0xff]  ;;  %v3015_v58 = vld [vmem:[#allocation6 + $0x1c08] sm:$0xff] }
 0x411   :  { %3440 = vmatprep.subr.bf16.mxu1 %v2927_v59  ;;  %3768 = vmatprep.subr.bf16.mxu0 %v2929_v10  ;;  %v3017_v59 = vld [vmem:[#allocation6 + $0x1c18] sm:$0xff]  ;;  %v7871_v10 = vpack.c.bf16 %v7848_v25, %v7848_v25  ;;  %v3022_v25 = vld [vmem:[#allocation6 + $0x1c40] sm:$0xff] }
 0x414   :  { %3441 = vmatpush1.bf16.msra.mxu1 %v2926_v3  ;;  %3769 = vmatpush1.bf16.msra.mxu0 %v2928_v27  ;;  %v3016_v3 = vld [vmem:[#allocation6 + $0x1c10] sm:$0xff]  ;;  %v3023_v27 = vld [vmem:[#allocation6 + $0x1c48] sm:$0xff] }
 0x415   :  { %3442 = vmatprep.subr.bf16.mxu1 %v2935_v5  ;;  %3770 = vmatprep.subr.bf16.mxu0 %v2937_v4  ;;  %v3025_v5 = vld [vmem:[#allocation6 + $0x1c58] sm:$0xff]  ;;  %v7873_v4 = vpack.c.bf16 %v2085_v22, %v2085_v22  ;;  %v3111_v22 = vld [vmem:[#allocation6 + $0x1f08] sm:$0xff] }
 0x418   :  { %3443 = vmatpush1.bf16.msra.mxu1 %v2934_v7  ;;  %3771 = vmatpush1.bf16.msra.mxu0 %v2936_v57  ;;  %v3024_v7 = vld [vmem:[#allocation6 + $0x1c50] sm:$0xff]  ;;  %v3031_v57 = vld [vmem:[#allocation6 + $0x1c88] sm:$0xff] }
 0x419   :  { %3444 = vmatprep.subr.bf16.mxu1 %v2943_v60  ;;  %3772 = vmatprep.subr.bf16.mxu0 %v2945_v63  ;;  %v3033_v60 = vld [vmem:[#allocation6 + $0x1c98] sm:$0xff]  ;;  %v3030_v63 = vld [vmem:[#allocation6 + $0x1c80] sm:$0xff] }
 0x41c   :  { %3445 = vmatpush1.bf16.msra.mxu1 %v2942_v0  ;;  %3773 = vmatpush1.bf16.msra.mxu0 %v2944_v48  ;;  %v3032_v0 = vld [vmem:[#allocation6 + $0x1c90] sm:$0xff]  ;;  %v3039_v48 = vld [vmem:[#allocation6 + $0x1cc8] sm:$0xff] }
 0x41d   :  { %3446 = vmatprep.subr.bf16.mxu1 %v2951_v1  ;;  %3774 = vmatprep.subr.bf16.mxu0 %v2953_v39  ;;  %v3041_v1 = vld [vmem:[#allocation6 + $0x1cd8] sm:$0xff]  ;;  %v3038_v39 = vld [vmem:[#allocation6 + $0x1cc0] sm:$0xff] }
 0x420   :  { %3447 = vmatpush1.bf16.msra.mxu1 %v2950_v6  ;;  %3775 = vmatpush1.bf16.msra.mxu0 %v2952_v14  ;;  %v3040_v6 = vld [vmem:[#allocation6 + $0x1cd0] sm:$0xff]  ;;  %v3047_v14 = vld [vmem:[#allocation6 + $0x1d08] sm:$0xff] }
 0x421   :  { %3448 = vmatprep.subr.bf16.mxu1 %v2959_v19  ;;  %3776 = vmatprep.subr.bf16.mxu0 %v2961_v13  ;;  %v3049_v19 = vld [vmem:[#allocation6 + $0x1d18] sm:$0xff]  ;;  %v3046_v13 = vld [vmem:[#allocation6 + $0x1d00] sm:$0xff] }
 0x424   :  { %3449 = vmatpush1.bf16.msra.mxu1 %v2958_v49  ;;  %3777 = vmatpush1.bf16.msra.mxu0 %v2960_v21  ;;  %v3048_v49 = vld [vmem:[#allocation6 + $0x1d10] sm:$0xff]  ;;  %v3055_v21 = vld [vmem:[#allocation6 + $0x1d48] sm:$0xff] }
 0x425   :  { %3450 = vmatprep.subr.bf16.mxu1 %v2967_v15  ;;  %3778 = vmatprep.subr.bf16.mxu0 %v2969_v31  ;;  %v3057_v15 = vld [vmem:[#allocation6 + $0x1d58] sm:$0xff]  ;;  %v3054_v31 = vld [vmem:[#allocation6 + $0x1d40] sm:$0xff] }
 0x428   :  { %3451 = vmatpush1.bf16.msra.mxu1 %v2966_v16  ;;  %3779 = vmatpush1.bf16.msra.mxu0 %v2968_v17  ;;  %v3056_v16 = vld [vmem:[#allocation6 + $0x1d50] sm:$0xff]  ;;  %v3063_v17 = vld [vmem:[#allocation6 + $0x1d88] sm:$0xff] }
 0x429   :  { %3452 = vmatprep.subr.bf16.mxu1 %v2975_v20  ;;  %3780 = vmatprep.subr.bf16.mxu0 %v2977_v33  ;;  %v3065_v20 = vld [vmem:[#allocation6 + $0x1d98] sm:$0xff]  ;;  %v3062_v33 = vld [vmem:[#allocation6 + $0x1d80] sm:$0xff] }
 0x42c   :  { %3453 = vmatpush1.bf16.msra.mxu1 %v2974_v28  ;;  %3781 = vmatpush1.bf16.msra.mxu0 %v2976_v24  ;;  %v3064_v28 = vld [vmem:[#allocation6 + $0x1d90] sm:$0xff]  ;;  %v3071_v24 = vld [vmem:[#allocation6 + $0x1dc8] sm:$0xff] }
 0x42d   :  { %3454 = vmatprep.subr.bf16.mxu1 %v2983_v29  ;;  %3782 = vmatprep.subr.bf16.mxu0 %v2985_v35  ;;  %v3073_v29 = vld [vmem:[#allocation6 + $0x1dd8] sm:$0xff]  ;;  %v3070_v35 = vld [vmem:[#allocation6 + $0x1dc0] sm:$0xff] }
 0x430   :  { %3455 = vmatpush1.bf16.msra.mxu1 %v2982_v41  ;;  %3783 = vmatpush1.bf16.msra.mxu0 %v2984_v43  ;;  %v3072_v41 = vld [vmem:[#allocation6 + $0x1dd0] sm:$0xff]  ;;  %v3079_v43 = vld [vmem:[#allocation6 + $0x1e08] sm:$0xff] }
 0x431   :  { %3456 = vmatprep.subr.bf16.mxu1 %v2991_v37  ;;  %3784 = vmatprep.subr.bf16.mxu0 %v2993_v9  ;;  %v3081_v37 = vld [vmem:[#allocation6 + $0x1e18] sm:$0xff]  ;;  %v3078_v9 = vld [vmem:[#allocation6 + $0x1e00] sm:$0xff] }
 0x434   :  { %3457 = vmatpush1.bf16.msra.mxu1 %v2990_v12  ;;  %3785 = vmatpush1.bf16.msra.mxu0 %v2992_v52  ;;  %v3080_v12 = vld [vmem:[#allocation6 + $0x1e10] sm:$0xff]  ;;  %v3087_v52 = vld [vmem:[#allocation6 + $0x1e48] sm:$0xff] }
 0x435   :  { %3458 = vmatprep.subr.bf16.mxu1 %v2999_v38  ;;  %3786 = vmatprep.subr.bf16.mxu0 %v3001_v46  ;;  %v3089_v38 = vld [vmem:[#allocation6 + $0x1e58] sm:$0xff]  ;;  %v3086_v46 = vld [vmem:[#allocation6 + $0x1e40] sm:$0xff] }
 0x438   :  { %3459 = vmatpush1.bf16.msra.mxu1 %v2998_v44  ;;  %3787 = vmatpush1.bf16.msra.mxu0 %v3000_v56  ;;  %v3095_v44 = vld [vmem:[#allocation6 + $0x1e88] sm:$0xff]  ;;  %v3097_v56 = vld [vmem:[#allocation6 + $0x1e98] sm:$0xff] }
 0x439   :  { %3460 = vmatprep.subr.bf16.mxu1 %v3007_v54  ;;  %3788 = vmatprep.subr.bf16.mxu0 %v3009_v55  ;;  %v3094_v54 = vld [vmem:[#allocation6 + $0x1e80] sm:$0xff]  ;;  %v3096_v55 = vld [vmem:[#allocation6 + $0x1e90] sm:$0xff] }
 0x43c   :  { %3461 = vmatpush1.bf16.msra.mxu1 %v3006_v61  ;;  %3789 = vmatpush1.bf16.msra.mxu0 %v3008_v53  ;;  %v3103_v61 = vld [vmem:[#allocation6 + $0x1ec8] sm:$0xff]  ;;  %v3105_v53 = vld [vmem:[#allocation6 + $0x1ed8] sm:$0xff] }
 0x43d   :  { %3471 = vmatprep.subr.bf16.mxu1 %v3015_v58  ;;  %3799 = vmatprep.subr.bf16.mxu0 %v3017_v59  ;;  %v3102_v58 = vld [vmem:[#allocation6 + $0x1ec0] sm:$0xff]  ;;  %v3104_v59 = vld [vmem:[#allocation6 + $0x1ed0] sm:$0xff] }
 0x43f   :  { %3463 = vmatmul.mubr.bf16.vlgmr.msra.gmra.mrb[0].mxu1 %v7871_v10  ;;  %3791 = vmatmul.mubr.bf16.vlgmr.msra.gmra.mrb[4].mxu0 %v7871_v10 }
 0x440   :  { %3472 = vmatpush1.bf16.msra.mxu1 %v3014_v23  ;;  %3800 = vmatpush1.bf16.msra.mxu0 %v3016_v3  ;;  %v3113_v23 = vld [vmem:[#allocation6 + $0x1f18] sm:$0xff]  ;;  %v3110_v3 = vld [vmem:[#allocation6 + $0x1f00] sm:$0xff] }
 0x441   :  { %3473 = vmatprep.subr.bf16.mxu1 %v3023_v27  ;;  %3801 = vmatprep.subr.bf16.mxu0 %v3025_v5  ;;  %v3112_v27 = vld [vmem:[#allocation6 + $0x1f10] sm:$0xff]  ;;  %v3119_v5 = vld [vmem:[#allocation6 + $0x1f48] sm:$0xff] }
 0x442   :  { %3503 = vmatprep.mubr.bf16.mxu1 %v7873_v4  ;;  %3831 = vmatprep.mubr.bf16.mxu0 %v7873_v4 }
 0x444   :  { %3474 = vmatpush1.bf16.msra.mxu1 %v3022_v25  ;;  %3802 = vmatpush1.bf16.msra.mxu0 %v3024_v7  ;;  %v3121_v25 = vld [vmem:[#allocation6 + $0x1f58] sm:$0xff]  ;;  %v3118_v7 = vld [vmem:[#allocation6 + $0x1f40] sm:$0xff] }
 0x445   :  { %3475 = vmatprep.subr.bf16.mxu1 %v3031_v57  ;;  %3803 = vmatprep.subr.bf16.mxu0 %v3033_v60  ;;  %v3120_v57 = vld [vmem:[#allocation6 + $0x1f50] sm:$0xff]  ;;  %v3127_v60 = vld [vmem:[#allocation6 + $0x1f88] sm:$0xff] }
 0x448   :  { %3476 = vmatpush1.bf16.msra.mxu1 %v3030_v63  ;;  %3804 = vmatpush1.bf16.msra.mxu0 %v3032_v0  ;;  %v3129_v63 = vld [vmem:[#allocation6 + $0x1f98] sm:$0xff]  ;;  %v3126_v0 = vld [vmem:[#allocation6 + $0x1f80] sm:$0xff] }
 0x449   :  { %3477 = vmatprep.subr.bf16.mxu1 %v3039_v48  ;;  %3805 = vmatprep.subr.bf16.mxu0 %v3041_v1  ;;  %v3128_v48 = vld [vmem:[#allocation6 + $0x1f90] sm:$0xff]  ;;  %v3135_v1 = vld [vmem:[#allocation6 + $0x1fc8] sm:$0xff] }
 0x44c   :  { %3478 = vmatpush1.bf16.msra.mxu1 %v3038_v39  ;;  %3806 = vmatpush1.bf16.msra.mxu0 %v3040_v6  ;;  %v3137_v39 = vld [vmem:[#allocation6 + $0x1fd8] sm:$0xff]  ;;  %v3134_v6 = vld [vmem:[#allocation6 + $0x1fc0] sm:$0xff] }
 0x44d   :  { %3479 = vmatprep.subr.bf16.mxu1 %v3047_v14  ;;  %3807 = vmatprep.subr.bf16.mxu0 %v3049_v19  ;;  %v3136_v14 = vld [vmem:[#allocation6 + $0x1fd0] sm:$0xff]  ;;  %v2123_v19 = vld [vmem:[#allocation6 + $0x28] sm:$0xff] }
 0x450   :  { %3480 = vmatpush1.bf16.msra.mxu1 %v3046_v13  ;;  %3808 = vmatpush1.bf16.msra.mxu0 %v3048_v49  ;;  %v2125_v13 = vld [vmem:[#allocation6 + $0x38] sm:$0xff]  ;;  %v7881_v49 = vpack.c.bf16 %v7865_v47, %v7865_v47  ;;  %v2139_v47 = vld [vmem:[#allocation6 + $0xa8] sm:$0xff] }
 0x451   :  { %3481 = vmatprep.subr.bf16.mxu1 %v3055_v21  ;;  %3809 = vmatprep.subr.bf16.mxu0 %v3057_v15  ;;  %v2122_v21 = vld [vmem:[#allocation6 + $0x20] sm:$0xff]  ;;  %v2124_v15 = vld [vmem:[#allocation6 + $0x30] sm:$0xff] }
 0x454   :  { %3482 = vmatpush1.bf16.msra.mxu1 %v3054_v31  ;;  %3810 = vmatpush1.bf16.msra.mxu0 %v3056_v16  ;;  %v2131_v31 = vld [vmem:[#allocation6 + $0x68] sm:$0xff]  ;;  %v2133_v16 = vld [vmem:[#allocation6 + $0x78] sm:$0xff] }
 0x455   :  { %3483 = vmatprep.subr.bf16.mxu1 %v3063_v17  ;;  %3811 = vmatprep.subr.bf16.mxu0 %v3065_v20  ;;  %v2130_v17 = vld [vmem:[#allocation6 + $0x60] sm:$0xff]  ;;  %v2132_v20 = vld [vmem:[#allocation6 + $0x70] sm:$0xff] }
 0x458   :  { %3484 = vmatpush1.bf16.msra.mxu1 %v3062_v33  ;;  %3812 = vmatpush1.bf16.msra.mxu0 %v3064_v28  ;;  %v2141_v33 = vld [vmem:[#allocation6 + $0xb8] sm:$0xff]  ;;  %v2138_v28 = vld [vmem:[#allocation6 + $0xa0] sm:$0xff] }
 0x459   :  { %3485 = vmatprep.subr.bf16.mxu1 %v3071_v24  ;;  %3813 = vmatprep.subr.bf16.mxu0 %v3073_v29  ;;  %v2140_v24 = vld [vmem:[#allocation6 + $0xb0] sm:$0xff]  ;;  %v2147_v29 = vld [vmem:[#allocation6 + $0xe8] sm:$0xff] }
 0x45c   :  { %3486 = vmatpush1.bf16.msra.mxu1 %v3070_v35  ;;  %3814 = vmatpush1.bf16.msra.mxu0 %v3072_v41  ;;  %v2149_v35 = vld [vmem:[#allocation6 + $0xf8] sm:$0xff]  ;;  %v2146_v41 = vld [vmem:[#allocation6 + $0xe0] sm:$0xff] }
 0x45d   :  { %3487 = vmatprep.subr.bf16.mxu1 %v3079_v43  ;;  %3815 = vmatprep.subr.bf16.mxu0 %v3081_v37  ;;  %v2148_v43 = vld [vmem:[#allocation6 + $0xf0] sm:$0xff]  ;;  %v2155_v37 = vld [vmem:[#allocation6 + $0x128] sm:$0xff] }
 0x460   :  { %3488 = vmatpush1.bf16.msra.mxu1 %v3078_v9  ;;  %3816 = vmatpush1.bf16.msra.mxu0 %v3080_v12  ;;  %v2157_v9 = vld [vmem:[#allocation6 + $0x138] sm:$0xff]  ;;  %v2156_v12 = vld [vmem:[#allocation6 + $0x130] sm:$0xff] }
 0x461   :  { %3489 = vmatprep.subr.bf16.mxu1 %v3087_v52  ;;  %3817 = vmatprep.subr.bf16.mxu0 %v3089_v38  ;;  %v2163_v52 = vld [vmem:[#allocation6 + $0x168] sm:$0xff]  ;;  %v2165_v38 = vld [vmem:[#allocation6 + $0x178] sm:$0xff] }
 0x464   :  { %3490 = vmatpush1.bf16.msra.mxu1 %v3086_v46  ;;  %3818 = vmatpush1.bf16.msra.mxu0 %v3088_v26  ;;  %v2162_v46 = vld [vmem:[#allocation6 + $0x160] sm:$0xff]  ;;  %v2164_v26 = vld [vmem:[#allocation6 + $0x170] sm:$0xff] }
 0x465   :  { %3491 = vmatprep.subr.bf16.mxu1 %v3095_v44  ;;  %3819 = vmatprep.subr.bf16.mxu0 %v3097_v56  ;;  %v2171_v44 = vld [vmem:[#allocation6 + $0x1a8] sm:$0xff]  ;;  %v2173_v56 = vld [vmem:[#allocation6 + $0x1b8] sm:$0xff] }
 0x468   :  { %3492 = vmatpush1.bf16.msra.mxu1 %v3094_v54  ;;  %3820 = vmatpush1.bf16.msra.mxu0 %v3096_v55  ;;  %v2170_v54 = vld [vmem:[#allocation6 + $0x1a0] sm:$0xff]  ;;  %v2172_v55 = vld [vmem:[#allocation6 + $0x1b0] sm:$0xff] }
 0x469   :  { %3493 = vmatprep.subr.bf16.mxu1 %v3103_v61  ;;  %3821 = vmatprep.subr.bf16.mxu0 %v3105_v53  ;;  %v2179_v61 = vld [vmem:[#allocation6 + $0x1e8] sm:$0xff]  ;;  %v2181_v53 = vld [vmem:[#allocation6 + $0x1f8] sm:$0xff] }
 0x46c   :  { %3494 = vmatpush1.bf16.msra.mxu1 %v3102_v58  ;;  %3822 = vmatpush1.bf16.msra.mxu0 %v3104_v59  ;;  %v2178_v58 = vld [vmem:[#allocation6 + $0x1e0] sm:$0xff]  ;;  %v2180_v59 = vld [vmem:[#allocation6 + $0x1f0] sm:$0xff] }
 0x46d   :  { %3495 = vmatprep.subr.bf16.mxu1 %v3111_v22  ;;  %3823 = vmatprep.subr.bf16.mxu0 %v3113_v23  ;;  %v2187_v22 = vld [vmem:[#allocation6 + $0x228] sm:$0xff]  ;;  %v2189_v23 = vld [vmem:[#allocation6 + $0x238] sm:$0xff] }
 0x470   :  { %3496 = vmatpush1.bf16.msra.mxu1 %v3110_v3  ;;  %3824 = vmatpush1.bf16.msra.mxu0 %v3112_v27  ;;  %v2186_v3 = vld [vmem:[#allocation6 + $0x220] sm:$0xff]  ;;  %v2188_v27 = vld [vmem:[#allocation6 + $0x230] sm:$0xff] }
 0x471   :  { %3497 = vmatprep.subr.bf16.mxu1 %v3119_v5  ;;  %3825 = vmatprep.subr.bf16.mxu0 %v3121_v25  ;;  %v2195_v5 = vld [vmem:[#allocation6 + $0x268] sm:$0xff]  ;;  %v2197_v25 = vld [vmem:[#allocation6 + $0x278] sm:$0xff] }
 0x474   :  { %3498 = vmatpush1.bf16.msra.mxu1 %v3118_v7  ;;  %3826 = vmatpush1.bf16.msra.mxu0 %v3120_v57  ;;  %v2194_v7 = vld [vmem:[#allocation6 + $0x260] sm:$0xff]  ;;  %v2196_v57 = vld [vmem:[#allocation6 + $0x270] sm:$0xff] }
 0x475   :  { %3499 = vmatprep.subr.bf16.mxu1 %v3127_v60  ;;  %3827 = vmatprep.subr.bf16.mxu0 %v3129_v63  ;;  %v2203_v60 = vld [vmem:[#allocation6 + $0x2a8] sm:$0xff]  ;;  %v2205_v63 = vld [vmem:[#allocation6 + $0x2b8] sm:$0xff] }
 0x478   :  { %3500 = vmatpush1.bf16.msra.mxu1 %v3126_v0  ;;  %3828 = vmatpush1.bf16.msra.mxu0 %v3128_v48  ;;  %v2202_v0 = vld [vmem:[#allocation6 + $0x2a0] sm:$0xff]  ;;  %v2204_v48 = vld [vmem:[#allocation6 + $0x2b0] sm:$0xff] }
 0x479   :  { %3501 = vmatprep.subr.bf16.mxu1 %v3135_v1  ;;  %3829 = vmatprep.subr.bf16.mxu0 %v3137_v39  ;;  %v2211_v1 = vld [vmem:[#allocation6 + $0x2e8] sm:$0xff]  ;;  %v2213_v39 = vld [vmem:[#allocation6 + $0x2f8] sm:$0xff] }
 0x47c   :  { %3502 = vmatpush1.bf16.msra.mxu1 %v3134_v6  ;;  %3830 = vmatpush1.bf16.msra.mxu0 %v3136_v14  ;;  %v2210_v6 = vld [vmem:[#allocation6 + $0x2e0] sm:$0xff]  ;;  %v2212_v14 = vld [vmem:[#allocation6 + $0x2f0] sm:$0xff] }
 0x47d   :  { %3840 = vmatprep.subr.bf16.mxu1 %v2123_v19  ;;  %4168 = vmatprep.subr.bf16.mxu0 %v2125_v13  ;;  %v2219_v19 = vld [vmem:[#allocation6 + $0x328] sm:$0xff]  ;;  %v2221_v13 = vld [vmem:[#allocation6 + $0x338] sm:$0xff] }
 0x47f   :  { %3504 = vmatmul.mubr.bf16.vlgmr.msra.gmra.mrb[0].mxu1 %v7881_v49  ;;  %3832 = vmatmul.mubr.bf16.vlgmr.msra.gmra.mrb[4].mxu0 %v7881_v49 }
 0x480   :  { %3841 = vmatpush1.bf16.msra.mxu1 %v2122_v21  ;;  %4169 = vmatpush1.bf16.msra.mxu0 %v2124_v15  ;;  %v2218_v21 = vld [vmem:[#allocation6 + $0x320] sm:$0xff]  ;;  %v2220_v15 = vld [vmem:[#allocation6 + $0x330] sm:$0xff] }
 0x481   :  { %3842 = vmatprep.subr.bf16.mxu1 %v2131_v31  ;;  %4170 = vmatprep.subr.bf16.mxu0 %v2133_v16  ;;  %v2227_v31 = vld [vmem:[#allocation6 + $0x368] sm:$0xff]  ;;  %v2229_v16 = vld [vmem:[#allocation6 + $0x378] sm:$0xff] }
 0x482   :  { %3872 = vmatprep.mubr.bf16.mxu1 %v7753_v42  ;;  %4200 = vmatprep.mubr.bf16.mxu0 %v7753_v42  ;;  %v2154_v42 = vld [vmem:[#allocation6 + $0x120] sm:$0xff] }
 0x484   :  { %3843 = vmatpush1.bf16.msra.mxu1 %v2130_v17  ;;  %4171 = vmatpush1.bf16.msra.mxu0 %v2132_v20  ;;  %v2226_v17 = vld [vmem:[#allocation6 + $0x360] sm:$0xff]  ;;  %v2228_v20 = vld [vmem:[#allocation6 + $0x370] sm:$0xff] }
 0x485   :  { %3844 = vmatprep.subr.bf16.mxu1 %v2139_v47  ;;  %4172 = vmatprep.subr.bf16.mxu0 %v2141_v33  ;;  %v2235_v47 = vld [vmem:[#allocation6 + $0x3a8] sm:$0xff]  ;;  %v2237_v33 = vld [vmem:[#allocation6 + $0x3b8] sm:$0xff] }
 0x488   :  { %3845 = vmatpush1.bf16.msra.mxu1 %v2138_v28  ;;  %4173 = vmatpush1.bf16.msra.mxu0 %v2140_v24  ;;  %v2234_v28 = vld [vmem:[#allocation6 + $0x3a0] sm:$0xff]  ;;  %v2236_v24 = vld [vmem:[#allocation6 + $0x3b0] sm:$0xff] }
 0x489   :  { %3846 = vmatprep.subr.bf16.mxu1 %v2147_v29  ;;  %4174 = vmatprep.subr.bf16.mxu0 %v2149_v35  ;;  %v2243_v29 = vld [vmem:[#allocation6 + $0x3e8] sm:$0xff]  ;;  %v2245_v35 = vld [vmem:[#allocation6 + $0x3f8] sm:$0xff] }
 0x48c   :  { %3847 = vmatpush1.bf16.msra.mxu1 %v2146_v41  ;;  %4175 = vmatpush1.bf16.msra.mxu0 %v2148_v43  ;;  %v2242_v41 = vld [vmem:[#allocation6 + $0x3e0] sm:$0xff]  ;;  %v2244_v43 = vld [vmem:[#allocation6 + $0x3f0] sm:$0xff] }
 0x48d   :  { %3848 = vmatprep.subr.bf16.mxu1 %v2155_v37  ;;  %4176 = vmatprep.subr.bf16.mxu0 %v2157_v9  ;;  %v2251_v37 = vld [vmem:[#allocation6 + $0x428] sm:$0xff]  ;;  %v2253_v9 = vld [vmem:[#allocation6 + $0x438] sm:$0xff] }
 0x490   :  { %3849 = vmatpush1.bf16.msra.mxu1 %v2154_v42  ;;  %4177 = vmatpush1.bf16.msra.mxu0 %v2156_v12  ;;  %v2250_v42 = vld [vmem:[#allocation6 + $0x420] sm:$0xff]  ;;  %v2252_v12 = vld [vmem:[#allocation6 + $0x430] sm:$0xff] }
 0x491   :  { %3850 = vmatprep.subr.bf16.mxu1 %v2163_v52  ;;  %4178 = vmatprep.subr.bf16.mxu0 %v2165_v38  ;;  %v2259_v52 = vld [vmem:[#allocation6 + $0x468] sm:$0xff]  ;;  %v2261_v38 = vld [vmem:[#allocation6 + $0x478] sm:$0xff] }
 0x494   :  { %3851 = vmatpush1.bf16.msra.mxu1 %v2162_v46  ;;  %4179 = vmatpush1.bf16.msra.mxu0 %v2164_v26  ;;  %v2258_v46 = vld [vmem:[#allocation6 + $0x460] sm:$0xff]  ;;  %v2260_v26 = vld [vmem:[#allocation6 + $0x470] sm:$0xff] }
 0x495   :  { %3852 = vmatprep.subr.bf16.mxu1 %v2171_v44  ;;  %4180 = vmatprep.subr.bf16.mxu0 %v2173_v56  ;;  %v2267_v44 = vld [vmem:[#allocation6 + $0x4a8] sm:$0xff]  ;;  %v2269_v56 = vld [vmem:[#allocation6 + $0x4b8] sm:$0xff] }
 0x498   :  { %3853 = vmatpush1.bf16.msra.mxu1 %v2170_v54  ;;  %4181 = vmatpush1.bf16.msra.mxu0 %v2172_v55  ;;  %v2266_v54 = vld [vmem:[#allocation6 + $0x4a0] sm:$0xff]  ;;  %v2268_v55 = vld [vmem:[#allocation6 + $0x4b0] sm:$0xff] }
 0x499   :  { %3854 = vmatprep.subr.bf16.mxu1 %v2179_v61  ;;  %4182 = vmatprep.subr.bf16.mxu0 %v2181_v53  ;;  %v2275_v61 = vld [vmem:[#allocation6 + $0x4e8] sm:$0xff]  ;;  %v2274_v53 = vld [vmem:[#allocation6 + $0x4e0] sm:$0xff] }
 0x49c   :  { %3855 = vmatpush1.bf16.msra.mxu1 %v2178_v58  ;;  %4183 = vmatpush1.bf16.msra.mxu0 %v2180_v59  ;;  %v2276_v58 = vld [vmem:[#allocation6 + $0x4f0] sm:$0xff]  ;;  %v2283_v59 = vld [vmem:[#allocation6 + $0x528] sm:$0xff] }
 0x49d   :  { %3856 = vmatprep.subr.bf16.mxu1 %v2187_v22  ;;  %4184 = vmatprep.subr.bf16.mxu0 %v2189_v23  ;;  %v2285_v22 = vld [vmem:[#allocation6 + $0x538] sm:$0xff]  ;;  %v2284_v23 = vld [vmem:[#allocation6 + $0x530] sm:$0xff] }
 0x4a0   :  { %3857 = vmatpush1.bf16.msra.mxu1 %v2186_v3  ;;  %4185 = vmatpush1.bf16.msra.mxu0 %v2188_v27  ;;  %v2291_v3 = vld [vmem:[#allocation6 + $0x568] sm:$0xff]  ;;  %v2293_v27 = vld [vmem:[#allocation6 + $0x578] sm:$0xff] }
 0x4a1   :  { %3858 = vmatprep.subr.bf16.mxu1 %v2195_v5  ;;  %4186 = vmatprep.subr.bf16.mxu0 %v2197_v25  ;;  %v2290_v5 = vld [vmem:[#allocation6 + $0x560] sm:$0xff]  ;;  %v2292_v25 = vld [vmem:[#allocation6 + $0x570] sm:$0xff] }
 0x4a4   :  { %3859 = vmatpush1.bf16.msra.mxu1 %v2194_v7  ;;  %4187 = vmatpush1.bf16.msra.mxu0 %v2196_v57  ;;  %v2299_v7 = vld [vmem:[#allocation6 + $0x5a8] sm:$0xff]  ;;  %v2301_v57 = vld [vmem:[#allocation6 + $0x5b8] sm:$0xff] }
 0x4a5   :  { %3860 = vmatprep.subr.bf16.mxu1 %v2203_v60  ;;  %4188 = vmatprep.subr.bf16.mxu0 %v2205_v63  ;;  %v2298_v60 = vld [vmem:[#allocation6 + $0x5a0] sm:$0xff]  ;;  %v2300_v63 = vld [vmem:[#allocation6 + $0x5b0] sm:$0xff] }
 0x4a8   :  { %3861 = vmatpush1.bf16.msra.mxu1 %v2202_v0  ;;  %4189 = vmatpush1.bf16.msra.mxu0 %v2204_v48  ;;  %v2307_v0 = vld [vmem:[#allocation6 + $0x5e8] sm:$0xff]  ;;  %v2309_v48 = vld [vmem:[#allocation6 + $0x5f8] sm:$0xff] }
 0x4a9   :  { %3862 = vmatprep.subr.bf16.mxu1 %v2211_v1  ;;  %4190 = vmatprep.subr.bf16.mxu0 %v2213_v39  ;;  %v2306_v1 = vld [vmem:[#allocation6 + $0x5e0] sm:$0xff]  ;;  %v2308_v39 = vld [vmem:[#allocation6 + $0x5f0] sm:$0xff] }
 0x4ac   :  { %3863 = vmatpush1.bf16.msra.mxu1 %v2210_v6  ;;  %4191 = vmatpush1.bf16.msra.mxu0 %v2212_v14  ;;  %v2315_v6 = vld [vmem:[#allocation6 + $0x628] sm:$0xff]  ;;  %v2317_v14 = vld [vmem:[#allocation6 + $0x638] sm:$0xff] }
 0x4ad   :  { %3864 = vmatprep.subr.bf16.mxu1 %v2219_v19  ;;  %4192 = vmatprep.subr.bf16.mxu0 %v2221_v13  ;;  %v2314_v19 = vld [vmem:[#allocation6 + $0x620] sm:$0xff]  ;;  %v2316_v13 = vld [vmem:[#allocation6 + $0x630] sm:$0xff] }
 0x4b0   :  { %3865 = vmatpush1.bf16.msra.mxu1 %v2218_v21  ;;  %4193 = vmatpush1.bf16.msra.mxu0 %v2220_v15  ;;  %v2323_v21 = vld [vmem:[#allocation6 + $0x668] sm:$0xff]  ;;  %v2325_v15 = vld [vmem:[#allocation6 + $0x678] sm:$0xff] }
 0x4b1   :  { %3866 = vmatprep.subr.bf16.mxu1 %v2227_v31  ;;  %4194 = vmatprep.subr.bf16.mxu0 %v2229_v16  ;;  %v2322_v31 = vld [vmem:[#allocation6 + $0x660] sm:$0xff]  ;;  %v2324_v16 = vld [vmem:[#allocation6 + $0x670] sm:$0xff] }
 0x4b4   :  { %3867 = vmatpush1.bf16.msra.mxu1 %v2226_v17  ;;  %4195 = vmatpush1.bf16.msra.mxu0 %v2228_v20  ;;  %v2331_v17 = vld [vmem:[#allocation6 + $0x6a8] sm:$0xff]  ;;  %v2333_v20 = vld [vmem:[#allocation6 + $0x6b8] sm:$0xff] }
 0x4b5   :  { %3868 = vmatprep.subr.bf16.mxu1 %v2235_v47  ;;  %4196 = vmatprep.subr.bf16.mxu0 %v2237_v33  ;;  %v2330_v47 = vld [vmem:[#allocation6 + $0x6a0] sm:$0xff]  ;;  %v2332_v33 = vld [vmem:[#allocation6 + $0x6b0] sm:$0xff] }
 0x4b8   :  { %3869 = vmatpush1.bf16.msra.mxu1 %v2234_v28  ;;  %4197 = vmatpush1.bf16.msra.mxu0 %v2236_v24  ;;  %v2339_v28 = vld [vmem:[#allocation6 + $0x6e8] sm:$0xff]  ;;  %v2341_v24 = vld [vmem:[#allocation6 + $0x6f8] sm:$0xff] }
 0x4b9   :  { %3870 = vmatprep.subr.bf16.mxu1 %v2243_v29  ;;  %4198 = vmatprep.subr.bf16.mxu0 %v2245_v35  ;;  %v2338_v29 = vld [vmem:[#allocation6 + $0x6e0] sm:$0xff]  ;;  %v2340_v35 = vld [vmem:[#allocation6 + $0x6f0] sm:$0xff] }
 0x4bc   :  { %3871 = vmatpush1.bf16.msra.mxu1 %v2242_v41  ;;  %4199 = vmatpush1.bf16.msra.mxu0 %v2244_v43  ;;  %v2347_v41 = vld [vmem:[#allocation6 + $0x728] sm:$0xff]  ;;  %v2349_v43 = vld [vmem:[#allocation6 + $0x738] sm:$0xff] }
 0x4bd   :  { %3881 = vmatprep.subr.bf16.mxu1 %v2251_v37  ;;  %4209 = vmatprep.subr.bf16.mxu0 %v2253_v9  ;;  %v2346_v37 = vld [vmem:[#allocation6 + $0x720] sm:$0xff]  ;;  %v2348_v9 = vld [vmem:[#allocation6 + $0x730] sm:$0xff] }
 0x4bf   :  { %3873 = vmatmul.mubr.bf16.vlgmr.msra.gmra.mrb[4].mxu1 %v7766_v11  ;;  %4201 = vmatmul.mubr.bf16.vlgmr.msra.gmra.mrb[8].mxu0 %v7766_v11  ;;  %v2277_v11 = vld [vmem:[#allocation6 + $0x4f8] sm:$0xff] }
 0x4c0   :  { %3882 = vmatpush1.bf16.msra.mxu1 %v2250_v42  ;;  %4210 = vmatpush1.bf16.msra.mxu0 %v2252_v12  ;;  %v2355_v42 = vld [vmem:[#allocation6 + $0x768] sm:$0xff]  ;;  %v2357_v12 = vld [vmem:[#allocation6 + $0x778] sm:$0xff] }
 0x4c1   :  { %3883 = vmatprep.subr.bf16.mxu1 %v2259_v52  ;;  %4211 = vmatprep.subr.bf16.mxu0 %v2261_v38  ;;  %v2354_v52 = vld [vmem:[#allocation6 + $0x760] sm:$0xff]  ;;  %v2356_v38 = vld [vmem:[#allocation6 + $0x770] sm:$0xff] }
 0x4c2   :  { %3913 = vmatprep.mubr.bf16.mxu1 %v7768_v30  ;;  %4241 = vmatprep.mubr.bf16.mxu0 %v7768_v30  ;;  %v2282_v30 = vld [vmem:[#allocation6 + $0x520] sm:$0xff] }
 0x4c4   :  { %3884 = vmatpush1.bf16.msra.mxu1 %v2258_v46  ;;  %4212 = vmatpush1.bf16.msra.mxu0 %v2260_v26  ;;  %v2363_v46 = vld [vmem:[#allocation6 + $0x7a8] sm:$0xff]  ;;  %v2365_v26 = vld [vmem:[#allocation6 + $0x7b8] sm:$0xff] }
 0x4c5   :  { %3885 = vmatprep.subr.bf16.mxu1 %v2267_v44  ;;  %4213 = vmatprep.subr.bf16.mxu0 %v2269_v56  ;;  %v2362_v44 = vld [vmem:[#allocation6 + $0x7a0] sm:$0xff]  ;;  %v2364_v56 = vld [vmem:[#allocation6 + $0x7b0] sm:$0xff] }
 0x4c8   :  { %3886 = vmatpush1.bf16.msra.mxu1 %v2266_v54  ;;  %4214 = vmatpush1.bf16.msra.mxu0 %v2268_v55  ;;  %v2371_v54 = vld [vmem:[#allocation6 + $0x7e8] sm:$0xff]  ;;  %v2373_v55 = vld [vmem:[#allocation6 + $0x7f8] sm:$0xff] }
 0x4c9   :  { %3887 = vmatprep.subr.bf16.mxu1 %v2275_v61  ;;  %4215 = vmatprep.subr.bf16.mxu0 %v2277_v11  ;;  %v2370_v61 = vld [vmem:[#allocation6 + $0x7e0] sm:$0xff]  ;;  %v2372_v11 = vld [vmem:[#allocation6 + $0x7f0] sm:$0xff] }
 0x4cc   :  { %3888 = vmatpush1.bf16.msra.mxu1 %v2274_v53  ;;  %4216 = vmatpush1.bf16.msra.mxu0 %v2276_v58  ;;  %v2379_v53 = vld [vmem:[#allocation6 + $0x828] sm:$0xff]  ;;  %v2381_v58 = vld [vmem:[#allocation6 + $0x838] sm:$0xff] }
 0x4cd   :  { %3889 = vmatprep.subr.bf16.mxu1 %v2283_v59  ;;  %4217 = vmatprep.subr.bf16.mxu0 %v2285_v22  ;;  %v2378_v59 = vld [vmem:[#allocation6 + $0x820] sm:$0xff]  ;;  %v2380_v22 = vld [vmem:[#allocation6 + $0x830] sm:$0xff] }
 0x4d0   :  { %3890 = vmatpush1.bf16.msra.mxu1 %v2282_v30  ;;  %4218 = vmatpush1.bf16.msra.mxu0 %v2284_v23  ;;  %v2387_v30 = vld [vmem:[#allocation6 + $0x868] sm:$0xff]  ;;  %v2389_v23 = vld [vmem:[#allocation6 + $0x878] sm:$0xff] }
 0x4d1   :  { %3891 = vmatprep.subr.bf16.mxu1 %v2291_v3  ;;  %4219 = vmatprep.subr.bf16.mxu0 %v2293_v27  ;;  %v2386_v3 = vld [vmem:[#allocation6 + $0x860] sm:$0xff]  ;;  %v2388_v27 = vld [vmem:[#allocation6 + $0x870] sm:$0xff] }
 0x4d4   :  { %3892 = vmatpush1.bf16.msra.mxu1 %v2290_v5  ;;  %4220 = vmatpush1.bf16.msra.mxu0 %v2292_v25  ;;  %v2395_v5 = vld [vmem:[#allocation6 + $0x8a8] sm:$0xff]  ;;  %v2397_v25 = vld [vmem:[#allocation6 + $0x8b8] sm:$0xff] }
 0x4d5   :  { %3893 = vmatprep.subr.bf16.mxu1 %v2299_v7  ;;  %4221 = vmatprep.subr.bf16.mxu0 %v2301_v57  ;;  %v2394_v7 = vld [vmem:[#allocation6 + $0x8a0] sm:$0xff]  ;;  %v2396_v57 = vld [vmem:[#allocation6 + $0x8b0] sm:$0xff] }
 0x4d8   :  { %3894 = vmatpush1.bf16.msra.mxu1 %v2298_v60  ;;  %4222 = vmatpush1.bf16.msra.mxu0 %v2300_v63  ;;  %v2403_v60 = vld [vmem:[#allocation6 + $0x8e8] sm:$0xff]  ;;  %v2402_v63 = vld [vmem:[#allocation6 + $0x8e0] sm:$0xff] }
 0x4d9   :  { %3895 = vmatprep.subr.bf16.mxu1 %v2307_v0  ;;  %4223 = vmatprep.subr.bf16.mxu0 %v2309_v48  ;;  %v2404_v0 = vld [vmem:[#allocation6 + $0x8f0] sm:$0xff]  ;;  %v2411_v48 = vld [vmem:[#allocation6 + $0x928] sm:$0xff] }
 0x4dc   :  { %3896 = vmatpush1.bf16.msra.mxu1 %v2306_v1  ;;  %4224 = vmatpush1.bf16.msra.mxu0 %v2308_v39  ;;  %v2413_v1 = vld [vmem:[#allocation6 + $0x938] sm:$0xff]  ;;  %v2412_v39 = vld [vmem:[#allocation6 + $0x930] sm:$0xff] }
 0x4dd   :  { %3897 = vmatprep.subr.bf16.mxu1 %v2315_v6  ;;  %4225 = vmatprep.subr.bf16.mxu0 %v2317_v14  ;;  %v2419_v6 = vld [vmem:[#allocation6 + $0x968] sm:$0xff]  ;;  %v2421_v14 = vld [vmem:[#allocation6 + $0x978] sm:$0xff] }
 0x4e0   :  { %3898 = vmatpush1.bf16.msra.mxu1 %v2314_v19  ;;  %4226 = vmatpush1.bf16.msra.mxu0 %v2316_v13  ;;  %v2418_v19 = vld [vmem:[#allocation6 + $0x960] sm:$0xff]  ;;  %v2420_v13 = vld [vmem:[#allocation6 + $0x970] sm:$0xff] }
 0x4e1   :  { %3899 = vmatprep.subr.bf16.mxu1 %v2323_v21  ;;  %4227 = vmatprep.subr.bf16.mxu0 %v2325_v15  ;;  %v2427_v21 = vld [vmem:[#allocation6 + $0x9a8] sm:$0xff]  ;;  %v2429_v15 = vld [vmem:[#allocation6 + $0x9b8] sm:$0xff] }
 0x4e4   :  { %3900 = vmatpush1.bf16.msra.mxu1 %v2322_v31  ;;  %4228 = vmatpush1.bf16.msra.mxu0 %v2324_v16  ;;  %v2426_v31 = vld [vmem:[#allocation6 + $0x9a0] sm:$0xff]  ;;  %v2428_v16 = vld [vmem:[#allocation6 + $0x9b0] sm:$0xff] }
 0x4e5   :  { %3901 = vmatprep.subr.bf16.mxu1 %v2331_v17  ;;  %4229 = vmatprep.subr.bf16.mxu0 %v2333_v20  ;;  %v2435_v17 = vld [vmem:[#allocation6 + $0x9e8] sm:$0xff]  ;;  %v2437_v20 = vld [vmem:[#allocation6 + $0x9f8] sm:$0xff] }
 0x4e8   :  { %3902 = vmatpush1.bf16.msra.mxu1 %v2330_v47  ;;  %4230 = vmatpush1.bf16.msra.mxu0 %v2332_v33  ;;  %v2434_v47 = vld [vmem:[#allocation6 + $0x9e0] sm:$0xff]  ;;  %v2436_v33 = vld [vmem:[#allocation6 + $0x9f0] sm:$0xff] }
 0x4e9   :  { %3903 = vmatprep.subr.bf16.mxu1 %v2339_v28  ;;  %4231 = vmatprep.subr.bf16.mxu0 %v2341_v24  ;;  %v2443_v28 = vld [vmem:[#allocation6 + $0xa28] sm:$0xff]  ;;  %v2445_v24 = vld [vmem:[#allocation6 + $0xa38] sm:$0xff] }
 0x4ec   :  { %3904 = vmatpush1.bf16.msra.mxu1 %v2338_v29  ;;  %4232 = vmatpush1.bf16.msra.mxu0 %v2340_v35  ;;  %v2442_v29 = vld [vmem:[#allocation6 + $0xa20] sm:$0xff]  ;;  %v2444_v35 = vld [vmem:[#allocation6 + $0xa30] sm:$0xff] }
 0x4ed   :  { %3905 = vmatprep.subr.bf16.mxu1 %v2347_v41  ;;  %4233 = vmatprep.subr.bf16.mxu0 %v2349_v43  ;;  %v2451_v41 = vld [vmem:[#allocation6 + $0xa68] sm:$0xff]  ;;  %v2453_v43 = vld [vmem:[#allocation6 + $0xa78] sm:$0xff] }
 0x4f0   :  { %3906 = vmatpush1.bf16.msra.mxu1 %v2346_v37  ;;  %4234 = vmatpush1.bf16.msra.mxu0 %v2348_v9  ;;  %v2450_v37 = vld [vmem:[#allocation6 + $0xa60] sm:$0xff]  ;;  %v2452_v9 = vld [vmem:[#allocation6 + $0xa70] sm:$0xff] }
 0x4f1   :  { %3907 = vmatprep.subr.bf16.mxu1 %v2355_v42  ;;  %4235 = vmatprep.subr.bf16.mxu0 %v2357_v12  ;;  %v2459_v42 = vld [vmem:[#allocation6 + $0xaa8] sm:$0xff]  ;;  %v2461_v12 = vld [vmem:[#allocation6 + $0xab8] sm:$0xff] }
 0x4f4   :  { %3908 = vmatpush1.bf16.msra.mxu1 %v2354_v52  ;;  %4236 = vmatpush1.bf16.msra.mxu0 %v2356_v38  ;;  %v2458_v52 = vld [vmem:[#allocation6 + $0xaa0] sm:$0xff]  ;;  %v2460_v38 = vld [vmem:[#allocation6 + $0xab0] sm:$0xff] }
 0x4f5   :  { %3909 = vmatprep.subr.bf16.mxu1 %v2363_v46  ;;  %4237 = vmatprep.subr.bf16.mxu0 %v2365_v26  ;;  %v2467_v46 = vld [vmem:[#allocation6 + $0xae8] sm:$0xff]  ;;  %v2469_v26 = vld [vmem:[#allocation6 + $0xaf8] sm:$0xff] }
 0x4f8   :  { %3910 = vmatpush1.bf16.msra.mxu1 %v2362_v44  ;;  %4238 = vmatpush1.bf16.msra.mxu0 %v2364_v56  ;;  %v2466_v44 = vld [vmem:[#allocation6 + $0xae0] sm:$0xff]  ;;  %v2468_v56 = vld [vmem:[#allocation6 + $0xaf0] sm:$0xff] }
 0x4f9   :  { %3911 = vmatprep.subr.bf16.mxu1 %v2371_v54  ;;  %4239 = vmatprep.subr.bf16.mxu0 %v2373_v55  ;;  %v2475_v54 = vld [vmem:[#allocation6 + $0xb28] sm:$0xff]  ;;  %v2477_v55 = vld [vmem:[#allocation6 + $0xb38] sm:$0xff] }
 0x4fc   :  { %3912 = vmatpush1.bf16.msra.mxu1 %v2370_v61  ;;  %4240 = vmatpush1.bf16.msra.mxu0 %v2372_v11  ;;  %v2474_v61 = vld [vmem:[#allocation6 + $0xb20] sm:$0xff]  ;;  %v2476_v11 = vld [vmem:[#allocation6 + $0xb30] sm:$0xff] }
 0x4fd   :  { %3922 = vmatprep.subr.bf16.mxu1 %v2379_v53  ;;  %4250 = vmatprep.subr.bf16.mxu0 %v2381_v58  ;;  %v2483_v53 = vld [vmem:[#allocation6 + $0xb68] sm:$0xff]  ;;  %v2485_v58 = vld [vmem:[#allocation6 + $0xb78] sm:$0xff] }
 0x4ff   :  { %3914 = vmatmul.mubr.bf16.vlgmr.msra.gmra.mrb[4].mxu1 %v7784_v36  ;;  %4242 = vmatmul.mubr.bf16.vlgmr.msra.gmra.mrb[8].mxu0 %v7784_v36  ;;  %v2405_v36 = vld [vmem:[#allocation6 + $0x8f8] sm:$0xff] }
 0x500   :  { %3923 = vmatpush1.bf16.msra.mxu1 %v2378_v59  ;;  %4251 = vmatpush1.bf16.msra.mxu0 %v2380_v22  ;;  %v2482_v59 = vld [vmem:[#allocation6 + $0xb60] sm:$0xff]  ;;  %v2484_v22 = vld [vmem:[#allocation6 + $0xb70] sm:$0xff] }
 0x501   :  { %3924 = vmatprep.subr.bf16.mxu1 %v2387_v30  ;;  %4252 = vmatprep.subr.bf16.mxu0 %v2389_v23  ;;  %v2491_v30 = vld [vmem:[#allocation6 + $0xba8] sm:$0xff]  ;;  %v2493_v23 = vld [vmem:[#allocation6 + $0xbb8] sm:$0xff] }
 0x502   :  { %3954 = vmatprep.mubr.bf16.mxu1 %v7786_v34  ;;  %4282 = vmatprep.mubr.bf16.mxu0 %v7786_v34  ;;  %v2410_v34 = vld [vmem:[#allocation6 + $0x920] sm:$0xff] }
 0x504   :  { %3925 = vmatpush1.bf16.msra.mxu1 %v2386_v3  ;;  %4253 = vmatpush1.bf16.msra.mxu0 %v2388_v27  ;;  %v2490_v3 = vld [vmem:[#allocation6 + $0xba0] sm:$0xff]  ;;  %v2492_v27 = vld [vmem:[#allocation6 + $0xbb0] sm:$0xff] }
 0x505   :  { %3926 = vmatprep.subr.bf16.mxu1 %v2395_v5  ;;  %4254 = vmatprep.subr.bf16.mxu0 %v2397_v25  ;;  %v2499_v5 = vld [vmem:[#allocation6 + $0xbe8] sm:$0xff]  ;;  %v2501_v25 = vld [vmem:[#allocation6 + $0xbf8] sm:$0xff] }
 0x508   :  { %3927 = vmatpush1.bf16.msra.mxu1 %v2394_v7  ;;  %4255 = vmatpush1.bf16.msra.mxu0 %v2396_v57  ;;  %v2498_v7 = vld [vmem:[#allocation6 + $0xbe0] sm:$0xff]  ;;  %v2500_v57 = vld [vmem:[#allocation6 + $0xbf0] sm:$0xff] }
 0x509   :  { %3928 = vmatprep.subr.bf16.mxu1 %v2403_v60  ;;  %4256 = vmatprep.subr.bf16.mxu0 %v2405_v36  ;;  %v2507_v60 = vld [vmem:[#allocation6 + $0xc28] sm:$0xff]  ;;  %v2509_v36 = vld [vmem:[#allocation6 + $0xc38] sm:$0xff] }
 0x50c   :  { %3929 = vmatpush1.bf16.msra.mxu1 %v2402_v63  ;;  %4257 = vmatpush1.bf16.msra.mxu0 %v2404_v0  ;;  %v2506_v63 = vld [vmem:[#allocation6 + $0xc20] sm:$0xff]  ;;  %v2508_v0 = vld [vmem:[#allocation6 + $0xc30] sm:$0xff] }
 0x50d   :  { %3930 = vmatprep.subr.bf16.mxu1 %v2411_v48  ;;  %4258 = vmatprep.subr.bf16.mxu0 %v2413_v1  ;;  %v2515_v48 = vld [vmem:[#allocation6 + $0xc68] sm:$0xff]  ;;  %v2517_v1 = vld [vmem:[#allocation6 + $0xc78] sm:$0xff] }
 0x510   :  { %3931 = vmatpush1.bf16.msra.mxu1 %v2410_v34  ;;  %4259 = vmatpush1.bf16.msra.mxu0 %v2412_v39  ;;  %v2514_v34 = vld [vmem:[#allocation6 + $0xc60] sm:$0xff]  ;;  %v2516_v39 = vld [vmem:[#allocation6 + $0xc70] sm:$0xff] }
 0x511   :  { %3932 = vmatprep.subr.bf16.mxu1 %v2419_v6  ;;  %4260 = vmatprep.subr.bf16.mxu0 %v2421_v14  ;;  %v2523_v6 = vld [vmem:[#allocation6 + $0xca8] sm:$0xff]  ;;  %v2525_v14 = vld [vmem:[#allocation6 + $0xcb8] sm:$0xff] }
 0x514   :  { %3933 = vmatpush1.bf16.msra.mxu1 %v2418_v19  ;;  %4261 = vmatpush1.bf16.msra.mxu0 %v2420_v13  ;;  %v2522_v19 = vld [vmem:[#allocation6 + $0xca0] sm:$0xff]  ;;  %v2524_v13 = vld [vmem:[#allocation6 + $0xcb0] sm:$0xff] }
 0x515   :  { %3934 = vmatprep.subr.bf16.mxu1 %v2427_v21  ;;  %4262 = vmatprep.subr.bf16.mxu0 %v2429_v15  ;;  %v2531_v21 = vld [vmem:[#allocation6 + $0xce8] sm:$0xff]  ;;  %v2530_v15 = vld [vmem:[#allocation6 + $0xce0] sm:$0xff] }
 0x518   :  { %3935 = vmatpush1.bf16.msra.mxu1 %v2426_v31  ;;  %4263 = vmatpush1.bf16.msra.mxu0 %v2428_v16  ;;  %v2532_v31 = vld [vmem:[#allocation6 + $0xcf0] sm:$0xff]  ;;  %v2539_v16 = vld [vmem:[#allocation6 + $0xd28] sm:$0xff] }
 0x519   :  { %3936 = vmatprep.subr.bf16.mxu1 %v2435_v17  ;;  %4264 = vmatprep.subr.bf16.mxu0 %v2437_v20  ;;  %v2541_v17 = vld [vmem:[#allocation6 + $0xd38] sm:$0xff]  ;;  %v2540_v20 = vld [vmem:[#allocation6 + $0xd30] sm:$0xff] }
 0x51c   :  { %3937 = vmatpush1.bf16.msra.mxu1 %v2434_v47  ;;  %4265 = vmatpush1.bf16.msra.mxu0 %v2436_v33  ;;  %v2547_v47 = vld [vmem:[#allocation6 + $0xd68] sm:$0xff]  ;;  %v2549_v33 = vld [vmem:[#allocation6 + $0xd78] sm:$0xff] }
 0x51d   :  { %3938 = vmatprep.subr.bf16.mxu1 %v2443_v28  ;;  %4266 = vmatprep.subr.bf16.mxu0 %v2445_v24  ;;  %v2546_v28 = vld [vmem:[#allocation6 + $0xd60] sm:$0xff]  ;;  %v2548_v24 = vld [vmem:[#allocation6 + $0xd70] sm:$0xff] }
 0x520   :  { %3939 = vmatpush1.bf16.msra.mxu1 %v2442_v29  ;;  %4267 = vmatpush1.bf16.msra.mxu0 %v2444_v35 }
 0x521   :  { %3940 = vmatprep.subr.bf16.mxu1 %v2451_v41  ;;  %4268 = vmatprep.subr.bf16.mxu0 %v2453_v43  ;;  %v2555_v41 = vld [vmem:[#allocation6 + $0xda8] sm:$0xff]  ;;  %v2557_v43 = vld [vmem:[#allocation6 + $0xdb8] sm:$0xff] }
 0x524   :  { %3941 = vmatpush1.bf16.msra.mxu1 %v2450_v37  ;;  %4269 = vmatpush1.bf16.msra.mxu0 %v2452_v9 }
 0x525   :  { %3942 = vmatprep.subr.bf16.mxu1 %v2459_v42  ;;  %4270 = vmatprep.subr.bf16.mxu0 %v2461_v12 }
 0x528   :  { %3943 = vmatpush1.bf16.msra.mxu1 %v2458_v52  ;;  %4271 = vmatpush1.bf16.msra.mxu0 %v2460_v38 }
 0x529   :  { %3944 = vmatprep.subr.bf16.mxu1 %v2467_v46  ;;  %4272 = vmatprep.subr.bf16.mxu0 %v2469_v26  ;;  %v2554_v46 = vld [vmem:[#allocation6 + $0xda0] sm:$0xff]  ;;  %v2556_v26 = vld [vmem:[#allocation6 + $0xdb0] sm:$0xff] }
 0x52c   :  { %3945 = vmatpush1.bf16.msra.mxu1 %v2466_v44  ;;  %4273 = vmatpush1.bf16.msra.mxu0 %v2468_v56  ;;  %v2563_v44 = vld [vmem:[#allocation6 + $0xde8] sm:$0xff]  ;;  %v2565_v56 = vld [vmem:[#allocation6 + $0xdf8] sm:$0xff] }
 0x52d   :  { %3946 = vmatprep.subr.bf16.mxu1 %v2475_v54  ;;  %4274 = vmatprep.subr.bf16.mxu0 %v2477_v55  ;;  %v2562_v54 = vld [vmem:[#allocation6 + $0xde0] sm:$0xff]  ;;  %v2564_v55 = vld [vmem:[#allocation6 + $0xdf0] sm:$0xff] }
 0x530   :  { %3947 = vmatpush1.bf16.msra.mxu1 %v2474_v61  ;;  %4275 = vmatpush1.bf16.msra.mxu0 %v2476_v11  ;;  %v2571_v61 = vld [vmem:[#allocation6 + $0xe28] sm:$0xff]  ;;  %v2573_v11 = vld [vmem:[#allocation6 + $0xe38] sm:$0xff] }
 0x531   :  { %3948 = vmatprep.subr.bf16.mxu1 %v2483_v53  ;;  %4276 = vmatprep.subr.bf16.mxu0 %v2485_v58  ;;  %v2570_v53 = vld [vmem:[#allocation6 + $0xe20] sm:$0xff]  ;;  %v2572_v58 = vld [vmem:[#allocation6 + $0xe30] sm:$0xff] }
 0x534   :  { %3949 = vmatpush1.bf16.msra.mxu1 %v2482_v59  ;;  %4277 = vmatpush1.bf16.msra.mxu0 %v2484_v22  ;;  %v2579_v59 = vld [vmem:[#allocation6 + $0xe68] sm:$0xff]  ;;  %v2581_v22 = vld [vmem:[#allocation6 + $0xe78] sm:$0xff] }
 0x535   :  { %3950 = vmatprep.subr.bf16.mxu1 %v2491_v30  ;;  %4278 = vmatprep.subr.bf16.mxu0 %v2493_v23  ;;  %v2578_v30 = vld [vmem:[#allocation6 + $0xe60] sm:$0xff]  ;;  %v2580_v23 = vld [vmem:[#allocation6 + $0xe70] sm:$0xff] }
 0x538   :  { %3951 = vmatpush1.bf16.msra.mxu1 %v2490_v3  ;;  %4279 = vmatpush1.bf16.msra.mxu0 %v2492_v27  ;;  %v2587_v3 = vld [vmem:[#allocation6 + $0xea8] sm:$0xff]  ;;  %v2589_v27 = vld [vmem:[#allocation6 + $0xeb8] sm:$0xff] }
 0x539   :  { %3952 = vmatprep.subr.bf16.mxu1 %v2499_v5  ;;  %4280 = vmatprep.subr.bf16.mxu0 %v2501_v25  ;;  %v2586_v5 = vld [vmem:[#allocation6 + $0xea0] sm:$0xff]  ;;  %v2588_v25 = vld [vmem:[#allocation6 + $0xeb0] sm:$0xff] }
 0x53c   :  { %3953 = vmatpush1.bf16.msra.mxu1 %v2498_v7  ;;  %4281 = vmatpush1.bf16.msra.mxu0 %v2500_v57  ;;  %v2595_v7 = vld [vmem:[#allocation6 + $0xee8] sm:$0xff]  ;;  %v2597_v57 = vld [vmem:[#allocation6 + $0xef8] sm:$0xff] }
 0x53d   :  { %3963 = vmatprep.subr.bf16.mxu1 %v2507_v60  ;;  %4291 = vmatprep.subr.bf16.mxu0 %v2509_v36  ;;  %v2594_v60 = vld [vmem:[#allocation6 + $0xee0] sm:$0xff]  ;;  %v2596_v36 = vld [vmem:[#allocation6 + $0xef0] sm:$0xff] }
 0x53f   :  { %3955 = vmatmul.mubr.bf16.vlgmr.msra.gmra.mrb[4].mxu1 %v7801_v51  ;;  %4283 = vmatmul.mubr.bf16.vlgmr.msra.gmra.mrb[8].mxu0 %v7801_v51  ;;  %v2533_v51 = vld [vmem:[#allocation6 + $0xcf8] sm:$0xff] }
 0x540   :  { %3964 = vmatpush1.bf16.msra.mxu1 %v2506_v63  ;;  %4292 = vmatpush1.bf16.msra.mxu0 %v2508_v0  ;;  %v2603_v63 = vld [vmem:[#allocation6 + $0xf28] sm:$0xff]  ;;  %v2605_v0 = vld [vmem:[#allocation6 + $0xf38] sm:$0xff] }
 0x541   :  { %3965 = vmatprep.subr.bf16.mxu1 %v2515_v48  ;;  %4293 = vmatprep.subr.bf16.mxu0 %v2517_v1  ;;  %v2602_v48 = vld [vmem:[#allocation6 + $0xf20] sm:$0xff]  ;;  %v2604_v1 = vld [vmem:[#allocation6 + $0xf30] sm:$0xff] }
 0x542   :  { %3995 = vmatprep.mubr.bf16.mxu1 %v7803_v40  ;;  %4323 = vmatprep.mubr.bf16.mxu0 %v7803_v40  ;;  %v2538_v40 = vld [vmem:[#allocation6 + $0xd20] sm:$0xff] }
 0x544   :  { %3966 = vmatpush1.bf16.msra.mxu1 %v2514_v34  ;;  %4294 = vmatpush1.bf16.msra.mxu0 %v2516_v39  ;;  %v2611_v34 = vld [vmem:[#allocation6 + $0xf68] sm:$0xff]  ;;  %v2613_v39 = vld [vmem:[#allocation6 + $0xf78] sm:$0xff] }
 0x545   :  { %3967 = vmatprep.subr.bf16.mxu1 %v2523_v6  ;;  %4295 = vmatprep.subr.bf16.mxu0 %v2525_v14  ;;  %v2610_v6 = vld [vmem:[#allocation6 + $0xf60] sm:$0xff]  ;;  %v2612_v14 = vld [vmem:[#allocation6 + $0xf70] sm:$0xff] }
 0x548   :  { %3968 = vmatpush1.bf16.msra.mxu1 %v2522_v19  ;;  %4296 = vmatpush1.bf16.msra.mxu0 %v2524_v13  ;;  %v2619_v19 = vld [vmem:[#allocation6 + $0xfa8] sm:$0xff]  ;;  %v2621_v13 = vld [vmem:[#allocation6 + $0xfb8] sm:$0xff] }
 0x549   :  { %3969 = vmatprep.subr.bf16.mxu1 %v2531_v21  ;;  %4297 = vmatprep.subr.bf16.mxu0 %v2533_v51  ;;  %v2618_v21 = vld [vmem:[#allocation6 + $0xfa0] sm:$0xff]  ;;  %v2620_v51 = vld [vmem:[#allocation6 + $0xfb0] sm:$0xff] }
 0x54c   :  { %3970 = vmatpush1.bf16.msra.mxu1 %v2530_v15  ;;  %4298 = vmatpush1.bf16.msra.mxu0 %v2532_v31  ;;  %v2627_v15 = vld [vmem:[#allocation6 + $0xfe8] sm:$0xff]  ;;  %v2629_v31 = vld [vmem:[#allocation6 + $0xff8] sm:$0xff] }
 0x54d   :  { %3971 = vmatprep.subr.bf16.mxu1 %v2539_v16  ;;  %4299 = vmatprep.subr.bf16.mxu0 %v2541_v17  ;;  %v2626_v16 = vld [vmem:[#allocation6 + $0xfe0] sm:$0xff]  ;;  %v2628_v17 = vld [vmem:[#allocation6 + $0xff0] sm:$0xff] }
 0x550   :  { %3972 = vmatpush1.bf16.msra.mxu1 %v2538_v40  ;;  %4300 = vmatpush1.bf16.msra.mxu0 %v2540_v20  ;;  %v2635_v40 = vld [vmem:[#allocation6 + $0x1028] sm:$0xff]  ;;  %v2637_v20 = vld [vmem:[#allocation6 + $0x1038] sm:$0xff] }
 0x551   :  { %3973 = vmatprep.subr.bf16.mxu1 %v2547_v47  ;;  %4301 = vmatprep.subr.bf16.mxu0 %v2549_v33  ;;  %v2634_v47 = vld [vmem:[#allocation6 + $0x1020] sm:$0xff]  ;;  %v2636_v33 = vld [vmem:[#allocation6 + $0x1030] sm:$0xff] }
 0x552   :  { %v7899_v29 = vpop.f32.mrb[0].mxu1  ;;  %v7901_v35 = vpop.f32.mrb[4].mxu0 }
 0x553   :  { %v7903_v37 = vpop.f32.mrb[1].mxu1  ;;  %v7905_v9 = vpop.f32.mrb[5].mxu0 }
 0x554   :  { %v3509_v42 = vpop.f32.mrb[2].mxu1  ;;  %v3837_v12 = vpop.f32.mrb[6].mxu0  ;;  %3974 = vmatpush1.bf16.msra.mxu1 %v2546_v28  ;;  %4302 = vmatpush1.bf16.msra.mxu0 %v2548_v24  ;;  %v2643_v28 = vld [vmem:[#allocation6 + $0x1068] sm:$0xff]  ;;  %v2645_v24 = vld [vmem:[#allocation6 + $0x1078] sm:$0xff] }
 0x555   :  { %v3510_v52 = vpop.f32.mrb[3].mxu1  ;;  %v3838_v38 = vpop.f32.mrb[7].mxu0  ;;  %3975 = vmatprep.subr.bf16.mxu1 %v2555_v41  ;;  %4303 = vmatprep.subr.bf16.mxu0 %v2557_v43  ;;  %v2642_v41 = vld [vmem:[#allocation6 + $0x1060] sm:$0xff]  ;;  %v2644_v43 = vld [vmem:[#allocation6 + $0x1070] sm:$0xff]  ;;  %v2651_v42 = vld [vmem:[#allocation6 + $0x10a8] sm:$0xff] }
 0x556   :  { %v2653_v12 = vld [vmem:[#allocation6 + $0x10b8] sm:$0xff]  ;;  %v2650_v52 = vld [vmem:[#allocation6 + $0x10a0] sm:$0xff]  ;;  %v2652_v38 = vld [vmem:[#allocation6 + $0x10b0] sm:$0xff] }
 0x558   :  { %3976 = vmatpush1.bf16.msra.mxu1 %v2554_v46  ;;  %4304 = vmatpush1.bf16.msra.mxu0 %v2556_v26  ;;  %v2659_v46 = vld [vmem:[#allocation6 + $0x10e8] sm:$0xff]  ;;  %v2658_v26 = vld [vmem:[#allocation6 + $0x10e0] sm:$0xff] }
 0x559   :  { %3977 = vmatprep.subr.bf16.mxu1 %v2563_v44  ;;  %4305 = vmatprep.subr.bf16.mxu0 %v2565_v56  ;;  %v2660_v44 = vld [vmem:[#allocation6 + $0x10f0] sm:$0xff]  ;;  %v2667_v56 = vld [vmem:[#allocation6 + $0x1128] sm:$0xff] }
 0x55c   :  { %3978 = vmatpush1.bf16.msra.mxu1 %v2562_v54  ;;  %4306 = vmatpush1.bf16.msra.mxu0 %v2564_v55  ;;  %v2669_v54 = vld [vmem:[#allocation6 + $0x1138] sm:$0xff]  ;;  %v2668_v55 = vld [vmem:[#allocation6 + $0x1130] sm:$0xff] }
 0x55d   :  { %3979 = vmatprep.subr.bf16.mxu1 %v2571_v61  ;;  %4307 = vmatprep.subr.bf16.mxu0 %v2573_v11  ;;  %v2675_v61 = vld [vmem:[#allocation6 + $0x1168] sm:$0xff]  ;;  %v2677_v11 = vld [vmem:[#allocation6 + $0x1178] sm:$0xff] }
 0x560   :  { %3980 = vmatpush1.bf16.msra.mxu1 %v2570_v53  ;;  %4308 = vmatpush1.bf16.msra.mxu0 %v2572_v58  ;;  %v2674_v53 = vld [vmem:[#allocation6 + $0x1160] sm:$0xff]  ;;  %v2676_v58 = vld [vmem:[#allocation6 + $0x1170] sm:$0xff] }
 0x561   :  { %3981 = vmatprep.subr.bf16.mxu1 %v2579_v59  ;;  %4309 = vmatprep.subr.bf16.mxu0 %v2581_v22  ;;  %v2683_v59 = vld [vmem:[#allocation6 + $0x11a8] sm:$0xff]  ;;  %v2685_v22 = vld [vmem:[#allocation6 + $0x11b8] sm:$0xff] }
 0x564   :  { %3982 = vmatpush1.bf16.msra.mxu1 %v2578_v30  ;;  %4310 = vmatpush1.bf16.msra.mxu0 %v2580_v23  ;;  %v2682_v30 = vld [vmem:[#allocation6 + $0x11a0] sm:$0xff]  ;;  %v2684_v23 = vld [vmem:[#allocation6 + $0x11b0] sm:$0xff] }
 0x565   :  { %3983 = vmatprep.subr.bf16.mxu1 %v2587_v3  ;;  %4311 = vmatprep.subr.bf16.mxu0 %v2589_v27  ;;  %v2691_v3 = vld [vmem:[#allocation6 + $0x11e8] sm:$0xff]  ;;  %v2693_v27 = vld [vmem:[#allocation6 + $0x11f8] sm:$0xff] }
 0x568   :  { %3984 = vmatpush1.bf16.msra.mxu1 %v2586_v5  ;;  %4312 = vmatpush1.bf16.msra.mxu0 %v2588_v25  ;;  %v2690_v5 = vld [vmem:[#allocation6 + $0x11e0] sm:$0xff]  ;;  %v2692_v25 = vld [vmem:[#allocation6 + $0x11f0] sm:$0xff] }
 0x569   :  { %3985 = vmatprep.subr.bf16.mxu1 %v2595_v7  ;;  %4313 = vmatprep.subr.bf16.mxu0 %v2597_v57  ;;  %v2699_v7 = vld [vmem:[#allocation6 + $0x1228] sm:$0xff]  ;;  %v2701_v57 = vld [vmem:[#allocation6 + $0x1238] sm:$0xff] }
 0x56c   :  { %3986 = vmatpush1.bf16.msra.mxu1 %v2594_v60  ;;  %4314 = vmatpush1.bf16.msra.mxu0 %v2596_v36  ;;  %v2698_v60 = vld [vmem:[#allocation6 + $0x1220] sm:$0xff]  ;;  %v2700_v36 = vld [vmem:[#allocation6 + $0x1230] sm:$0xff] }
 0x56d   :  { %3987 = vmatprep.subr.bf16.mxu1 %v2603_v63  ;;  %4315 = vmatprep.subr.bf16.mxu0 %v2605_v0  ;;  %v2707_v63 = vld [vmem:[#allocation6 + $0x1268] sm:$0xff]  ;;  %v2709_v0 = vld [vmem:[#allocation6 + $0x1278] sm:$0xff] }
 0x570   :  { %3988 = vmatpush1.bf16.msra.mxu1 %v2602_v48  ;;  %4316 = vmatpush1.bf16.msra.mxu0 %v2604_v1  ;;  %v2706_v48 = vld [vmem:[#allocation6 + $0x1260] sm:$0xff]  ;;  %v2708_v1 = vld [vmem:[#allocation6 + $0x1270] sm:$0xff] }
 0x571   :  { %3989 = vmatprep.subr.bf16.mxu1 %v2611_v34  ;;  %4317 = vmatprep.subr.bf16.mxu0 %v2613_v39  ;;  %v2715_v34 = vld [vmem:[#allocation6 + $0x12a8] sm:$0xff]  ;;  %v2717_v39 = vld [vmem:[#allocation6 + $0x12b8] sm:$0xff] }
 0x574   :  { %3990 = vmatpush1.bf16.msra.mxu1 %v2610_v6  ;;  %4318 = vmatpush1.bf16.msra.mxu0 %v2612_v14  ;;  %v2714_v6 = vld [vmem:[#allocation6 + $0x12a0] sm:$0xff]  ;;  %v2716_v14 = vld [vmem:[#allocation6 + $0x12b0] sm:$0xff] }
 0x575   :  { %3991 = vmatprep.subr.bf16.mxu1 %v2619_v19  ;;  %4319 = vmatprep.subr.bf16.mxu0 %v2621_v13  ;;  %v2723_v19 = vld [vmem:[#allocation6 + $0x12e8] sm:$0xff]  ;;  %v2725_v13 = vld [vmem:[#allocation6 + $0x12f8] sm:$0xff] }
 0x578   :  { %3992 = vmatpush1.bf16.msra.mxu1 %v2618_v21  ;;  %4320 = vmatpush1.bf16.msra.mxu0 %v2620_v51  ;;  %v2722_v21 = vld [vmem:[#allocation6 + $0x12e0] sm:$0xff]  ;;  %v2724_v51 = vld [vmem:[#allocation6 + $0x12f0] sm:$0xff] }
 0x579   :  { %3993 = vmatprep.subr.bf16.mxu1 %v2627_v15  ;;  %4321 = vmatprep.subr.bf16.mxu0 %v2629_v31  ;;  %v2731_v15 = vld [vmem:[#allocation6 + $0x1328] sm:$0xff]  ;;  %v2733_v31 = vld [vmem:[#allocation6 + $0x1338] sm:$0xff] }
 0x57c   :  { %3994 = vmatpush1.bf16.msra.mxu1 %v2626_v16  ;;  %4322 = vmatpush1.bf16.msra.mxu0 %v2628_v17  ;;  %v2730_v16 = vld [vmem:[#allocation6 + $0x1320] sm:$0xff]  ;;  %v2732_v17 = vld [vmem:[#allocation6 + $0x1330] sm:$0xff] }
 0x57d   :  { %4004 = vmatprep.subr.bf16.mxu1 %v2635_v40  ;;  %4332 = vmatprep.subr.bf16.mxu0 %v2637_v20  ;;  %v2739_v40 = vld [vmem:[#allocation6 + $0x1368] sm:$0xff]  ;;  %v2741_v20 = vld [vmem:[#allocation6 + $0x1378] sm:$0xff] }
 0x57f   :  { %3996 = vmatmul.mubr.bf16.vlgmr.msra.gmra.mrb[4].mxu1 %v7819_v45  ;;  %4324 = vmatmul.mubr.bf16.vlgmr.msra.gmra.mrb[8].mxu0 %v7819_v45  ;;  %v2661_v45 = vld [vmem:[#allocation6 + $0x10f8] sm:$0xff] }
 0x580   :  { %4005 = vmatpush1.bf16.msra.mxu1 %v2634_v47  ;;  %4333 = vmatpush1.bf16.msra.mxu0 %v2636_v33  ;;  %v2738_v47 = vld [vmem:[#allocation6 + $0x1360] sm:$0xff]  ;;  %v2740_v33 = vld [vmem:[#allocation6 + $0x1370] sm:$0xff] }
 0x581   :  { %4006 = vmatprep.subr.bf16.mxu1 %v2643_v28  ;;  %4334 = vmatprep.subr.bf16.mxu0 %v2645_v24  ;;  %v2747_v28 = vld [vmem:[#allocation6 + $0x13a8] sm:$0xff]  ;;  %v2749_v24 = vld [vmem:[#allocation6 + $0x13b8] sm:$0xff] }
 0x582   :  { %4036 = vmatprep.mubr.bf16.mxu1 %v7821_v62  ;;  %4364 = vmatprep.mubr.bf16.mxu0 %v7821_v62  ;;  %v2666_v62 = vld [vmem:[#allocation6 + $0x1120] sm:$0xff] }
 0x584   :  { %4007 = vmatpush1.bf16.msra.mxu1 %v2642_v41  ;;  %4335 = vmatpush1.bf16.msra.mxu0 %v2644_v43  ;;  %v2746_v41 = vld [vmem:[#allocation6 + $0x13a0] sm:$0xff]  ;;  %v2748_v43 = vld [vmem:[#allocation6 + $0x13b0] sm:$0xff] }
 0x585   :  { %4008 = vmatprep.subr.bf16.mxu1 %v2651_v42  ;;  %4336 = vmatprep.subr.bf16.mxu0 %v2653_v12  ;;  %v2755_v42 = vld [vmem:[#allocation6 + $0x13e8] sm:$0xff]  ;;  %v2757_v12 = vld [vmem:[#allocation6 + $0x13f8] sm:$0xff] }
 0x588   :  { %4009 = vmatpush1.bf16.msra.mxu1 %v2650_v52  ;;  %4337 = vmatpush1.bf16.msra.mxu0 %v2652_v38  ;;  %v2754_v52 = vld [vmem:[#allocation6 + $0x13e0] sm:$0xff]  ;;  %v2756_v38 = vld [vmem:[#allocation6 + $0x13f0] sm:$0xff] }
 0x589   :  { %4010 = vmatprep.subr.bf16.mxu1 %v2659_v46  ;;  %4338 = vmatprep.subr.bf16.mxu0 %v2661_v45  ;;  %v2763_v46 = vld [vmem:[#allocation6 + $0x1428] sm:$0xff]  ;;  %v2765_v45 = vld [vmem:[#allocation6 + $0x1438] sm:$0xff] }
 0x58c   :  { %4011 = vmatpush1.bf16.msra.mxu1 %v2658_v26  ;;  %4339 = vmatpush1.bf16.msra.mxu0 %v2660_v44  ;;  %v2762_v26 = vld [vmem:[#allocation6 + $0x1420] sm:$0xff]  ;;  %v2764_v44 = vld [vmem:[#allocation6 + $0x1430] sm:$0xff] }
 0x58d   :  { %4012 = vmatprep.subr.bf16.mxu1 %v2667_v56  ;;  %4340 = vmatprep.subr.bf16.mxu0 %v2669_v54  ;;  %v2771_v56 = vld [vmem:[#allocation6 + $0x1468] sm:$0xff]  ;;  %v2773_v54 = vld [vmem:[#allocation6 + $0x1478] sm:$0xff] }
 0x590   :  { %4013 = vmatpush1.bf16.msra.mxu1 %v2666_v62  ;;  %4341 = vmatpush1.bf16.msra.mxu0 %v2668_v55  ;;  %v2770_v62 = vld [vmem:[#allocation6 + $0x1460] sm:$0xff]  ;;  %v2772_v55 = vld [vmem:[#allocation6 + $0x1470] sm:$0xff] }
 0x591   :  { %4014 = vmatprep.subr.bf16.mxu1 %v2675_v61  ;;  %4342 = vmatprep.subr.bf16.mxu0 %v2677_v11  ;;  %v2779_v61 = vld [vmem:[#allocation6 + $0x14a8] sm:$0xff]  ;;  %v2781_v11 = vld [vmem:[#allocation6 + $0x14b8] sm:$0xff] }
 0x594   :  { %4015 = vmatpush1.bf16.msra.mxu1 %v2674_v53  ;;  %4343 = vmatpush1.bf16.msra.mxu0 %v2676_v58  ;;  %v2778_v53 = vld [vmem:[#allocation6 + $0x14a0] sm:$0xff]  ;;  %v2780_v58 = vld [vmem:[#allocation6 + $0x14b0] sm:$0xff] }
 0x595   :  { %4016 = vmatprep.subr.bf16.mxu1 %v2683_v59  ;;  %4344 = vmatprep.subr.bf16.mxu0 %v2685_v22  ;;  %v2787_v59 = vld [vmem:[#allocation6 + $0x14e8] sm:$0xff]  ;;  %v2786_v22 = vld [vmem:[#allocation6 + $0x14e0] sm:$0xff] }
 0x598   :  { %4017 = vmatpush1.bf16.msra.mxu1 %v2682_v30  ;;  %4345 = vmatpush1.bf16.msra.mxu0 %v2684_v23  ;;  %v2788_v30 = vld [vmem:[#allocation6 + $0x14f0] sm:$0xff]  ;;  %v2795_v23 = vld [vmem:[#allocation6 + $0x1528] sm:$0xff] }
 0x599   :  { %4018 = vmatprep.subr.bf16.mxu1 %v2691_v3  ;;  %4346 = vmatprep.subr.bf16.mxu0 %v2693_v27  ;;  %v2797_v3 = vld [vmem:[#allocation6 + $0x1538] sm:$0xff]  ;;  %v2796_v27 = vld [vmem:[#allocation6 + $0x1530] sm:$0xff] }
 0x59c   :  { %4019 = vmatpush1.bf16.msra.mxu1 %v2690_v5  ;;  %4347 = vmatpush1.bf16.msra.mxu0 %v2692_v25  ;;  %v2803_v5 = vld [vmem:[#allocation6 + $0x1568] sm:$0xff]  ;;  %v2805_v25 = vld [vmem:[#allocation6 + $0x1578] sm:$0xff] }
 0x59d   :  { %4020 = vmatprep.subr.bf16.mxu1 %v2699_v7  ;;  %4348 = vmatprep.subr.bf16.mxu0 %v2701_v57  ;;  %v2802_v7 = vld [vmem:[#allocation6 + $0x1560] sm:$0xff]  ;;  %v2804_v57 = vld [vmem:[#allocation6 + $0x1570] sm:$0xff] }
 0x5a0   :  { %4021 = vmatpush1.bf16.msra.mxu1 %v2698_v60  ;;  %4349 = vmatpush1.bf16.msra.mxu0 %v2700_v36  ;;  %v2811_v60 = vld [vmem:[#allocation6 + $0x15a8] sm:$0xff]  ;;  %v2813_v36 = vld [vmem:[#allocation6 + $0x15b8] sm:$0xff] }
 0x5a1   :  { %4022 = vmatprep.subr.bf16.mxu1 %v2707_v63  ;;  %4350 = vmatprep.subr.bf16.mxu0 %v2709_v0  ;;  %v2810_v63 = vld [vmem:[#allocation6 + $0x15a0] sm:$0xff]  ;;  %v2812_v0 = vld [vmem:[#allocation6 + $0x15b0] sm:$0xff] }
 0x5a4   :  { %4023 = vmatpush1.bf16.msra.mxu1 %v2706_v48  ;;  %4351 = vmatpush1.bf16.msra.mxu0 %v2708_v1  ;;  %v2819_v48 = vld [vmem:[#allocation6 + $0x15e8] sm:$0xff]  ;;  %v2821_v1 = vld [vmem:[#allocation6 + $0x15f8] sm:$0xff] }
 0x5a5   :  { %4024 = vmatprep.subr.bf16.mxu1 %v2715_v34  ;;  %4352 = vmatprep.subr.bf16.mxu0 %v2717_v39  ;;  %v2818_v34 = vld [vmem:[#allocation6 + $0x15e0] sm:$0xff]  ;;  %v2820_v39 = vld [vmem:[#allocation6 + $0x15f0] sm:$0xff] }
 0x5a8   :  { %4025 = vmatpush1.bf16.msra.mxu1 %v2714_v6  ;;  %4353 = vmatpush1.bf16.msra.mxu0 %v2716_v14  ;;  %v2827_v6 = vld [vmem:[#allocation6 + $0x1628] sm:$0xff]  ;;  %v2829_v14 = vld [vmem:[#allocation6 + $0x1638] sm:$0xff] }
 0x5a9   :  { %4026 = vmatprep.subr.bf16.mxu1 %v2723_v19  ;;  %4354 = vmatprep.subr.bf16.mxu0 %v2725_v13  ;;  %v2826_v19 = vld [vmem:[#allocation6 + $0x1620] sm:$0xff]  ;;  %v2828_v13 = vld [vmem:[#allocation6 + $0x1630] sm:$0xff] }
 0x5ac   :  { %4027 = vmatpush1.bf16.msra.mxu1 %v2722_v21  ;;  %4355 = vmatpush1.bf16.msra.mxu0 %v2724_v51  ;;  %v2835_v21 = vld [vmem:[#allocation6 + $0x1668] sm:$0xff]  ;;  %v2837_v51 = vld [vmem:[#allocation6 + $0x1678] sm:$0xff] }
 0x5ad   :  { %4028 = vmatprep.subr.bf16.mxu1 %v2731_v15  ;;  %4356 = vmatprep.subr.bf16.mxu0 %v2733_v31  ;;  %v2834_v15 = vld [vmem:[#allocation6 + $0x1660] sm:$0xff]  ;;  %v2836_v31 = vld [vmem:[#allocation6 + $0x1670] sm:$0xff] }
 0x5b0   :  { %4029 = vmatpush1.bf16.msra.mxu1 %v2730_v16  ;;  %4357 = vmatpush1.bf16.msra.mxu0 %v2732_v17  ;;  %v2843_v16 = vld [vmem:[#allocation6 + $0x16a8] sm:$0xff]  ;;  %v2845_v17 = vld [vmem:[#allocation6 + $0x16b8] sm:$0xff] }
 0x5b1   :  { %4030 = vmatprep.subr.bf16.mxu1 %v2739_v40  ;;  %4358 = vmatprep.subr.bf16.mxu0 %v2741_v20  ;;  %v2842_v40 = vld [vmem:[#allocation6 + $0x16a0] sm:$0xff]  ;;  %v2844_v20 = vld [vmem:[#allocation6 + $0x16b0] sm:$0xff] }
 0x5b4   :  { %4031 = vmatpush1.bf16.msra.mxu1 %v2738_v47  ;;  %4359 = vmatpush1.bf16.msra.mxu0 %v2740_v33  ;;  %v2851_v47 = vld [vmem:[#allocation6 + $0x16e8] sm:$0xff]  ;;  %v2853_v33 = vld [vmem:[#allocation6 + $0x16f8] sm:$0xff] }
 0x5b5   :  { %4032 = vmatprep.subr.bf16.mxu1 %v2747_v28  ;;  %4360 = vmatprep.subr.bf16.mxu0 %v2749_v24  ;;  %v2850_v28 = vld [vmem:[#allocation6 + $0x16e0] sm:$0xff]  ;;  %v2852_v24 = vld [vmem:[#allocation6 + $0x16f0] sm:$0xff] }
 0x5b8   :  { %4033 = vmatpush1.bf16.msra.mxu1 %v2746_v41  ;;  %4361 = vmatpush1.bf16.msra.mxu0 %v2748_v43  ;;  %v2859_v41 = vld [vmem:[#allocation6 + $0x1728] sm:$0xff]  ;;  %v2861_v43 = vld [vmem:[#allocation6 + $0x1738] sm:$0xff] }
 0x5b9   :  { %4034 = vmatprep.subr.bf16.mxu1 %v2755_v42  ;;  %4362 = vmatprep.subr.bf16.mxu0 %v2757_v12  ;;  %v2858_v42 = vld [vmem:[#allocation6 + $0x1720] sm:$0xff]  ;;  %v2860_v12 = vld [vmem:[#allocation6 + $0x1730] sm:$0xff] }
 0x5bc   :  { %4035 = vmatpush1.bf16.msra.mxu1 %v2754_v52  ;;  %4363 = vmatpush1.bf16.msra.mxu0 %v2756_v38  ;;  %v2867_v52 = vld [vmem:[#allocation6 + $0x1768] sm:$0xff]  ;;  %v2869_v38 = vld [vmem:[#allocation6 + $0x1778] sm:$0xff] }
 0x5bd   :  { %4045 = vmatprep.subr.bf16.mxu1 %v2763_v46  ;;  %4373 = vmatprep.subr.bf16.mxu0 %v2765_v45  ;;  %v2866_v46 = vld [vmem:[#allocation6 + $0x1760] sm:$0xff]  ;;  %v2868_v45 = vld [vmem:[#allocation6 + $0x1770] sm:$0xff] }
 0x5bf   :  { %4037 = vmatmul.mubr.bf16.vlgmr.msra.gmra.mrb[4].mxu1 %v7836_v8  ;;  %4365 = vmatmul.mubr.bf16.vlgmr.msra.gmra.mrb[8].mxu0 %v7836_v8  ;;  %v2789_v8 = vld [vmem:[#allocation6 + $0x14f8] sm:$0xff] }
 0x5c0   :  { %4046 = vmatpush1.bf16.msra.mxu1 %v2762_v26  ;;  %4374 = vmatpush1.bf16.msra.mxu0 %v2764_v44  ;;  %v2875_v26 = vld [vmem:[#allocation6 + $0x17a8] sm:$0xff]  ;;  %v2877_v44 = vld [vmem:[#allocation6 + $0x17b8] sm:$0xff] }
 0x5c1   :  { %4047 = vmatprep.subr.bf16.mxu1 %v2771_v56  ;;  %4375 = vmatprep.subr.bf16.mxu0 %v2773_v54  ;;  %v2874_v56 = vld [vmem:[#allocation6 + $0x17a0] sm:$0xff]  ;;  %v2876_v54 = vld [vmem:[#allocation6 + $0x17b0] sm:$0xff] }
 0x5c2   :  { %4077 = vmatprep.mubr.bf16.mxu1 %v7838_v2  ;;  %4405 = vmatprep.mubr.bf16.mxu0 %v7838_v2  ;;  %v2794_v2 = vld [vmem:[#allocation6 + $0x1520] sm:$0xff] }
 0x5c4   :  { %4048 = vmatpush1.bf16.msra.mxu1 %v2770_v62  ;;  %4376 = vmatpush1.bf16.msra.mxu0 %v2772_v55  ;;  %v2883_v62 = vld [vmem:[#allocation6 + $0x17e8] sm:$0xff]  ;;  %v2885_v55 = vld [vmem:[#allocation6 + $0x17f8] sm:$0xff] }
 0x5c5   :  { %4049 = vmatprep.subr.bf16.mxu1 %v2779_v61  ;;  %4377 = vmatprep.subr.bf16.mxu0 %v2781_v11  ;;  %v2882_v61 = vld [vmem:[#allocation6 + $0x17e0] sm:$0xff]  ;;  %v2884_v11 = vld [vmem:[#allocation6 + $0x17f0] sm:$0xff] }
 0x5c8   :  { %4050 = vmatpush1.bf16.msra.mxu1 %v2778_v53  ;;  %4378 = vmatpush1.bf16.msra.mxu0 %v2780_v58  ;;  %v2891_v53 = vld [vmem:[#allocation6 + $0x1828] sm:$0xff]  ;;  %v2893_v58 = vld [vmem:[#allocation6 + $0x1838] sm:$0xff] }
 0x5c9   :  { %4051 = vmatprep.subr.bf16.mxu1 %v2787_v59  ;;  %4379 = vmatprep.subr.bf16.mxu0 %v2789_v8  ;;  %v2890_v59 = vld [vmem:[#allocation6 + $0x1820] sm:$0xff]  ;;  %v2892_v8 = vld [vmem:[#allocation6 + $0x1830] sm:$0xff] }
 0x5cc   :  { %4052 = vmatpush1.bf16.msra.mxu1 %v2786_v22  ;;  %4380 = vmatpush1.bf16.msra.mxu0 %v2788_v30  ;;  %v2899_v22 = vld [vmem:[#allocation6 + $0x1868] sm:$0xff]  ;;  %v2901_v30 = vld [vmem:[#allocation6 + $0x1878] sm:$0xff] }
 0x5cd   :  { %4053 = vmatprep.subr.bf16.mxu1 %v2795_v23  ;;  %4381 = vmatprep.subr.bf16.mxu0 %v2797_v3  ;;  %v2898_v23 = vld [vmem:[#allocation6 + $0x1860] sm:$0xff]  ;;  %v2900_v3 = vld [vmem:[#allocation6 + $0x1870] sm:$0xff] }
 0x5d0   :  { %4054 = vmatpush1.bf16.msra.mxu1 %v2794_v2  ;;  %4382 = vmatpush1.bf16.msra.mxu0 %v2796_v27  ;;  %v2907_v2 = vld [vmem:[#allocation6 + $0x18a8] sm:$0xff]  ;;  %v2909_v27 = vld [vmem:[#allocation6 + $0x18b8] sm:$0xff] }
 0x5d1   :  { %4055 = vmatprep.subr.bf16.mxu1 %v2803_v5  ;;  %4383 = vmatprep.subr.bf16.mxu0 %v2805_v25  ;;  %v2906_v5 = vld [vmem:[#allocation6 + $0x18a0] sm:$0xff]  ;;  %v2908_v25 = vld [vmem:[#allocation6 + $0x18b0] sm:$0xff] }
 0x5d4   :  { %4056 = vmatpush1.bf16.msra.mxu1 %v2802_v7  ;;  %4384 = vmatpush1.bf16.msra.mxu0 %v2804_v57  ;;  %v2915_v7 = vld [vmem:[#allocation6 + $0x18e8] sm:$0xff]  ;;  %v2914_v57 = vld [vmem:[#allocation6 + $0x18e0] sm:$0xff] }
 0x5d5   :  { %4057 = vmatprep.subr.bf16.mxu1 %v2811_v60  ;;  %4385 = vmatprep.subr.bf16.mxu0 %v2813_v36  ;;  %v2916_v60 = vld [vmem:[#allocation6 + $0x18f0] sm:$0xff]  ;;  %v2923_v36 = vld [vmem:[#allocation6 + $0x1928] sm:$0xff] }
 0x5d8   :  { %4058 = vmatpush1.bf16.msra.mxu1 %v2810_v63  ;;  %4386 = vmatpush1.bf16.msra.mxu0 %v2812_v0  ;;  %v2925_v63 = vld [vmem:[#allocation6 + $0x1938] sm:$0xff]  ;;  %v2924_v0 = vld [vmem:[#allocation6 + $0x1930] sm:$0xff] }
 0x5d9   :  { %4059 = vmatprep.subr.bf16.mxu1 %v2819_v48  ;;  %4387 = vmatprep.subr.bf16.mxu0 %v2821_v1  ;;  %v2931_v48 = vld [vmem:[#allocation6 + $0x1968] sm:$0xff]  ;;  %v2933_v1 = vld [vmem:[#allocation6 + $0x1978] sm:$0xff] }
 0x5dc   :  { %4060 = vmatpush1.bf16.msra.mxu1 %v2818_v34  ;;  %4388 = vmatpush1.bf16.msra.mxu0 %v2820_v39  ;;  %v2930_v34 = vld [vmem:[#allocation6 + $0x1960] sm:$0xff]  ;;  %v2932_v39 = vld [vmem:[#allocation6 + $0x1970] sm:$0xff] }
 0x5dd   :  { %4061 = vmatprep.subr.bf16.mxu1 %v2827_v6  ;;  %4389 = vmatprep.subr.bf16.mxu0 %v2829_v14  ;;  %v2939_v6 = vld [vmem:[#allocation6 + $0x19a8] sm:$0xff]  ;;  %v2941_v14 = vld [vmem:[#allocation6 + $0x19b8] sm:$0xff] }
 0x5e0   :  { %4062 = vmatpush1.bf16.msra.mxu1 %v2826_v19  ;;  %4390 = vmatpush1.bf16.msra.mxu0 %v2828_v13  ;;  %v2938_v19 = vld [vmem:[#allocation6 + $0x19a0] sm:$0xff]  ;;  %v2940_v13 = vld [vmem:[#allocation6 + $0x19b0] sm:$0xff] }
 0x5e1   :  { %4063 = vmatprep.subr.bf16.mxu1 %v2835_v21  ;;  %4391 = vmatprep.subr.bf16.mxu0 %v2837_v51  ;;  %v2947_v21 = vld [vmem:[#allocation6 + $0x19e8] sm:$0xff]  ;;  %v2949_v51 = vld [vmem:[#allocation6 + $0x19f8] sm:$0xff] }
 0x5e4   :  { %4064 = vmatpush1.bf16.msra.mxu1 %v2834_v15  ;;  %4392 = vmatpush1.bf16.msra.mxu0 %v2836_v31  ;;  %v2946_v15 = vld [vmem:[#allocation6 + $0x19e0] sm:$0xff]  ;;  %v2948_v31 = vld [vmem:[#allocation6 + $0x19f0] sm:$0xff] }
 0x5e5   :  { %4065 = vmatprep.subr.bf16.mxu1 %v2843_v16  ;;  %4393 = vmatprep.subr.bf16.mxu0 %v2845_v17  ;;  %v2955_v16 = vld [vmem:[#allocation6 + $0x1a28] sm:$0xff]  ;;  %v2957_v17 = vld [vmem:[#allocation6 + $0x1a38] sm:$0xff] }
 0x5e8   :  { %4066 = vmatpush1.bf16.msra.mxu1 %v2842_v40  ;;  %4394 = vmatpush1.bf16.msra.mxu0 %v2844_v20  ;;  %v2954_v40 = vld [vmem:[#allocation6 + $0x1a20] sm:$0xff]  ;;  %v2956_v20 = vld [vmem:[#allocation6 + $0x1a30] sm:$0xff] }
 0x5e9   :  { %4067 = vmatprep.subr.bf16.mxu1 %v2851_v47  ;;  %4395 = vmatprep.subr.bf16.mxu0 %v2853_v33  ;;  %v2963_v47 = vld [vmem:[#allocation6 + $0x1a68] sm:$0xff]  ;;  %v2965_v33 = vld [vmem:[#allocation6 + $0x1a78] sm:$0xff] }
 0x5ec   :  { %4068 = vmatpush1.bf16.msra.mxu1 %v2850_v28  ;;  %4396 = vmatpush1.bf16.msra.mxu0 %v2852_v24  ;;  %v2962_v28 = vld [vmem:[#allocation6 + $0x1a60] sm:$0xff]  ;;  %v2964_v24 = vld [vmem:[#allocation6 + $0x1a70] sm:$0xff] }
 0x5ed   :  { %4069 = vmatprep.subr.bf16.mxu1 %v2859_v41  ;;  %4397 = vmatprep.subr.bf16.mxu0 %v2861_v43  ;;  %v2971_v41 = vld [vmem:[#allocation6 + $0x1aa8] sm:$0xff]  ;;  %v2973_v43 = vld [vmem:[#allocation6 + $0x1ab8] sm:$0xff] }
 0x5f0   :  { %4070 = vmatpush1.bf16.msra.mxu1 %v2858_v42  ;;  %4398 = vmatpush1.bf16.msra.mxu0 %v2860_v12  ;;  %v2970_v42 = vld [vmem:[#allocation6 + $0x1aa0] sm:$0xff]  ;;  %v2972_v12 = vld [vmem:[#allocation6 + $0x1ab0] sm:$0xff] }
 0x5f1   :  { %4071 = vmatprep.subr.bf16.mxu1 %v2867_v52  ;;  %4399 = vmatprep.subr.bf16.mxu0 %v2869_v38  ;;  %v2979_v52 = vld [vmem:[#allocation6 + $0x1ae8] sm:$0xff]  ;;  %v2981_v38 = vld [vmem:[#allocation6 + $0x1af8] sm:$0xff] }
 0x5f4   :  { %4072 = vmatpush1.bf16.msra.mxu1 %v2866_v46  ;;  %4400 = vmatpush1.bf16.msra.mxu0 %v2868_v45  ;;  %v2978_v46 = vld [vmem:[#allocation6 + $0x1ae0] sm:$0xff]  ;;  %v2980_v45 = vld [vmem:[#allocation6 + $0x1af0] sm:$0xff] }
 0x5f5   :  { %4073 = vmatprep.subr.bf16.mxu1 %v2875_v26  ;;  %4401 = vmatprep.subr.bf16.mxu0 %v2877_v44  ;;  %v2987_v26 = vld [vmem:[#allocation6 + $0x1b28] sm:$0xff]  ;;  %v2989_v44 = vld [vmem:[#allocation6 + $0x1b38] sm:$0xff] }
 0x5f8   :  { %4074 = vmatpush1.bf16.msra.mxu1 %v2874_v56  ;;  %4402 = vmatpush1.bf16.msra.mxu0 %v2876_v54  ;;  %v2986_v56 = vld [vmem:[#allocation6 + $0x1b20] sm:$0xff]  ;;  %v2988_v54 = vld [vmem:[#allocation6 + $0x1b30] sm:$0xff] }
 0x5f9   :  { %4075 = vmatprep.subr.bf16.mxu1 %v2883_v62  ;;  %4403 = vmatprep.subr.bf16.mxu0 %v2885_v55  ;;  %v2995_v62 = vld [vmem:[#allocation6 + $0x1b68] sm:$0xff]  ;;  %v2997_v55 = vld [vmem:[#allocation6 + $0x1b78] sm:$0xff] }
 0x5fc   :  { %4076 = vmatpush1.bf16.msra.mxu1 %v2882_v61  ;;  %4404 = vmatpush1.bf16.msra.mxu0 %v2884_v11  ;;  %v2994_v61 = vld [vmem:[#allocation6 + $0x1b60] sm:$0xff]  ;;  %v2996_v11 = vld [vmem:[#allocation6 + $0x1b70] sm:$0xff] }
 0x5fd   :  { %4086 = vmatprep.subr.bf16.mxu1 %v2891_v53  ;;  %4414 = vmatprep.subr.bf16.mxu0 %v2893_v58  ;;  %v3003_v53 = vld [vmem:[#allocation6 + $0x1ba8] sm:$0xff]  ;;  %v3005_v58 = vld [vmem:[#allocation6 + $0x1bb8] sm:$0xff] }
 0x5ff   :  { %4078 = vmatmul.mubr.bf16.vlgmr.msra.gmra.mrb[4].mxu1 %v7854_v18  ;;  %4406 = vmatmul.mubr.bf16.vlgmr.msra.gmra.mrb[8].mxu0 %v7854_v18  ;;  %v2917_v18 = vld [vmem:[#allocation6 + $0x18f8] sm:$0xff] }
 0x600   :  { %4087 = vmatpush1.bf16.msra.mxu1 %v2890_v59  ;;  %4415 = vmatpush1.bf16.msra.mxu0 %v2892_v8  ;;  %v3002_v59 = vld [vmem:[#allocation6 + $0x1ba0] sm:$0xff]  ;;  %v3004_v8 = vld [vmem:[#allocation6 + $0x1bb0] sm:$0xff] }
 0x601   :  { %4088 = vmatprep.subr.bf16.mxu1 %v2899_v22  ;;  %4416 = vmatprep.subr.bf16.mxu0 %v2901_v30  ;;  %v3011_v22 = vld [vmem:[#allocation6 + $0x1be8] sm:$0xff]  ;;  %v3013_v30 = vld [vmem:[#allocation6 + $0x1bf8] sm:$0xff] }
 0x602   :  { %4118 = vmatprep.mubr.bf16.mxu1 %v7856_v50  ;;  %4446 = vmatprep.mubr.bf16.mxu0 %v7856_v50  ;;  %v2922_v50 = vld [vmem:[#allocation6 + $0x1920] sm:$0xff] }
 0x604   :  { %4089 = vmatpush1.bf16.msra.mxu1 %v2898_v23  ;;  %4417 = vmatpush1.bf16.msra.mxu0 %v2900_v3  ;;  %v3010_v23 = vld [vmem:[#allocation6 + $0x1be0] sm:$0xff]  ;;  %v3012_v3 = vld [vmem:[#allocation6 + $0x1bf0] sm:$0xff] }
 0x605   :  { %4090 = vmatprep.subr.bf16.mxu1 %v2907_v2  ;;  %4418 = vmatprep.subr.bf16.mxu0 %v2909_v27  ;;  %v3019_v2 = vld [vmem:[#allocation6 + $0x1c28] sm:$0xff]  ;;  %v3021_v27 = vld [vmem:[#allocation6 + $0x1c38] sm:$0xff] }
 0x608   :  { %4091 = vmatpush1.bf16.msra.mxu1 %v2906_v5  ;;  %4419 = vmatpush1.bf16.msra.mxu0 %v2908_v25  ;;  %v3018_v5 = vld [vmem:[#allocation6 + $0x1c20] sm:$0xff]  ;;  %v3020_v25 = vld [vmem:[#allocation6 + $0x1c30] sm:$0xff] }
 0x609   :  { %4092 = vmatprep.subr.bf16.mxu1 %v2915_v7  ;;  %4420 = vmatprep.subr.bf16.mxu0 %v2917_v18  ;;  %v3027_v7 = vld [vmem:[#allocation6 + $0x1c68] sm:$0xff]  ;;  %v3029_v18 = vld [vmem:[#allocation6 + $0x1c78] sm:$0xff] }
 0x60c   :  { %4093 = vmatpush1.bf16.msra.mxu1 %v2914_v57  ;;  %4421 = vmatpush1.bf16.msra.mxu0 %v2916_v60  ;;  %v3026_v57 = vld [vmem:[#allocation6 + $0x1c60] sm:$0xff]  ;;  %v3028_v60 = vld [vmem:[#allocation6 + $0x1c70] sm:$0xff] }
 0x60d   :  { %4094 = vmatprep.subr.bf16.mxu1 %v2923_v36  ;;  %4422 = vmatprep.subr.bf16.mxu0 %v2925_v63  ;;  %v3035_v36 = vld [vmem:[#allocation6 + $0x1ca8] sm:$0xff]  ;;  %v3037_v63 = vld [vmem:[#allocation6 + $0x1cb8] sm:$0xff] }
 0x610   :  { %4095 = vmatpush1.bf16.msra.mxu1 %v2922_v50  ;;  %4423 = vmatpush1.bf16.msra.mxu0 %v2924_v0  ;;  %v3034_v50 = vld [vmem:[#allocation6 + $0x1ca0] sm:$0xff]  ;;  %v3036_v0 = vld [vmem:[#allocation6 + $0x1cb0] sm:$0xff] }
 0x611   :  { %4096 = vmatprep.subr.bf16.mxu1 %v2931_v48  ;;  %4424 = vmatprep.subr.bf16.mxu0 %v2933_v1  ;;  %v3043_v48 = vld [vmem:[#allocation6 + $0x1ce8] sm:$0xff]  ;;  %v3042_v1 = vld [vmem:[#allocation6 + $0x1ce0] sm:$0xff] }
 0x614   :  { %4097 = vmatpush1.bf16.msra.mxu1 %v2930_v34  ;;  %4425 = vmatpush1.bf16.msra.mxu0 %v2932_v39  ;;  %v3044_v34 = vld [vmem:[#allocation6 + $0x1cf0] sm:$0xff]  ;;  %v3051_v39 = vld [vmem:[#allocation6 + $0x1d28] sm:$0xff] }
 0x615   :  { %4098 = vmatprep.subr.bf16.mxu1 %v2939_v6  ;;  %4426 = vmatprep.subr.bf16.mxu0 %v2941_v14  ;;  %v3053_v6 = vld [vmem:[#allocation6 + $0x1d38] sm:$0xff]  ;;  %v3052_v14 = vld [vmem:[#allocation6 + $0x1d30] sm:$0xff] }
 0x618   :  { %4099 = vmatpush1.bf16.msra.mxu1 %v2938_v19  ;;  %4427 = vmatpush1.bf16.msra.mxu0 %v2940_v13  ;;  %v3059_v19 = vld [vmem:[#allocation6 + $0x1d68] sm:$0xff]  ;;  %v3061_v13 = vld [vmem:[#allocation6 + $0x1d78] sm:$0xff] }
 0x619   :  { %4100 = vmatprep.subr.bf16.mxu1 %v2947_v21  ;;  %4428 = vmatprep.subr.bf16.mxu0 %v2949_v51  ;;  %v3058_v21 = vld [vmem:[#allocation6 + $0x1d60] sm:$0xff]  ;;  %v3060_v51 = vld [vmem:[#allocation6 + $0x1d70] sm:$0xff] }
 0x61c   :  { %4101 = vmatpush1.bf16.msra.mxu1 %v2946_v15  ;;  %4429 = vmatpush1.bf16.msra.mxu0 %v2948_v31  ;;  %v3067_v15 = vld [vmem:[#allocation6 + $0x1da8] sm:$0xff]  ;;  %v3069_v31 = vld [vmem:[#allocation6 + $0x1db8] sm:$0xff] }
 0x61d   :  { %4102 = vmatprep.subr.bf16.mxu1 %v2955_v16  ;;  %4430 = vmatprep.subr.bf16.mxu0 %v2957_v17  ;;  %v3066_v16 = vld [vmem:[#allocation6 + $0x1da0] sm:$0xff]  ;;  %v3068_v17 = vld [vmem:[#allocation6 + $0x1db0] sm:$0xff] }
 0x620   :  { %4103 = vmatpush1.bf16.msra.mxu1 %v2954_v40  ;;  %4431 = vmatpush1.bf16.msra.mxu0 %v2956_v20  ;;  %v3075_v40 = vld [vmem:[#allocation6 + $0x1de8] sm:$0xff]  ;;  %v3077_v20 = vld [vmem:[#allocation6 + $0x1df8] sm:$0xff] }
 0x621   :  { %4104 = vmatprep.subr.bf16.mxu1 %v2963_v47  ;;  %4432 = vmatprep.subr.bf16.mxu0 %v2965_v33  ;;  %v3074_v47 = vld [vmem:[#allocation6 + $0x1de0] sm:$0xff]  ;;  %v3076_v33 = vld [vmem:[#allocation6 + $0x1df0] sm:$0xff] }
 0x624   :  { %4105 = vmatpush1.bf16.msra.mxu1 %v2962_v28  ;;  %4433 = vmatpush1.bf16.msra.mxu0 %v2964_v24  ;;  %v3083_v28 = vld [vmem:[#allocation6 + $0x1e28] sm:$0xff]  ;;  %v3085_v24 = vld [vmem:[#allocation6 + $0x1e38] sm:$0xff] }
 0x625   :  { %4106 = vmatprep.subr.bf16.mxu1 %v2971_v41  ;;  %4434 = vmatprep.subr.bf16.mxu0 %v2973_v43  ;;  %v3082_v41 = vld [vmem:[#allocation6 + $0x1e20] sm:$0xff]  ;;  %v3084_v43 = vld [vmem:[#allocation6 + $0x1e30] sm:$0xff] }
 0x628   :  { %4107 = vmatpush1.bf16.msra.mxu1 %v2970_v42  ;;  %4435 = vmatpush1.bf16.msra.mxu0 %v2972_v12  ;;  %v3091_v42 = vld [vmem:[#allocation6 + $0x1e68] sm:$0xff]  ;;  %v3093_v12 = vld [vmem:[#allocation6 + $0x1e78] sm:$0xff] }
 0x629   :  { %4108 = vmatprep.subr.bf16.mxu1 %v2979_v52  ;;  %4436 = vmatprep.subr.bf16.mxu0 %v2981_v38  ;;  %v3090_v52 = vld [vmem:[#allocation6 + $0x1e60] sm:$0xff]  ;;  %v3092_v38 = vld [vmem:[#allocation6 + $0x1e70] sm:$0xff] }
 0x62c   :  { %4109 = vmatpush1.bf16.msra.mxu1 %v2978_v46  ;;  %4437 = vmatpush1.bf16.msra.mxu0 %v2980_v45  ;;  %v3099_v46 = vld [vmem:[#allocation6 + $0x1ea8] sm:$0xff]  ;;  %v3101_v45 = vld [vmem:[#allocation6 + $0x1eb8] sm:$0xff] }
 0x62d   :  { %4110 = vmatprep.subr.bf16.mxu1 %v2987_v26  ;;  %4438 = vmatprep.subr.bf16.mxu0 %v2989_v44  ;;  %v3098_v26 = vld [vmem:[#allocation6 + $0x1ea0] sm:$0xff]  ;;  %v3100_v44 = vld [vmem:[#allocation6 + $0x1eb0] sm:$0xff] }
 0x630   :  { %4111 = vmatpush1.bf16.msra.mxu1 %v2986_v56  ;;  %4439 = vmatpush1.bf16.msra.mxu0 %v2988_v54  ;;  %v3107_v56 = vld [vmem:[#allocation6 + $0x1ee8] sm:$0xff]  ;;  %v3109_v54 = vld [vmem:[#allocation6 + $0x1ef8] sm:$0xff] }
 0x631   :  { %4112 = vmatprep.subr.bf16.mxu1 %v2995_v62  ;;  %4440 = vmatprep.subr.bf16.mxu0 %v2997_v55  ;;  %v3106_v62 = vld [vmem:[#allocation6 + $0x1ee0] sm:$0xff]  ;;  %v3108_v55 = vld [vmem:[#allocation6 + $0x1ef0] sm:$0xff] }
 0x634   :  { %4113 = vmatpush1.bf16.msra.mxu1 %v2994_v61  ;;  %4441 = vmatpush1.bf16.msra.mxu0 %v2996_v11  ;;  %v3115_v61 = vld [vmem:[#allocation6 + $0x1f28] sm:$0xff]  ;;  %v3117_v11 = vld [vmem:[#allocation6 + $0x1f38] sm:$0xff] }
 0x635   :  { %4114 = vmatprep.subr.bf16.mxu1 %v3003_v53  ;;  %4442 = vmatprep.subr.bf16.mxu0 %v3005_v58  ;;  %v3114_v53 = vld [vmem:[#allocation6 + $0x1f20] sm:$0xff]  ;;  %v3116_v58 = vld [vmem:[#allocation6 + $0x1f30] sm:$0xff] }
 0x638   :  { %4115 = vmatpush1.bf16.msra.mxu1 %v3002_v59  ;;  %4443 = vmatpush1.bf16.msra.mxu0 %v3004_v8  ;;  %v3150_v59 = vsub.s32 1, %v7740_v32  ;;  %v3123_v8 = vld [vmem:[#allocation6 + $0x1f68] sm:$0xff] }
 0x639   :  { %4116 = vmatprep.subr.bf16.mxu1 %v3011_v22  ;;  %4444 = vmatprep.subr.bf16.mxu0 %v3013_v30  ;;  %v3125_v22 = vld [vmem:[#allocation6 + $0x1f78] sm:$0xff]  ;;  %v7924_v30 = vld [vmem:[#allocation13] sm:$0xff] }
 0x63c   :  { %4117 = vmatpush1.bf16.msra.mxu1 %v3010_v23  ;;  %4445 = vmatpush1.bf16.msra.mxu0 %v3012_v3  ;;  %v3158_v23 = vsub.s32 3, %v7740_v32  ;;  %v3122_v3 = vld [vmem:[#allocation6 + $0x1f60] sm:$0xff] }
 0x63d   :  { %4127 = vmatprep.subr.bf16.mxu1 %v3019_v2  ;;  %4455 = vmatprep.subr.bf16.mxu0 %v3021_v27  ;;  %v3124_v2 = vld [vmem:[#allocation6 + $0x1f70] sm:$0xff]  ;;  %v3151_v27 = vrot.slane %v7924_v30, %v3150_v59  ;;  %v5556_v59 = vld [vmem:[#allocation14 + $0xb8] sm:$0xff]  }
 0x63f   :  { %4119 = vmatmul.mubr.bf16.vlgmr.msra.gmra.mrb[4].mxu1 %v7871_v10  ;;  %4447 = vmatmul.mubr.bf16.vlgmr.msra.gmra.mrb[8].mxu0 %v7871_v10  ;;  %v3045_v10 = vld [vmem:[#allocation6 + $0x1cf8] sm:$0xff] }
 0x640   :  { %4128 = vmatpush1.bf16.msra.mxu1 %v3018_v5  ;;  %4456 = vmatpush1.bf16.msra.mxu0 %v3020_v25  ;;  %v3131_v5 = vld [vmem:[#allocation6 + $0x1fa8] sm:$0xff]  ;;  %v3133_v25 = vld [vmem:[#allocation6 + $0x1fb8] sm:$0xff] }
 0x641   :  { %4129 = vmatprep.subr.bf16.mxu1 %v3027_v7  ;;  %4457 = vmatprep.subr.bf16.mxu0 %v3029_v18  ;;  %v3159_v7 = vrot.slane %v7924_v30, %v3158_v23  ;;  %v3130_v18 = vld [vmem:[#allocation6 + $0x1fa0] sm:$0xff]  ;;  %v5558_v23 = vld [vmem:[#allocation14 + $0x1c0] sm:$0xff]  }
 0x642   :  { %4159 = vmatprep.mubr.bf16.mxu1 %v7873_v4  ;;  %4487 = vmatprep.mubr.bf16.mxu0 %v7873_v4  ;;  %v3050_v4 = vld [vmem:[#allocation6 + $0x1d20] sm:$0xff] }
 0x644   :  { %4130 = vmatpush1.bf16.msra.mxu1 %v3026_v57  ;;  %4458 = vmatpush1.bf16.msra.mxu0 %v3028_v60  ;;  %v3132_v57 = vld [vmem:[#allocation6 + $0x1fb0] sm:$0xff]  ;;  %v5384_v60 = vadd.f32 %v7903_v37, %v3151_v27 }
 0x645   :  { %4131 = vmatprep.subr.bf16.mxu1 %v3035_v36  ;;  %4459 = vmatprep.subr.bf16.mxu0 %v3037_v63  ;;  %v3139_v36 = vld [vmem:[#allocation6 + $0x1fe8] sm:$0xff]  ;;  %v3141_v63 = vld [vmem:[#allocation6 + $0x1ff8] sm:$0xff] }
 0x646   :  { %v5528_v37 = vld [vmem:[#allocation14 + $0x80] sm:$0xff]   ;;  %v5561_v27 = vld [vmem:[#allocation14 + $0x148] sm:$0xff]  }
 0x648   :  { %4132 = vmatpush1.bf16.msra.mxu1 %v3034_v50  ;;  %4460 = vmatpush1.bf16.msra.mxu0 %v3036_v0  ;;  %v5386_v50 = vadd.f32 %v7905_v9, %v3159_v7  ;;  %v3138_v0 = vld [vmem:[#allocation6 + $0x1fe0] sm:$0xff]  ;;  %v5564_v7 = vld [vmem:[#allocation14 + $0x188] sm:$0xff]  }
 0x649   :  { %4133 = vmatprep.subr.bf16.mxu1 %v3043_v48  ;;  %4461 = vmatprep.subr.bf16.mxu0 %v3045_v10  ;;  %v3140_v48 = vld [vmem:[#allocation6 + $0x1ff0] sm:$0xff] }
 0x64a   :  { %v5525_v10 = vld [vmem:[#allocation14 + $0x40] sm:$0xff]  }
 0x64c   :  { %4134 = vmatpush1.bf16.msra.mxu1 %v3042_v1  ;;  %4462 = vmatpush1.bf16.msra.mxu0 %v3044_v34  ;;  %v5526_v1 = vld [vmem:[#allocation14 + $0xc0] sm:$0xff]   ;;  %v4497_v34 = vmax.f32 %v5384_v60, 0.0  ;;  %v5567_v60 = vld [vmem:[#allocation14 + $0x110] sm:$0xff]  }
 0x64d   :  { %4135 = vmatprep.subr.bf16.mxu1 %v3051_v39  ;;  %4463 = vmatprep.subr.bf16.mxu0 %v3053_v6  ;;  %v4499_v39 = vmax.f32 %v5386_v50, 0.0  ;;  %v5527_v6 = vld [vmem:[#allocation14] sm:$0xff]   ;;  %v5570_v50 = vld [vmem:[#allocation14 + $0x1d8] sm:$0xff]  }
 0x64f   :  { %v4507_v9 = vpack.c.bf16 %v4499_v39, %v4499_v39  ;;  %v5576_v39 = vld [vmem:[#allocation14 + $0x1a0] sm:$0xff]  }
 0x650   :  { %4136 = vmatpush1.bf16.msra.mxu1 %v3050_v4  ;;  %4464 = vmatpush1.bf16.msra.mxu0 %v3052_v14  ;;  %v4505_v4 = vpack.c.bf16 %v4497_v34, %v4497_v34  ;;  %v5529_v14 = vld [vmem:[#allocation14 + $0x48] sm:$0xff]   ;;  %v5575_v34 = vld [vmem:[#allocation14 + $0x120] sm:$0xff]  }
 0x651   :  { %4137 = vmatprep.subr.bf16.mxu1 %v3059_v19  ;;  %4465 = vmatprep.subr.bf16.mxu0 %v3061_v13  ;;  %v5530_v19 = vld [vmem:[#allocation14 + $0xc8] sm:$0xff]  }
 0x652   :  { %v5531_v13 = vld [vmem:[#allocation14 + $0x8] sm:$0xff]  }
 0x654   :  { %4138 = vmatpush1.bf16.msra.mxu1 %v3058_v21  ;;  %4466 = vmatpush1.bf16.msra.mxu0 %v3060_v51  ;;  %v5532_v21 = vld [vmem:[#allocation14 + $0x88] sm:$0xff]   ;;  %v5533_v51 = vld [vmem:[#allocation14 + $0x50] sm:$0xff]  }
 0x655   :  { %4139 = vmatprep.subr.bf16.mxu1 %v3067_v15  ;;  %4467 = vmatprep.subr.bf16.mxu0 %v3069_v31  ;;  %v5534_v15 = vld [vmem:[#allocation14 + $0xd0] sm:$0xff]  }
 0x656   :  { %v5535_v31 = vld [vmem:[#allocation14 + $0x10] sm:$0xff]  }
 0x658   :  { %4140 = vmatpush1.bf16.msra.mxu1 %v3066_v16  ;;  %4468 = vmatpush1.bf16.msra.mxu0 %v3068_v17  ;;  %v5536_v16 = vld [vmem:[#allocation14 + $0x90] sm:$0xff]   ;;  %v5537_v17 = vld [vmem:[#allocation14 + $0x58] sm:$0xff]  }
 0x659   :  { %4141 = vmatprep.subr.bf16.mxu1 %v3075_v40  ;;  %4469 = vmatprep.subr.bf16.mxu0 %v3077_v20  ;;  %v5538_v40 = vld [vmem:[#allocation14 + $0xd8] sm:$0xff]  }
 0x65a   :  { %v5540_v20 = vld [vmem:[#allocation14 + $0x98] sm:$0xff]  }
 0x65c   :  { %4142 = vmatpush1.bf16.msra.mxu1 %v3074_v47  ;;  %4470 = vmatpush1.bf16.msra.mxu0 %v3076_v33  ;;  %v5541_v47 = vld [vmem:[#allocation14 + $0x60] sm:$0xff]  }
 0x65d   :  { %4143 = vmatprep.subr.bf16.mxu1 %v3083_v28  ;;  %4471 = vmatprep.subr.bf16.mxu0 %v3085_v24  ;;  %v5542_v33 = vld [vmem:[#allocation14 + $0xe0] sm:$0xff]   ;;  %v3146_v24 = vsub.s32 0, %v7740_v32 }
 0x65e   :  { %v5543_v28 = vld [vmem:[#allocation14 + $0x20] sm:$0xff]  }
 0x660   :  { %4144 = vmatpush1.bf16.msra.mxu1 %v3082_v41  ;;  %4472 = vmatpush1.bf16.msra.mxu0 %v3084_v43  ;;  %v5544_v41 = vld [vmem:[#allocation14 + $0xa0] sm:$0xff]   ;;  %v5545_v43 = vld [vmem:[#allocation14 + $0x68] sm:$0xff]  }
 0x661   :  { %4145 = vmatprep.subr.bf16.mxu1 %v3091_v42  ;;  %4473 = vmatprep.subr.bf16.mxu0 %v3093_v12  ;;  %v3154_v42 = vsub.s32 2, %v7740_v32  ;;  %v5546_v12 = vld [vmem:[#allocation14 + $0xe8] sm:$0xff]  }
 0x664   :  { %4146 = vmatpush1.bf16.msra.mxu1 %v3090_v52  ;;  %4474 = vmatpush1.bf16.msra.mxu0 %v3092_v38  ;;  %v5547_v52 = vld [vmem:[#allocation14 + $0x28] sm:$0xff]   ;;  %v3147_v38 = vrot.slane %v7924_v30, %v3146_v24 }
 0x665   :  { %4147 = vmatprep.subr.bf16.mxu1 %v3099_v46  ;;  %4475 = vmatprep.subr.bf16.mxu0 %v3101_v45  ;;  %v5548_v46 = vld [vmem:[#allocation14 + $0xa8] sm:$0xff]   ;;  %v5549_v45 = vld [vmem:[#allocation14 + $0x70] sm:$0xff]  }
 0x668   :  { %4148 = vmatpush1.bf16.msra.mxu1 %v3098_v26  ;;  %4476 = vmatpush1.bf16.msra.mxu0 %v3100_v44  ;;  %v3155_v26 = vrot.slane %v7924_v30, %v3154_v42  ;;  %v5550_v44 = vld [vmem:[#allocation14 + $0xf0] sm:$0xff]  }
 0x669   :  { %4149 = vmatprep.subr.bf16.mxu1 %v3107_v56  ;;  %4477 = vmatprep.subr.bf16.mxu0 %v3109_v54  ;;  %v5551_v56 = vld [vmem:[#allocation14 + $0x30] sm:$0xff]   ;;  %v5383_v54 = vadd.f32 %v7899_v29, %v3147_v38  ;;  %v5559_v29 = vld [vmem:[#allocation14 + $0x100] sm:$0xff]  }
 0x66c   :  { %4150 = vmatpush1.bf16.msra.mxu1 %v3106_v62  ;;  %4478 = vmatpush1.bf16.msra.mxu0 %v3108_v55  ;;  %v5552_v62 = vld [vmem:[#allocation14 + $0xb0] sm:$0xff]   ;;  %v5553_v55 = vld [vmem:[#allocation14 + $0x78] sm:$0xff]  }
 0x66d   :  { %4151 = vmatprep.subr.bf16.mxu1 %v3115_v61  ;;  %4479 = vmatprep.subr.bf16.mxu0 %v3117_v11  ;;  %v5385_v61 = vadd.f32 %v7901_v35, %v3155_v26  ;;  %v5554_v11 = vld [vmem:[#allocation14 + $0xf8] sm:$0xff]  }
 0x670   :  { %4152 = vmatpush1.bf16.msra.mxu1 %v3114_v53  ;;  %4480 = vmatpush1.bf16.msra.mxu0 %v3116_v58  ;;  %v5555_v53 = vld [vmem:[#allocation14 + $0x38] sm:$0xff]   ;;  %v4496_v58 = vmax.f32 %v5383_v54, 0.0 }
 0x671   :  { %4153 = vmatprep.subr.bf16.mxu1 %v3123_v8  ;;  %4481 = vmatprep.subr.bf16.mxu0 %v3125_v22  ;;  %v5557_v8 = vld [vmem:[#allocation14 + $0x140] sm:$0xff]   ;;  %v4498_v22 = vmax.f32 %v5385_v61, 0.0 }
 0x673   :  { %v4506_v35 = vpack.c.bf16 %v4498_v22, %v4498_v22  ;;  %v5220_v22 = vld [vmem:[#allocation16] ss:$0 sm:$0xff] }
 0x674   :  { %4154 = vmatpush1.bf16.msra.mxu1 %v3122_v3  ;;  %4482 = vmatpush1.bf16.msra.mxu0 %v3124_v2  ;;  %v4504_v3 = vpack.c.bf16 %v4496_v58, %v4496_v58  ;;  %v5560_v2 = vld [vmem:[#allocation14 + $0x180] sm:$0xff]  }
 0x675   :  { %4155 = vmatprep.subr.bf16.mxu1 %v3131_v5  ;;  %4483 = vmatprep.subr.bf16.mxu0 %v3133_v25  ;;  %v5562_v5 = vld [vmem:[#allocation14 + $0x1c8] sm:$0xff]  }
 0x676   :  { %v5563_v25 = vld [vmem:[#allocation14 + $0x108] sm:$0xff]  }
 0x678   :  { %4156 = vmatpush1.bf16.msra.mxu1 %v3130_v18  ;;  %4484 = vmatpush1.bf16.msra.mxu0 %v3132_v57  ;;  %v5565_v18 = vld [vmem:[#allocation14 + $0x150] sm:$0xff]  }
 0x679   :  { %4157 = vmatprep.subr.bf16.mxu1 %v3139_v36  ;;  %4485 = vmatprep.subr.bf16.mxu0 %v3141_v63  ;;  %v5566_v57 = vld [vmem:[#allocation14 + $0x1d0] sm:$0xff]   ;;  %v5569_v63 = vld [vmem:[#allocation14 + $0x158] sm:$0xff]  }
 0x67a   :  { %v5568_v36 = vld [vmem:[#allocation14 + $0x190] sm:$0xff]  }
 0x67c   :  { %4158 = vmatpush1.bf16.msra.mxu1 %v3138_v0  ;;  %4486 = vmatpush1.bf16.msra.mxu0 %v3140_v48  ;;  %v5571_v0 = vld [vmem:[#allocation14 + $0x118] sm:$0xff]  }
 0x67d   :  { %5289 = vmatprep.subr.bf16.mxu1 %v5525_v10  ;;  %5311 = vmatprep.subr.bf16.mxu0 %v5526_v1  ;;  %v5572_v48 = vld [vmem:[#allocation14 + $0x198] sm:$0xff]   ;;  %v5573_v10 = vld [vmem:[#allocation14 + $0x160] sm:$0xff]  }
 0x67e   :  { %v5574_v1 = vld [vmem:[#allocation14 + $0x1e0] sm:$0xff]  }
 0x67f   :  { %4160 = vmatmul.mubr.bf16.vlgmr.msra.gmra.mrb[4].mxu1 %v7881_v49  ;;  %4488 = vmatmul.mubr.bf16.vlgmr.msra.gmra.mrb[8].mxu0 %v7881_v49  ;;  %v5539_v49 = vld [vmem:[#allocation14 + $0x18] sm:$0xff]  }
 0x680   :  { %5290 = vmatpush3.bf16.msra.mxu1 %v5527_v6  ;;  %5063 = vmatprep.mubr.bf16.mxu1 %v4505_v4  ;;  %v5577_v6 = vld [vmem:[#allocation14 + $0x168] sm:$0xff]  }
 0x681   :  { %5312 = vmatpush3.bf16.msra.mxu0 %v5528_v37  ;;  %5103 = vmatprep.mubr.bf16.mxu0 %v4507_v9  ;;  %v5578_v37 = vld [vmem:[#allocation14 + $0x1e8] sm:$0xff]   ;;  %v5582_v9 = vld [vmem:[#allocation14 + $0x1f0] sm:$0xff]  }
 0x682   :  { %5291 = vmatprep.subr.bf16.mxu1 %v5529_v14  ;;  %5313 = vmatprep.subr.bf16.mxu0 %v5530_v19  ;;  %v5579_v4 = vld [vmem:[#allocation14 + $0x128] sm:$0xff]   ;;  %v5581_v19 = vld [vmem:[#allocation14 + $0x170] sm:$0xff]  }
 0x683   :  { %v5580_v14 = vld [vmem:[#allocation14 + $0x1a8] sm:$0xff]  }
 0x684   :  { %5292 = vmatpush3.bf16.msra.mxu1 %v5531_v13  ;;  %v5583_v13 = vld [vmem:[#allocation14 + $0x130] sm:$0xff]  }
 0x685   :  { %5314 = vmatpush3.bf16.msra.mxu0 %v5532_v21  ;;  %5293 = vmatprep.subr.bf16.mxu1 %v5533_v51  ;;  %v5584_v21 = vld [vmem:[#allocation14 + $0x1b0] sm:$0xff]   ;;  %v5585_v51 = vld [vmem:[#allocation14 + $0x178] sm:$0xff]  }
 0x686   :  { %5315 = vmatprep.subr.bf16.mxu0 %v5534_v15  ;;  %v5586_v15 = vld [vmem:[#allocation14 + $0x1f8] sm:$0xff]  }
 0x688   :  { %5294 = vmatpush3.bf16.msra.mxu1 %v5535_v31  ;;  %v5587_v31 = vld [vmem:[#allocation14 + $0x138] sm:$0xff]  }
 0x689   :  { %5316 = vmatpush3.bf16.msra.mxu0 %v5536_v16  ;;  %5295 = vmatprep.subr.bf16.mxu1 %v5537_v17  ;;  %v5588_v16 = vld [vmem:[#allocation14 + $0x1b8] sm:$0xff]   ;;  %v3162_v17 = vsub.s32 4, %v7740_v32 }
 0x68a   :  { %5317 = vmatprep.subr.bf16.mxu0 %v5538_v40  ;;  %v3170_v40 = vsub.s32 6, %v7740_v32 }
 0x68c   :  { %5296 = vmatpush3.bf16.msra.mxu1 %v5539_v49  ;;  %v3166_v49 = vsub.s32 5, %v7740_v32 }
 0x68d   :  { %5318 = vmatpush3.bf16.msra.mxu0 %v5540_v20  ;;  %5297 = vmatprep.subr.bf16.mxu1 %v5541_v47  ;;  %v3174_v20 = vsub.s32 7, %v7740_v32  ;;  %v3163_v47 = vrot.slane %v7924_v30, %v3162_v17 }
 0x68e   :  { %5319 = vmatprep.subr.bf16.mxu0 %v5542_v33  ;;  %v3171_v33 = vrot.slane %v7924_v30, %v3170_v40 }
 0x68f   :  { %v3175_v24 = vrot.slane %v7924_v30, %v3174_v20 }
 0x690   :  { %5298 = vmatpush3.bf16.msra.mxu1 %v5543_v28  ;;  %v3167_v28 = vrot.slane %v7924_v30, %v3166_v49 }
 0x691   :  { %5320 = vmatpush3.bf16.msra.mxu0 %v5544_v41  ;;  %5299 = vmatprep.subr.bf16.mxu1 %v5545_v43 }
 0x692   :  { %5321 = vmatprep.subr.bf16.mxu0 %v5546_v12 }
 0x694   :  { %5300 = vmatpush3.bf16.msra.mxu1 %v5547_v52 }
 0x695   :  { %5322 = vmatpush3.bf16.msra.mxu0 %v5548_v46  ;;  %5301 = vmatprep.subr.bf16.mxu1 %v5549_v45 }
 0x696   :  { %5323 = vmatprep.subr.bf16.mxu0 %v5550_v44 }
 0x698   :  { %5302 = vmatpush3.bf16.msra.mxu1 %v5551_v56 }
 0x699   :  { %5324 = vmatpush3.bf16.msra.mxu0 %v5552_v62  ;;  %5303 = vmatprep.subr.bf16.mxu1 %v5553_v55 }
 0x69a   :  { %5325 = vmatprep.subr.bf16.mxu0 %v5554_v11 }
 0x69c   :  { %5304 = vmatpush3.bf16.msra.mxu1 %v5555_v53 }
 0x69d   :  { %5326 = vmatpush3.bf16.msra.mxu0 %v5556_v59  ;;  %5333 = vmatprep.subr.bf16.mxu1 %v5557_v8 }
 0x69e   :  { %5355 = vmatprep.subr.bf16.mxu0 %v5558_v23 }
 0x69f   :  { %5064 = vmatmul.mubr.bf16.vlgmr.msra.gmra.mrb[8].mxu1 %v4504_v3 }
 0x6a0   :  { %5104 = vmatmul.mubr.bf16.vlgmr.msra.gmra.mrb[12].mxu0 %v4506_v35  ;;  %5334 = vmatpush3.bf16.msra.mxu1 %v5559_v29 }
 0x6a1   :  { %5356 = vmatpush3.bf16.msra.mxu0 %v5560_v2  ;;  %5335 = vmatprep.subr.bf16.mxu1 %v5561_v27 }
 0x6a2   :  { %5357 = vmatprep.subr.bf16.mxu0 %v5562_v5 }
 0x6a4   :  { %5336 = vmatpush3.bf16.msra.mxu1 %v5563_v25 }
 0x6a5   :  { %5358 = vmatpush3.bf16.msra.mxu0 %v5564_v7  ;;  %5337 = vmatprep.subr.bf16.mxu1 %v5565_v18 }
 0x6a6   :  { %5359 = vmatprep.subr.bf16.mxu0 %v5566_v57 }
 0x6a8   :  { %5338 = vmatpush3.bf16.msra.mxu1 %v5567_v60 }
 0x6a9   :  { %5360 = vmatpush3.bf16.msra.mxu0 %v5568_v36  ;;  %5339 = vmatprep.subr.bf16.mxu1 %v5569_v63 }
 0x6aa   :  { %5361 = vmatprep.subr.bf16.mxu0 %v5570_v50 }
 0x6ac   :  { %5340 = vmatpush3.bf16.msra.mxu1 %v5571_v0 }
 0x6ad   :  { %5362 = vmatpush3.bf16.msra.mxu0 %v5572_v48  ;;  %5341 = vmatprep.subr.bf16.mxu1 %v5573_v10 }
 0x6ae   :  { %5363 = vmatprep.subr.bf16.mxu0 %v5574_v1 }
 0x6b0   :  { %5342 = vmatpush3.bf16.msra.mxu1 %v5575_v34 }
 0x6b1   :  { %5364 = vmatpush3.bf16.msra.mxu0 %v5576_v39  ;;  %5343 = vmatprep.subr.bf16.mxu1 %v5577_v6 }
 0x6b2   :  { %5365 = vmatprep.subr.bf16.mxu0 %v5578_v37 }
 0x6b4   :  { %5344 = vmatpush3.bf16.msra.mxu1 %v5579_v4 }
 0x6b5   :  { %5366 = vmatpush3.bf16.msra.mxu0 %v5580_v14  ;;  %5345 = vmatprep.subr.bf16.mxu1 %v5581_v19 }
 0x6b6   :  { %5367 = vmatprep.subr.bf16.mxu0 %v5582_v9 }
 0x6b8   :  { %5346 = vmatpush3.bf16.msra.mxu1 %v5583_v13 }
 0x6b9   :  { %5368 = vmatpush3.bf16.msra.mxu0 %v5584_v21  ;;  %5347 = vmatprep.subr.bf16.mxu1 %v5585_v51 }
 0x6ba   :  { %5369 = vmatprep.subr.bf16.mxu0 %v5586_v15 }
 0x6bc   :  { %5348 = vmatpush3.bf16.msra.mxu1 %v5587_v31 }
 0x6bd   :  { %5370 = vmatpush3.bf16.msra.mxu0 %v5588_v16 }
 0x752   :  { %v4161_v41 = vpop.f32.mrb[4].mxu1  ;;  %v4489_v43 = vpop.f32.mrb[8].mxu0 }
 0x753   :  { %v5387_v42 = vadd.f32 %v4161_v41, %v3163_v47  ;;  %v5389_v12 = vadd.f32 %v4489_v43, %v3171_v33  ;;  %v4163_v52 = vpop.f32.mrb[5].mxu1  ;;  %v4491_v38 = vpop.f32.mrb[9].mxu0 }
 0x754   :  { %v5388_v46 = vadd.f32 %v4163_v52, %v3167_v28  ;;  %v5390_v45 = vadd.f32 %v4491_v38, %v3175_v24  ;;  %v4165_v26 = vpop.f32.mrb[6].mxu1  ;;  %v4493_v44 = vpop.f32.mrb[10].mxu0 }
 0x755   :  { %v4500_v56 = vmax.f32 %v5387_v42, 0.0  ;;  %v4502_v32 = vmax.f32 %v5389_v12, 0.0  ;;  %v4166_v54 = vpop.f32.mrb[7].mxu1  ;;  %v4494_v62 = vpop.f32.mrb[11].mxu0 }
 0x756   :  { %v4501_v55 = vmax.f32 %v5388_v46, 0.0  ;;  %v4503_v61 = vmax.f32 %v5390_v45, 0.0 }
 0x757   :  { %v4508_v58 = vpack.c.bf16 %v4500_v56, %v4500_v56  ;;  %v4510_v30 = vpack.c.bf16 %v4502_v32, %v4502_v32 }
 0x758   :  { %v4509_v11 = vpack.c.bf16 %v4501_v55, %v4501_v55  ;;  %v4511_v53 = vpack.c.bf16 %v4503_v61, %v4503_v61 }
 0x75a   :  { %5143 = vmatprep.mubr.bf16.mxu1 %v4509_v11  ;;  %5183 = vmatprep.mubr.bf16.mxu0 %v4511_v53 }
 0x75b   :  { %5144 = vmatmul.mubr.bf16.vlgmr.msra.gmra.mrb[12].mxu1 %v4508_v58  ;;  %5184 = vmatmul.mubr.bf16.vlgmr.msra.gmra.mrb[16].mxu0 %v4510_v30 }
 0x772   :  { %v5305_v59 = vpop.f32.mrb[8].mxu1 }
 0x773   :  { %v5327_v8 = vpop.f32.mrb[12].mxu0  ;;  %v5306_v23 = vpop.f32.mrb[9].mxu1 }
 0x774   :  { %v5307_v29 = vadd.f32 %v5306_v23, %v5305_v59  ;;  %v5328_v3 = vpop.f32.mrb[13].mxu0  ;;  %v5308_v2 = vpop.f32.mrb[10].mxu1 }
 0x775   :  { %v5329_v27 = vadd.f32 %v5328_v3, %v5327_v8  ;;  %v5330_v35 = vpop.f32.mrb[14].mxu0  ;;  %v5309_v5 = vpop.f32.mrb[11].mxu1 }
 0x776   :  { %v5066_v25 = vadd.f32 %v5307_v29, %v5220_v22  ;;  %v5331_v7 = vpop.f32.mrb[15].mxu0 }
 0x778   :  { %v5106_v18 = vadd.f32 %v5329_v27, %v5066_v25 }
 0x82e   :  { %v5349_v57 = vpop.f32.mrb[12].mxu1  ;;  %v5371_v60 = vpop.f32.mrb[16].mxu0 }
 0x82f   :  { %v5350_v36 = vpop.f32.mrb[13].mxu1  ;;  %v5372_v63 = vpop.f32.mrb[17].mxu0 }
 0x830   :  { %v5351_v50 = vadd.f32 %v5350_v36, %v5349_v57  ;;  %v5373_v0 = vadd.f32 %v5372_v63, %v5371_v60  ;;  %v5352_v48 = vpop.f32.mrb[14].mxu1  ;;  %v5374_v10 = vpop.f32.mrb[18].mxu0 }
 0x831   :  { %v5353_v1 = vpop.f32.mrb[15].mxu1  ;;  %v5375_v34 = vpop.f32.mrb[19].mxu0 }
 0x832   :  { %v5146_v39 = vadd.f32 %v5351_v50, %v5106_v18 }
 0x834   :  { %v5186_v6 = vadd.f32 %v5373_v0, %v5146_v39 }
 0x836   :  { %5191 = vst [vmem:[#allocation17] sm:$0x3] %v5186_v6 }
 0x837   :  { %5710 = shalt.err (!%p5707_p2)
}
 0x838   :  { %s5711_s21 = scalar_lea.hbm %s7966_s7, 32 }
 0x839   :  { %p5712_p3 = scmp.ne.s32.totalorder %s7966_s7, %s5711_s21  ;;  %p5715_p4 = scmp.lt.u32.totalorder %s5711_s21, %s7966_s7 }
 0x83b   :  { %p5717_p5 = pnand %p5715_p4, %p5712_p3 }
 0x83d   :  { %5720 = shalt.err (!%p5717_p5)
}
 0x83e   :  { %5201 = dma.vmem_to_hbm [thread:$0]  %s5199_s18, 32, %s7966_s7, [#allocation10]  }
 0x83f   :  { %5729 = dma.done.wait [#allocation10], 32  }
 0x840   :  { %5730 = vsyncadd [#allocation10], 4294967264 }
 0x841   :  { %5205 = vsyncpa [#allocation9], 1 }
 0x842   :  { %5206 = vsyncpa [#allocation12], 1 }
 0x843   :  { %5207 = vsyncpa [#allocation15], 1 }
 0x844   :  { %5208 = vsyncpa [#allocation10], 1 }
 0x845   :  { %5209 = vsyncmov [#allocation7] }
 0x848   :  { %s5210_s29 = vpop.sfrf %5209 }
 0x849   :  { %p5285_p6 = scmp.ne.s32.totalorder %s5210_s29, 0 }
 0x84b   :  { %5214 = shalt.err (%p5285_p6)  }

</bundles_post_ra>
